<compile_context>
chip_gen: v5e
topology: v5e:2x2
jax: 0.10.0
libtpu: 0.0.40
codegen_flags: <defaults>
</compile_context>

<pallas_src>
from collections import namedtuple

import numpy as np
import jax
import jax.numpy as jnp
from jax.experimental import pallas as pl
from jax.experimental.pallas import tpu as pltpu

BN_EPS = 1e-5

Genotype = namedtuple("Genotype", "normal normal_concat reduce reduce_concat")

# Canonical DARTS_V2 genotype; Cell built with reduction=False, reduction_prev=False.
DARTS_V2 = Genotype(
    normal=[
        ("sep_conv_3x3", 0), ("sep_conv_3x3", 1),
        ("sep_conv_3x3", 0), ("sep_conv_3x3", 1),
        ("sep_conv_3x3", 1), ("skip_connect", 0),
        ("skip_connect", 0), ("dil_conv_3x3", 2),
    ],
    normal_concat=list(range(2, 6)),
    reduce=[
        ("max_pool_3x3", 0), ("max_pool_3x3", 1),
        ("skip_connect", 2), ("max_pool_3x3", 1),
        ("max_pool_3x3", 0), ("skip_connect", 2),
        ("skip_connect", 2), ("max_pool_3x3", 1),
    ],
    reduce_concat=list(range(2, 6)),
)


def _tree_sum(terms):
    """Pairwise (tree) sum to shorten the VPU dependency chain."""
    terms = list(terms)
    while len(terms) > 1:
        nxt = [terms[i] + terms[i + 1] for i in range(0, len(terms) - 1, 2)]
        if len(terms) % 2:
            nxt.append(terms[-1])
        terms = nxt
    return terms[0]


# --------------------------- fused cell kernel -------------------------------

def _make_cell_kernel(plan, indices, concat, mask_index, c, h, w):
    """plan[op] is a static list of stages {dw, pw, dil} (empty = skip_connect);
    indices/concat from genotype; mask_index maps (dy, dx) -> row of mask_ref."""
    hw = h * w
    steps = len(indices) // 2

    def kernel(s0_ref, s1_ref, p0w_ref, p0b_ref, p1w_ref, p1b_ref,
               dw_ref, pw_ref, pb_ref, mask_ref, out_ref):

        def pw_conv(x, w2d, b_col):
            # 1x1 conv + folded-BN bias as C_in broadcast MACs on the VPU:
            # out[co, p] = sum_ci w2d[co, ci] * x[ci, p] + b[co]
            c_in = x.shape[0]
            terms = [w2d[:, ci:ci + 1] * x[ci:ci + 1, :] for ci in range(c_in)]
            return _tree_sum(terms) + b_col

        def relu_dw3x3(x, k, dil):
            # ReLU -> depthwise 3x3 ("same", stride 1, dilation dil):
            # 9 lane-rotated taps (pltpu.roll, XLU) * precomputed border masks.
            xr = jnp.maximum(x, 0.0)
            wst = dw_ref[k]                                    # (C, 9) per-channel taps
            terms = []
            for ky in range(3):
                for kx in range(3):
                    dy, dx = (ky - 1) * dil, (kx - 1) * dil
                    off = dy * w + dx
                    if off == 0:
                        src = xr
                    else:
                        src = pltpu.roll(xr, shift=(-off) % hw, axis=1)
                        src = src * mask_ref[mask_index[(dy, dx)]]   # (1, hw) mask
                    t = ky * 3 + kx
                    terms.append(src * wst[:, t:t + 1])
            return _tree_sum(terms)

        def apply_op(op_idx, x):
            y = x
            for st in plan[op_idx]:                            # empty => identity
                y = relu_dw3x3(y, st["dw"], st["dil"])
                y = pw_conv(y, pw_ref[st["pw"]], pb_ref[st["pw"]])
            return y

        # preprocess0 / preprocess1 : ReLUConvBN(C_in, C, 1, 1, 0), BN folded.
        s0 = pw_conv(jnp.maximum(s0_ref[...], 0.0), p0w_ref[...], p0b_ref[...])
        s1 = pw_conv(jnp.maximum(s1_ref[...], 0.0), p1w_ref[...], p1b_ref[...])

        states = [s0, s1]
        for i in range(steps):
            h1 = apply_op(2 * i, states[indices[2 * i]])
            h2 = apply_op(2 * i + 1, states[indices[2 * i + 1]])
            states.append(h1 + h2)                             # fused per-step add

        # Single lane-dense store of the channel concat: (4C, H*W).
        out_ref[...] = jnp.concatenate([states[i] for i in concat], axis=0)

    return kernel


# ------------------------------ wrapper --------------------------------------

def _fold_bn(w_io, bn):
    """Fold eval-mode BN after a 1x1 conv. w_io: (C_in, C_out).
    Returns kernel layout: (C_out, C_in) weight and (C_out, 1) bias."""
    scale = bn["gamma"] / jnp.sqrt(bn["var"] + BN_EPS)
    w_oi = (w_io * scale[None, :]).T
    b = (bn["beta"] - bn["mean"] * scale).reshape(-1, 1)
    return w_oi, b


def _build_tap_masks(h, w, dilations):
    """Precompute "same"-padding border masks for every (dy, dx) tap offset."""
    masks, index = [], {}
    rr = np.arange(h).reshape(h, 1)
    cc = np.arange(w).reshape(1, w)
    for d in sorted(set(dilations)):
        for ky in range(3):
            for kx in range(3):
                dy, dx = (ky - 1) * d, (kx - 1) * d
                if (dy, dx) == (0, 0) or (dy, dx) in index:
                    continue
                m = ((rr + dy >= 0) & (rr + dy < h) & (cc + dx >= 0) & (cc + dx < w))
                index[(dy, dx)] = len(masks)
                masks.append(m.astype(np.float32).reshape(1, h * w))
    if not masks:                       # degenerate all-skip genotype
        masks.append(np.zeros((1, h * w), np.float32))
    return jnp.asarray(np.stack(masks)), index      # (n_mask, 1, H*W)


def cell_forward(params, genotype, s0_nchw, s1_nchw, drop_prob=0.0):
    # TODO(synk): drop_path / training-mode BN / aux-skip / reduction cell not implemented.
    del drop_prob
    op_names, indices = zip(*genotype.normal)
    indices = tuple(int(i) for i in indices)
    concat = tuple(int(i) for i in genotype.normal_concat)

    n, c_pp, h, w = s0_nchw.shape
    c_p = s1_nchw.shape[1]
    c = params["pre0"]["w"].shape[1]
    hw = h * w

    # NCHW -> (N, C, H*W): pure reshape (no transpose). Pixels on lanes (dense),
    # channels on sublanes.
    s0 = s0_nchw.reshape(n, c_pp, hw).astype(jnp.float32)
    s1 = s1_nchw.reshape(n, c_p, hw).astype(jnp.float32)

    p0w, p0b = _fold_bn(params["pre0"]["w"], params["pre0"]["bn"])
    p1w, p1b = _fold_bn(params["pre1"]["w"], params["pre1"]["bn"])

    # Static per-op plan + stacked weight tensors.
    plan, dw_list, pw_list, pb_list, dils = [], [], [], [], []
    for op_i, name in enumerate(op_names):
        p = params["ops"][op_i]
        stages = []
        if name == "sep_conv_3x3":
            # ReLU->dw3x3->1x1->BN->ReLU->dw3x3->1x1->BN
            for dwk, pwk, bnk in (("dw1", "pw1", "bn1"), ("dw2", "pw2", "bn2")):
                we, be = _fold_bn(p[pwk], p[bnk])
                dw_list.append(p[dwk].T)                       # (C, 9)
                pw_list.append(we); pb_list.append(be)
                stages.append(dict(dw=len(dw_list) - 1, pw=len(pw_list) - 1, dil=1))
                dils.append(1)
        elif name == "dil_conv_3x3":
            # ReLU->dw3x3(dil=2,pad=2)->1x1->BN
            we, be = _fold_bn(p["pw"], p["bn"])
            dw_list.append(p["dw"].T)
            pw_list.append(we); pb_list.append(be)
            stages.append(dict(dw=len(dw_list) - 1, pw=len(pw_list) - 1, dil=2))
            dils.append(2)
        elif name == "skip_connect":
            pass                                               # identity (stride 1)
        else:
            raise NotImplementedError(name)
        plan.append(stages)

    if not dw_list:                                            # keep stacks non-empty
        dw_list = [jnp.zeros((c, 9), jnp.float32)]
        pw_list = [jnp.zeros((c, c), jnp.float32)]
        pb_list = [jnp.zeros((c, 1), jnp.float32)]

    dw = jnp.stack(dw_list)        # (n_stage, C, 9)  depthwise taps, channel-major
    pw = jnp.stack(pw_list)        # (n_stage, C, C)  (C_out, C_in), BN scale folded
    pb = jnp.stack(pb_list)        # (n_stage, C, 1)  folded BN bias

    masks, mask_index = _build_tap_masks(h, w, dils)           # (n_mask, 1, H*W)

    c_out = len(concat) * c
    kernel = _make_cell_kernel(plan, indices, concat, mask_index, c, h, w)

    out = pl.pallas_call(
        kernel,
        out_shape=jax.ShapeDtypeStruct((n, c_out, hw), jnp.float32),
        grid=(n,),
        in_specs=[
            pl.BlockSpec((None, c_pp, hw), lambda i: (i, 0, 0)),
            pl.BlockSpec((None, c_p, hw), lambda i: (i, 0, 0)),
            pl.BlockSpec(p0w.shape, lambda i: (0, 0)),
            pl.BlockSpec(p0b.shape, lambda i: (0, 0)),
            pl.BlockSpec(p1w.shape, lambda i: (0, 0)),
            pl.BlockSpec(p1b.shape, lambda i: (0, 0)),
            pl.BlockSpec(dw.shape, lambda i: (0, 0, 0)),
            pl.BlockSpec(pw.shape, lambda i: (0, 0, 0)),
            pl.BlockSpec(pb.shape, lambda i: (0, 0, 0)),
            pl.BlockSpec(masks.shape, lambda i: (0, 0, 0)),
        ],
        out_specs=pl.BlockSpec((None, c_out, hw), lambda i: (i, 0, 0)),
        compiler_params=pltpu.CompilerParams(dimension_semantics=("parallel",)),
    )(s0, s1, p0w, p0b, p1w, p1b, dw, pw, pb, masks)

    return out.reshape(n, c_out, h, w)                         # back to NCHW


# ------------------------------ parameter setup ------------------------------

def _bn_params(c):
    # PyTorch BatchNorm2d default init: gamma=1, beta=0, running stats 0/1.
    return dict(gamma=jnp.ones((c,), jnp.float32), beta=jnp.zeros((c,), jnp.float32),
                mean=jnp.zeros((c,), jnp.float32), var=jnp.ones((c,), jnp.float32))


def init_cell_params(key, genotype, c_prev_prev, c_prev, c):
    keys = iter(jax.random.split(key, 128))

    def wmat(shape):
        return 0.1 * jax.random.normal(next(keys), shape, jnp.float32)

    params = {
        "pre0": dict(w=wmat((c_prev_prev, c)), bn=_bn_params(c)),   # ReLUConvBN(C_pp, C)
        "pre1": dict(w=wmat((c_prev, c)), bn=_bn_params(c)),        # ReLUConvBN(C_p,  C)
        "ops": [],
    }
    for name, _idx in genotype.normal:
        if name == "sep_conv_3x3":
            p = dict(dw1=wmat((9, c)), pw1=wmat((c, c)), bn1=_bn_params(c),
                     dw2=wmat((9, c)), pw2=wmat((c, c)), bn2=_bn_params(c))
        elif name == "dil_conv_3x3":
            p = dict(dw=wmat((9, c)), pw=wmat((c, c)), bn=_bn_params(c))
        else:  # skip_connect
            p = dict()
        params["ops"].append(p)
    return params


# --------------------------- pure-JAX reference -------------------------------

def _ref_relu_dw3x3(x, w9c, dil):
    xr = jnp.maximum(x, 0.0)
    xp = jnp.pad(xr, ((0, 0), (dil, dil), (dil, dil), (0, 0)))
    h, w = x.shape[1], x.shape[2]
    out = jnp.zeros_like(x)
    for ky in range(3):
        for kx in range(3):
            out = out + xp[:, ky * dil:ky * dil + h, kx * dil:kx * dil + w, :] * w9c[ky * 3 + kx]
    return out


def _ref_pw_bn(x, w2d, bn, relu_first=False):
    if relu_first:
        x = jnp.maximum(x, 0.0)
    y = jnp.einsum("nhwc,co->nhwo", x, w2d, precision=jax.lax.Precision.HIGHEST)
    inv = 1.0 / jnp.sqrt(bn["var"] + BN_EPS)
    return (y - bn["mean"]) * inv * bn["gamma"] + bn["beta"]


def cell_forward_reference(params, genotype, s0_nchw, s1_nchw):
    s0 = jnp.transpose(s0_nchw, (0, 2, 3, 1)).astype(jnp.float32)
    s1 = jnp.transpose(s1_nchw, (0, 2, 3, 1)).astype(jnp.float32)
    s0 = _ref_pw_bn(s0, params["pre0"]["w"], params["pre0"]["bn"], relu_first=True)
    s1 = _ref_pw_bn(s1, params["pre1"]["w"], params["pre1"]["bn"], relu_first=True)
    op_names, indices = zip(*genotype.normal)
    states = [s0, s1]
    for i in range(len(op_names) // 2):
        hs = []
        for j in (2 * i, 2 * i + 1):
            name, x, p = op_names[j], states[indices[j]], params["ops"][j]
            if name == "sep_conv_3x3":
                y = _ref_relu_dw3x3(x, p["dw1"], 1)
                y = _ref_pw_bn(y, p["pw1"], p["bn1"])
                y = _ref_relu_dw3x3(y, p["dw2"], 1)
                y = _ref_pw_bn(y, p["pw2"], p["bn2"])
            elif name == "dil_conv_3x3":
                y = _ref_relu_dw3x3(x, p["dw"], 2)
                y = _ref_pw_bn(y, p["pw"], p["bn"])
            else:
                y = x
            hs.append(y)
        states.append(hs[0] + hs[1])
    out = jnp.concatenate([states[i] for i in genotype.normal_concat], axis=-1)
    return jnp.transpose(out, (0, 3, 1, 2))


# ----------------------------------- main -------------------------------------

if __name__ == "__main__":
    key = jax.random.PRNGKey(0)
    kp, k0, k1 = jax.random.split(key, 3)

    N, C_PP, C_P, C, H, W = 2, 8, 8, 8, 16, 16    # H*W = 256 (lane-dense)
    genotype = DARTS_V2

    params = init_cell_params(kp, genotype, C_PP, C_P, C)
    s0 = jax.random.normal(k0, (N, C_PP, H, W), jnp.float32)
    s1 = jax.random.normal(k1, (N, C_P, H, W), jnp.float32)

    fwd = jax.jit(lambda p, a, b: cell_forward(p, genotype, a, b, drop_prob=0.0))
    out = jax.block_until_ready(fwd(params, s0, s1))

    expected_shape = (N, len(genotype.normal_concat) * C, H, W)
    assert out.shape == expected_shape, (out.shape, expected_shape)
    assert out.dtype == jnp.float32
    assert bool(jnp.all(jnp.isfinite(out)))

    ref = cell_forward_reference(params, genotype, s0, s1)
    err = float(jnp.max(jnp.abs(out - ref)))
    assert err < 5e-3, f"max |pallas - reference| = {err}"

    print("KERNEL_OK")
</pallas_src>

<mosaic_0001>
module attributes {stable_mosaic.version = 11 : i64} {
  func.func @kernel(%arg0: i32, %arg1: memref<1x8x256xf32, #tpu.memory_space<vmem>>, %arg2: memref<1x8x256xf32, #tpu.memory_space<vmem>>, %arg3: memref<8x8xf32, #tpu.memory_space<vmem>>, %arg4: memref<8x1xf32, #tpu.memory_space<vmem>>, %arg5: memref<8x8xf32, #tpu.memory_space<vmem>>, %arg6: memref<8x1xf32, #tpu.memory_space<vmem>>, %arg7: memref<11x8x9xf32, #tpu.memory_space<vmem>>, %arg8: memref<11x8x8xf32, #tpu.memory_space<vmem>>, %arg9: memref<11x8x1xf32, #tpu.memory_space<vmem>>, %arg10: memref<16x1x256xf32, #tpu.memory_space<vmem>>, %arg11: memref<1x32x256xf32, #tpu.memory_space<vmem>>) attributes {dimension_semantics = [#tpu.dimension_semantics<parallel>], iteration_bounds = array<i64: 2>, scalar_prefetch = 0 : i64, scratch_operands = 0 : i64, tpu.core_type = #tpu.core_type<tc>, window_params = [{transform_indices = @transform_0, window_bounds = array<i64: 1, 8, 256>}, {transform_indices = @transform_1, window_bounds = array<i64: 1, 8, 256>}, {pipeline_mode = #tpu.pipeline_mode<synchronous>, transform_indices = @transform_2, window_bounds = array<i64: 8, 8>}, {pipeline_mode = #tpu.pipeline_mode<synchronous>, transform_indices = @transform_3, window_bounds = array<i64: 8, 1>}, {pipeline_mode = #tpu.pipeline_mode<synchronous>, transform_indices = @transform_4, window_bounds = array<i64: 8, 8>}, {pipeline_mode = #tpu.pipeline_mode<synchronous>, transform_indices = @transform_5, window_bounds = array<i64: 8, 1>}, {pipeline_mode = #tpu.pipeline_mode<synchronous>, transform_indices = @transform_6, window_bounds = array<i64: 11, 8, 9>}, {pipeline_mode = #tpu.pipeline_mode<synchronous>, transform_indices = @transform_7, window_bounds = array<i64: 11, 8, 8>}, {pipeline_mode = #tpu.pipeline_mode<synchronous>, transform_indices = @transform_8, window_bounds = array<i64: 11, 8, 1>}, {pipeline_mode = #tpu.pipeline_mode<synchronous>, transform_indices = @transform_9, window_bounds = array<i64: 16, 1, 256>}, {transform_indices = @transform_10, window_bounds = array<i64: 1, 32, 256>}]} {
    %c0 = arith.constant 0 : index
    %c0_0 = arith.constant 0 : index
    %c0_1 = arith.constant 0 : index
    %0 = vector.load %arg1[%c0, %c0_0, %c0_1] : memref<1x8x256xf32, #tpu.memory_space<vmem>>, vector<1x8x256xf32>
    %1 = vector.shape_cast %0 : vector<1x8x256xf32> to vector<8x256xf32>
    %cst = arith.constant 0.000000e+00 : f32
    %2 = vector.broadcast %cst : f32 to vector<8x256xf32>
    %3 = arith.maximumf %1, %2 : vector<8x256xf32>
    %c0_2 = arith.constant 0 : index
    %c0_3 = arith.constant 0 : index
    %4 = vector.load %arg3[%c0_2, %c0_3] : memref<8x8xf32, #tpu.memory_space<vmem>>, vector<8x8xf32>
    %c0_4 = arith.constant 0 : index
    %c0_5 = arith.constant 0 : index
    %5 = vector.load %arg4[%c0_4, %c0_5] : memref<8x1xf32, #tpu.memory_space<vmem>>, vector<8x1xf32>
    %6 = vector.extract_strided_slice %4 {offsets = [0, 0], sizes = [8, 1], strides = [1, 1]} : vector<8x8xf32> to vector<8x1xf32>
    %7 = vector.extract_strided_slice %3 {offsets = [0, 0], sizes = [1, 256], strides = [1, 1]} : vector<8x256xf32> to vector<1x256xf32>
    %8 = vector.broadcast %6 : vector<8x1xf32> to vector<8x256xf32>
    %9 = vector.broadcast %7 : vector<1x256xf32> to vector<8x256xf32>
    %10 = arith.mulf %8, %9 : vector<8x256xf32>
    %11 = vector.extract_strided_slice %4 {offsets = [0, 1], sizes = [8, 1], strides = [1, 1]} : vector<8x8xf32> to vector<8x1xf32>
    %12 = vector.extract_strided_slice %3 {offsets = [1, 0], sizes = [1, 256], strides = [1, 1]} : vector<8x256xf32> to vector<1x256xf32>
    %13 = vector.broadcast %11 : vector<8x1xf32> to vector<8x256xf32>
    %14 = vector.broadcast %12 : vector<1x256xf32> to vector<8x256xf32>
    %15 = arith.mulf %13, %14 : vector<8x256xf32>
    %16 = vector.extract_strided_slice %4 {offsets = [0, 2], sizes = [8, 1], strides = [1, 1]} : vector<8x8xf32> to vector<8x1xf32>
    %17 = vector.extract_strided_slice %3 {offsets = [2, 0], sizes = [1, 256], strides = [1, 1]} : vector<8x256xf32> to vector<1x256xf32>
    %18 = vector.broadcast %16 : vector<8x1xf32> to vector<8x256xf32>
    %19 = vector.broadcast %17 : vector<1x256xf32> to vector<8x256xf32>
    %20 = arith.mulf %18, %19 : vector<8x256xf32>
    %21 = vector.extract_strided_slice %4 {offsets = [0, 3], sizes = [8, 1], strides = [1, 1]} : vector<8x8xf32> to vector<8x1xf32>
    %22 = vector.extract_strided_slice %3 {offsets = [3, 0], sizes = [1, 256], strides = [1, 1]} : vector<8x256xf32> to vector<1x256xf32>
    %23 = vector.broadcast %21 : vector<8x1xf32> to vector<8x256xf32>
    %24 = vector.broadcast %22 : vector<1x256xf32> to vector<8x256xf32>
    %25 = arith.mulf %23, %24 : vector<8x256xf32>
    %26 = vector.extract_strided_slice %4 {offsets = [0, 4], sizes = [8, 1], strides = [1, 1]} : vector<8x8xf32> to vector<8x1xf32>
    %27 = vector.extract_strided_slice %3 {offsets = [4, 0], sizes = [1, 256], strides = [1, 1]} : vector<8x256xf32> to vector<1x256xf32>
    %28 = vector.broadcast %26 : vector<8x1xf32> to vector<8x256xf32>
    %29 = vector.broadcast %27 : vector<1x256xf32> to vector<8x256xf32>
    %30 = arith.mulf %28, %29 : vector<8x256xf32>
    %31 = vector.extract_strided_slice %4 {offsets = [0, 5], sizes = [8, 1], strides = [1, 1]} : vector<8x8xf32> to vector<8x1xf32>
    %32 = vector.extract_strided_slice %3 {offsets = [5, 0], sizes = [1, 256], strides = [1, 1]} : vector<8x256xf32> to vector<1x256xf32>
    %33 = vector.broadcast %31 : vector<8x1xf32> to vector<8x256xf32>
    %34 = vector.broadcast %32 : vector<1x256xf32> to vector<8x256xf32>
    %35 = arith.mulf %33, %34 : vector<8x256xf32>
    %36 = vector.extract_strided_slice %4 {offsets = [0, 6], sizes = [8, 1], strides = [1, 1]} : vector<8x8xf32> to vector<8x1xf32>
    %37 = vector.extract_strided_slice %3 {offsets = [6, 0], sizes = [1, 256], strides = [1, 1]} : vector<8x256xf32> to vector<1x256xf32>
    %38 = vector.broadcast %36 : vector<8x1xf32> to vector<8x256xf32>
    %39 = vector.broadcast %37 : vector<1x256xf32> to vector<8x256xf32>
    %40 = arith.mulf %38, %39 : vector<8x256xf32>
    %41 = vector.extract_strided_slice %4 {offsets = [0, 7], sizes = [8, 1], strides = [1, 1]} : vector<8x8xf32> to vector<8x1xf32>
    %42 = vector.extract_strided_slice %3 {offsets = [7, 0], sizes = [1, 256], strides = [1, 1]} : vector<8x256xf32> to vector<1x256xf32>
    %43 = vector.broadcast %41 : vector<8x1xf32> to vector<8x256xf32>
    %44 = vector.broadcast %42 : vector<1x256xf32> to vector<8x256xf32>
    %45 = arith.mulf %43, %44 : vector<8x256xf32>
    %46 = arith.addf %10, %15 : vector<8x256xf32>
    %47 = arith.addf %20, %25 : vector<8x256xf32>
    %48 = arith.addf %30, %35 : vector<8x256xf32>
    %49 = arith.addf %40, %45 : vector<8x256xf32>
    %50 = arith.addf %46, %47 : vector<8x256xf32>
    %51 = arith.addf %48, %49 : vector<8x256xf32>
    %52 = arith.addf %50, %51 : vector<8x256xf32>
    %53 = vector.broadcast %5 : vector<8x1xf32> to vector<8x256xf32>
    %54 = arith.addf %52, %53 : vector<8x256xf32>
    %c0_6 = arith.constant 0 : index
    %c0_7 = arith.constant 0 : index
    %c0_8 = arith.constant 0 : index
    %55 = vector.load %arg2[%c0_6, %c0_7, %c0_8] : memref<1x8x256xf32, #tpu.memory_space<vmem>>, vector<1x8x256xf32>
    %56 = vector.shape_cast %55 : vector<1x8x256xf32> to vector<8x256xf32>
    %cst_9 = arith.constant 0.000000e+00 : f32
    %57 = vector.broadcast %cst_9 : f32 to vector<8x256xf32>
    %58 = arith.maximumf %56, %57 : vector<8x256xf32>
    %c0_10 = arith.constant 0 : index
    %c0_11 = arith.constant 0 : index
    %59 = vector.load %arg5[%c0_10, %c0_11] : memref<8x8xf32, #tpu.memory_space<vmem>>, vector<8x8xf32>
    %c0_12 = arith.constant 0 : index
    %c0_13 = arith.constant 0 : index
    %60 = vector.load %arg6[%c0_12, %c0_13] : memref<8x1xf32, #tpu.memory_space<vmem>>, vector<8x1xf32>
    %61 = vector.extract_strided_slice %59 {offsets = [0, 0], sizes = [8, 1], strides = [1, 1]} : vector<8x8xf32> to vector<8x1xf32>
    %62 = vector.extract_strided_slice %58 {offsets = [0, 0], sizes = [1, 256], strides = [1, 1]} : vector<8x256xf32> to vector<1x256xf32>
    %63 = vector.broadcast %61 : vector<8x1xf32> to vector<8x256xf32>
    %64 = vector.broadcast %62 : vector<1x256xf32> to vector<8x256xf32>
    %65 = arith.mulf %63, %64 : vector<8x256xf32>
    %66 = vector.extract_strided_slice %59 {offsets = [0, 1], sizes = [8, 1], strides = [1, 1]} : vector<8x8xf32> to vector<8x1xf32>
    %67 = vector.extract_strided_slice %58 {offsets = [1, 0], sizes = [1, 256], strides = [1, 1]} : vector<8x256xf32> to vector<1x256xf32>
    %68 = vector.broadcast %66 : vector<8x1xf32> to vector<8x256xf32>
    %69 = vector.broadcast %67 : vector<1x256xf32> to vector<8x256xf32>
    %70 = arith.mulf %68, %69 : vector<8x256xf32>
    %71 = vector.extract_strided_slice %59 {offsets = [0, 2], sizes = [8, 1], strides = [1, 1]} : vector<8x8xf32> to vector<8x1xf32>
    %72 = vector.extract_strided_slice %58 {offsets = [2, 0], sizes = [1, 256], strides = [1, 1]} : vector<8x256xf32> to vector<1x256xf32>
    %73 = vector.broadcast %71 : vector<8x1xf32> to vector<8x256xf32>
    %74 = vector.broadcast %72 : vector<1x256xf32> to vector<8x256xf32>
    %75 = arith.mulf %73, %74 : vector<8x256xf32>
    %76 = vector.extract_strided_slice %59 {offsets = [0, 3], sizes = [8, 1], strides = [1, 1]} : vector<8x8xf32> to vector<8x1xf32>
    %77 = vector.extract_strided_slice %58 {offsets = [3, 0], sizes = [1, 256], strides = [1, 1]} : vector<8x256xf32> to vector<1x256xf32>
    %78 = vector.broadcast %76 : vector<8x1xf32> to vector<8x256xf32>
    %79 = vector.broadcast %77 : vector<1x256xf32> to vector<8x256xf32>
    %80 = arith.mulf %78, %79 : vector<8x256xf32>
    %81 = vector.extract_strided_slice %59 {offsets = [0, 4], sizes = [8, 1], strides = [1, 1]} : vector<8x8xf32> to vector<8x1xf32>
    %82 = vector.extract_strided_slice %58 {offsets = [4, 0], sizes = [1, 256], strides = [1, 1]} : vector<8x256xf32> to vector<1x256xf32>
    %83 = vector.broadcast %81 : vector<8x1xf32> to vector<8x256xf32>
    %84 = vector.broadcast %82 : vector<1x256xf32> to vector<8x256xf32>
    %85 = arith.mulf %83, %84 : vector<8x256xf32>
    %86 = vector.extract_strided_slice %59 {offsets = [0, 5], sizes = [8, 1], strides = [1, 1]} : vector<8x8xf32> to vector<8x1xf32>
    %87 = vector.extract_strided_slice %58 {offsets = [5, 0], sizes = [1, 256], strides = [1, 1]} : vector<8x256xf32> to vector<1x256xf32>
    %88 = vector.broadcast %86 : vector<8x1xf32> to vector<8x256xf32>
    %89 = vector.broadcast %87 : vector<1x256xf32> to vector<8x256xf32>
    %90 = arith.mulf %88, %89 : vector<8x256xf32>
    %91 = vector.extract_strided_slice %59 {offsets = [0, 6], sizes = [8, 1], strides = [1, 1]} : vector<8x8xf32> to vector<8x1xf32>
    %92 = vector.extract_strided_slice %58 {offsets = [6, 0], sizes = [1, 256], strides = [1, 1]} : vector<8x256xf32> to vector<1x256xf32>
    %93 = vector.broadcast %91 : vector<8x1xf32> to vector<8x256xf32>
    %94 = vector.broadcast %92 : vector<1x256xf32> to vector<8x256xf32>
    %95 = arith.mulf %93, %94 : vector<8x256xf32>
    %96 = vector.extract_strided_slice %59 {offsets = [0, 7], sizes = [8, 1], strides = [1, 1]} : vector<8x8xf32> to vector<8x1xf32>
    %97 = vector.extract_strided_slice %58 {offsets = [7, 0], sizes = [1, 256], strides = [1, 1]} : vector<8x256xf32> to vector<1x256xf32>
    %98 = vector.broadcast %96 : vector<8x1xf32> to vector<8x256xf32>
    %99 = vector.broadcast %97 : vector<1x256xf32> to vector<8x256xf32>
    %100 = arith.mulf %98, %99 : vector<8x256xf32>
    %101 = arith.addf %65, %70 : vector<8x256xf32>
    %102 = arith.addf %75, %80 : vector<8x256xf32>
    %103 = arith.addf %85, %90 : vector<8x256xf32>
    %104 = arith.addf %95, %100 : vector<8x256xf32>
    %105 = arith.addf %101, %102 : vector<8x256xf32>
    %106 = arith.addf %103, %104 : vector<8x256xf32>
    %107 = arith.addf %105, %106 : vector<8x256xf32>
    %108 = vector.broadcast %60 : vector<8x1xf32> to vector<8x256xf32>
    %109 = arith.addf %107, %108 : vector<8x256xf32>
    %cst_14 = arith.constant 0.000000e+00 : f32
    %110 = vector.broadcast %cst_14 : f32 to vector<8x256xf32>
    %111 = arith.maximumf %54, %110 : vector<8x256xf32>
    %c0_15 = arith.constant 0 : index
    %c0_16 = arith.constant 0 : index
    %c0_17 = arith.constant 0 : index
    %112 = vector.load %arg7[%c0_15, %c0_16, %c0_17] : memref<11x8x9xf32, #tpu.memory_space<vmem>>, vector<1x8x9xf32>
    %113 = vector.shape_cast %112 : vector<1x8x9xf32> to vector<8x9xf32>
    %c17_i32 = arith.constant 17 : i32
    %114 = tpu.dynamic_rotate %111 by %c17_i32 dim 1 : vector<8x256xf32>, i32 -> vector<8x256xf32>
    %c0_18 = arith.constant 0 : index
    %c0_19 = arith.constant 0 : index
    %c0_20 = arith.constant 0 : index
    %115 = vector.load %arg10[%c0_18, %c0_19, %c0_20] : memref<16x1x256xf32, #tpu.memory_space<vmem>>, vector<1x1x256xf32>
    %116 = vector.shape_cast %115 : vector<1x1x256xf32> to vector<1x256xf32>
    %117 = vector.broadcast %116 : vector<1x256xf32> to vector<8x256xf32>
    %118 = arith.mulf %114, %117 : vector<8x256xf32>
    %119 = vector.extract_strided_slice %113 {offsets = [0, 0], sizes = [8, 1], strides = [1, 1]} : vector<8x9xf32> to vector<8x1xf32>
    %120 = vector.broadcast %119 : vector<8x1xf32> to vector<8x256xf32>
    %121 = arith.mulf %118, %120 : vector<8x256xf32>
    %c16_i32 = arith.constant 16 : i32
    %122 = tpu.dynamic_rotate %111 by %c16_i32 dim 1 : vector<8x256xf32>, i32 -> vector<8x256xf32>
    %c1 = arith.constant 1 : index
    %c0_21 = arith.constant 0 : index
    %c0_22 = arith.constant 0 : index
    %123 = vector.load %arg10[%c1, %c0_21, %c0_22] : memref<16x1x256xf32, #tpu.memory_space<vmem>>, vector<1x1x256xf32>
    %124 = vector.shape_cast %123 : vector<1x1x256xf32> to vector<1x256xf32>
    %125 = vector.broadcast %124 : vector<1x256xf32> to vector<8x256xf32>
    %126 = arith.mulf %122, %125 : vector<8x256xf32>
    %127 = vector.extract_strided_slice %113 {offsets = [0, 1], sizes = [8, 1], strides = [1, 1]} : vector<8x9xf32> to vector<8x1xf32>
    %128 = vector.broadcast %127 : vector<8x1xf32> to vector<8x256xf32>
    %129 = arith.mulf %126, %128 : vector<8x256xf32>
    %c15_i32 = arith.constant 15 : i32
    %130 = tpu.dynamic_rotate %111 by %c15_i32 dim 1 : vector<8x256xf32>, i32 -> vector<8x256xf32>
    %c2 = arith.constant 2 : index
    %c0_23 = arith.constant 0 : index
    %c0_24 = arith.constant 0 : index
    %131 = vector.load %arg10[%c2, %c0_23, %c0_24] : memref<16x1x256xf32, #tpu.memory_space<vmem>>, vector<1x1x256xf32>
    %132 = vector.shape_cast %131 : vector<1x1x256xf32> to vector<1x256xf32>
    %133 = vector.broadcast %132 : vector<1x256xf32> to vector<8x256xf32>
    %134 = arith.mulf %130, %133 : vector<8x256xf32>
    %135 = vector.extract_strided_slice %113 {offsets = [0, 2], sizes = [8, 1], strides = [1, 1]} : vector<8x9xf32> to vector<8x1xf32>
    %136 = vector.broadcast %135 : vector<8x1xf32> to vector<8x256xf32>
    %137 = arith.mulf %134, %136 : vector<8x256xf32>
    %c1_i32 = arith.constant 1 : i32
    %138 = tpu.dynamic_rotate %111 by %c1_i32 dim 1 : vector<8x256xf32>, i32 -> vector<8x256xf32>
    %c3 = arith.constant 3 : index
    %c0_25 = arith.constant 0 : index
    %c0_26 = arith.constant 0 : index
    %139 = vector.load %arg10[%c3, %c0_25, %c0_26] : memref<16x1x256xf32, #tpu.memory_space<vmem>>, vector<1x1x256xf32>
    %140 = vector.shape_cast %139 : vector<1x1x256xf32> to vector<1x256xf32>
    %141 = vector.broadcast %140 : vector<1x256xf32> to vector<8x256xf32>
    %142 = arith.mulf %138, %141 : vector<8x256xf32>
    %143 = vector.extract_strided_slice %113 {offsets = [0, 3], sizes = [8, 1], strides = [1, 1]} : vector<8x9xf32> to vector<8x1xf32>
    %144 = vector.broadcast %143 : vector<8x1xf32> to vector<8x256xf32>
    %145 = arith.mulf %142, %144 : vector<8x256xf32>
    %146 = vector.extract_strided_slice %113 {offsets = [0, 4], sizes = [8, 1], strides = [1, 1]} : vector<8x9xf32> to vector<8x1xf32>
    %147 = vector.broadcast %146 : vector<8x1xf32> to vector<8x256xf32>
    %148 = arith.mulf %111, %147 : vector<8x256xf32>
    %c255_i32 = arith.constant 255 : i32
    %149 = tpu.dynamic_rotate %111 by %c255_i32 dim 1 : vector<8x256xf32>, i32 -> vector<8x256xf32>
    %c4 = arith.constant 4 : index
    %c0_27 = arith.constant 0 : index
    %c0_28 = arith.constant 0 : index
    %150 = vector.load %arg10[%c4, %c0_27, %c0_28] : memref<16x1x256xf32, #tpu.memory_space<vmem>>, vector<1x1x256xf32>
    %151 = vector.shape_cast %150 : vector<1x1x256xf32> to vector<1x256xf32>
    %152 = vector.broadcast %151 : vector<1x256xf32> to vector<8x256xf32>
    %153 = arith.mulf %149, %152 : vector<8x256xf32>
    %154 = vector.extract_strided_slice %113 {offsets = [0, 5], sizes = [8, 1], strides = [1, 1]} : vector<8x9xf32> to vector<8x1xf32>
    %155 = vector.broadcast %154 : vector<8x1xf32> to vector<8x256xf32>
    %156 = arith.mulf %153, %155 : vector<8x256xf32>
    %c241_i32 = arith.constant 241 : i32
    %157 = tpu.dynamic_rotate %111 by %c241_i32 dim 1 : vector<8x256xf32>, i32 -> vector<8x256xf32>
    %c5 = arith.constant 5 : index
    %c0_29 = arith.constant 0 : index
    %c0_30 = arith.constant 0 : index
    %158 = vector.load %arg10[%c5, %c0_29, %c0_30] : memref<16x1x256xf32, #tpu.memory_space<vmem>>, vector<1x1x256xf32>
    %159 = vector.shape_cast %158 : vector<1x1x256xf32> to vector<1x256xf32>
    %160 = vector.broadcast %159 : vector<1x256xf32> to vector<8x256xf32>
    %161 = arith.mulf %157, %160 : vector<8x256xf32>
    %162 = vector.extract_strided_slice %113 {offsets = [0, 6], sizes = [8, 1], strides = [1, 1]} : vector<8x9xf32> to vector<8x1xf32>
    %163 = vector.broadcast %162 : vector<8x1xf32> to vector<8x256xf32>
    %164 = arith.mulf %161, %163 : vector<8x256xf32>
    %c240_i32 = arith.constant 240 : i32
    %165 = tpu.dynamic_rotate %111 by %c240_i32 dim 1 : vector<8x256xf32>, i32 -> vector<8x256xf32>
    %c6 = arith.constant 6 : index
    %c0_31 = arith.constant 0 : index
    %c0_32 = arith.constant 0 : index
    %166 = vector.load %arg10[%c6, %c0_31, %c0_32] : memref<16x1x256xf32, #tpu.memory_space<vmem>>, vector<1x1x256xf32>
    %167 = vector.shape_cast %166 : vector<1x1x256xf32> to vector<1x256xf32>
    %168 = vector.broadcast %167 : vector<1x256xf32> to vector<8x256xf32>
    %169 = arith.mulf %165, %168 : vector<8x256xf32>
    %170 = vector.extract_strided_slice %113 {offsets = [0, 7], sizes = [8, 1], strides = [1, 1]} : vector<8x9xf32> to vector<8x1xf32>
    %171 = vector.broadcast %170 : vector<8x1xf32> to vector<8x256xf32>
    %172 = arith.mulf %169, %171 : vector<8x256xf32>
    %c239_i32 = arith.constant 239 : i32
    %173 = tpu.dynamic_rotate %111 by %c239_i32 dim 1 : vector<8x256xf32>, i32 -> vector<8x256xf32>
    %c7 = arith.constant 7 : index
    %c0_33 = arith.constant 0 : index
    %c0_34 = arith.constant 0 : index
    %174 = vector.load %arg10[%c7, %c0_33, %c0_34] : memref<16x1x256xf32, #tpu.memory_space<vmem>>, vector<1x1x256xf32>
    %175 = vector.shape_cast %174 : vector<1x1x256xf32> to vector<1x256xf32>
    %176 = vector.broadcast %175 : vector<1x256xf32> to vector<8x256xf32>
    %177 = arith.mulf %173, %176 : vector<8x256xf32>
    %178 = vector.extract_strided_slice %113 {offsets = [0, 8], sizes = [8, 1], strides = [1, 1]} : vector<8x9xf32> to vector<8x1xf32>
    %179 = vector.broadcast %178 : vector<8x1xf32> to vector<8x256xf32>
    %180 = arith.mulf %177, %179 : vector<8x256xf32>
    %181 = arith.addf %121, %129 : vector<8x256xf32>
    %182 = arith.addf %137, %145 : vector<8x256xf32>
    %183 = arith.addf %148, %156 : vector<8x256xf32>
    %184 = arith.addf %164, %172 : vector<8x256xf32>
    %185 = arith.addf %181, %182 : vector<8x256xf32>
    %186 = arith.addf %183, %184 : vector<8x256xf32>
    %187 = arith.addf %185, %186 : vector<8x256xf32>
    %188 = arith.addf %187, %180 : vector<8x256xf32>
    %c0_35 = arith.constant 0 : index
    %c0_36 = arith.constant 0 : index
    %c0_37 = arith.constant 0 : index
    %189 = vector.load %arg8[%c0_35, %c0_36, %c0_37] : memref<11x8x8xf32, #tpu.memory_space<vmem>>, vector<1x8x8xf32>
    %190 = vector.shape_cast %189 : vector<1x8x8xf32> to vector<8x8xf32>
    %c0_38 = arith.constant 0 : index
    %c0_39 = arith.constant 0 : index
    %c0_40 = arith.constant 0 : index
    %191 = vector.load %arg9[%c0_38, %c0_39, %c0_40] : memref<11x8x1xf32, #tpu.memory_space<vmem>>, vector<1x8x1xf32>
    %192 = vector.shape_cast %191 : vector<1x8x1xf32> to vector<8x1xf32>
    %193 = vector.extract_strided_slice %190 {offsets = [0, 0], sizes = [8, 1], strides = [1, 1]} : vector<8x8xf32> to vector<8x1xf32>
    %194 = vector.extract_strided_slice %188 {offsets = [0, 0], sizes = [1, 256], strides = [1, 1]} : vector<8x256xf32> to vector<1x256xf32>
    %195 = vector.broadcast %193 : vector<8x1xf32> to vector<8x256xf32>
    %196 = vector.broadcast %194 : vector<1x256xf32> to vector<8x256xf32>
    %197 = arith.mulf %195, %196 : vector<8x256xf32>
    %198 = vector.extract_strided_slice %190 {offsets = [0, 1], sizes = [8, 1], strides = [1, 1]} : vector<8x8xf32> to vector<8x1xf32>
    %199 = vector.extract_strided_slice %188 {offsets = [1, 0], sizes = [1, 256], strides = [1, 1]} : vector<8x256xf32> to vector<1x256xf32>
    %200 = vector.broadcast %198 : vector<8x1xf32> to vector<8x256xf32>
    %201 = vector.broadcast %199 : vector<1x256xf32> to vector<8x256xf32>
    %202 = arith.mulf %200, %201 : vector<8x256xf32>
    %203 = vector.extract_strided_slice %190 {offsets = [0, 2], sizes = [8, 1], strides = [1, 1]} : vector<8x8xf32> to vector<8x1xf32>
    %204 = vector.extract_strided_slice %188 {offsets = [2, 0], sizes = [1, 256], strides = [1, 1]} : vector<8x256xf32> to vector<1x256xf32>
    %205 = vector.broadcast %203 : vector<8x1xf32> to vector<8x256xf32>
    %206 = vector.broadcast %204 : vector<1x256xf32> to vector<8x256xf32>
    %207 = arith.mulf %205, %206 : vector<8x256xf32>
    %208 = vector.extract_strided_slice %190 {offsets = [0, 3], sizes = [8, 1], strides = [1, 1]} : vector<8x8xf32> to vector<8x1xf32>
    %209 = vector.extract_strided_slice %188 {offsets = [3, 0], sizes = [1, 256], strides = [1, 1]} : vector<8x256xf32> to vector<1x256xf32>
    %210 = vector.broadcast %208 : vector<8x1xf32> to vector<8x256xf32>
    %211 = vector.broadcast %209 : vector<1x256xf32> to vector<8x256xf32>
    %212 = arith.mulf %210, %211 : vector<8x256xf32>
    %213 = vector.extract_strided_slice %190 {offsets = [0, 4], sizes = [8, 1], strides = [1, 1]} : vector<8x8xf32> to vector<8x1xf32>
    %214 = vector.extract_strided_slice %188 {offsets = [4, 0], sizes = [1, 256], strides = [1, 1]} : vector<8x256xf32> to vector<1x256xf32>
    %215 = vector.broadcast %213 : vector<8x1xf32> to vector<8x256xf32>
    %216 = vector.broadcast %214 : vector<1x256xf32> to vector<8x256xf32>
    %217 = arith.mulf %215, %216 : vector<8x256xf32>
    %218 = vector.extract_strided_slice %190 {offsets = [0, 5], sizes = [8, 1], strides = [1, 1]} : vector<8x8xf32> to vector<8x1xf32>
    %219 = vector.extract_strided_slice %188 {offsets = [5, 0], sizes = [1, 256], strides = [1, 1]} : vector<8x256xf32> to vector<1x256xf32>
    %220 = vector.broadcast %218 : vector<8x1xf32> to vector<8x256xf32>
    %221 = vector.broadcast %219 : vector<1x256xf32> to vector<8x256xf32>
    %222 = arith.mulf %220, %221 : vector<8x256xf32>
    %223 = vector.extract_strided_slice %190 {offsets = [0, 6], sizes = [8, 1], strides = [1, 1]} : vector<8x8xf32> to vector<8x1xf32>
    %224 = vector.extract_strided_slice %188 {offsets = [6, 0], sizes = [1, 256], strides = [1, 1]} : vector<8x256xf32> to vector<1x256xf32>
    %225 = vector.broadcast %223 : vector<8x1xf32> to vector<8x256xf32>
    %226 = vector.broadcast %224 : vector<1x256xf32> to vector<8x256xf32>
    %227 = arith.mulf %225, %226 : vector<8x256xf32>
    %228 = vector.extract_strided_slice %190 {offsets = [0, 7], sizes = [8, 1], strides = [1, 1]} : vector<8x8xf32> to vector<8x1xf32>
    %229 = vector.extract_strided_slice %188 {offsets = [7, 0], sizes = [1, 256], strides = [1, 1]} : vector<8x256xf32> to vector<1x256xf32>
    %230 = vector.broadcast %228 : vector<8x1xf32> to vector<8x256xf32>
    %231 = vector.broadcast %229 : vector<1x256xf32> to vector<8x256xf32>
    %232 = arith.mulf %230, %231 : vector<8x256xf32>
    %233 = arith.addf %197, %202 : vector<8x256xf32>
    %234 = arith.addf %207, %212 : vector<8x256xf32>
    %235 = arith.addf %217, %222 : vector<8x256xf32>
    %236 = arith.addf %227, %232 : vector<8x256xf32>
    %237 = arith.addf %233, %234 : vector<8x256xf32>
    %238 = arith.addf %235, %236 : vector<8x256xf32>
    %239 = arith.addf %237, %238 : vector<8x256xf32>
    %240 = vector.broadcast %192 : vector<8x1xf32> to vector<8x256xf32>
    %241 = arith.addf %239, %240 : vector<8x256xf32>
    %cst_41 = arith.constant 0.000000e+00 : f32
    %242 = vector.broadcast %cst_41 : f32 to vector<8x256xf32>
    %243 = arith.maximumf %241, %242 : vector<8x256xf32>
    %c1_42 = arith.constant 1 : index
    %c0_43 = arith.constant 0 : index
    %c0_44 = arith.constant 0 : index
    %244 = vector.load %arg7[%c1_42, %c0_43, %c0_44] : memref<11x8x9xf32, #tpu.memory_space<vmem>>, vector<1x8x9xf32>
    %245 = vector.shape_cast %244 : vector<1x8x9xf32> to vector<8x9xf32>
    %c17_i32_45 = arith.constant 17 : i32
    %246 = tpu.dynamic_rotate %243 by %c17_i32_45 dim 1 : vector<8x256xf32>, i32 -> vector<8x256xf32>
    %c0_46 = arith.constant 0 : index
    %c0_47 = arith.constant 0 : index
    %c0_48 = arith.constant 0 : index
    %247 = vector.load %arg10[%c0_46, %c0_47, %c0_48] : memref<16x1x256xf32, #tpu.memory_space<vmem>>, vector<1x1x256xf32>
    %248 = vector.shape_cast %247 : vector<1x1x256xf32> to vector<1x256xf32>
    %249 = vector.broadcast %248 : vector<1x256xf32> to vector<8x256xf32>
    %250 = arith.mulf %246, %249 : vector<8x256xf32>
    %251 = vector.extract_strided_slice %245 {offsets = [0, 0], sizes = [8, 1], strides = [1, 1]} : vector<8x9xf32> to vector<8x1xf32>
    %252 = vector.broadcast %251 : vector<8x1xf32> to vector<8x256xf32>
    %253 = arith.mulf %250, %252 : vector<8x256xf32>
    %c16_i32_49 = arith.constant 16 : i32
    %254 = tpu.dynamic_rotate %243 by %c16_i32_49 dim 1 : vector<8x256xf32>, i32 -> vector<8x256xf32>
    %c1_50 = arith.constant 1 : index
    %c0_51 = arith.constant 0 : index
    %c0_52 = arith.constant 0 : index
    %255 = vector.load %arg10[%c1_50, %c0_51, %c0_52] : memref<16x1x256xf32, #tpu.memory_space<vmem>>, vector<1x1x256xf32>
    %256 = vector.shape_cast %255 : vector<1x1x256xf32> to vector<1x256xf32>
    %257 = vector.broadcast %256 : vector<1x256xf32> to vector<8x256xf32>
    %258 = arith.mulf %254, %257 : vector<8x256xf32>
    %259 = vector.extract_strided_slice %245 {offsets = [0, 1], sizes = [8, 1], strides = [1, 1]} : vector<8x9xf32> to vector<8x1xf32>
    %260 = vector.broadcast %259 : vector<8x1xf32> to vector<8x256xf32>
    %261 = arith.mulf %258, %260 : vector<8x256xf32>
    %c15_i32_53 = arith.constant 15 : i32
    %262 = tpu.dynamic_rotate %243 by %c15_i32_53 dim 1 : vector<8x256xf32>, i32 -> vector<8x256xf32>
    %c2_54 = arith.constant 2 : index
    %c0_55 = arith.constant 0 : index
    %c0_56 = arith.constant 0 : index
    %263 = vector.load %arg10[%c2_54, %c0_55, %c0_56] : memref<16x1x256xf32, #tpu.memory_space<vmem>>, vector<1x1x256xf32>
    %264 = vector.shape_cast %263 : vector<1x1x256xf32> to vector<1x256xf32>
    %265 = vector.broadcast %264 : vector<1x256xf32> to vector<8x256xf32>
    %266 = arith.mulf %262, %265 : vector<8x256xf32>
    %267 = vector.extract_strided_slice %245 {offsets = [0, 2], sizes = [8, 1], strides = [1, 1]} : vector<8x9xf32> to vector<8x1xf32>
    %268 = vector.broadcast %267 : vector<8x1xf32> to vector<8x256xf32>
    %269 = arith.mulf %266, %268 : vector<8x256xf32>
    %c1_i32_57 = arith.constant 1 : i32
    %270 = tpu.dynamic_rotate %243 by %c1_i32_57 dim 1 : vector<8x256xf32>, i32 -> vector<8x256xf32>
    %c3_58 = arith.constant 3 : index
    %c0_59 = arith.constant 0 : index
    %c0_60 = arith.constant 0 : index
    %271 = vector.load %arg10[%c3_58, %c0_59, %c0_60] : memref<16x1x256xf32, #tpu.memory_space<vmem>>, vector<1x1x256xf32>
    %272 = vector.shape_cast %271 : vector<1x1x256xf32> to vector<1x256xf32>
    %273 = vector.broadcast %272 : vector<1x256xf32> to vector<8x256xf32>
    %274 = arith.mulf %270, %273 : vector<8x256xf32>
    %275 = vector.extract_strided_slice %245 {offsets = [0, 3], sizes = [8, 1], strides = [1, 1]} : vector<8x9xf32> to vector<8x1xf32>
    %276 = vector.broadcast %275 : vector<8x1xf32> to vector<8x256xf32>
    %277 = arith.mulf %274, %276 : vector<8x256xf32>
    %278 = vector.extract_strided_slice %245 {offsets = [0, 4], sizes = [8, 1], strides = [1, 1]} : vector<8x9xf32> to vector<8x1xf32>
    %279 = vector.broadcast %278 : vector<8x1xf32> to vector<8x256xf32>
    %280 = arith.mulf %243, %279 : vector<8x256xf32>
    %c255_i32_61 = arith.constant 255 : i32
    %281 = tpu.dynamic_rotate %243 by %c255_i32_61 dim 1 : vector<8x256xf32>, i32 -> vector<8x256xf32>
    %c4_62 = arith.constant 4 : index
    %c0_63 = arith.constant 0 : index
    %c0_64 = arith.constant 0 : index
    %282 = vector.load %arg10[%c4_62, %c0_63, %c0_64] : memref<16x1x256xf32, #tpu.memory_space<vmem>>, vector<1x1x256xf32>
    %283 = vector.shape_cast %282 : vector<1x1x256xf32> to vector<1x256xf32>
    %284 = vector.broadcast %283 : vector<1x256xf32> to vector<8x256xf32>
    %285 = arith.mulf %281, %284 : vector<8x256xf32>
    %286 = vector.extract_strided_slice %245 {offsets = [0, 5], sizes = [8, 1], strides = [1, 1]} : vector<8x9xf32> to vector<8x1xf32>
    %287 = vector.broadcast %286 : vector<8x1xf32> to vector<8x256xf32>
    %288 = arith.mulf %285, %287 : vector<8x256xf32>
    %c241_i32_65 = arith.constant 241 : i32
    %289 = tpu.dynamic_rotate %243 by %c241_i32_65 dim 1 : vector<8x256xf32>, i32 -> vector<8x256xf32>
    %c5_66 = arith.constant 5 : index
    %c0_67 = arith.constant 0 : index
    %c0_68 = arith.constant 0 : index
    %290 = vector.load %arg10[%c5_66, %c0_67, %c0_68] : memref<16x1x256xf32, #tpu.memory_space<vmem>>, vector<1x1x256xf32>
    %291 = vector.shape_cast %290 : vector<1x1x256xf32> to vector<1x256xf32>
    %292 = vector.broadcast %291 : vector<1x256xf32> to vector<8x256xf32>
    %293 = arith.mulf %289, %292 : vector<8x256xf32>
    %294 = vector.extract_strided_slice %245 {offsets = [0, 6], sizes = [8, 1], strides = [1, 1]} : vector<8x9xf32> to vector<8x1xf32>
    %295 = vector.broadcast %294 : vector<8x1xf32> to vector<8x256xf32>
    %296 = arith.mulf %293, %295 : vector<8x256xf32>
    %c240_i32_69 = arith.constant 240 : i32
    %297 = tpu.dynamic_rotate %243 by %c240_i32_69 dim 1 : vector<8x256xf32>, i32 -> vector<8x256xf32>
    %c6_70 = arith.constant 6 : index
    %c0_71 = arith.constant 0 : index
    %c0_72 = arith.constant 0 : index
    %298 = vector.load %arg10[%c6_70, %c0_71, %c0_72] : memref<16x1x256xf32, #tpu.memory_space<vmem>>, vector<1x1x256xf32>
    %299 = vector.shape_cast %298 : vector<1x1x256xf32> to vector<1x256xf32>
    %300 = vector.broadcast %299 : vector<1x256xf32> to vector<8x256xf32>
    %301 = arith.mulf %297, %300 : vector<8x256xf32>
    %302 = vector.extract_strided_slice %245 {offsets = [0, 7], sizes = [8, 1], strides = [1, 1]} : vector<8x9xf32> to vector<8x1xf32>
    %303 = vector.broadcast %302 : vector<8x1xf32> to vector<8x256xf32>
    %304 = arith.mulf %301, %303 : vector<8x256xf32>
    %c239_i32_73 = arith.constant 239 : i32
    %305 = tpu.dynamic_rotate %243 by %c239_i32_73 dim 1 : vector<8x256xf32>, i32 -> vector<8x256xf32>
    %c7_74 = arith.constant 7 : index
    %c0_75 = arith.constant 0 : index
    %c0_76 = arith.constant 0 : index
    %306 = vector.load %arg10[%c7_74, %c0_75, %c0_76] : memref<16x1x256xf32, #tpu.memory_space<vmem>>, vector<1x1x256xf32>
    %307 = vector.shape_cast %306 : vector<1x1x256xf32> to vector<1x256xf32>
    %308 = vector.broadcast %307 : vector<1x256xf32> to vector<8x256xf32>
    %309 = arith.mulf %305, %308 : vector<8x256xf32>
    %310 = vector.extract_strided_slice %245 {offsets = [0, 8], sizes = [8, 1], strides = [1, 1]} : vector<8x9xf32> to vector<8x1xf32>
    %311 = vector.broadcast %310 : vector<8x1xf32> to vector<8x256xf32>
    %312 = arith.mulf %309, %311 : vector<8x256xf32>
    %313 = arith.addf %253, %261 : vector<8x256xf32>
    %314 = arith.addf %269, %277 : vector<8x256xf32>
    %315 = arith.addf %280, %288 : vector<8x256xf32>
    %316 = arith.addf %296, %304 : vector<8x256xf32>
    %317 = arith.addf %313, %314 : vector<8x256xf32>
    %318 = arith.addf %315, %316 : vector<8x256xf32>
    %319 = arith.addf %317, %318 : vector<8x256xf32>
    %320 = arith.addf %319, %312 : vector<8x256xf32>
    %c1_77 = arith.constant 1 : index
    %c0_78 = arith.constant 0 : index
    %c0_79 = arith.constant 0 : index
    %321 = vector.load %arg8[%c1_77, %c0_78, %c0_79] : memref<11x8x8xf32, #tpu.memory_space<vmem>>, vector<1x8x8xf32>
    %322 = vector.shape_cast %321 : vector<1x8x8xf32> to vector<8x8xf32>
    %c1_80 = arith.constant 1 : index
    %c0_81 = arith.constant 0 : index
    %c0_82 = arith.constant 0 : index
    %323 = vector.load %arg9[%c1_80, %c0_81, %c0_82] : memref<11x8x1xf32, #tpu.memory_space<vmem>>, vector<1x8x1xf32>
    %324 = vector.shape_cast %323 : vector<1x8x1xf32> to vector<8x1xf32>
    %325 = vector.extract_strided_slice %322 {offsets = [0, 0], sizes = [8, 1], strides = [1, 1]} : vector<8x8xf32> to vector<8x1xf32>
    %326 = vector.extract_strided_slice %320 {offsets = [0, 0], sizes = [1, 256], strides = [1, 1]} : vector<8x256xf32> to vector<1x256xf32>
    %327 = vector.broadcast %325 : vector<8x1xf32> to vector<8x256xf32>
    %328 = vector.broadcast %326 : vector<1x256xf32> to vector<8x256xf32>
    %329 = arith.mulf %327, %328 : vector<8x256xf32>
    %330 = vector.extract_strided_slice %322 {offsets = [0, 1], sizes = [8, 1], strides = [1, 1]} : vector<8x8xf32> to vector<8x1xf32>
    %331 = vector.extract_strided_slice %320 {offsets = [1, 0], sizes = [1, 256], strides = [1, 1]} : vector<8x256xf32> to vector<1x256xf32>
    %332 = vector.broadcast %330 : vector<8x1xf32> to vector<8x256xf32>
    %333 = vector.broadcast %331 : vector<1x256xf32> to vector<8x256xf32>
    %334 = arith.mulf %332, %333 : vector<8x256xf32>
    %335 = vector.extract_strided_slice %322 {offsets = [0, 2], sizes = [8, 1], strides = [1, 1]} : vector<8x8xf32> to vector<8x1xf32>
    %336 = vector.extract_strided_slice %320 {offsets = [2, 0], sizes = [1, 256], strides = [1, 1]} : vector<8x256xf32> to vector<1x256xf32>
    %337 = vector.broadcast %335 : vector<8x1xf32> to vector<8x256xf32>
    %338 = vector.broadcast %336 : vector<1x256xf32> to vector<8x256xf32>
    %339 = arith.mulf %337, %338 : vector<8x256xf32>
    %340 = vector.extract_strided_slice %322 {offsets = [0, 3], sizes = [8, 1], strides = [1, 1]} : vector<8x8xf32> to vector<8x1xf32>
    %341 = vector.extract_strided_slice %320 {offsets = [3, 0], sizes = [1, 256], strides = [1, 1]} : vector<8x256xf32> to vector<1x256xf32>
    %342 = vector.broadcast %340 : vector<8x1xf32> to vector<8x256xf32>
    %343 = vector.broadcast %341 : vector<1x256xf32> to vector<8x256xf32>
    %344 = arith.mulf %342, %343 : vector<8x256xf32>
    %345 = vector.extract_strided_slice %322 {offsets = [0, 4], sizes = [8, 1], strides = [1, 1]} : vector<8x8xf32> to vector<8x1xf32>
    %346 = vector.extract_strided_slice %320 {offsets = [4, 0], sizes = [1, 256], strides = [1, 1]} : vector<8x256xf32> to vector<1x256xf32>
    %347 = vector.broadcast %345 : vector<8x1xf32> to vector<8x256xf32>
    %348 = vector.broadcast %346 : vector<1x256xf32> to vector<8x256xf32>
    %349 = arith.mulf %347, %348 : vector<8x256xf32>
    %350 = vector.extract_strided_slice %322 {offsets = [0, 5], sizes = [8, 1], strides = [1, 1]} : vector<8x8xf32> to vector<8x1xf32>
    %351 = vector.extract_strided_slice %320 {offsets = [5, 0], sizes = [1, 256], strides = [1, 1]} : vector<8x256xf32> to vector<1x256xf32>
    %352 = vector.broadcast %350 : vector<8x1xf32> to vector<8x256xf32>
    %353 = vector.broadcast %351 : vector<1x256xf32> to vector<8x256xf32>
    %354 = arith.mulf %352, %353 : vector<8x256xf32>
    %355 = vector.extract_strided_slice %322 {offsets = [0, 6], sizes = [8, 1], strides = [1, 1]} : vector<8x8xf32> to vector<8x1xf32>
    %356 = vector.extract_strided_slice %320 {offsets = [6, 0], sizes = [1, 256], strides = [1, 1]} : vector<8x256xf32> to vector<1x256xf32>
    %357 = vector.broadcast %355 : vector<8x1xf32> to vector<8x256xf32>
    %358 = vector.broadcast %356 : vector<1x256xf32> to vector<8x256xf32>
    %359 = arith.mulf %357, %358 : vector<8x256xf32>
    %360 = vector.extract_strided_slice %322 {offsets = [0, 7], sizes = [8, 1], strides = [1, 1]} : vector<8x8xf32> to vector<8x1xf32>
    %361 = vector.extract_strided_slice %320 {offsets = [7, 0], sizes = [1, 256], strides = [1, 1]} : vector<8x256xf32> to vector<1x256xf32>
    %362 = vector.broadcast %360 : vector<8x1xf32> to vector<8x256xf32>
    %363 = vector.broadcast %361 : vector<1x256xf32> to vector<8x256xf32>
    %364 = arith.mulf %362, %363 : vector<8x256xf32>
    %365 = arith.addf %329, %334 : vector<8x256xf32>
    %366 = arith.addf %339, %344 : vector<8x256xf32>
    %367 = arith.addf %349, %354 : vector<8x256xf32>
    %368 = arith.addf %359, %364 : vector<8x256xf32>
    %369 = arith.addf %365, %366 : vector<8x256xf32>
    %370 = arith.addf %367, %368 : vector<8x256xf32>
    %371 = arith.addf %369, %370 : vector<8x256xf32>
    %372 = vector.broadcast %324 : vector<8x1xf32> to vector<8x256xf32>
    %373 = arith.addf %371, %372 : vector<8x256xf32>
    %cst_83 = arith.constant 0.000000e+00 : f32
    %374 = vector.broadcast %cst_83 : f32 to vector<8x256xf32>
    %375 = arith.maximumf %109, %374 : vector<8x256xf32>
    %c2_84 = arith.constant 2 : index
    %c0_85 = arith.constant 0 : index
    %c0_86 = arith.constant 0 : index
    %376 = vector.load %arg7[%c2_84, %c0_85, %c0_86] : memref<11x8x9xf32, #tpu.memory_space<vmem>>, vector<1x8x9xf32>
    %377 = vector.shape_cast %376 : vector<1x8x9xf32> to vector<8x9xf32>
    %c17_i32_87 = arith.constant 17 : i32
    %378 = tpu.dynamic_rotate %375 by %c17_i32_87 dim 1 : vector<8x256xf32>, i32 -> vector<8x256xf32>
    %c0_88 = arith.constant 0 : index
    %c0_89 = arith.constant 0 : index
    %c0_90 = arith.constant 0 : index
    %379 = vector.load %arg10[%c0_88, %c0_89, %c0_90] : memref<16x1x256xf32, #tpu.memory_space<vmem>>, vector<1x1x256xf32>
    %380 = vector.shape_cast %379 : vector<1x1x256xf32> to vector<1x256xf32>
    %381 = vector.broadcast %380 : vector<1x256xf32> to vector<8x256xf32>
    %382 = arith.mulf %378, %381 : vector<8x256xf32>
    %383 = vector.extract_strided_slice %377 {offsets = [0, 0], sizes = [8, 1], strides = [1, 1]} : vector<8x9xf32> to vector<8x1xf32>
    %384 = vector.broadcast %383 : vector<8x1xf32> to vector<8x256xf32>
    %385 = arith.mulf %382, %384 : vector<8x256xf32>
    %c16_i32_91 = arith.constant 16 : i32
    %386 = tpu.dynamic_rotate %375 by %c16_i32_91 dim 1 : vector<8x256xf32>, i32 -> vector<8x256xf32>
    %c1_92 = arith.constant 1 : index
    %c0_93 = arith.constant 0 : index
    %c0_94 = arith.constant 0 : index
    %387 = vector.load %arg10[%c1_92, %c0_93, %c0_94] : memref<16x1x256xf32, #tpu.memory_space<vmem>>, vector<1x1x256xf32>
    %388 = vector.shape_cast %387 : vector<1x1x256xf32> to vector<1x256xf32>
    %389 = vector.broadcast %388 : vector<1x256xf32> to vector<8x256xf32>
    %390 = arith.mulf %386, %389 : vector<8x256xf32>
    %391 = vector.extract_strided_slice %377 {offsets = [0, 1], sizes = [8, 1], strides = [1, 1]} : vector<8x9xf32> to vector<8x1xf32>
    %392 = vector.broadcast %391 : vector<8x1xf32> to vector<8x256xf32>
    %393 = arith.mulf %390, %392 : vector<8x256xf32>
    %c15_i32_95 = arith.constant 15 : i32
    %394 = tpu.dynamic_rotate %375 by %c15_i32_95 dim 1 : vector<8x256xf32>, i32 -> vector<8x256xf32>
    %c2_96 = arith.constant 2 : index
    %c0_97 = arith.constant 0 : index
    %c0_98 = arith.constant 0 : index
    %395 = vector.load %arg10[%c2_96, %c0_97, %c0_98] : memref<16x1x256xf32, #tpu.memory_space<vmem>>, vector<1x1x256xf32>
    %396 = vector.shape_cast %395 : vector<1x1x256xf32> to vector<1x256xf32>
    %397 = vector.broadcast %396 : vector<1x256xf32> to vector<8x256xf32>
    %398 = arith.mulf %394, %397 : vector<8x256xf32>
    %399 = vector.extract_strided_slice %377 {offsets = [0, 2], sizes = [8, 1], strides = [1, 1]} : vector<8x9xf32> to vector<8x1xf32>
    %400 = vector.broadcast %399 : vector<8x1xf32> to vector<8x256xf32>
    %401 = arith.mulf %398, %400 : vector<8x256xf32>
    %c1_i32_99 = arith.constant 1 : i32
    %402 = tpu.dynamic_rotate %375 by %c1_i32_99 dim 1 : vector<8x256xf32>, i32 -> vector<8x256xf32>
    %c3_100 = arith.constant 3 : index
    %c0_101 = arith.constant 0 : index
    %c0_102 = arith.constant 0 : index
    %403 = vector.load %arg10[%c3_100, %c0_101, %c0_102] : memref<16x1x256xf32, #tpu.memory_space<vmem>>, vector<1x1x256xf32>
    %404 = vector.shape_cast %403 : vector<1x1x256xf32> to vector<1x256xf32>
    %405 = vector.broadcast %404 : vector<1x256xf32> to vector<8x256xf32>
    %406 = arith.mulf %402, %405 : vector<8x256xf32>
    %407 = vector.extract_strided_slice %377 {offsets = [0, 3], sizes = [8, 1], strides = [1, 1]} : vector<8x9xf32> to vector<8x1xf32>
    %408 = vector.broadcast %407 : vector<8x1xf32> to vector<8x256xf32>
    %409 = arith.mulf %406, %408 : vector<8x256xf32>
    %410 = vector.extract_strided_slice %377 {offsets = [0, 4], sizes = [8, 1], strides = [1, 1]} : vector<8x9xf32> to vector<8x1xf32>
    %411 = vector.broadcast %410 : vector<8x1xf32> to vector<8x256xf32>
    %412 = arith.mulf %375, %411 : vector<8x256xf32>
    %c255_i32_103 = arith.constant 255 : i32
    %413 = tpu.dynamic_rotate %375 by %c255_i32_103 dim 1 : vector<8x256xf32>, i32 -> vector<8x256xf32>
    %c4_104 = arith.constant 4 : index
    %c0_105 = arith.constant 0 : index
    %c0_106 = arith.constant 0 : index
    %414 = vector.load %arg10[%c4_104, %c0_105, %c0_106] : memref<16x1x256xf32, #tpu.memory_space<vmem>>, vector<1x1x256xf32>
    %415 = vector.shape_cast %414 : vector<1x1x256xf32> to vector<1x256xf32>
    %416 = vector.broadcast %415 : vector<1x256xf32> to vector<8x256xf32>
    %417 = arith.mulf %413, %416 : vector<8x256xf32>
    %418 = vector.extract_strided_slice %377 {offsets = [0, 5], sizes = [8, 1], strides = [1, 1]} : vector<8x9xf32> to vector<8x1xf32>
    %419 = vector.broadcast %418 : vector<8x1xf32> to vector<8x256xf32>
    %420 = arith.mulf %417, %419 : vector<8x256xf32>
    %c241_i32_107 = arith.constant 241 : i32
    %421 = tpu.dynamic_rotate %375 by %c241_i32_107 dim 1 : vector<8x256xf32>, i32 -> vector<8x256xf32>
    %c5_108 = arith.constant 5 : index
    %c0_109 = arith.constant 0 : index
    %c0_110 = arith.constant 0 : index
    %422 = vector.load %arg10[%c5_108, %c0_109, %c0_110] : memref<16x1x256xf32, #tpu.memory_space<vmem>>, vector<1x1x256xf32>
    %423 = vector.shape_cast %422 : vector<1x1x256xf32> to vector<1x256xf32>
    %424 = vector.broadcast %423 : vector<1x256xf32> to vector<8x256xf32>
    %425 = arith.mulf %421, %424 : vector<8x256xf32>
    %426 = vector.extract_strided_slice %377 {offsets = [0, 6], sizes = [8, 1], strides = [1, 1]} : vector<8x9xf32> to vector<8x1xf32>
    %427 = vector.broadcast %426 : vector<8x1xf32> to vector<8x256xf32>
    %428 = arith.mulf %425, %427 : vector<8x256xf32>
    %c240_i32_111 = arith.constant 240 : i32
    %429 = tpu.dynamic_rotate %375 by %c240_i32_111 dim 1 : vector<8x256xf32>, i32 -> vector<8x256xf32>
    %c6_112 = arith.constant 6 : index
    %c0_113 = arith.constant 0 : index
    %c0_114 = arith.constant 0 : index
    %430 = vector.load %arg10[%c6_112, %c0_113, %c0_114] : memref<16x1x256xf32, #tpu.memory_space<vmem>>, vector<1x1x256xf32>
    %431 = vector.shape_cast %430 : vector<1x1x256xf32> to vector<1x256xf32>
    %432 = vector.broadcast %431 : vector<1x256xf32> to vector<8x256xf32>
    %433 = arith.mulf %429, %432 : vector<8x256xf32>
    %434 = vector.extract_strided_slice %377 {offsets = [0, 7], sizes = [8, 1], strides = [1, 1]} : vector<8x9xf32> to vector<8x1xf32>
    %435 = vector.broadcast %434 : vector<8x1xf32> to vector<8x256xf32>
    %436 = arith.mulf %433, %435 : vector<8x256xf32>
    %c239_i32_115 = arith.constant 239 : i32
    %437 = tpu.dynamic_rotate %375 by %c239_i32_115 dim 1 : vector<8x256xf32>, i32 -> vector<8x256xf32>
    %c7_116 = arith.constant 7 : index
    %c0_117 = arith.constant 0 : index
    %c0_118 = arith.constant 0 : index
    %438 = vector.load %arg10[%c7_116, %c0_117, %c0_118] : memref<16x1x256xf32, #tpu.memory_space<vmem>>, vector<1x1x256xf32>
    %439 = vector.shape_cast %438 : vector<1x1x256xf32> to vector<1x256xf32>
    %440 = vector.broadcast %439 : vector<1x256xf32> to vector<8x256xf32>
    %441 = arith.mulf %437, %440 : vector<8x256xf32>
    %442 = vector.extract_strided_slice %377 {offsets = [0, 8], sizes = [8, 1], strides = [1, 1]} : vector<8x9xf32> to vector<8x1xf32>
    %443 = vector.broadcast %442 : vector<8x1xf32> to vector<8x256xf32>
    %444 = arith.mulf %441, %443 : vector<8x256xf32>
    %445 = arith.addf %385, %393 : vector<8x256xf32>
    %446 = arith.addf %401, %409 : vector<8x256xf32>
    %447 = arith.addf %412, %420 : vector<8x256xf32>
    %448 = arith.addf %428, %436 : vector<8x256xf32>
    %449 = arith.addf %445, %446 : vector<8x256xf32>
    %450 = arith.addf %447, %448 : vector<8x256xf32>
    %451 = arith.addf %449, %450 : vector<8x256xf32>
    %452 = arith.addf %451, %444 : vector<8x256xf32>
    %c2_119 = arith.constant 2 : index
    %c0_120 = arith.constant 0 : index
    %c0_121 = arith.constant 0 : index
    %453 = vector.load %arg8[%c2_119, %c0_120, %c0_121] : memref<11x8x8xf32, #tpu.memory_space<vmem>>, vector<1x8x8xf32>
    %454 = vector.shape_cast %453 : vector<1x8x8xf32> to vector<8x8xf32>
    %c2_122 = arith.constant 2 : index
    %c0_123 = arith.constant 0 : index
    %c0_124 = arith.constant 0 : index
    %455 = vector.load %arg9[%c2_122, %c0_123, %c0_124] : memref<11x8x1xf32, #tpu.memory_space<vmem>>, vector<1x8x1xf32>
    %456 = vector.shape_cast %455 : vector<1x8x1xf32> to vector<8x1xf32>
    %457 = vector.extract_strided_slice %454 {offsets = [0, 0], sizes = [8, 1], strides = [1, 1]} : vector<8x8xf32> to vector<8x1xf32>
    %458 = vector.extract_strided_slice %452 {offsets = [0, 0], sizes = [1, 256], strides = [1, 1]} : vector<8x256xf32> to vector<1x256xf32>
    %459 = vector.broadcast %457 : vector<8x1xf32> to vector<8x256xf32>
    %460 = vector.broadcast %458 : vector<1x256xf32> to vector<8x256xf32>
    %461 = arith.mulf %459, %460 : vector<8x256xf32>
    %462 = vector.extract_strided_slice %454 {offsets = [0, 1], sizes = [8, 1], strides = [1, 1]} : vector<8x8xf32> to vector<8x1xf32>
    %463 = vector.extract_strided_slice %452 {offsets = [1, 0], sizes = [1, 256], strides = [1, 1]} : vector<8x256xf32> to vector<1x256xf32>
    %464 = vector.broadcast %462 : vector<8x1xf32> to vector<8x256xf32>
    %465 = vector.broadcast %463 : vector<1x256xf32> to vector<8x256xf32>
    %466 = arith.mulf %464, %465 : vector<8x256xf32>
    %467 = vector.extract_strided_slice %454 {offsets = [0, 2], sizes = [8, 1], strides = [1, 1]} : vector<8x8xf32> to vector<8x1xf32>
    %468 = vector.extract_strided_slice %452 {offsets = [2, 0], sizes = [1, 256], strides = [1, 1]} : vector<8x256xf32> to vector<1x256xf32>
    %469 = vector.broadcast %467 : vector<8x1xf32> to vector<8x256xf32>
    %470 = vector.broadcast %468 : vector<1x256xf32> to vector<8x256xf32>
    %471 = arith.mulf %469, %470 : vector<8x256xf32>
    %472 = vector.extract_strided_slice %454 {offsets = [0, 3], sizes = [8, 1], strides = [1, 1]} : vector<8x8xf32> to vector<8x1xf32>
    %473 = vector.extract_strided_slice %452 {offsets = [3, 0], sizes = [1, 256], strides = [1, 1]} : vector<8x256xf32> to vector<1x256xf32>
    %474 = vector.broadcast %472 : vector<8x1xf32> to vector<8x256xf32>
    %475 = vector.broadcast %473 : vector<1x256xf32> to vector<8x256xf32>
    %476 = arith.mulf %474, %475 : vector<8x256xf32>
    %477 = vector.extract_strided_slice %454 {offsets = [0, 4], sizes = [8, 1], strides = [1, 1]} : vector<8x8xf32> to vector<8x1xf32>
    %478 = vector.extract_strided_slice %452 {offsets = [4, 0], sizes = [1, 256], strides = [1, 1]} : vector<8x256xf32> to vector<1x256xf32>
    %479 = vector.broadcast %477 : vector<8x1xf32> to vector<8x256xf32>
    %480 = vector.broadcast %478 : vector<1x256xf32> to vector<8x256xf32>
    %481 = arith.mulf %479, %480 : vector<8x256xf32>
    %482 = vector.extract_strided_slice %454 {offsets = [0, 5], sizes = [8, 1], strides = [1, 1]} : vector<8x8xf32> to vector<8x1xf32>
    %483 = vector.extract_strided_slice %452 {offsets = [5, 0], sizes = [1, 256], strides = [1, 1]} : vector<8x256xf32> to vector<1x256xf32>
    %484 = vector.broadcast %482 : vector<8x1xf32> to vector<8x256xf32>
    %485 = vector.broadcast %483 : vector<1x256xf32> to vector<8x256xf32>
    %486 = arith.mulf %484, %485 : vector<8x256xf32>
    %487 = vector.extract_strided_slice %454 {offsets = [0, 6], sizes = [8, 1], strides = [1, 1]} : vector<8x8xf32> to vector<8x1xf32>
    %488 = vector.extract_strided_slice %452 {offsets = [6, 0], sizes = [1, 256], strides = [1, 1]} : vector<8x256xf32> to vector<1x256xf32>
    %489 = vector.broadcast %487 : vector<8x1xf32> to vector<8x256xf32>
    %490 = vector.broadcast %488 : vector<1x256xf32> to vector<8x256xf32>
    %491 = arith.mulf %489, %490 : vector<8x256xf32>
    %492 = vector.extract_strided_slice %454 {offsets = [0, 7], sizes = [8, 1], strides = [1, 1]} : vector<8x8xf32> to vector<8x1xf32>
    %493 = vector.extract_strided_slice %452 {offsets = [7, 0], sizes = [1, 256], strides = [1, 1]} : vector<8x256xf32> to vector<1x256xf32>
    %494 = vector.broadcast %492 : vector<8x1xf32> to vector<8x256xf32>
    %495 = vector.broadcast %493 : vector<1x256xf32> to vector<8x256xf32>
    %496 = arith.mulf %494, %495 : vector<8x256xf32>
    %497 = arith.addf %461, %466 : vector<8x256xf32>
    %498 = arith.addf %471, %476 : vector<8x256xf32>
    %499 = arith.addf %481, %486 : vector<8x256xf32>
    %500 = arith.addf %491, %496 : vector<8x256xf32>
    %501 = arith.addf %497, %498 : vector<8x256xf32>
    %502 = arith.addf %499, %500 : vector<8x256xf32>
    %503 = arith.addf %501, %502 : vector<8x256xf32>
    %504 = vector.broadcast %456 : vector<8x1xf32> to vector<8x256xf32>
    %505 = arith.addf %503, %504 : vector<8x256xf32>
    %cst_125 = arith.constant 0.000000e+00 : f32
    %506 = vector.broadcast %cst_125 : f32 to vector<8x256xf32>
    %507 = arith.maximumf %505, %506 : vector<8x256xf32>
    %c3_126 = arith.constant 3 : index
    %c0_127 = arith.constant 0 : index
    %c0_128 = arith.constant 0 : index
    %508 = vector.load %arg7[%c3_126, %c0_127, %c0_128] : memref<11x8x9xf32, #tpu.memory_space<vmem>>, vector<1x8x9xf32>
    %509 = vector.shape_cast %508 : vector<1x8x9xf32> to vector<8x9xf32>
    %c17_i32_129 = arith.constant 17 : i32
    %510 = tpu.dynamic_rotate %507 by %c17_i32_129 dim 1 : vector<8x256xf32>, i32 -> vector<8x256xf32>
    %c0_130 = arith.constant 0 : index
    %c0_131 = arith.constant 0 : index
    %c0_132 = arith.constant 0 : index
    %511 = vector.load %arg10[%c0_130, %c0_131, %c0_132] : memref<16x1x256xf32, #tpu.memory_space<vmem>>, vector<1x1x256xf32>
    %512 = vector.shape_cast %511 : vector<1x1x256xf32> to vector<1x256xf32>
    %513 = vector.broadcast %512 : vector<1x256xf32> to vector<8x256xf32>
    %514 = arith.mulf %510, %513 : vector<8x256xf32>
    %515 = vector.extract_strided_slice %509 {offsets = [0, 0], sizes = [8, 1], strides = [1, 1]} : vector<8x9xf32> to vector<8x1xf32>
    %516 = vector.broadcast %515 : vector<8x1xf32> to vector<8x256xf32>
    %517 = arith.mulf %514, %516 : vector<8x256xf32>
    %c16_i32_133 = arith.constant 16 : i32
    %518 = tpu.dynamic_rotate %507 by %c16_i32_133 dim 1 : vector<8x256xf32>, i32 -> vector<8x256xf32>
    %c1_134 = arith.constant 1 : index
    %c0_135 = arith.constant 0 : index
    %c0_136 = arith.constant 0 : index
    %519 = vector.load %arg10[%c1_134, %c0_135, %c0_136] : memref<16x1x256xf32, #tpu.memory_space<vmem>>, vector<1x1x256xf32>
    %520 = vector.shape_cast %519 : vector<1x1x256xf32> to vector<1x256xf32>
    %521 = vector.broadcast %520 : vector<1x256xf32> to vector<8x256xf32>
    %522 = arith.mulf %518, %521 : vector<8x256xf32>
    %523 = vector.extract_strided_slice %509 {offsets = [0, 1], sizes = [8, 1], strides = [1, 1]} : vector<8x9xf32> to vector<8x1xf32>
    %524 = vector.broadcast %523 : vector<8x1xf32> to vector<8x256xf32>
    %525 = arith.mulf %522, %524 : vector<8x256xf32>
    %c15_i32_137 = arith.constant 15 : i32
    %526 = tpu.dynamic_rotate %507 by %c15_i32_137 dim 1 : vector<8x256xf32>, i32 -> vector<8x256xf32>
    %c2_138 = arith.constant 2 : index
    %c0_139 = arith.constant 0 : index
    %c0_140 = arith.constant 0 : index
    %527 = vector.load %arg10[%c2_138, %c0_139, %c0_140] : memref<16x1x256xf32, #tpu.memory_space<vmem>>, vector<1x1x256xf32>
    %528 = vector.shape_cast %527 : vector<1x1x256xf32> to vector<1x256xf32>
    %529 = vector.broadcast %528 : vector<1x256xf32> to vector<8x256xf32>
    %530 = arith.mulf %526, %529 : vector<8x256xf32>
    %531 = vector.extract_strided_slice %509 {offsets = [0, 2], sizes = [8, 1], strides = [1, 1]} : vector<8x9xf32> to vector<8x1xf32>
    %532 = vector.broadcast %531 : vector<8x1xf32> to vector<8x256xf32>
    %533 = arith.mulf %530, %532 : vector<8x256xf32>
    %c1_i32_141 = arith.constant 1 : i32
    %534 = tpu.dynamic_rotate %507 by %c1_i32_141 dim 1 : vector<8x256xf32>, i32 -> vector<8x256xf32>
    %c3_142 = arith.constant 3 : index
    %c0_143 = arith.constant 0 : index
    %c0_144 = arith.constant 0 : index
    %535 = vector.load %arg10[%c3_142, %c0_143, %c0_144] : memref<16x1x256xf32, #tpu.memory_space<vmem>>, vector<1x1x256xf32>
    %536 = vector.shape_cast %535 : vector<1x1x256xf32> to vector<1x256xf32>
    %537 = vector.broadcast %536 : vector<1x256xf32> to vector<8x256xf32>
    %538 = arith.mulf %534, %537 : vector<8x256xf32>
    %539 = vector.extract_strided_slice %509 {offsets = [0, 3], sizes = [8, 1], strides = [1, 1]} : vector<8x9xf32> to vector<8x1xf32>
    %540 = vector.broadcast %539 : vector<8x1xf32> to vector<8x256xf32>
    %541 = arith.mulf %538, %540 : vector<8x256xf32>
    %542 = vector.extract_strided_slice %509 {offsets = [0, 4], sizes = [8, 1], strides = [1, 1]} : vector<8x9xf32> to vector<8x1xf32>
    %543 = vector.broadcast %542 : vector<8x1xf32> to vector<8x256xf32>
    %544 = arith.mulf %507, %543 : vector<8x256xf32>
    %c255_i32_145 = arith.constant 255 : i32
    %545 = tpu.dynamic_rotate %507 by %c255_i32_145 dim 1 : vector<8x256xf32>, i32 -> vector<8x256xf32>
    %c4_146 = arith.constant 4 : index
    %c0_147 = arith.constant 0 : index
    %c0_148 = arith.constant 0 : index
    %546 = vector.load %arg10[%c4_146, %c0_147, %c0_148] : memref<16x1x256xf32, #tpu.memory_space<vmem>>, vector<1x1x256xf32>
    %547 = vector.shape_cast %546 : vector<1x1x256xf32> to vector<1x256xf32>
    %548 = vector.broadcast %547 : vector<1x256xf32> to vector<8x256xf32>
    %549 = arith.mulf %545, %548 : vector<8x256xf32>
    %550 = vector.extract_strided_slice %509 {offsets = [0, 5], sizes = [8, 1], strides = [1, 1]} : vector<8x9xf32> to vector<8x1xf32>
    %551 = vector.broadcast %550 : vector<8x1xf32> to vector<8x256xf32>
    %552 = arith.mulf %549, %551 : vector<8x256xf32>
    %c241_i32_149 = arith.constant 241 : i32
    %553 = tpu.dynamic_rotate %507 by %c241_i32_149 dim 1 : vector<8x256xf32>, i32 -> vector<8x256xf32>
    %c5_150 = arith.constant 5 : index
    %c0_151 = arith.constant 0 : index
    %c0_152 = arith.constant 0 : index
    %554 = vector.load %arg10[%c5_150, %c0_151, %c0_152] : memref<16x1x256xf32, #tpu.memory_space<vmem>>, vector<1x1x256xf32>
    %555 = vector.shape_cast %554 : vector<1x1x256xf32> to vector<1x256xf32>
    %556 = vector.broadcast %555 : vector<1x256xf32> to vector<8x256xf32>
    %557 = arith.mulf %553, %556 : vector<8x256xf32>
    %558 = vector.extract_strided_slice %509 {offsets = [0, 6], sizes = [8, 1], strides = [1, 1]} : vector<8x9xf32> to vector<8x1xf32>
    %559 = vector.broadcast %558 : vector<8x1xf32> to vector<8x256xf32>
    %560 = arith.mulf %557, %559 : vector<8x256xf32>
    %c240_i32_153 = arith.constant 240 : i32
    %561 = tpu.dynamic_rotate %507 by %c240_i32_153 dim 1 : vector<8x256xf32>, i32 -> vector<8x256xf32>
    %c6_154 = arith.constant 6 : index
    %c0_155 = arith.constant 0 : index
    %c0_156 = arith.constant 0 : index
    %562 = vector.load %arg10[%c6_154, %c0_155, %c0_156] : memref<16x1x256xf32, #tpu.memory_space<vmem>>, vector<1x1x256xf32>
    %563 = vector.shape_cast %562 : vector<1x1x256xf32> to vector<1x256xf32>
    %564 = vector.broadcast %563 : vector<1x256xf32> to vector<8x256xf32>
    %565 = arith.mulf %561, %564 : vector<8x256xf32>
    %566 = vector.extract_strided_slice %509 {offsets = [0, 7], sizes = [8, 1], strides = [1, 1]} : vector<8x9xf32> to vector<8x1xf32>
    %567 = vector.broadcast %566 : vector<8x1xf32> to vector<8x256xf32>
    %568 = arith.mulf %565, %567 : vector<8x256xf32>
    %c239_i32_157 = arith.constant 239 : i32
    %569 = tpu.dynamic_rotate %507 by %c239_i32_157 dim 1 : vector<8x256xf32>, i32 -> vector<8x256xf32>
    %c7_158 = arith.constant 7 : index
    %c0_159 = arith.constant 0 : index
    %c0_160 = arith.constant 0 : index
    %570 = vector.load %arg10[%c7_158, %c0_159, %c0_160] : memref<16x1x256xf32, #tpu.memory_space<vmem>>, vector<1x1x256xf32>
    %571 = vector.shape_cast %570 : vector<1x1x256xf32> to vector<1x256xf32>
    %572 = vector.broadcast %571 : vector<1x256xf32> to vector<8x256xf32>
    %573 = arith.mulf %569, %572 : vector<8x256xf32>
    %574 = vector.extract_strided_slice %509 {offsets = [0, 8], sizes = [8, 1], strides = [1, 1]} : vector<8x9xf32> to vector<8x1xf32>
    %575 = vector.broadcast %574 : vector<8x1xf32> to vector<8x256xf32>
    %576 = arith.mulf %573, %575 : vector<8x256xf32>
    %577 = arith.addf %517, %525 : vector<8x256xf32>
    %578 = arith.addf %533, %541 : vector<8x256xf32>
    %579 = arith.addf %544, %552 : vector<8x256xf32>
    %580 = arith.addf %560, %568 : vector<8x256xf32>
    %581 = arith.addf %577, %578 : vector<8x256xf32>
    %582 = arith.addf %579, %580 : vector<8x256xf32>
    %583 = arith.addf %581, %582 : vector<8x256xf32>
    %584 = arith.addf %583, %576 : vector<8x256xf32>
    %c3_161 = arith.constant 3 : index
    %c0_162 = arith.constant 0 : index
    %c0_163 = arith.constant 0 : index
    %585 = vector.load %arg8[%c3_161, %c0_162, %c0_163] : memref<11x8x8xf32, #tpu.memory_space<vmem>>, vector<1x8x8xf32>
    %586 = vector.shape_cast %585 : vector<1x8x8xf32> to vector<8x8xf32>
    %c3_164 = arith.constant 3 : index
    %c0_165 = arith.constant 0 : index
    %c0_166 = arith.constant 0 : index
    %587 = vector.load %arg9[%c3_164, %c0_165, %c0_166] : memref<11x8x1xf32, #tpu.memory_space<vmem>>, vector<1x8x1xf32>
    %588 = vector.shape_cast %587 : vector<1x8x1xf32> to vector<8x1xf32>
    %589 = vector.extract_strided_slice %586 {offsets = [0, 0], sizes = [8, 1], strides = [1, 1]} : vector<8x8xf32> to vector<8x1xf32>
    %590 = vector.extract_strided_slice %584 {offsets = [0, 0], sizes = [1, 256], strides = [1, 1]} : vector<8x256xf32> to vector<1x256xf32>
    %591 = vector.broadcast %589 : vector<8x1xf32> to vector<8x256xf32>
    %592 = vector.broadcast %590 : vector<1x256xf32> to vector<8x256xf32>
    %593 = arith.mulf %591, %592 : vector<8x256xf32>
    %594 = vector.extract_strided_slice %586 {offsets = [0, 1], sizes = [8, 1], strides = [1, 1]} : vector<8x8xf32> to vector<8x1xf32>
    %595 = vector.extract_strided_slice %584 {offsets = [1, 0], sizes = [1, 256], strides = [1, 1]} : vector<8x256xf32> to vector<1x256xf32>
    %596 = vector.broadcast %594 : vector<8x1xf32> to vector<8x256xf32>
    %597 = vector.broadcast %595 : vector<1x256xf32> to vector<8x256xf32>
    %598 = arith.mulf %596, %597 : vector<8x256xf32>
    %599 = vector.extract_strided_slice %586 {offsets = [0, 2], sizes = [8, 1], strides = [1, 1]} : vector<8x8xf32> to vector<8x1xf32>
    %600 = vector.extract_strided_slice %584 {offsets = [2, 0], sizes = [1, 256], strides = [1, 1]} : vector<8x256xf32> to vector<1x256xf32>
    %601 = vector.broadcast %599 : vector<8x1xf32> to vector<8x256xf32>
    %602 = vector.broadcast %600 : vector<1x256xf32> to vector<8x256xf32>
    %603 = arith.mulf %601, %602 : vector<8x256xf32>
    %604 = vector.extract_strided_slice %586 {offsets = [0, 3], sizes = [8, 1], strides = [1, 1]} : vector<8x8xf32> to vector<8x1xf32>
    %605 = vector.extract_strided_slice %584 {offsets = [3, 0], sizes = [1, 256], strides = [1, 1]} : vector<8x256xf32> to vector<1x256xf32>
    %606 = vector.broadcast %604 : vector<8x1xf32> to vector<8x256xf32>
    %607 = vector.broadcast %605 : vector<1x256xf32> to vector<8x256xf32>
    %608 = arith.mulf %606, %607 : vector<8x256xf32>
    %609 = vector.extract_strided_slice %586 {offsets = [0, 4], sizes = [8, 1], strides = [1, 1]} : vector<8x8xf32> to vector<8x1xf32>
    %610 = vector.extract_strided_slice %584 {offsets = [4, 0], sizes = [1, 256], strides = [1, 1]} : vector<8x256xf32> to vector<1x256xf32>
    %611 = vector.broadcast %609 : vector<8x1xf32> to vector<8x256xf32>
    %612 = vector.broadcast %610 : vector<1x256xf32> to vector<8x256xf32>
    %613 = arith.mulf %611, %612 : vector<8x256xf32>
    %614 = vector.extract_strided_slice %586 {offsets = [0, 5], sizes = [8, 1], strides = [1, 1]} : vector<8x8xf32> to vector<8x1xf32>
    %615 = vector.extract_strided_slice %584 {offsets = [5, 0], sizes = [1, 256], strides = [1, 1]} : vector<8x256xf32> to vector<1x256xf32>
    %616 = vector.broadcast %614 : vector<8x1xf32> to vector<8x256xf32>
    %617 = vector.broadcast %615 : vector<1x256xf32> to vector<8x256xf32>
    %618 = arith.mulf %616, %617 : vector<8x256xf32>
    %619 = vector.extract_strided_slice %586 {offsets = [0, 6], sizes = [8, 1], strides = [1, 1]} : vector<8x8xf32> to vector<8x1xf32>
    %620 = vector.extract_strided_slice %584 {offsets = [6, 0], sizes = [1, 256], strides = [1, 1]} : vector<8x256xf32> to vector<1x256xf32>
    %621 = vector.broadcast %619 : vector<8x1xf32> to vector<8x256xf32>
    %622 = vector.broadcast %620 : vector<1x256xf32> to vector<8x256xf32>
    %623 = arith.mulf %621, %622 : vector<8x256xf32>
    %624 = vector.extract_strided_slice %586 {offsets = [0, 7], sizes = [8, 1], strides = [1, 1]} : vector<8x8xf32> to vector<8x1xf32>
    %625 = vector.extract_strided_slice %584 {offsets = [7, 0], sizes = [1, 256], strides = [1, 1]} : vector<8x256xf32> to vector<1x256xf32>
    %626 = vector.broadcast %624 : vector<8x1xf32> to vector<8x256xf32>
    %627 = vector.broadcast %625 : vector<1x256xf32> to vector<8x256xf32>
    %628 = arith.mulf %626, %627 : vector<8x256xf32>
    %629 = arith.addf %593, %598 : vector<8x256xf32>
    %630 = arith.addf %603, %608 : vector<8x256xf32>
    %631 = arith.addf %613, %618 : vector<8x256xf32>
    %632 = arith.addf %623, %628 : vector<8x256xf32>
    %633 = arith.addf %629, %630 : vector<8x256xf32>
    %634 = arith.addf %631, %632 : vector<8x256xf32>
    %635 = arith.addf %633, %634 : vector<8x256xf32>
    %636 = vector.broadcast %588 : vector<8x1xf32> to vector<8x256xf32>
    %637 = arith.addf %635, %636 : vector<8x256xf32>
    %638 = arith.addf %373, %637 : vector<8x256xf32>
    %cst_167 = arith.constant 0.000000e+00 : f32
    %639 = vector.broadcast %cst_167 : f32 to vector<8x256xf32>
    %640 = arith.maximumf %54, %639 : vector<8x256xf32>
    %c4_168 = arith.constant 4 : index
    %c0_169 = arith.constant 0 : index
    %c0_170 = arith.constant 0 : index
    %641 = vector.load %arg7[%c4_168, %c0_169, %c0_170] : memref<11x8x9xf32, #tpu.memory_space<vmem>>, vector<1x8x9xf32>
    %642 = vector.shape_cast %641 : vector<1x8x9xf32> to vector<8x9xf32>
    %c17_i32_171 = arith.constant 17 : i32
    %643 = tpu.dynamic_rotate %640 by %c17_i32_171 dim 1 : vector<8x256xf32>, i32 -> vector<8x256xf32>
    %c0_172 = arith.constant 0 : index
    %c0_173 = arith.constant 0 : index
    %c0_174 = arith.constant 0 : index
    %644 = vector.load %arg10[%c0_172, %c0_173, %c0_174] : memref<16x1x256xf32, #tpu.memory_space<vmem>>, vector<1x1x256xf32>
    %645 = vector.shape_cast %644 : vector<1x1x256xf32> to vector<1x256xf32>
    %646 = vector.broadcast %645 : vector<1x256xf32> to vector<8x256xf32>
    %647 = arith.mulf %643, %646 : vector<8x256xf32>
    %648 = vector.extract_strided_slice %642 {offsets = [0, 0], sizes = [8, 1], strides = [1, 1]} : vector<8x9xf32> to vector<8x1xf32>
    %649 = vector.broadcast %648 : vector<8x1xf32> to vector<8x256xf32>
    %650 = arith.mulf %647, %649 : vector<8x256xf32>
    %c16_i32_175 = arith.constant 16 : i32
    %651 = tpu.dynamic_rotate %640 by %c16_i32_175 dim 1 : vector<8x256xf32>, i32 -> vector<8x256xf32>
    %c1_176 = arith.constant 1 : index
    %c0_177 = arith.constant 0 : index
    %c0_178 = arith.constant 0 : index
    %652 = vector.load %arg10[%c1_176, %c0_177, %c0_178] : memref<16x1x256xf32, #tpu.memory_space<vmem>>, vector<1x1x256xf32>
    %653 = vector.shape_cast %652 : vector<1x1x256xf32> to vector<1x256xf32>
    %654 = vector.broadcast %653 : vector<1x256xf32> to vector<8x256xf32>
    %655 = arith.mulf %651, %654 : vector<8x256xf32>
    %656 = vector.extract_strided_slice %642 {offsets = [0, 1], sizes = [8, 1], strides = [1, 1]} : vector<8x9xf32> to vector<8x1xf32>
    %657 = vector.broadcast %656 : vector<8x1xf32> to vector<8x256xf32>
    %658 = arith.mulf %655, %657 : vector<8x256xf32>
    %c15_i32_179 = arith.constant 15 : i32
    %659 = tpu.dynamic_rotate %640 by %c15_i32_179 dim 1 : vector<8x256xf32>, i32 -> vector<8x256xf32>
    %c2_180 = arith.constant 2 : index
    %c0_181 = arith.constant 0 : index
    %c0_182 = arith.constant 0 : index
    %660 = vector.load %arg10[%c2_180, %c0_181, %c0_182] : memref<16x1x256xf32, #tpu.memory_space<vmem>>, vector<1x1x256xf32>
    %661 = vector.shape_cast %660 : vector<1x1x256xf32> to vector<1x256xf32>
    %662 = vector.broadcast %661 : vector<1x256xf32> to vector<8x256xf32>
    %663 = arith.mulf %659, %662 : vector<8x256xf32>
    %664 = vector.extract_strided_slice %642 {offsets = [0, 2], sizes = [8, 1], strides = [1, 1]} : vector<8x9xf32> to vector<8x1xf32>
    %665 = vector.broadcast %664 : vector<8x1xf32> to vector<8x256xf32>
    %666 = arith.mulf %663, %665 : vector<8x256xf32>
    %c1_i32_183 = arith.constant 1 : i32
    %667 = tpu.dynamic_rotate %640 by %c1_i32_183 dim 1 : vector<8x256xf32>, i32 -> vector<8x256xf32>
    %c3_184 = arith.constant 3 : index
    %c0_185 = arith.constant 0 : index
    %c0_186 = arith.constant 0 : index
    %668 = vector.load %arg10[%c3_184, %c0_185, %c0_186] : memref<16x1x256xf32, #tpu.memory_space<vmem>>, vector<1x1x256xf32>
    %669 = vector.shape_cast %668 : vector<1x1x256xf32> to vector<1x256xf32>
    %670 = vector.broadcast %669 : vector<1x256xf32> to vector<8x256xf32>
    %671 = arith.mulf %667, %670 : vector<8x256xf32>
    %672 = vector.extract_strided_slice %642 {offsets = [0, 3], sizes = [8, 1], strides = [1, 1]} : vector<8x9xf32> to vector<8x1xf32>
    %673 = vector.broadcast %672 : vector<8x1xf32> to vector<8x256xf32>
    %674 = arith.mulf %671, %673 : vector<8x256xf32>
    %675 = vector.extract_strided_slice %642 {offsets = [0, 4], sizes = [8, 1], strides = [1, 1]} : vector<8x9xf32> to vector<8x1xf32>
    %676 = vector.broadcast %675 : vector<8x1xf32> to vector<8x256xf32>
    %677 = arith.mulf %640, %676 : vector<8x256xf32>
    %c255_i32_187 = arith.constant 255 : i32
    %678 = tpu.dynamic_rotate %640 by %c255_i32_187 dim 1 : vector<8x256xf32>, i32 -> vector<8x256xf32>
    %c4_188 = arith.constant 4 : index
    %c0_189 = arith.constant 0 : index
    %c0_190 = arith.constant 0 : index
    %679 = vector.load %arg10[%c4_188, %c0_189, %c0_190] : memref<16x1x256xf32, #tpu.memory_space<vmem>>, vector<1x1x256xf32>
    %680 = vector.shape_cast %679 : vector<1x1x256xf32> to vector<1x256xf32>
    %681 = vector.broadcast %680 : vector<1x256xf32> to vector<8x256xf32>
    %682 = arith.mulf %678, %681 : vector<8x256xf32>
    %683 = vector.extract_strided_slice %642 {offsets = [0, 5], sizes = [8, 1], strides = [1, 1]} : vector<8x9xf32> to vector<8x1xf32>
    %684 = vector.broadcast %683 : vector<8x1xf32> to vector<8x256xf32>
    %685 = arith.mulf %682, %684 : vector<8x256xf32>
    %c241_i32_191 = arith.constant 241 : i32
    %686 = tpu.dynamic_rotate %640 by %c241_i32_191 dim 1 : vector<8x256xf32>, i32 -> vector<8x256xf32>
    %c5_192 = arith.constant 5 : index
    %c0_193 = arith.constant 0 : index
    %c0_194 = arith.constant 0 : index
    %687 = vector.load %arg10[%c5_192, %c0_193, %c0_194] : memref<16x1x256xf32, #tpu.memory_space<vmem>>, vector<1x1x256xf32>
    %688 = vector.shape_cast %687 : vector<1x1x256xf32> to vector<1x256xf32>
    %689 = vector.broadcast %688 : vector<1x256xf32> to vector<8x256xf32>
    %690 = arith.mulf %686, %689 : vector<8x256xf32>
    %691 = vector.extract_strided_slice %642 {offsets = [0, 6], sizes = [8, 1], strides = [1, 1]} : vector<8x9xf32> to vector<8x1xf32>
    %692 = vector.broadcast %691 : vector<8x1xf32> to vector<8x256xf32>
    %693 = arith.mulf %690, %692 : vector<8x256xf32>
    %c240_i32_195 = arith.constant 240 : i32
    %694 = tpu.dynamic_rotate %640 by %c240_i32_195 dim 1 : vector<8x256xf32>, i32 -> vector<8x256xf32>
    %c6_196 = arith.constant 6 : index
    %c0_197 = arith.constant 0 : index
    %c0_198 = arith.constant 0 : index
    %695 = vector.load %arg10[%c6_196, %c0_197, %c0_198] : memref<16x1x256xf32, #tpu.memory_space<vmem>>, vector<1x1x256xf32>
    %696 = vector.shape_cast %695 : vector<1x1x256xf32> to vector<1x256xf32>
    %697 = vector.broadcast %696 : vector<1x256xf32> to vector<8x256xf32>
    %698 = arith.mulf %694, %697 : vector<8x256xf32>
    %699 = vector.extract_strided_slice %642 {offsets = [0, 7], sizes = [8, 1], strides = [1, 1]} : vector<8x9xf32> to vector<8x1xf32>
    %700 = vector.broadcast %699 : vector<8x1xf32> to vector<8x256xf32>
    %701 = arith.mulf %698, %700 : vector<8x256xf32>
    %c239_i32_199 = arith.constant 239 : i32
    %702 = tpu.dynamic_rotate %640 by %c239_i32_199 dim 1 : vector<8x256xf32>, i32 -> vector<8x256xf32>
    %c7_200 = arith.constant 7 : index
    %c0_201 = arith.constant 0 : index
    %c0_202 = arith.constant 0 : index
    %703 = vector.load %arg10[%c7_200, %c0_201, %c0_202] : memref<16x1x256xf32, #tpu.memory_space<vmem>>, vector<1x1x256xf32>
    %704 = vector.shape_cast %703 : vector<1x1x256xf32> to vector<1x256xf32>
    %705 = vector.broadcast %704 : vector<1x256xf32> to vector<8x256xf32>
    %706 = arith.mulf %702, %705 : vector<8x256xf32>
    %707 = vector.extract_strided_slice %642 {offsets = [0, 8], sizes = [8, 1], strides = [1, 1]} : vector<8x9xf32> to vector<8x1xf32>
    %708 = vector.broadcast %707 : vector<8x1xf32> to vector<8x256xf32>
    %709 = arith.mulf %706, %708 : vector<8x256xf32>
    %710 = arith.addf %650, %658 : vector<8x256xf32>
    %711 = arith.addf %666, %674 : vector<8x256xf32>
    %712 = arith.addf %677, %685 : vector<8x256xf32>
    %713 = arith.addf %693, %701 : vector<8x256xf32>
    %714 = arith.addf %710, %711 : vector<8x256xf32>
    %715 = arith.addf %712, %713 : vector<8x256xf32>
    %716 = arith.addf %714, %715 : vector<8x256xf32>
    %717 = arith.addf %716, %709 : vector<8x256xf32>
    %c4_203 = arith.constant 4 : index
    %c0_204 = arith.constant 0 : index
    %c0_205 = arith.constant 0 : index
    %718 = vector.load %arg8[%c4_203, %c0_204, %c0_205] : memref<11x8x8xf32, #tpu.memory_space<vmem>>, vector<1x8x8xf32>
    %719 = vector.shape_cast %718 : vector<1x8x8xf32> to vector<8x8xf32>
    %c4_206 = arith.constant 4 : index
    %c0_207 = arith.constant 0 : index
    %c0_208 = arith.constant 0 : index
    %720 = vector.load %arg9[%c4_206, %c0_207, %c0_208] : memref<11x8x1xf32, #tpu.memory_space<vmem>>, vector<1x8x1xf32>
    %721 = vector.shape_cast %720 : vector<1x8x1xf32> to vector<8x1xf32>
    %722 = vector.extract_strided_slice %719 {offsets = [0, 0], sizes = [8, 1], strides = [1, 1]} : vector<8x8xf32> to vector<8x1xf32>
    %723 = vector.extract_strided_slice %717 {offsets = [0, 0], sizes = [1, 256], strides = [1, 1]} : vector<8x256xf32> to vector<1x256xf32>
    %724 = vector.broadcast %722 : vector<8x1xf32> to vector<8x256xf32>
    %725 = vector.broadcast %723 : vector<1x256xf32> to vector<8x256xf32>
    %726 = arith.mulf %724, %725 : vector<8x256xf32>
    %727 = vector.extract_strided_slice %719 {offsets = [0, 1], sizes = [8, 1], strides = [1, 1]} : vector<8x8xf32> to vector<8x1xf32>
    %728 = vector.extract_strided_slice %717 {offsets = [1, 0], sizes = [1, 256], strides = [1, 1]} : vector<8x256xf32> to vector<1x256xf32>
    %729 = vector.broadcast %727 : vector<8x1xf32> to vector<8x256xf32>
    %730 = vector.broadcast %728 : vector<1x256xf32> to vector<8x256xf32>
    %731 = arith.mulf %729, %730 : vector<8x256xf32>
    %732 = vector.extract_strided_slice %719 {offsets = [0, 2], sizes = [8, 1], strides = [1, 1]} : vector<8x8xf32> to vector<8x1xf32>
    %733 = vector.extract_strided_slice %717 {offsets = [2, 0], sizes = [1, 256], strides = [1, 1]} : vector<8x256xf32> to vector<1x256xf32>
    %734 = vector.broadcast %732 : vector<8x1xf32> to vector<8x256xf32>
    %735 = vector.broadcast %733 : vector<1x256xf32> to vector<8x256xf32>
    %736 = arith.mulf %734, %735 : vector<8x256xf32>
    %737 = vector.extract_strided_slice %719 {offsets = [0, 3], sizes = [8, 1], strides = [1, 1]} : vector<8x8xf32> to vector<8x1xf32>
    %738 = vector.extract_strided_slice %717 {offsets = [3, 0], sizes = [1, 256], strides = [1, 1]} : vector<8x256xf32> to vector<1x256xf32>
    %739 = vector.broadcast %737 : vector<8x1xf32> to vector<8x256xf32>
    %740 = vector.broadcast %738 : vector<1x256xf32> to vector<8x256xf32>
    %741 = arith.mulf %739, %740 : vector<8x256xf32>
    %742 = vector.extract_strided_slice %719 {offsets = [0, 4], sizes = [8, 1], strides = [1, 1]} : vector<8x8xf32> to vector<8x1xf32>
    %743 = vector.extract_strided_slice %717 {offsets = [4, 0], sizes = [1, 256], strides = [1, 1]} : vector<8x256xf32> to vector<1x256xf32>
    %744 = vector.broadcast %742 : vector<8x1xf32> to vector<8x256xf32>
    %745 = vector.broadcast %743 : vector<1x256xf32> to vector<8x256xf32>
    %746 = arith.mulf %744, %745 : vector<8x256xf32>
    %747 = vector.extract_strided_slice %719 {offsets = [0, 5], sizes = [8, 1], strides = [1, 1]} : vector<8x8xf32> to vector<8x1xf32>
    %748 = vector.extract_strided_slice %717 {offsets = [5, 0], sizes = [1, 256], strides = [1, 1]} : vector<8x256xf32> to vector<1x256xf32>
    %749 = vector.broadcast %747 : vector<8x1xf32> to vector<8x256xf32>
    %750 = vector.broadcast %748 : vector<1x256xf32> to vector<8x256xf32>
    %751 = arith.mulf %749, %750 : vector<8x256xf32>
    %752 = vector.extract_strided_slice %719 {offsets = [0, 6], sizes = [8, 1], strides = [1, 1]} : vector<8x8xf32> to vector<8x1xf32>
    %753 = vector.extract_strided_slice %717 {offsets = [6, 0], sizes = [1, 256], strides = [1, 1]} : vector<8x256xf32> to vector<1x256xf32>
    %754 = vector.broadcast %752 : vector<8x1xf32> to vector<8x256xf32>
    %755 = vector.broadcast %753 : vector<1x256xf32> to vector<8x256xf32>
    %756 = arith.mulf %754, %755 : vector<8x256xf32>
    %757 = vector.extract_strided_slice %719 {offsets = [0, 7], sizes = [8, 1], strides = [1, 1]} : vector<8x8xf32> to vector<8x1xf32>
    %758 = vector.extract_strided_slice %717 {offsets = [7, 0], sizes = [1, 256], strides = [1, 1]} : vector<8x256xf32> to vector<1x256xf32>
    %759 = vector.broadcast %757 : vector<8x1xf32> to vector<8x256xf32>
    %760 = vector.broadcast %758 : vector<1x256xf32> to vector<8x256xf32>
    %761 = arith.mulf %759, %760 : vector<8x256xf32>
    %762 = arith.addf %726, %731 : vector<8x256xf32>
    %763 = arith.addf %736, %741 : vector<8x256xf32>
    %764 = arith.addf %746, %751 : vector<8x256xf32>
    %765 = arith.addf %756, %761 : vector<8x256xf32>
    %766 = arith.addf %762, %763 : vector<8x256xf32>
    %767 = arith.addf %764, %765 : vector<8x256xf32>
    %768 = arith.addf %766, %767 : vector<8x256xf32>
    %769 = vector.broadcast %721 : vector<8x1xf32> to vector<8x256xf32>
    %770 = arith.addf %768, %769 : vector<8x256xf32>
    %cst_209 = arith.constant 0.000000e+00 : f32
    %771 = vector.broadcast %cst_209 : f32 to vector<8x256xf32>
    %772 = arith.maximumf %770, %771 : vector<8x256xf32>
    %c5_210 = arith.constant 5 : index
    %c0_211 = arith.constant 0 : index
    %c0_212 = arith.constant 0 : index
    %773 = vector.load %arg7[%c5_210, %c0_211, %c0_212] : memref<11x8x9xf32, #tpu.memory_space<vmem>>, vector<1x8x9xf32>
    %774 = vector.shape_cast %773 : vector<1x8x9xf32> to vector<8x9xf32>
    %c17_i32_213 = arith.constant 17 : i32
    %775 = tpu.dynamic_rotate %772 by %c17_i32_213 dim 1 : vector<8x256xf32>, i32 -> vector<8x256xf32>
    %c0_214 = arith.constant 0 : index
    %c0_215 = arith.constant 0 : index
    %c0_216 = arith.constant 0 : index
    %776 = vector.load %arg10[%c0_214, %c0_215, %c0_216] : memref<16x1x256xf32, #tpu.memory_space<vmem>>, vector<1x1x256xf32>
    %777 = vector.shape_cast %776 : vector<1x1x256xf32> to vector<1x256xf32>
    %778 = vector.broadcast %777 : vector<1x256xf32> to vector<8x256xf32>
    %779 = arith.mulf %775, %778 : vector<8x256xf32>
    %780 = vector.extract_strided_slice %774 {offsets = [0, 0], sizes = [8, 1], strides = [1, 1]} : vector<8x9xf32> to vector<8x1xf32>
    %781 = vector.broadcast %780 : vector<8x1xf32> to vector<8x256xf32>
    %782 = arith.mulf %779, %781 : vector<8x256xf32>
    %c16_i32_217 = arith.constant 16 : i32
    %783 = tpu.dynamic_rotate %772 by %c16_i32_217 dim 1 : vector<8x256xf32>, i32 -> vector<8x256xf32>
    %c1_218 = arith.constant 1 : index
    %c0_219 = arith.constant 0 : index
    %c0_220 = arith.constant 0 : index
    %784 = vector.load %arg10[%c1_218, %c0_219, %c0_220] : memref<16x1x256xf32, #tpu.memory_space<vmem>>, vector<1x1x256xf32>
    %785 = vector.shape_cast %784 : vector<1x1x256xf32> to vector<1x256xf32>
    %786 = vector.broadcast %785 : vector<1x256xf32> to vector<8x256xf32>
    %787 = arith.mulf %783, %786 : vector<8x256xf32>
    %788 = vector.extract_strided_slice %774 {offsets = [0, 1], sizes = [8, 1], strides = [1, 1]} : vector<8x9xf32> to vector<8x1xf32>
    %789 = vector.broadcast %788 : vector<8x1xf32> to vector<8x256xf32>
    %790 = arith.mulf %787, %789 : vector<8x256xf32>
    %c15_i32_221 = arith.constant 15 : i32
    %791 = tpu.dynamic_rotate %772 by %c15_i32_221 dim 1 : vector<8x256xf32>, i32 -> vector<8x256xf32>
    %c2_222 = arith.constant 2 : index
    %c0_223 = arith.constant 0 : index
    %c0_224 = arith.constant 0 : index
    %792 = vector.load %arg10[%c2_222, %c0_223, %c0_224] : memref<16x1x256xf32, #tpu.memory_space<vmem>>, vector<1x1x256xf32>
    %793 = vector.shape_cast %792 : vector<1x1x256xf32> to vector<1x256xf32>
    %794 = vector.broadcast %793 : vector<1x256xf32> to vector<8x256xf32>
    %795 = arith.mulf %791, %794 : vector<8x256xf32>
    %796 = vector.extract_strided_slice %774 {offsets = [0, 2], sizes = [8, 1], strides = [1, 1]} : vector<8x9xf32> to vector<8x1xf32>
    %797 = vector.broadcast %796 : vector<8x1xf32> to vector<8x256xf32>
    %798 = arith.mulf %795, %797 : vector<8x256xf32>
    %c1_i32_225 = arith.constant 1 : i32
    %799 = tpu.dynamic_rotate %772 by %c1_i32_225 dim 1 : vector<8x256xf32>, i32 -> vector<8x256xf32>
    %c3_226 = arith.constant 3 : index
    %c0_227 = arith.constant 0 : index
    %c0_228 = arith.constant 0 : index
    %800 = vector.load %arg10[%c3_226, %c0_227, %c0_228] : memref<16x1x256xf32, #tpu.memory_space<vmem>>, vector<1x1x256xf32>
    %801 = vector.shape_cast %800 : vector<1x1x256xf32> to vector<1x256xf32>
    %802 = vector.broadcast %801 : vector<1x256xf32> to vector<8x256xf32>
    %803 = arith.mulf %799, %802 : vector<8x256xf32>
    %804 = vector.extract_strided_slice %774 {offsets = [0, 3], sizes = [8, 1], strides = [1, 1]} : vector<8x9xf32> to vector<8x1xf32>
    %805 = vector.broadcast %804 : vector<8x1xf32> to vector<8x256xf32>
    %806 = arith.mulf %803, %805 : vector<8x256xf32>
    %807 = vector.extract_strided_slice %774 {offsets = [0, 4], sizes = [8, 1], strides = [1, 1]} : vector<8x9xf32> to vector<8x1xf32>
    %808 = vector.broadcast %807 : vector<8x1xf32> to vector<8x256xf32>
    %809 = arith.mulf %772, %808 : vector<8x256xf32>
    %c255_i32_229 = arith.constant 255 : i32
    %810 = tpu.dynamic_rotate %772 by %c255_i32_229 dim 1 : vector<8x256xf32>, i32 -> vector<8x256xf32>
    %c4_230 = arith.constant 4 : index
    %c0_231 = arith.constant 0 : index
    %c0_232 = arith.constant 0 : index
    %811 = vector.load %arg10[%c4_230, %c0_231, %c0_232] : memref<16x1x256xf32, #tpu.memory_space<vmem>>, vector<1x1x256xf32>
    %812 = vector.shape_cast %811 : vector<1x1x256xf32> to vector<1x256xf32>
    %813 = vector.broadcast %812 : vector<1x256xf32> to vector<8x256xf32>
    %814 = arith.mulf %810, %813 : vector<8x256xf32>
    %815 = vector.extract_strided_slice %774 {offsets = [0, 5], sizes = [8, 1], strides = [1, 1]} : vector<8x9xf32> to vector<8x1xf32>
    %816 = vector.broadcast %815 : vector<8x1xf32> to vector<8x256xf32>
    %817 = arith.mulf %814, %816 : vector<8x256xf32>
    %c241_i32_233 = arith.constant 241 : i32
    %818 = tpu.dynamic_rotate %772 by %c241_i32_233 dim 1 : vector<8x256xf32>, i32 -> vector<8x256xf32>
    %c5_234 = arith.constant 5 : index
    %c0_235 = arith.constant 0 : index
    %c0_236 = arith.constant 0 : index
    %819 = vector.load %arg10[%c5_234, %c0_235, %c0_236] : memref<16x1x256xf32, #tpu.memory_space<vmem>>, vector<1x1x256xf32>
    %820 = vector.shape_cast %819 : vector<1x1x256xf32> to vector<1x256xf32>
    %821 = vector.broadcast %820 : vector<1x256xf32> to vector<8x256xf32>
    %822 = arith.mulf %818, %821 : vector<8x256xf32>
    %823 = vector.extract_strided_slice %774 {offsets = [0, 6], sizes = [8, 1], strides = [1, 1]} : vector<8x9xf32> to vector<8x1xf32>
    %824 = vector.broadcast %823 : vector<8x1xf32> to vector<8x256xf32>
    %825 = arith.mulf %822, %824 : vector<8x256xf32>
    %c240_i32_237 = arith.constant 240 : i32
    %826 = tpu.dynamic_rotate %772 by %c240_i32_237 dim 1 : vector<8x256xf32>, i32 -> vector<8x256xf32>
    %c6_238 = arith.constant 6 : index
    %c0_239 = arith.constant 0 : index
    %c0_240 = arith.constant 0 : index
    %827 = vector.load %arg10[%c6_238, %c0_239, %c0_240] : memref<16x1x256xf32, #tpu.memory_space<vmem>>, vector<1x1x256xf32>
    %828 = vector.shape_cast %827 : vector<1x1x256xf32> to vector<1x256xf32>
    %829 = vector.broadcast %828 : vector<1x256xf32> to vector<8x256xf32>
    %830 = arith.mulf %826, %829 : vector<8x256xf32>
    %831 = vector.extract_strided_slice %774 {offsets = [0, 7], sizes = [8, 1], strides = [1, 1]} : vector<8x9xf32> to vector<8x1xf32>
    %832 = vector.broadcast %831 : vector<8x1xf32> to vector<8x256xf32>
    %833 = arith.mulf %830, %832 : vector<8x256xf32>
    %c239_i32_241 = arith.constant 239 : i32
    %834 = tpu.dynamic_rotate %772 by %c239_i32_241 dim 1 : vector<8x256xf32>, i32 -> vector<8x256xf32>
    %c7_242 = arith.constant 7 : index
    %c0_243 = arith.constant 0 : index
    %c0_244 = arith.constant 0 : index
    %835 = vector.load %arg10[%c7_242, %c0_243, %c0_244] : memref<16x1x256xf32, #tpu.memory_space<vmem>>, vector<1x1x256xf32>
    %836 = vector.shape_cast %835 : vector<1x1x256xf32> to vector<1x256xf32>
    %837 = vector.broadcast %836 : vector<1x256xf32> to vector<8x256xf32>
    %838 = arith.mulf %834, %837 : vector<8x256xf32>
    %839 = vector.extract_strided_slice %774 {offsets = [0, 8], sizes = [8, 1], strides = [1, 1]} : vector<8x9xf32> to vector<8x1xf32>
    %840 = vector.broadcast %839 : vector<8x1xf32> to vector<8x256xf32>
    %841 = arith.mulf %838, %840 : vector<8x256xf32>
    %842 = arith.addf %782, %790 : vector<8x256xf32>
    %843 = arith.addf %798, %806 : vector<8x256xf32>
    %844 = arith.addf %809, %817 : vector<8x256xf32>
    %845 = arith.addf %825, %833 : vector<8x256xf32>
    %846 = arith.addf %842, %843 : vector<8x256xf32>
    %847 = arith.addf %844, %845 : vector<8x256xf32>
    %848 = arith.addf %846, %847 : vector<8x256xf32>
    %849 = arith.addf %848, %841 : vector<8x256xf32>
    %c5_245 = arith.constant 5 : index
    %c0_246 = arith.constant 0 : index
    %c0_247 = arith.constant 0 : index
    %850 = vector.load %arg8[%c5_245, %c0_246, %c0_247] : memref<11x8x8xf32, #tpu.memory_space<vmem>>, vector<1x8x8xf32>
    %851 = vector.shape_cast %850 : vector<1x8x8xf32> to vector<8x8xf32>
    %c5_248 = arith.constant 5 : index
    %c0_249 = arith.constant 0 : index
    %c0_250 = arith.constant 0 : index
    %852 = vector.load %arg9[%c5_248, %c0_249, %c0_250] : memref<11x8x1xf32, #tpu.memory_space<vmem>>, vector<1x8x1xf32>
    %853 = vector.shape_cast %852 : vector<1x8x1xf32> to vector<8x1xf32>
    %854 = vector.extract_strided_slice %851 {offsets = [0, 0], sizes = [8, 1], strides = [1, 1]} : vector<8x8xf32> to vector<8x1xf32>
    %855 = vector.extract_strided_slice %849 {offsets = [0, 0], sizes = [1, 256], strides = [1, 1]} : vector<8x256xf32> to vector<1x256xf32>
    %856 = vector.broadcast %854 : vector<8x1xf32> to vector<8x256xf32>
    %857 = vector.broadcast %855 : vector<1x256xf32> to vector<8x256xf32>
    %858 = arith.mulf %856, %857 : vector<8x256xf32>
    %859 = vector.extract_strided_slice %851 {offsets = [0, 1], sizes = [8, 1], strides = [1, 1]} : vector<8x8xf32> to vector<8x1xf32>
    %860 = vector.extract_strided_slice %849 {offsets = [1, 0], sizes = [1, 256], strides = [1, 1]} : vector<8x256xf32> to vector<1x256xf32>
    %861 = vector.broadcast %859 : vector<8x1xf32> to vector<8x256xf32>
    %862 = vector.broadcast %860 : vector<1x256xf32> to vector<8x256xf32>
    %863 = arith.mulf %861, %862 : vector<8x256xf32>
    %864 = vector.extract_strided_slice %851 {offsets = [0, 2], sizes = [8, 1], strides = [1, 1]} : vector<8x8xf32> to vector<8x1xf32>
    %865 = vector.extract_strided_slice %849 {offsets = [2, 0], sizes = [1, 256], strides = [1, 1]} : vector<8x256xf32> to vector<1x256xf32>
    %866 = vector.broadcast %864 : vector<8x1xf32> to vector<8x256xf32>
    %867 = vector.broadcast %865 : vector<1x256xf32> to vector<8x256xf32>
    %868 = arith.mulf %866, %867 : vector<8x256xf32>
    %869 = vector.extract_strided_slice %851 {offsets = [0, 3], sizes = [8, 1], strides = [1, 1]} : vector<8x8xf32> to vector<8x1xf32>
    %870 = vector.extract_strided_slice %849 {offsets = [3, 0], sizes = [1, 256], strides = [1, 1]} : vector<8x256xf32> to vector<1x256xf32>
    %871 = vector.broadcast %869 : vector<8x1xf32> to vector<8x256xf32>
    %872 = vector.broadcast %870 : vector<1x256xf32> to vector<8x256xf32>
    %873 = arith.mulf %871, %872 : vector<8x256xf32>
    %874 = vector.extract_strided_slice %851 {offsets = [0, 4], sizes = [8, 1], strides = [1, 1]} : vector<8x8xf32> to vector<8x1xf32>
    %875 = vector.extract_strided_slice %849 {offsets = [4, 0], sizes = [1, 256], strides = [1, 1]} : vector<8x256xf32> to vector<1x256xf32>
    %876 = vector.broadcast %874 : vector<8x1xf32> to vector<8x256xf32>
    %877 = vector.broadcast %875 : vector<1x256xf32> to vector<8x256xf32>
    %878 = arith.mulf %876, %877 : vector<8x256xf32>
    %879 = vector.extract_strided_slice %851 {offsets = [0, 5], sizes = [8, 1], strides = [1, 1]} : vector<8x8xf32> to vector<8x1xf32>
    %880 = vector.extract_strided_slice %849 {offsets = [5, 0], sizes = [1, 256], strides = [1, 1]} : vector<8x256xf32> to vector<1x256xf32>
    %881 = vector.broadcast %879 : vector<8x1xf32> to vector<8x256xf32>
    %882 = vector.broadcast %880 : vector<1x256xf32> to vector<8x256xf32>
    %883 = arith.mulf %881, %882 : vector<8x256xf32>
    %884 = vector.extract_strided_slice %851 {offsets = [0, 6], sizes = [8, 1], strides = [1, 1]} : vector<8x8xf32> to vector<8x1xf32>
    %885 = vector.extract_strided_slice %849 {offsets = [6, 0], sizes = [1, 256], strides = [1, 1]} : vector<8x256xf32> to vector<1x256xf32>
    %886 = vector.broadcast %884 : vector<8x1xf32> to vector<8x256xf32>
    %887 = vector.broadcast %885 : vector<1x256xf32> to vector<8x256xf32>
    %888 = arith.mulf %886, %887 : vector<8x256xf32>
    %889 = vector.extract_strided_slice %851 {offsets = [0, 7], sizes = [8, 1], strides = [1, 1]} : vector<8x8xf32> to vector<8x1xf32>
    %890 = vector.extract_strided_slice %849 {offsets = [7, 0], sizes = [1, 256], strides = [1, 1]} : vector<8x256xf32> to vector<1x256xf32>
    %891 = vector.broadcast %889 : vector<8x1xf32> to vector<8x256xf32>
    %892 = vector.broadcast %890 : vector<1x256xf32> to vector<8x256xf32>
    %893 = arith.mulf %891, %892 : vector<8x256xf32>
    %894 = arith.addf %858, %863 : vector<8x256xf32>
    %895 = arith.addf %868, %873 : vector<8x256xf32>
    %896 = arith.addf %878, %883 : vector<8x256xf32>
    %897 = arith.addf %888, %893 : vector<8x256xf32>
    %898 = arith.addf %894, %895 : vector<8x256xf32>
    %899 = arith.addf %896, %897 : vector<8x256xf32>
    %900 = arith.addf %898, %899 : vector<8x256xf32>
    %901 = vector.broadcast %853 : vector<8x1xf32> to vector<8x256xf32>
    %902 = arith.addf %900, %901 : vector<8x256xf32>
    %cst_251 = arith.constant 0.000000e+00 : f32
    %903 = vector.broadcast %cst_251 : f32 to vector<8x256xf32>
    %904 = arith.maximumf %109, %903 : vector<8x256xf32>
    %c6_252 = arith.constant 6 : index
    %c0_253 = arith.constant 0 : index
    %c0_254 = arith.constant 0 : index
    %905 = vector.load %arg7[%c6_252, %c0_253, %c0_254] : memref<11x8x9xf32, #tpu.memory_space<vmem>>, vector<1x8x9xf32>
    %906 = vector.shape_cast %905 : vector<1x8x9xf32> to vector<8x9xf32>
    %c17_i32_255 = arith.constant 17 : i32
    %907 = tpu.dynamic_rotate %904 by %c17_i32_255 dim 1 : vector<8x256xf32>, i32 -> vector<8x256xf32>
    %c0_256 = arith.constant 0 : index
    %c0_257 = arith.constant 0 : index
    %c0_258 = arith.constant 0 : index
    %908 = vector.load %arg10[%c0_256, %c0_257, %c0_258] : memref<16x1x256xf32, #tpu.memory_space<vmem>>, vector<1x1x256xf32>
    %909 = vector.shape_cast %908 : vector<1x1x256xf32> to vector<1x256xf32>
    %910 = vector.broadcast %909 : vector<1x256xf32> to vector<8x256xf32>
    %911 = arith.mulf %907, %910 : vector<8x256xf32>
    %912 = vector.extract_strided_slice %906 {offsets = [0, 0], sizes = [8, 1], strides = [1, 1]} : vector<8x9xf32> to vector<8x1xf32>
    %913 = vector.broadcast %912 : vector<8x1xf32> to vector<8x256xf32>
    %914 = arith.mulf %911, %913 : vector<8x256xf32>
    %c16_i32_259 = arith.constant 16 : i32
    %915 = tpu.dynamic_rotate %904 by %c16_i32_259 dim 1 : vector<8x256xf32>, i32 -> vector<8x256xf32>
    %c1_260 = arith.constant 1 : index
    %c0_261 = arith.constant 0 : index
    %c0_262 = arith.constant 0 : index
    %916 = vector.load %arg10[%c1_260, %c0_261, %c0_262] : memref<16x1x256xf32, #tpu.memory_space<vmem>>, vector<1x1x256xf32>
    %917 = vector.shape_cast %916 : vector<1x1x256xf32> to vector<1x256xf32>
    %918 = vector.broadcast %917 : vector<1x256xf32> to vector<8x256xf32>
    %919 = arith.mulf %915, %918 : vector<8x256xf32>
    %920 = vector.extract_strided_slice %906 {offsets = [0, 1], sizes = [8, 1], strides = [1, 1]} : vector<8x9xf32> to vector<8x1xf32>
    %921 = vector.broadcast %920 : vector<8x1xf32> to vector<8x256xf32>
    %922 = arith.mulf %919, %921 : vector<8x256xf32>
    %c15_i32_263 = arith.constant 15 : i32
    %923 = tpu.dynamic_rotate %904 by %c15_i32_263 dim 1 : vector<8x256xf32>, i32 -> vector<8x256xf32>
    %c2_264 = arith.constant 2 : index
    %c0_265 = arith.constant 0 : index
    %c0_266 = arith.constant 0 : index
    %924 = vector.load %arg10[%c2_264, %c0_265, %c0_266] : memref<16x1x256xf32, #tpu.memory_space<vmem>>, vector<1x1x256xf32>
    %925 = vector.shape_cast %924 : vector<1x1x256xf32> to vector<1x256xf32>
    %926 = vector.broadcast %925 : vector<1x256xf32> to vector<8x256xf32>
    %927 = arith.mulf %923, %926 : vector<8x256xf32>
    %928 = vector.extract_strided_slice %906 {offsets = [0, 2], sizes = [8, 1], strides = [1, 1]} : vector<8x9xf32> to vector<8x1xf32>
    %929 = vector.broadcast %928 : vector<8x1xf32> to vector<8x256xf32>
    %930 = arith.mulf %927, %929 : vector<8x256xf32>
    %c1_i32_267 = arith.constant 1 : i32
    %931 = tpu.dynamic_rotate %904 by %c1_i32_267 dim 1 : vector<8x256xf32>, i32 -> vector<8x256xf32>
    %c3_268 = arith.constant 3 : index
    %c0_269 = arith.constant 0 : index
    %c0_270 = arith.constant 0 : index
    %932 = vector.load %arg10[%c3_268, %c0_269, %c0_270] : memref<16x1x256xf32, #tpu.memory_space<vmem>>, vector<1x1x256xf32>
    %933 = vector.shape_cast %932 : vector<1x1x256xf32> to vector<1x256xf32>
    %934 = vector.broadcast %933 : vector<1x256xf32> to vector<8x256xf32>
    %935 = arith.mulf %931, %934 : vector<8x256xf32>
    %936 = vector.extract_strided_slice %906 {offsets = [0, 3], sizes = [8, 1], strides = [1, 1]} : vector<8x9xf32> to vector<8x1xf32>
    %937 = vector.broadcast %936 : vector<8x1xf32> to vector<8x256xf32>
    %938 = arith.mulf %935, %937 : vector<8x256xf32>
    %939 = vector.extract_strided_slice %906 {offsets = [0, 4], sizes = [8, 1], strides = [1, 1]} : vector<8x9xf32> to vector<8x1xf32>
    %940 = vector.broadcast %939 : vector<8x1xf32> to vector<8x256xf32>
    %941 = arith.mulf %904, %940 : vector<8x256xf32>
    %c255_i32_271 = arith.constant 255 : i32
    %942 = tpu.dynamic_rotate %904 by %c255_i32_271 dim 1 : vector<8x256xf32>, i32 -> vector<8x256xf32>
    %c4_272 = arith.constant 4 : index
    %c0_273 = arith.constant 0 : index
    %c0_274 = arith.constant 0 : index
    %943 = vector.load %arg10[%c4_272, %c0_273, %c0_274] : memref<16x1x256xf32, #tpu.memory_space<vmem>>, vector<1x1x256xf32>
    %944 = vector.shape_cast %943 : vector<1x1x256xf32> to vector<1x256xf32>
    %945 = vector.broadcast %944 : vector<1x256xf32> to vector<8x256xf32>
    %946 = arith.mulf %942, %945 : vector<8x256xf32>
    %947 = vector.extract_strided_slice %906 {offsets = [0, 5], sizes = [8, 1], strides = [1, 1]} : vector<8x9xf32> to vector<8x1xf32>
    %948 = vector.broadcast %947 : vector<8x1xf32> to vector<8x256xf32>
    %949 = arith.mulf %946, %948 : vector<8x256xf32>
    %c241_i32_275 = arith.constant 241 : i32
    %950 = tpu.dynamic_rotate %904 by %c241_i32_275 dim 1 : vector<8x256xf32>, i32 -> vector<8x256xf32>
    %c5_276 = arith.constant 5 : index
    %c0_277 = arith.constant 0 : index
    %c0_278 = arith.constant 0 : index
    %951 = vector.load %arg10[%c5_276, %c0_277, %c0_278] : memref<16x1x256xf32, #tpu.memory_space<vmem>>, vector<1x1x256xf32>
    %952 = vector.shape_cast %951 : vector<1x1x256xf32> to vector<1x256xf32>
    %953 = vector.broadcast %952 : vector<1x256xf32> to vector<8x256xf32>
    %954 = arith.mulf %950, %953 : vector<8x256xf32>
    %955 = vector.extract_strided_slice %906 {offsets = [0, 6], sizes = [8, 1], strides = [1, 1]} : vector<8x9xf32> to vector<8x1xf32>
    %956 = vector.broadcast %955 : vector<8x1xf32> to vector<8x256xf32>
    %957 = arith.mulf %954, %956 : vector<8x256xf32>
    %c240_i32_279 = arith.constant 240 : i32
    %958 = tpu.dynamic_rotate %904 by %c240_i32_279 dim 1 : vector<8x256xf32>, i32 -> vector<8x256xf32>
    %c6_280 = arith.constant 6 : index
    %c0_281 = arith.constant 0 : index
    %c0_282 = arith.constant 0 : index
    %959 = vector.load %arg10[%c6_280, %c0_281, %c0_282] : memref<16x1x256xf32, #tpu.memory_space<vmem>>, vector<1x1x256xf32>
    %960 = vector.shape_cast %959 : vector<1x1x256xf32> to vector<1x256xf32>
    %961 = vector.broadcast %960 : vector<1x256xf32> to vector<8x256xf32>
    %962 = arith.mulf %958, %961 : vector<8x256xf32>
    %963 = vector.extract_strided_slice %906 {offsets = [0, 7], sizes = [8, 1], strides = [1, 1]} : vector<8x9xf32> to vector<8x1xf32>
    %964 = vector.broadcast %963 : vector<8x1xf32> to vector<8x256xf32>
    %965 = arith.mulf %962, %964 : vector<8x256xf32>
    %c239_i32_283 = arith.constant 239 : i32
    %966 = tpu.dynamic_rotate %904 by %c239_i32_283 dim 1 : vector<8x256xf32>, i32 -> vector<8x256xf32>
    %c7_284 = arith.constant 7 : index
    %c0_285 = arith.constant 0 : index
    %c0_286 = arith.constant 0 : index
    %967 = vector.load %arg10[%c7_284, %c0_285, %c0_286] : memref<16x1x256xf32, #tpu.memory_space<vmem>>, vector<1x1x256xf32>
    %968 = vector.shape_cast %967 : vector<1x1x256xf32> to vector<1x256xf32>
    %969 = vector.broadcast %968 : vector<1x256xf32> to vector<8x256xf32>
    %970 = arith.mulf %966, %969 : vector<8x256xf32>
    %971 = vector.extract_strided_slice %906 {offsets = [0, 8], sizes = [8, 1], strides = [1, 1]} : vector<8x9xf32> to vector<8x1xf32>
    %972 = vector.broadcast %971 : vector<8x1xf32> to vector<8x256xf32>
    %973 = arith.mulf %970, %972 : vector<8x256xf32>
    %974 = arith.addf %914, %922 : vector<8x256xf32>
    %975 = arith.addf %930, %938 : vector<8x256xf32>
    %976 = arith.addf %941, %949 : vector<8x256xf32>
    %977 = arith.addf %957, %965 : vector<8x256xf32>
    %978 = arith.addf %974, %975 : vector<8x256xf32>
    %979 = arith.addf %976, %977 : vector<8x256xf32>
    %980 = arith.addf %978, %979 : vector<8x256xf32>
    %981 = arith.addf %980, %973 : vector<8x256xf32>
    %c6_287 = arith.constant 6 : index
    %c0_288 = arith.constant 0 : index
    %c0_289 = arith.constant 0 : index
    %982 = vector.load %arg8[%c6_287, %c0_288, %c0_289] : memref<11x8x8xf32, #tpu.memory_space<vmem>>, vector<1x8x8xf32>
    %983 = vector.shape_cast %982 : vector<1x8x8xf32> to vector<8x8xf32>
    %c6_290 = arith.constant 6 : index
    %c0_291 = arith.constant 0 : index
    %c0_292 = arith.constant 0 : index
    %984 = vector.load %arg9[%c6_290, %c0_291, %c0_292] : memref<11x8x1xf32, #tpu.memory_space<vmem>>, vector<1x8x1xf32>
    %985 = vector.shape_cast %984 : vector<1x8x1xf32> to vector<8x1xf32>
    %986 = vector.extract_strided_slice %983 {offsets = [0, 0], sizes = [8, 1], strides = [1, 1]} : vector<8x8xf32> to vector<8x1xf32>
    %987 = vector.extract_strided_slice %981 {offsets = [0, 0], sizes = [1, 256], strides = [1, 1]} : vector<8x256xf32> to vector<1x256xf32>
    %988 = vector.broadcast %986 : vector<8x1xf32> to vector<8x256xf32>
    %989 = vector.broadcast %987 : vector<1x256xf32> to vector<8x256xf32>
    %990 = arith.mulf %988, %989 : vector<8x256xf32>
    %991 = vector.extract_strided_slice %983 {offsets = [0, 1], sizes = [8, 1], strides = [1, 1]} : vector<8x8xf32> to vector<8x1xf32>
    %992 = vector.extract_strided_slice %981 {offsets = [1, 0], sizes = [1, 256], strides = [1, 1]} : vector<8x256xf32> to vector<1x256xf32>
    %993 = vector.broadcast %991 : vector<8x1xf32> to vector<8x256xf32>
    %994 = vector.broadcast %992 : vector<1x256xf32> to vector<8x256xf32>
    %995 = arith.mulf %993, %994 : vector<8x256xf32>
    %996 = vector.extract_strided_slice %983 {offsets = [0, 2], sizes = [8, 1], strides = [1, 1]} : vector<8x8xf32> to vector<8x1xf32>
    %997 = vector.extract_strided_slice %981 {offsets = [2, 0], sizes = [1, 256], strides = [1, 1]} : vector<8x256xf32> to vector<1x256xf32>
    %998 = vector.broadcast %996 : vector<8x1xf32> to vector<8x256xf32>
    %999 = vector.broadcast %997 : vector<1x256xf32> to vector<8x256xf32>
    %1000 = arith.mulf %998, %999 : vector<8x256xf32>
    %1001 = vector.extract_strided_slice %983 {offsets = [0, 3], sizes = [8, 1], strides = [1, 1]} : vector<8x8xf32> to vector<8x1xf32>
    %1002 = vector.extract_strided_slice %981 {offsets = [3, 0], sizes = [1, 256], strides = [1, 1]} : vector<8x256xf32> to vector<1x256xf32>
    %1003 = vector.broadcast %1001 : vector<8x1xf32> to vector<8x256xf32>
    %1004 = vector.broadcast %1002 : vector<1x256xf32> to vector<8x256xf32>
    %1005 = arith.mulf %1003, %1004 : vector<8x256xf32>
    %1006 = vector.extract_strided_slice %983 {offsets = [0, 4], sizes = [8, 1], strides = [1, 1]} : vector<8x8xf32> to vector<8x1xf32>
    %1007 = vector.extract_strided_slice %981 {offsets = [4, 0], sizes = [1, 256], strides = [1, 1]} : vector<8x256xf32> to vector<1x256xf32>
    %1008 = vector.broadcast %1006 : vector<8x1xf32> to vector<8x256xf32>
    %1009 = vector.broadcast %1007 : vector<1x256xf32> to vector<8x256xf32>
    %1010 = arith.mulf %1008, %1009 : vector<8x256xf32>
    %1011 = vector.extract_strided_slice %983 {offsets = [0, 5], sizes = [8, 1], strides = [1, 1]} : vector<8x8xf32> to vector<8x1xf32>
    %1012 = vector.extract_strided_slice %981 {offsets = [5, 0], sizes = [1, 256], strides = [1, 1]} : vector<8x256xf32> to vector<1x256xf32>
    %1013 = vector.broadcast %1011 : vector<8x1xf32> to vector<8x256xf32>
    %1014 = vector.broadcast %1012 : vector<1x256xf32> to vector<8x256xf32>
    %1015 = arith.mulf %1013, %1014 : vector<8x256xf32>
    %1016 = vector.extract_strided_slice %983 {offsets = [0, 6], sizes = [8, 1], strides = [1, 1]} : vector<8x8xf32> to vector<8x1xf32>
    %1017 = vector.extract_strided_slice %981 {offsets = [6, 0], sizes = [1, 256], strides = [1, 1]} : vector<8x256xf32> to vector<1x256xf32>
    %1018 = vector.broadcast %1016 : vector<8x1xf32> to vector<8x256xf32>
    %1019 = vector.broadcast %1017 : vector<1x256xf32> to vector<8x256xf32>
    %1020 = arith.mulf %1018, %1019 : vector<8x256xf32>
    %1021 = vector.extract_strided_slice %983 {offsets = [0, 7], sizes = [8, 1], strides = [1, 1]} : vector<8x8xf32> to vector<8x1xf32>
    %1022 = vector.extract_strided_slice %981 {offsets = [7, 0], sizes = [1, 256], strides = [1, 1]} : vector<8x256xf32> to vector<1x256xf32>
    %1023 = vector.broadcast %1021 : vector<8x1xf32> to vector<8x256xf32>
    %1024 = vector.broadcast %1022 : vector<1x256xf32> to vector<8x256xf32>
    %1025 = arith.mulf %1023, %1024 : vector<8x256xf32>
    %1026 = arith.addf %990, %995 : vector<8x256xf32>
    %1027 = arith.addf %1000, %1005 : vector<8x256xf32>
    %1028 = arith.addf %1010, %1015 : vector<8x256xf32>
    %1029 = arith.addf %1020, %1025 : vector<8x256xf32>
    %1030 = arith.addf %1026, %1027 : vector<8x256xf32>
    %1031 = arith.addf %1028, %1029 : vector<8x256xf32>
    %1032 = arith.addf %1030, %1031 : vector<8x256xf32>
    %1033 = vector.broadcast %985 : vector<8x1xf32> to vector<8x256xf32>
    %1034 = arith.addf %1032, %1033 : vector<8x256xf32>
    %cst_293 = arith.constant 0.000000e+00 : f32
    %1035 = vector.broadcast %cst_293 : f32 to vector<8x256xf32>
    %1036 = arith.maximumf %1034, %1035 : vector<8x256xf32>
    %c7_294 = arith.constant 7 : index
    %c0_295 = arith.constant 0 : index
    %c0_296 = arith.constant 0 : index
    %1037 = vector.load %arg7[%c7_294, %c0_295, %c0_296] : memref<11x8x9xf32, #tpu.memory_space<vmem>>, vector<1x8x9xf32>
    %1038 = vector.shape_cast %1037 : vector<1x8x9xf32> to vector<8x9xf32>
    %c17_i32_297 = arith.constant 17 : i32
    %1039 = tpu.dynamic_rotate %1036 by %c17_i32_297 dim 1 : vector<8x256xf32>, i32 -> vector<8x256xf32>
    %c0_298 = arith.constant 0 : index
    %c0_299 = arith.constant 0 : index
    %c0_300 = arith.constant 0 : index
    %1040 = vector.load %arg10[%c0_298, %c0_299, %c0_300] : memref<16x1x256xf32, #tpu.memory_space<vmem>>, vector<1x1x256xf32>
    %1041 = vector.shape_cast %1040 : vector<1x1x256xf32> to vector<1x256xf32>
    %1042 = vector.broadcast %1041 : vector<1x256xf32> to vector<8x256xf32>
    %1043 = arith.mulf %1039, %1042 : vector<8x256xf32>
    %1044 = vector.extract_strided_slice %1038 {offsets = [0, 0], sizes = [8, 1], strides = [1, 1]} : vector<8x9xf32> to vector<8x1xf32>
    %1045 = vector.broadcast %1044 : vector<8x1xf32> to vector<8x256xf32>
    %1046 = arith.mulf %1043, %1045 : vector<8x256xf32>
    %c16_i32_301 = arith.constant 16 : i32
    %1047 = tpu.dynamic_rotate %1036 by %c16_i32_301 dim 1 : vector<8x256xf32>, i32 -> vector<8x256xf32>
    %c1_302 = arith.constant 1 : index
    %c0_303 = arith.constant 0 : index
    %c0_304 = arith.constant 0 : index
    %1048 = vector.load %arg10[%c1_302, %c0_303, %c0_304] : memref<16x1x256xf32, #tpu.memory_space<vmem>>, vector<1x1x256xf32>
    %1049 = vector.shape_cast %1048 : vector<1x1x256xf32> to vector<1x256xf32>
    %1050 = vector.broadcast %1049 : vector<1x256xf32> to vector<8x256xf32>
    %1051 = arith.mulf %1047, %1050 : vector<8x256xf32>
    %1052 = vector.extract_strided_slice %1038 {offsets = [0, 1], sizes = [8, 1], strides = [1, 1]} : vector<8x9xf32> to vector<8x1xf32>
    %1053 = vector.broadcast %1052 : vector<8x1xf32> to vector<8x256xf32>
    %1054 = arith.mulf %1051, %1053 : vector<8x256xf32>
    %c15_i32_305 = arith.constant 15 : i32
    %1055 = tpu.dynamic_rotate %1036 by %c15_i32_305 dim 1 : vector<8x256xf32>, i32 -> vector<8x256xf32>
    %c2_306 = arith.constant 2 : index
    %c0_307 = arith.constant 0 : index
    %c0_308 = arith.constant 0 : index
    %1056 = vector.load %arg10[%c2_306, %c0_307, %c0_308] : memref<16x1x256xf32, #tpu.memory_space<vmem>>, vector<1x1x256xf32>
    %1057 = vector.shape_cast %1056 : vector<1x1x256xf32> to vector<1x256xf32>
    %1058 = vector.broadcast %1057 : vector<1x256xf32> to vector<8x256xf32>
    %1059 = arith.mulf %1055, %1058 : vector<8x256xf32>
    %1060 = vector.extract_strided_slice %1038 {offsets = [0, 2], sizes = [8, 1], strides = [1, 1]} : vector<8x9xf32> to vector<8x1xf32>
    %1061 = vector.broadcast %1060 : vector<8x1xf32> to vector<8x256xf32>
    %1062 = arith.mulf %1059, %1061 : vector<8x256xf32>
    %c1_i32_309 = arith.constant 1 : i32
    %1063 = tpu.dynamic_rotate %1036 by %c1_i32_309 dim 1 : vector<8x256xf32>, i32 -> vector<8x256xf32>
    %c3_310 = arith.constant 3 : index
    %c0_311 = arith.constant 0 : index
    %c0_312 = arith.constant 0 : index
    %1064 = vector.load %arg10[%c3_310, %c0_311, %c0_312] : memref<16x1x256xf32, #tpu.memory_space<vmem>>, vector<1x1x256xf32>
    %1065 = vector.shape_cast %1064 : vector<1x1x256xf32> to vector<1x256xf32>
    %1066 = vector.broadcast %1065 : vector<1x256xf32> to vector<8x256xf32>
    %1067 = arith.mulf %1063, %1066 : vector<8x256xf32>
    %1068 = vector.extract_strided_slice %1038 {offsets = [0, 3], sizes = [8, 1], strides = [1, 1]} : vector<8x9xf32> to vector<8x1xf32>
    %1069 = vector.broadcast %1068 : vector<8x1xf32> to vector<8x256xf32>
    %1070 = arith.mulf %1067, %1069 : vector<8x256xf32>
    %1071 = vector.extract_strided_slice %1038 {offsets = [0, 4], sizes = [8, 1], strides = [1, 1]} : vector<8x9xf32> to vector<8x1xf32>
    %1072 = vector.broadcast %1071 : vector<8x1xf32> to vector<8x256xf32>
    %1073 = arith.mulf %1036, %1072 : vector<8x256xf32>
    %c255_i32_313 = arith.constant 255 : i32
    %1074 = tpu.dynamic_rotate %1036 by %c255_i32_313 dim 1 : vector<8x256xf32>, i32 -> vector<8x256xf32>
    %c4_314 = arith.constant 4 : index
    %c0_315 = arith.constant 0 : index
    %c0_316 = arith.constant 0 : index
    %1075 = vector.load %arg10[%c4_314, %c0_315, %c0_316] : memref<16x1x256xf32, #tpu.memory_space<vmem>>, vector<1x1x256xf32>
    %1076 = vector.shape_cast %1075 : vector<1x1x256xf32> to vector<1x256xf32>
    %1077 = vector.broadcast %1076 : vector<1x256xf32> to vector<8x256xf32>
    %1078 = arith.mulf %1074, %1077 : vector<8x256xf32>
    %1079 = vector.extract_strided_slice %1038 {offsets = [0, 5], sizes = [8, 1], strides = [1, 1]} : vector<8x9xf32> to vector<8x1xf32>
    %1080 = vector.broadcast %1079 : vector<8x1xf32> to vector<8x256xf32>
    %1081 = arith.mulf %1078, %1080 : vector<8x256xf32>
    %c241_i32_317 = arith.constant 241 : i32
    %1082 = tpu.dynamic_rotate %1036 by %c241_i32_317 dim 1 : vector<8x256xf32>, i32 -> vector<8x256xf32>
    %c5_318 = arith.constant 5 : index
    %c0_319 = arith.constant 0 : index
    %c0_320 = arith.constant 0 : index
    %1083 = vector.load %arg10[%c5_318, %c0_319, %c0_320] : memref<16x1x256xf32, #tpu.memory_space<vmem>>, vector<1x1x256xf32>
    %1084 = vector.shape_cast %1083 : vector<1x1x256xf32> to vector<1x256xf32>
    %1085 = vector.broadcast %1084 : vector<1x256xf32> to vector<8x256xf32>
    %1086 = arith.mulf %1082, %1085 : vector<8x256xf32>
    %1087 = vector.extract_strided_slice %1038 {offsets = [0, 6], sizes = [8, 1], strides = [1, 1]} : vector<8x9xf32> to vector<8x1xf32>
    %1088 = vector.broadcast %1087 : vector<8x1xf32> to vector<8x256xf32>
    %1089 = arith.mulf %1086, %1088 : vector<8x256xf32>
    %c240_i32_321 = arith.constant 240 : i32
    %1090 = tpu.dynamic_rotate %1036 by %c240_i32_321 dim 1 : vector<8x256xf32>, i32 -> vector<8x256xf32>
    %c6_322 = arith.constant 6 : index
    %c0_323 = arith.constant 0 : index
    %c0_324 = arith.constant 0 : index
    %1091 = vector.load %arg10[%c6_322, %c0_323, %c0_324] : memref<16x1x256xf32, #tpu.memory_space<vmem>>, vector<1x1x256xf32>
    %1092 = vector.shape_cast %1091 : vector<1x1x256xf32> to vector<1x256xf32>
    %1093 = vector.broadcast %1092 : vector<1x256xf32> to vector<8x256xf32>
    %1094 = arith.mulf %1090, %1093 : vector<8x256xf32>
    %1095 = vector.extract_strided_slice %1038 {offsets = [0, 7], sizes = [8, 1], strides = [1, 1]} : vector<8x9xf32> to vector<8x1xf32>
    %1096 = vector.broadcast %1095 : vector<8x1xf32> to vector<8x256xf32>
    %1097 = arith.mulf %1094, %1096 : vector<8x256xf32>
    %c239_i32_325 = arith.constant 239 : i32
    %1098 = tpu.dynamic_rotate %1036 by %c239_i32_325 dim 1 : vector<8x256xf32>, i32 -> vector<8x256xf32>
    %c7_326 = arith.constant 7 : index
    %c0_327 = arith.constant 0 : index
    %c0_328 = arith.constant 0 : index
    %1099 = vector.load %arg10[%c7_326, %c0_327, %c0_328] : memref<16x1x256xf32, #tpu.memory_space<vmem>>, vector<1x1x256xf32>
    %1100 = vector.shape_cast %1099 : vector<1x1x256xf32> to vector<1x256xf32>
    %1101 = vector.broadcast %1100 : vector<1x256xf32> to vector<8x256xf32>
    %1102 = arith.mulf %1098, %1101 : vector<8x256xf32>
    %1103 = vector.extract_strided_slice %1038 {offsets = [0, 8], sizes = [8, 1], strides = [1, 1]} : vector<8x9xf32> to vector<8x1xf32>
    %1104 = vector.broadcast %1103 : vector<8x1xf32> to vector<8x256xf32>
    %1105 = arith.mulf %1102, %1104 : vector<8x256xf32>
    %1106 = arith.addf %1046, %1054 : vector<8x256xf32>
    %1107 = arith.addf %1062, %1070 : vector<8x256xf32>
    %1108 = arith.addf %1073, %1081 : vector<8x256xf32>
    %1109 = arith.addf %1089, %1097 : vector<8x256xf32>
    %1110 = arith.addf %1106, %1107 : vector<8x256xf32>
    %1111 = arith.addf %1108, %1109 : vector<8x256xf32>
    %1112 = arith.addf %1110, %1111 : vector<8x256xf32>
    %1113 = arith.addf %1112, %1105 : vector<8x256xf32>
    %c7_329 = arith.constant 7 : index
    %c0_330 = arith.constant 0 : index
    %c0_331 = arith.constant 0 : index
    %1114 = vector.load %arg8[%c7_329, %c0_330, %c0_331] : memref<11x8x8xf32, #tpu.memory_space<vmem>>, vector<1x8x8xf32>
    %1115 = vector.shape_cast %1114 : vector<1x8x8xf32> to vector<8x8xf32>
    %c7_332 = arith.constant 7 : index
    %c0_333 = arith.constant 0 : index
    %c0_334 = arith.constant 0 : index
    %1116 = vector.load %arg9[%c7_332, %c0_333, %c0_334] : memref<11x8x1xf32, #tpu.memory_space<vmem>>, vector<1x8x1xf32>
    %1117 = vector.shape_cast %1116 : vector<1x8x1xf32> to vector<8x1xf32>
    %1118 = vector.extract_strided_slice %1115 {offsets = [0, 0], sizes = [8, 1], strides = [1, 1]} : vector<8x8xf32> to vector<8x1xf32>
    %1119 = vector.extract_strided_slice %1113 {offsets = [0, 0], sizes = [1, 256], strides = [1, 1]} : vector<8x256xf32> to vector<1x256xf32>
    %1120 = vector.broadcast %1118 : vector<8x1xf32> to vector<8x256xf32>
    %1121 = vector.broadcast %1119 : vector<1x256xf32> to vector<8x256xf32>
    %1122 = arith.mulf %1120, %1121 : vector<8x256xf32>
    %1123 = vector.extract_strided_slice %1115 {offsets = [0, 1], sizes = [8, 1], strides = [1, 1]} : vector<8x8xf32> to vector<8x1xf32>
    %1124 = vector.extract_strided_slice %1113 {offsets = [1, 0], sizes = [1, 256], strides = [1, 1]} : vector<8x256xf32> to vector<1x256xf32>
    %1125 = vector.broadcast %1123 : vector<8x1xf32> to vector<8x256xf32>
    %1126 = vector.broadcast %1124 : vector<1x256xf32> to vector<8x256xf32>
    %1127 = arith.mulf %1125, %1126 : vector<8x256xf32>
    %1128 = vector.extract_strided_slice %1115 {offsets = [0, 2], sizes = [8, 1], strides = [1, 1]} : vector<8x8xf32> to vector<8x1xf32>
    %1129 = vector.extract_strided_slice %1113 {offsets = [2, 0], sizes = [1, 256], strides = [1, 1]} : vector<8x256xf32> to vector<1x256xf32>
    %1130 = vector.broadcast %1128 : vector<8x1xf32> to vector<8x256xf32>
    %1131 = vector.broadcast %1129 : vector<1x256xf32> to vector<8x256xf32>
    %1132 = arith.mulf %1130, %1131 : vector<8x256xf32>
    %1133 = vector.extract_strided_slice %1115 {offsets = [0, 3], sizes = [8, 1], strides = [1, 1]} : vector<8x8xf32> to vector<8x1xf32>
    %1134 = vector.extract_strided_slice %1113 {offsets = [3, 0], sizes = [1, 256], strides = [1, 1]} : vector<8x256xf32> to vector<1x256xf32>
    %1135 = vector.broadcast %1133 : vector<8x1xf32> to vector<8x256xf32>
    %1136 = vector.broadcast %1134 : vector<1x256xf32> to vector<8x256xf32>
    %1137 = arith.mulf %1135, %1136 : vector<8x256xf32>
    %1138 = vector.extract_strided_slice %1115 {offsets = [0, 4], sizes = [8, 1], strides = [1, 1]} : vector<8x8xf32> to vector<8x1xf32>
    %1139 = vector.extract_strided_slice %1113 {offsets = [4, 0], sizes = [1, 256], strides = [1, 1]} : vector<8x256xf32> to vector<1x256xf32>
    %1140 = vector.broadcast %1138 : vector<8x1xf32> to vector<8x256xf32>
    %1141 = vector.broadcast %1139 : vector<1x256xf32> to vector<8x256xf32>
    %1142 = arith.mulf %1140, %1141 : vector<8x256xf32>
    %1143 = vector.extract_strided_slice %1115 {offsets = [0, 5], sizes = [8, 1], strides = [1, 1]} : vector<8x8xf32> to vector<8x1xf32>
    %1144 = vector.extract_strided_slice %1113 {offsets = [5, 0], sizes = [1, 256], strides = [1, 1]} : vector<8x256xf32> to vector<1x256xf32>
    %1145 = vector.broadcast %1143 : vector<8x1xf32> to vector<8x256xf32>
    %1146 = vector.broadcast %1144 : vector<1x256xf32> to vector<8x256xf32>
    %1147 = arith.mulf %1145, %1146 : vector<8x256xf32>
    %1148 = vector.extract_strided_slice %1115 {offsets = [0, 6], sizes = [8, 1], strides = [1, 1]} : vector<8x8xf32> to vector<8x1xf32>
    %1149 = vector.extract_strided_slice %1113 {offsets = [6, 0], sizes = [1, 256], strides = [1, 1]} : vector<8x256xf32> to vector<1x256xf32>
    %1150 = vector.broadcast %1148 : vector<8x1xf32> to vector<8x256xf32>
    %1151 = vector.broadcast %1149 : vector<1x256xf32> to vector<8x256xf32>
    %1152 = arith.mulf %1150, %1151 : vector<8x256xf32>
    %1153 = vector.extract_strided_slice %1115 {offsets = [0, 7], sizes = [8, 1], strides = [1, 1]} : vector<8x8xf32> to vector<8x1xf32>
    %1154 = vector.extract_strided_slice %1113 {offsets = [7, 0], sizes = [1, 256], strides = [1, 1]} : vector<8x256xf32> to vector<1x256xf32>
    %1155 = vector.broadcast %1153 : vector<8x1xf32> to vector<8x256xf32>
    %1156 = vector.broadcast %1154 : vector<1x256xf32> to vector<8x256xf32>
    %1157 = arith.mulf %1155, %1156 : vector<8x256xf32>
    %1158 = arith.addf %1122, %1127 : vector<8x256xf32>
    %1159 = arith.addf %1132, %1137 : vector<8x256xf32>
    %1160 = arith.addf %1142, %1147 : vector<8x256xf32>
    %1161 = arith.addf %1152, %1157 : vector<8x256xf32>
    %1162 = arith.addf %1158, %1159 : vector<8x256xf32>
    %1163 = arith.addf %1160, %1161 : vector<8x256xf32>
    %1164 = arith.addf %1162, %1163 : vector<8x256xf32>
    %1165 = vector.broadcast %1117 : vector<8x1xf32> to vector<8x256xf32>
    %1166 = arith.addf %1164, %1165 : vector<8x256xf32>
    %1167 = arith.addf %902, %1166 : vector<8x256xf32>
    %cst_335 = arith.constant 0.000000e+00 : f32
    %1168 = vector.broadcast %cst_335 : f32 to vector<8x256xf32>
    %1169 = arith.maximumf %109, %1168 : vector<8x256xf32>
    %c8 = arith.constant 8 : index
    %c0_336 = arith.constant 0 : index
    %c0_337 = arith.constant 0 : index
    %1170 = vector.load %arg7[%c8, %c0_336, %c0_337] : memref<11x8x9xf32, #tpu.memory_space<vmem>>, vector<1x8x9xf32>
    %1171 = vector.shape_cast %1170 : vector<1x8x9xf32> to vector<8x9xf32>
    %c17_i32_338 = arith.constant 17 : i32
    %1172 = tpu.dynamic_rotate %1169 by %c17_i32_338 dim 1 : vector<8x256xf32>, i32 -> vector<8x256xf32>
    %c0_339 = arith.constant 0 : index
    %c0_340 = arith.constant 0 : index
    %c0_341 = arith.constant 0 : index
    %1173 = vector.load %arg10[%c0_339, %c0_340, %c0_341] : memref<16x1x256xf32, #tpu.memory_space<vmem>>, vector<1x1x256xf32>
    %1174 = vector.shape_cast %1173 : vector<1x1x256xf32> to vector<1x256xf32>
    %1175 = vector.broadcast %1174 : vector<1x256xf32> to vector<8x256xf32>
    %1176 = arith.mulf %1172, %1175 : vector<8x256xf32>
    %1177 = vector.extract_strided_slice %1171 {offsets = [0, 0], sizes = [8, 1], strides = [1, 1]} : vector<8x9xf32> to vector<8x1xf32>
    %1178 = vector.broadcast %1177 : vector<8x1xf32> to vector<8x256xf32>
    %1179 = arith.mulf %1176, %1178 : vector<8x256xf32>
    %c16_i32_342 = arith.constant 16 : i32
    %1180 = tpu.dynamic_rotate %1169 by %c16_i32_342 dim 1 : vector<8x256xf32>, i32 -> vector<8x256xf32>
    %c1_343 = arith.constant 1 : index
    %c0_344 = arith.constant 0 : index
    %c0_345 = arith.constant 0 : index
    %1181 = vector.load %arg10[%c1_343, %c0_344, %c0_345] : memref<16x1x256xf32, #tpu.memory_space<vmem>>, vector<1x1x256xf32>
    %1182 = vector.shape_cast %1181 : vector<1x1x256xf32> to vector<1x256xf32>
    %1183 = vector.broadcast %1182 : vector<1x256xf32> to vector<8x256xf32>
    %1184 = arith.mulf %1180, %1183 : vector<8x256xf32>
    %1185 = vector.extract_strided_slice %1171 {offsets = [0, 1], sizes = [8, 1], strides = [1, 1]} : vector<8x9xf32> to vector<8x1xf32>
    %1186 = vector.broadcast %1185 : vector<8x1xf32> to vector<8x256xf32>
    %1187 = arith.mulf %1184, %1186 : vector<8x256xf32>
    %c15_i32_346 = arith.constant 15 : i32
    %1188 = tpu.dynamic_rotate %1169 by %c15_i32_346 dim 1 : vector<8x256xf32>, i32 -> vector<8x256xf32>
    %c2_347 = arith.constant 2 : index
    %c0_348 = arith.constant 0 : index
    %c0_349 = arith.constant 0 : index
    %1189 = vector.load %arg10[%c2_347, %c0_348, %c0_349] : memref<16x1x256xf32, #tpu.memory_space<vmem>>, vector<1x1x256xf32>
    %1190 = vector.shape_cast %1189 : vector<1x1x256xf32> to vector<1x256xf32>
    %1191 = vector.broadcast %1190 : vector<1x256xf32> to vector<8x256xf32>
    %1192 = arith.mulf %1188, %1191 : vector<8x256xf32>
    %1193 = vector.extract_strided_slice %1171 {offsets = [0, 2], sizes = [8, 1], strides = [1, 1]} : vector<8x9xf32> to vector<8x1xf32>
    %1194 = vector.broadcast %1193 : vector<8x1xf32> to vector<8x256xf32>
    %1195 = arith.mulf %1192, %1194 : vector<8x256xf32>
    %c1_i32_350 = arith.constant 1 : i32
    %1196 = tpu.dynamic_rotate %1169 by %c1_i32_350 dim 1 : vector<8x256xf32>, i32 -> vector<8x256xf32>
    %c3_351 = arith.constant 3 : index
    %c0_352 = arith.constant 0 : index
    %c0_353 = arith.constant 0 : index
    %1197 = vector.load %arg10[%c3_351, %c0_352, %c0_353] : memref<16x1x256xf32, #tpu.memory_space<vmem>>, vector<1x1x256xf32>
    %1198 = vector.shape_cast %1197 : vector<1x1x256xf32> to vector<1x256xf32>
    %1199 = vector.broadcast %1198 : vector<1x256xf32> to vector<8x256xf32>
    %1200 = arith.mulf %1196, %1199 : vector<8x256xf32>
    %1201 = vector.extract_strided_slice %1171 {offsets = [0, 3], sizes = [8, 1], strides = [1, 1]} : vector<8x9xf32> to vector<8x1xf32>
    %1202 = vector.broadcast %1201 : vector<8x1xf32> to vector<8x256xf32>
    %1203 = arith.mulf %1200, %1202 : vector<8x256xf32>
    %1204 = vector.extract_strided_slice %1171 {offsets = [0, 4], sizes = [8, 1], strides = [1, 1]} : vector<8x9xf32> to vector<8x1xf32>
    %1205 = vector.broadcast %1204 : vector<8x1xf32> to vector<8x256xf32>
    %1206 = arith.mulf %1169, %1205 : vector<8x256xf32>
    %c255_i32_354 = arith.constant 255 : i32
    %1207 = tpu.dynamic_rotate %1169 by %c255_i32_354 dim 1 : vector<8x256xf32>, i32 -> vector<8x256xf32>
    %c4_355 = arith.constant 4 : index
    %c0_356 = arith.constant 0 : index
    %c0_357 = arith.constant 0 : index
    %1208 = vector.load %arg10[%c4_355, %c0_356, %c0_357] : memref<16x1x256xf32, #tpu.memory_space<vmem>>, vector<1x1x256xf32>
    %1209 = vector.shape_cast %1208 : vector<1x1x256xf32> to vector<1x256xf32>
    %1210 = vector.broadcast %1209 : vector<1x256xf32> to vector<8x256xf32>
    %1211 = arith.mulf %1207, %1210 : vector<8x256xf32>
    %1212 = vector.extract_strided_slice %1171 {offsets = [0, 5], sizes = [8, 1], strides = [1, 1]} : vector<8x9xf32> to vector<8x1xf32>
    %1213 = vector.broadcast %1212 : vector<8x1xf32> to vector<8x256xf32>
    %1214 = arith.mulf %1211, %1213 : vector<8x256xf32>
    %c241_i32_358 = arith.constant 241 : i32
    %1215 = tpu.dynamic_rotate %1169 by %c241_i32_358 dim 1 : vector<8x256xf32>, i32 -> vector<8x256xf32>
    %c5_359 = arith.constant 5 : index
    %c0_360 = arith.constant 0 : index
    %c0_361 = arith.constant 0 : index
    %1216 = vector.load %arg10[%c5_359, %c0_360, %c0_361] : memref<16x1x256xf32, #tpu.memory_space<vmem>>, vector<1x1x256xf32>
    %1217 = vector.shape_cast %1216 : vector<1x1x256xf32> to vector<1x256xf32>
    %1218 = vector.broadcast %1217 : vector<1x256xf32> to vector<8x256xf32>
    %1219 = arith.mulf %1215, %1218 : vector<8x256xf32>
    %1220 = vector.extract_strided_slice %1171 {offsets = [0, 6], sizes = [8, 1], strides = [1, 1]} : vector<8x9xf32> to vector<8x1xf32>
    %1221 = vector.broadcast %1220 : vector<8x1xf32> to vector<8x256xf32>
    %1222 = arith.mulf %1219, %1221 : vector<8x256xf32>
    %c240_i32_362 = arith.constant 240 : i32
    %1223 = tpu.dynamic_rotate %1169 by %c240_i32_362 dim 1 : vector<8x256xf32>, i32 -> vector<8x256xf32>
    %c6_363 = arith.constant 6 : index
    %c0_364 = arith.constant 0 : index
    %c0_365 = arith.constant 0 : index
    %1224 = vector.load %arg10[%c6_363, %c0_364, %c0_365] : memref<16x1x256xf32, #tpu.memory_space<vmem>>, vector<1x1x256xf32>
    %1225 = vector.shape_cast %1224 : vector<1x1x256xf32> to vector<1x256xf32>
    %1226 = vector.broadcast %1225 : vector<1x256xf32> to vector<8x256xf32>
    %1227 = arith.mulf %1223, %1226 : vector<8x256xf32>
    %1228 = vector.extract_strided_slice %1171 {offsets = [0, 7], sizes = [8, 1], strides = [1, 1]} : vector<8x9xf32> to vector<8x1xf32>
    %1229 = vector.broadcast %1228 : vector<8x1xf32> to vector<8x256xf32>
    %1230 = arith.mulf %1227, %1229 : vector<8x256xf32>
    %c239_i32_366 = arith.constant 239 : i32
    %1231 = tpu.dynamic_rotate %1169 by %c239_i32_366 dim 1 : vector<8x256xf32>, i32 -> vector<8x256xf32>
    %c7_367 = arith.constant 7 : index
    %c0_368 = arith.constant 0 : index
    %c0_369 = arith.constant 0 : index
    %1232 = vector.load %arg10[%c7_367, %c0_368, %c0_369] : memref<16x1x256xf32, #tpu.memory_space<vmem>>, vector<1x1x256xf32>
    %1233 = vector.shape_cast %1232 : vector<1x1x256xf32> to vector<1x256xf32>
    %1234 = vector.broadcast %1233 : vector<1x256xf32> to vector<8x256xf32>
    %1235 = arith.mulf %1231, %1234 : vector<8x256xf32>
    %1236 = vector.extract_strided_slice %1171 {offsets = [0, 8], sizes = [8, 1], strides = [1, 1]} : vector<8x9xf32> to vector<8x1xf32>
    %1237 = vector.broadcast %1236 : vector<8x1xf32> to vector<8x256xf32>
    %1238 = arith.mulf %1235, %1237 : vector<8x256xf32>
    %1239 = arith.addf %1179, %1187 : vector<8x256xf32>
    %1240 = arith.addf %1195, %1203 : vector<8x256xf32>
    %1241 = arith.addf %1206, %1214 : vector<8x256xf32>
    %1242 = arith.addf %1222, %1230 : vector<8x256xf32>
    %1243 = arith.addf %1239, %1240 : vector<8x256xf32>
    %1244 = arith.addf %1241, %1242 : vector<8x256xf32>
    %1245 = arith.addf %1243, %1244 : vector<8x256xf32>
    %1246 = arith.addf %1245, %1238 : vector<8x256xf32>
    %c8_370 = arith.constant 8 : index
    %c0_371 = arith.constant 0 : index
    %c0_372 = arith.constant 0 : index
    %1247 = vector.load %arg8[%c8_370, %c0_371, %c0_372] : memref<11x8x8xf32, #tpu.memory_space<vmem>>, vector<1x8x8xf32>
    %1248 = vector.shape_cast %1247 : vector<1x8x8xf32> to vector<8x8xf32>
    %c8_373 = arith.constant 8 : index
    %c0_374 = arith.constant 0 : index
    %c0_375 = arith.constant 0 : index
    %1249 = vector.load %arg9[%c8_373, %c0_374, %c0_375] : memref<11x8x1xf32, #tpu.memory_space<vmem>>, vector<1x8x1xf32>
    %1250 = vector.shape_cast %1249 : vector<1x8x1xf32> to vector<8x1xf32>
    %1251 = vector.extract_strided_slice %1248 {offsets = [0, 0], sizes = [8, 1], strides = [1, 1]} : vector<8x8xf32> to vector<8x1xf32>
    %1252 = vector.extract_strided_slice %1246 {offsets = [0, 0], sizes = [1, 256], strides = [1, 1]} : vector<8x256xf32> to vector<1x256xf32>
    %1253 = vector.broadcast %1251 : vector<8x1xf32> to vector<8x256xf32>
    %1254 = vector.broadcast %1252 : vector<1x256xf32> to vector<8x256xf32>
    %1255 = arith.mulf %1253, %1254 : vector<8x256xf32>
    %1256 = vector.extract_strided_slice %1248 {offsets = [0, 1], sizes = [8, 1], strides = [1, 1]} : vector<8x8xf32> to vector<8x1xf32>
    %1257 = vector.extract_strided_slice %1246 {offsets = [1, 0], sizes = [1, 256], strides = [1, 1]} : vector<8x256xf32> to vector<1x256xf32>
    %1258 = vector.broadcast %1256 : vector<8x1xf32> to vector<8x256xf32>
    %1259 = vector.broadcast %1257 : vector<1x256xf32> to vector<8x256xf32>
    %1260 = arith.mulf %1258, %1259 : vector<8x256xf32>
    %1261 = vector.extract_strided_slice %1248 {offsets = [0, 2], sizes = [8, 1], strides = [1, 1]} : vector<8x8xf32> to vector<8x1xf32>
    %1262 = vector.extract_strided_slice %1246 {offsets = [2, 0], sizes = [1, 256], strides = [1, 1]} : vector<8x256xf32> to vector<1x256xf32>
    %1263 = vector.broadcast %1261 : vector<8x1xf32> to vector<8x256xf32>
    %1264 = vector.broadcast %1262 : vector<1x256xf32> to vector<8x256xf32>
    %1265 = arith.mulf %1263, %1264 : vector<8x256xf32>
    %1266 = vector.extract_strided_slice %1248 {offsets = [0, 3], sizes = [8, 1], strides = [1, 1]} : vector<8x8xf32> to vector<8x1xf32>
    %1267 = vector.extract_strided_slice %1246 {offsets = [3, 0], sizes = [1, 256], strides = [1, 1]} : vector<8x256xf32> to vector<1x256xf32>
    %1268 = vector.broadcast %1266 : vector<8x1xf32> to vector<8x256xf32>
    %1269 = vector.broadcast %1267 : vector<1x256xf32> to vector<8x256xf32>
    %1270 = arith.mulf %1268, %1269 : vector<8x256xf32>
    %1271 = vector.extract_strided_slice %1248 {offsets = [0, 4], sizes = [8, 1], strides = [1, 1]} : vector<8x8xf32> to vector<8x1xf32>
    %1272 = vector.extract_strided_slice %1246 {offsets = [4, 0], sizes = [1, 256], strides = [1, 1]} : vector<8x256xf32> to vector<1x256xf32>
    %1273 = vector.broadcast %1271 : vector<8x1xf32> to vector<8x256xf32>
    %1274 = vector.broadcast %1272 : vector<1x256xf32> to vector<8x256xf32>
    %1275 = arith.mulf %1273, %1274 : vector<8x256xf32>
    %1276 = vector.extract_strided_slice %1248 {offsets = [0, 5], sizes = [8, 1], strides = [1, 1]} : vector<8x8xf32> to vector<8x1xf32>
    %1277 = vector.extract_strided_slice %1246 {offsets = [5, 0], sizes = [1, 256], strides = [1, 1]} : vector<8x256xf32> to vector<1x256xf32>
    %1278 = vector.broadcast %1276 : vector<8x1xf32> to vector<8x256xf32>
    %1279 = vector.broadcast %1277 : vector<1x256xf32> to vector<8x256xf32>
    %1280 = arith.mulf %1278, %1279 : vector<8x256xf32>
    %1281 = vector.extract_strided_slice %1248 {offsets = [0, 6], sizes = [8, 1], strides = [1, 1]} : vector<8x8xf32> to vector<8x1xf32>
    %1282 = vector.extract_strided_slice %1246 {offsets = [6, 0], sizes = [1, 256], strides = [1, 1]} : vector<8x256xf32> to vector<1x256xf32>
    %1283 = vector.broadcast %1281 : vector<8x1xf32> to vector<8x256xf32>
    %1284 = vector.broadcast %1282 : vector<1x256xf32> to vector<8x256xf32>
    %1285 = arith.mulf %1283, %1284 : vector<8x256xf32>
    %1286 = vector.extract_strided_slice %1248 {offsets = [0, 7], sizes = [8, 1], strides = [1, 1]} : vector<8x8xf32> to vector<8x1xf32>
    %1287 = vector.extract_strided_slice %1246 {offsets = [7, 0], sizes = [1, 256], strides = [1, 1]} : vector<8x256xf32> to vector<1x256xf32>
    %1288 = vector.broadcast %1286 : vector<8x1xf32> to vector<8x256xf32>
    %1289 = vector.broadcast %1287 : vector<1x256xf32> to vector<8x256xf32>
    %1290 = arith.mulf %1288, %1289 : vector<8x256xf32>
    %1291 = arith.addf %1255, %1260 : vector<8x256xf32>
    %1292 = arith.addf %1265, %1270 : vector<8x256xf32>
    %1293 = arith.addf %1275, %1280 : vector<8x256xf32>
    %1294 = arith.addf %1285, %1290 : vector<8x256xf32>
    %1295 = arith.addf %1291, %1292 : vector<8x256xf32>
    %1296 = arith.addf %1293, %1294 : vector<8x256xf32>
    %1297 = arith.addf %1295, %1296 : vector<8x256xf32>
    %1298 = vector.broadcast %1250 : vector<8x1xf32> to vector<8x256xf32>
    %1299 = arith.addf %1297, %1298 : vector<8x256xf32>
    %cst_376 = arith.constant 0.000000e+00 : f32
    %1300 = vector.broadcast %cst_376 : f32 to vector<8x256xf32>
    %1301 = arith.maximumf %1299, %1300 : vector<8x256xf32>
    %c9 = arith.constant 9 : index
    %c0_377 = arith.constant 0 : index
    %c0_378 = arith.constant 0 : index
    %1302 = vector.load %arg7[%c9, %c0_377, %c0_378] : memref<11x8x9xf32, #tpu.memory_space<vmem>>, vector<1x8x9xf32>
    %1303 = vector.shape_cast %1302 : vector<1x8x9xf32> to vector<8x9xf32>
    %c17_i32_379 = arith.constant 17 : i32
    %1304 = tpu.dynamic_rotate %1301 by %c17_i32_379 dim 1 : vector<8x256xf32>, i32 -> vector<8x256xf32>
    %c0_380 = arith.constant 0 : index
    %c0_381 = arith.constant 0 : index
    %c0_382 = arith.constant 0 : index
    %1305 = vector.load %arg10[%c0_380, %c0_381, %c0_382] : memref<16x1x256xf32, #tpu.memory_space<vmem>>, vector<1x1x256xf32>
    %1306 = vector.shape_cast %1305 : vector<1x1x256xf32> to vector<1x256xf32>
    %1307 = vector.broadcast %1306 : vector<1x256xf32> to vector<8x256xf32>
    %1308 = arith.mulf %1304, %1307 : vector<8x256xf32>
    %1309 = vector.extract_strided_slice %1303 {offsets = [0, 0], sizes = [8, 1], strides = [1, 1]} : vector<8x9xf32> to vector<8x1xf32>
    %1310 = vector.broadcast %1309 : vector<8x1xf32> to vector<8x256xf32>
    %1311 = arith.mulf %1308, %1310 : vector<8x256xf32>
    %c16_i32_383 = arith.constant 16 : i32
    %1312 = tpu.dynamic_rotate %1301 by %c16_i32_383 dim 1 : vector<8x256xf32>, i32 -> vector<8x256xf32>
    %c1_384 = arith.constant 1 : index
    %c0_385 = arith.constant 0 : index
    %c0_386 = arith.constant 0 : index
    %1313 = vector.load %arg10[%c1_384, %c0_385, %c0_386] : memref<16x1x256xf32, #tpu.memory_space<vmem>>, vector<1x1x256xf32>
    %1314 = vector.shape_cast %1313 : vector<1x1x256xf32> to vector<1x256xf32>
    %1315 = vector.broadcast %1314 : vector<1x256xf32> to vector<8x256xf32>
    %1316 = arith.mulf %1312, %1315 : vector<8x256xf32>
    %1317 = vector.extract_strided_slice %1303 {offsets = [0, 1], sizes = [8, 1], strides = [1, 1]} : vector<8x9xf32> to vector<8x1xf32>
    %1318 = vector.broadcast %1317 : vector<8x1xf32> to vector<8x256xf32>
    %1319 = arith.mulf %1316, %1318 : vector<8x256xf32>
    %c15_i32_387 = arith.constant 15 : i32
    %1320 = tpu.dynamic_rotate %1301 by %c15_i32_387 dim 1 : vector<8x256xf32>, i32 -> vector<8x256xf32>
    %c2_388 = arith.constant 2 : index
    %c0_389 = arith.constant 0 : index
    %c0_390 = arith.constant 0 : index
    %1321 = vector.load %arg10[%c2_388, %c0_389, %c0_390] : memref<16x1x256xf32, #tpu.memory_space<vmem>>, vector<1x1x256xf32>
    %1322 = vector.shape_cast %1321 : vector<1x1x256xf32> to vector<1x256xf32>
    %1323 = vector.broadcast %1322 : vector<1x256xf32> to vector<8x256xf32>
    %1324 = arith.mulf %1320, %1323 : vector<8x256xf32>
    %1325 = vector.extract_strided_slice %1303 {offsets = [0, 2], sizes = [8, 1], strides = [1, 1]} : vector<8x9xf32> to vector<8x1xf32>
    %1326 = vector.broadcast %1325 : vector<8x1xf32> to vector<8x256xf32>
    %1327 = arith.mulf %1324, %1326 : vector<8x256xf32>
    %c1_i32_391 = arith.constant 1 : i32
    %1328 = tpu.dynamic_rotate %1301 by %c1_i32_391 dim 1 : vector<8x256xf32>, i32 -> vector<8x256xf32>
    %c3_392 = arith.constant 3 : index
    %c0_393 = arith.constant 0 : index
    %c0_394 = arith.constant 0 : index
    %1329 = vector.load %arg10[%c3_392, %c0_393, %c0_394] : memref<16x1x256xf32, #tpu.memory_space<vmem>>, vector<1x1x256xf32>
    %1330 = vector.shape_cast %1329 : vector<1x1x256xf32> to vector<1x256xf32>
    %1331 = vector.broadcast %1330 : vector<1x256xf32> to vector<8x256xf32>
    %1332 = arith.mulf %1328, %1331 : vector<8x256xf32>
    %1333 = vector.extract_strided_slice %1303 {offsets = [0, 3], sizes = [8, 1], strides = [1, 1]} : vector<8x9xf32> to vector<8x1xf32>
    %1334 = vector.broadcast %1333 : vector<8x1xf32> to vector<8x256xf32>
    %1335 = arith.mulf %1332, %1334 : vector<8x256xf32>
    %1336 = vector.extract_strided_slice %1303 {offsets = [0, 4], sizes = [8, 1], strides = [1, 1]} : vector<8x9xf32> to vector<8x1xf32>
    %1337 = vector.broadcast %1336 : vector<8x1xf32> to vector<8x256xf32>
    %1338 = arith.mulf %1301, %1337 : vector<8x256xf32>
    %c255_i32_395 = arith.constant 255 : i32
    %1339 = tpu.dynamic_rotate %1301 by %c255_i32_395 dim 1 : vector<8x256xf32>, i32 -> vector<8x256xf32>
    %c4_396 = arith.constant 4 : index
    %c0_397 = arith.constant 0 : index
    %c0_398 = arith.constant 0 : index
    %1340 = vector.load %arg10[%c4_396, %c0_397, %c0_398] : memref<16x1x256xf32, #tpu.memory_space<vmem>>, vector<1x1x256xf32>
    %1341 = vector.shape_cast %1340 : vector<1x1x256xf32> to vector<1x256xf32>
    %1342 = vector.broadcast %1341 : vector<1x256xf32> to vector<8x256xf32>
    %1343 = arith.mulf %1339, %1342 : vector<8x256xf32>
    %1344 = vector.extract_strided_slice %1303 {offsets = [0, 5], sizes = [8, 1], strides = [1, 1]} : vector<8x9xf32> to vector<8x1xf32>
    %1345 = vector.broadcast %1344 : vector<8x1xf32> to vector<8x256xf32>
    %1346 = arith.mulf %1343, %1345 : vector<8x256xf32>
    %c241_i32_399 = arith.constant 241 : i32
    %1347 = tpu.dynamic_rotate %1301 by %c241_i32_399 dim 1 : vector<8x256xf32>, i32 -> vector<8x256xf32>
    %c5_400 = arith.constant 5 : index
    %c0_401 = arith.constant 0 : index
    %c0_402 = arith.constant 0 : index
    %1348 = vector.load %arg10[%c5_400, %c0_401, %c0_402] : memref<16x1x256xf32, #tpu.memory_space<vmem>>, vector<1x1x256xf32>
    %1349 = vector.shape_cast %1348 : vector<1x1x256xf32> to vector<1x256xf32>
    %1350 = vector.broadcast %1349 : vector<1x256xf32> to vector<8x256xf32>
    %1351 = arith.mulf %1347, %1350 : vector<8x256xf32>
    %1352 = vector.extract_strided_slice %1303 {offsets = [0, 6], sizes = [8, 1], strides = [1, 1]} : vector<8x9xf32> to vector<8x1xf32>
    %1353 = vector.broadcast %1352 : vector<8x1xf32> to vector<8x256xf32>
    %1354 = arith.mulf %1351, %1353 : vector<8x256xf32>
    %c240_i32_403 = arith.constant 240 : i32
    %1355 = tpu.dynamic_rotate %1301 by %c240_i32_403 dim 1 : vector<8x256xf32>, i32 -> vector<8x256xf32>
    %c6_404 = arith.constant 6 : index
    %c0_405 = arith.constant 0 : index
    %c0_406 = arith.constant 0 : index
    %1356 = vector.load %arg10[%c6_404, %c0_405, %c0_406] : memref<16x1x256xf32, #tpu.memory_space<vmem>>, vector<1x1x256xf32>
    %1357 = vector.shape_cast %1356 : vector<1x1x256xf32> to vector<1x256xf32>
    %1358 = vector.broadcast %1357 : vector<1x256xf32> to vector<8x256xf32>
    %1359 = arith.mulf %1355, %1358 : vector<8x256xf32>
    %1360 = vector.extract_strided_slice %1303 {offsets = [0, 7], sizes = [8, 1], strides = [1, 1]} : vector<8x9xf32> to vector<8x1xf32>
    %1361 = vector.broadcast %1360 : vector<8x1xf32> to vector<8x256xf32>
    %1362 = arith.mulf %1359, %1361 : vector<8x256xf32>
    %c239_i32_407 = arith.constant 239 : i32
    %1363 = tpu.dynamic_rotate %1301 by %c239_i32_407 dim 1 : vector<8x256xf32>, i32 -> vector<8x256xf32>
    %c7_408 = arith.constant 7 : index
    %c0_409 = arith.constant 0 : index
    %c0_410 = arith.constant 0 : index
    %1364 = vector.load %arg10[%c7_408, %c0_409, %c0_410] : memref<16x1x256xf32, #tpu.memory_space<vmem>>, vector<1x1x256xf32>
    %1365 = vector.shape_cast %1364 : vector<1x1x256xf32> to vector<1x256xf32>
    %1366 = vector.broadcast %1365 : vector<1x256xf32> to vector<8x256xf32>
    %1367 = arith.mulf %1363, %1366 : vector<8x256xf32>
    %1368 = vector.extract_strided_slice %1303 {offsets = [0, 8], sizes = [8, 1], strides = [1, 1]} : vector<8x9xf32> to vector<8x1xf32>
    %1369 = vector.broadcast %1368 : vector<8x1xf32> to vector<8x256xf32>
    %1370 = arith.mulf %1367, %1369 : vector<8x256xf32>
    %1371 = arith.addf %1311, %1319 : vector<8x256xf32>
    %1372 = arith.addf %1327, %1335 : vector<8x256xf32>
    %1373 = arith.addf %1338, %1346 : vector<8x256xf32>
    %1374 = arith.addf %1354, %1362 : vector<8x256xf32>
    %1375 = arith.addf %1371, %1372 : vector<8x256xf32>
    %1376 = arith.addf %1373, %1374 : vector<8x256xf32>
    %1377 = arith.addf %1375, %1376 : vector<8x256xf32>
    %1378 = arith.addf %1377, %1370 : vector<8x256xf32>
    %c9_411 = arith.constant 9 : index
    %c0_412 = arith.constant 0 : index
    %c0_413 = arith.constant 0 : index
    %1379 = vector.load %arg8[%c9_411, %c0_412, %c0_413] : memref<11x8x8xf32, #tpu.memory_space<vmem>>, vector<1x8x8xf32>
    %1380 = vector.shape_cast %1379 : vector<1x8x8xf32> to vector<8x8xf32>
    %c9_414 = arith.constant 9 : index
    %c0_415 = arith.constant 0 : index
    %c0_416 = arith.constant 0 : index
    %1381 = vector.load %arg9[%c9_414, %c0_415, %c0_416] : memref<11x8x1xf32, #tpu.memory_space<vmem>>, vector<1x8x1xf32>
    %1382 = vector.shape_cast %1381 : vector<1x8x1xf32> to vector<8x1xf32>
    %1383 = vector.extract_strided_slice %1380 {offsets = [0, 0], sizes = [8, 1], strides = [1, 1]} : vector<8x8xf32> to vector<8x1xf32>
    %1384 = vector.extract_strided_slice %1378 {offsets = [0, 0], sizes = [1, 256], strides = [1, 1]} : vector<8x256xf32> to vector<1x256xf32>
    %1385 = vector.broadcast %1383 : vector<8x1xf32> to vector<8x256xf32>
    %1386 = vector.broadcast %1384 : vector<1x256xf32> to vector<8x256xf32>
    %1387 = arith.mulf %1385, %1386 : vector<8x256xf32>
    %1388 = vector.extract_strided_slice %1380 {offsets = [0, 1], sizes = [8, 1], strides = [1, 1]} : vector<8x8xf32> to vector<8x1xf32>
    %1389 = vector.extract_strided_slice %1378 {offsets = [1, 0], sizes = [1, 256], strides = [1, 1]} : vector<8x256xf32> to vector<1x256xf32>
    %1390 = vector.broadcast %1388 : vector<8x1xf32> to vector<8x256xf32>
    %1391 = vector.broadcast %1389 : vector<1x256xf32> to vector<8x256xf32>
    %1392 = arith.mulf %1390, %1391 : vector<8x256xf32>
    %1393 = vector.extract_strided_slice %1380 {offsets = [0, 2], sizes = [8, 1], strides = [1, 1]} : vector<8x8xf32> to vector<8x1xf32>
    %1394 = vector.extract_strided_slice %1378 {offsets = [2, 0], sizes = [1, 256], strides = [1, 1]} : vector<8x256xf32> to vector<1x256xf32>
    %1395 = vector.broadcast %1393 : vector<8x1xf32> to vector<8x256xf32>
    %1396 = vector.broadcast %1394 : vector<1x256xf32> to vector<8x256xf32>
    %1397 = arith.mulf %1395, %1396 : vector<8x256xf32>
    %1398 = vector.extract_strided_slice %1380 {offsets = [0, 3], sizes = [8, 1], strides = [1, 1]} : vector<8x8xf32> to vector<8x1xf32>
    %1399 = vector.extract_strided_slice %1378 {offsets = [3, 0], sizes = [1, 256], strides = [1, 1]} : vector<8x256xf32> to vector<1x256xf32>
    %1400 = vector.broadcast %1398 : vector<8x1xf32> to vector<8x256xf32>
    %1401 = vector.broadcast %1399 : vector<1x256xf32> to vector<8x256xf32>
    %1402 = arith.mulf %1400, %1401 : vector<8x256xf32>
    %1403 = vector.extract_strided_slice %1380 {offsets = [0, 4], sizes = [8, 1], strides = [1, 1]} : vector<8x8xf32> to vector<8x1xf32>
    %1404 = vector.extract_strided_slice %1378 {offsets = [4, 0], sizes = [1, 256], strides = [1, 1]} : vector<8x256xf32> to vector<1x256xf32>
    %1405 = vector.broadcast %1403 : vector<8x1xf32> to vector<8x256xf32>
    %1406 = vector.broadcast %1404 : vector<1x256xf32> to vector<8x256xf32>
    %1407 = arith.mulf %1405, %1406 : vector<8x256xf32>
    %1408 = vector.extract_strided_slice %1380 {offsets = [0, 5], sizes = [8, 1], strides = [1, 1]} : vector<8x8xf32> to vector<8x1xf32>
    %1409 = vector.extract_strided_slice %1378 {offsets = [5, 0], sizes = [1, 256], strides = [1, 1]} : vector<8x256xf32> to vector<1x256xf32>
    %1410 = vector.broadcast %1408 : vector<8x1xf32> to vector<8x256xf32>
    %1411 = vector.broadcast %1409 : vector<1x256xf32> to vector<8x256xf32>
    %1412 = arith.mulf %1410, %1411 : vector<8x256xf32>
    %1413 = vector.extract_strided_slice %1380 {offsets = [0, 6], sizes = [8, 1], strides = [1, 1]} : vector<8x8xf32> to vector<8x1xf32>
    %1414 = vector.extract_strided_slice %1378 {offsets = [6, 0], sizes = [1, 256], strides = [1, 1]} : vector<8x256xf32> to vector<1x256xf32>
    %1415 = vector.broadcast %1413 : vector<8x1xf32> to vector<8x256xf32>
    %1416 = vector.broadcast %1414 : vector<1x256xf32> to vector<8x256xf32>
    %1417 = arith.mulf %1415, %1416 : vector<8x256xf32>
    %1418 = vector.extract_strided_slice %1380 {offsets = [0, 7], sizes = [8, 1], strides = [1, 1]} : vector<8x8xf32> to vector<8x1xf32>
    %1419 = vector.extract_strided_slice %1378 {offsets = [7, 0], sizes = [1, 256], strides = [1, 1]} : vector<8x256xf32> to vector<1x256xf32>
    %1420 = vector.broadcast %1418 : vector<8x1xf32> to vector<8x256xf32>
    %1421 = vector.broadcast %1419 : vector<1x256xf32> to vector<8x256xf32>
    %1422 = arith.mulf %1420, %1421 : vector<8x256xf32>
    %1423 = arith.addf %1387, %1392 : vector<8x256xf32>
    %1424 = arith.addf %1397, %1402 : vector<8x256xf32>
    %1425 = arith.addf %1407, %1412 : vector<8x256xf32>
    %1426 = arith.addf %1417, %1422 : vector<8x256xf32>
    %1427 = arith.addf %1423, %1424 : vector<8x256xf32>
    %1428 = arith.addf %1425, %1426 : vector<8x256xf32>
    %1429 = arith.addf %1427, %1428 : vector<8x256xf32>
    %1430 = vector.broadcast %1382 : vector<8x1xf32> to vector<8x256xf32>
    %1431 = arith.addf %1429, %1430 : vector<8x256xf32>
    %1432 = arith.addf %1431, %54 : vector<8x256xf32>
    %cst_417 = arith.constant 0.000000e+00 : f32
    %1433 = vector.broadcast %cst_417 : f32 to vector<8x256xf32>
    %1434 = arith.maximumf %638, %1433 : vector<8x256xf32>
    %c10 = arith.constant 10 : index
    %c0_418 = arith.constant 0 : index
    %c0_419 = arith.constant 0 : index
    %1435 = vector.load %arg7[%c10, %c0_418, %c0_419] : memref<11x8x9xf32, #tpu.memory_space<vmem>>, vector<1x8x9xf32>
    %1436 = vector.shape_cast %1435 : vector<1x8x9xf32> to vector<8x9xf32>
    %c34_i32 = arith.constant 34 : i32
    %1437 = tpu.dynamic_rotate %1434 by %c34_i32 dim 1 : vector<8x256xf32>, i32 -> vector<8x256xf32>
    %c8_420 = arith.constant 8 : index
    %c0_421 = arith.constant 0 : index
    %c0_422 = arith.constant 0 : index
    %1438 = vector.load %arg10[%c8_420, %c0_421, %c0_422] : memref<16x1x256xf32, #tpu.memory_space<vmem>>, vector<1x1x256xf32>
    %1439 = vector.shape_cast %1438 : vector<1x1x256xf32> to vector<1x256xf32>
    %1440 = vector.broadcast %1439 : vector<1x256xf32> to vector<8x256xf32>
    %1441 = arith.mulf %1437, %1440 : vector<8x256xf32>
    %1442 = vector.extract_strided_slice %1436 {offsets = [0, 0], sizes = [8, 1], strides = [1, 1]} : vector<8x9xf32> to vector<8x1xf32>
    %1443 = vector.broadcast %1442 : vector<8x1xf32> to vector<8x256xf32>
    %1444 = arith.mulf %1441, %1443 : vector<8x256xf32>
    %c32_i32 = arith.constant 32 : i32
    %1445 = tpu.dynamic_rotate %1434 by %c32_i32 dim 1 : vector<8x256xf32>, i32 -> vector<8x256xf32>
    %c9_423 = arith.constant 9 : index
    %c0_424 = arith.constant 0 : index
    %c0_425 = arith.constant 0 : index
    %1446 = vector.load %arg10[%c9_423, %c0_424, %c0_425] : memref<16x1x256xf32, #tpu.memory_space<vmem>>, vector<1x1x256xf32>
    %1447 = vector.shape_cast %1446 : vector<1x1x256xf32> to vector<1x256xf32>
    %1448 = vector.broadcast %1447 : vector<1x256xf32> to vector<8x256xf32>
    %1449 = arith.mulf %1445, %1448 : vector<8x256xf32>
    %1450 = vector.extract_strided_slice %1436 {offsets = [0, 1], sizes = [8, 1], strides = [1, 1]} : vector<8x9xf32> to vector<8x1xf32>
    %1451 = vector.broadcast %1450 : vector<8x1xf32> to vector<8x256xf32>
    %1452 = arith.mulf %1449, %1451 : vector<8x256xf32>
    %c30_i32 = arith.constant 30 : i32
    %1453 = tpu.dynamic_rotate %1434 by %c30_i32 dim 1 : vector<8x256xf32>, i32 -> vector<8x256xf32>
    %c10_426 = arith.constant 10 : index
    %c0_427 = arith.constant 0 : index
    %c0_428 = arith.constant 0 : index
    %1454 = vector.load %arg10[%c10_426, %c0_427, %c0_428] : memref<16x1x256xf32, #tpu.memory_space<vmem>>, vector<1x1x256xf32>
    %1455 = vector.shape_cast %1454 : vector<1x1x256xf32> to vector<1x256xf32>
    %1456 = vector.broadcast %1455 : vector<1x256xf32> to vector<8x256xf32>
    %1457 = arith.mulf %1453, %1456 : vector<8x256xf32>
    %1458 = vector.extract_strided_slice %1436 {offsets = [0, 2], sizes = [8, 1], strides = [1, 1]} : vector<8x9xf32> to vector<8x1xf32>
    %1459 = vector.broadcast %1458 : vector<8x1xf32> to vector<8x256xf32>
    %1460 = arith.mulf %1457, %1459 : vector<8x256xf32>
    %c2_i32 = arith.constant 2 : i32
    %1461 = tpu.dynamic_rotate %1434 by %c2_i32 dim 1 : vector<8x256xf32>, i32 -> vector<8x256xf32>
    %c11 = arith.constant 11 : index
    %c0_429 = arith.constant 0 : index
    %c0_430 = arith.constant 0 : index
    %1462 = vector.load %arg10[%c11, %c0_429, %c0_430] : memref<16x1x256xf32, #tpu.memory_space<vmem>>, vector<1x1x256xf32>
    %1463 = vector.shape_cast %1462 : vector<1x1x256xf32> to vector<1x256xf32>
    %1464 = vector.broadcast %1463 : vector<1x256xf32> to vector<8x256xf32>
    %1465 = arith.mulf %1461, %1464 : vector<8x256xf32>
    %1466 = vector.extract_strided_slice %1436 {offsets = [0, 3], sizes = [8, 1], strides = [1, 1]} : vector<8x9xf32> to vector<8x1xf32>
    %1467 = vector.broadcast %1466 : vector<8x1xf32> to vector<8x256xf32>
    %1468 = arith.mulf %1465, %1467 : vector<8x256xf32>
    %1469 = vector.extract_strided_slice %1436 {offsets = [0, 4], sizes = [8, 1], strides = [1, 1]} : vector<8x9xf32> to vector<8x1xf32>
    %1470 = vector.broadcast %1469 : vector<8x1xf32> to vector<8x256xf32>
    %1471 = arith.mulf %1434, %1470 : vector<8x256xf32>
    %c254_i32 = arith.constant 254 : i32
    %1472 = tpu.dynamic_rotate %1434 by %c254_i32 dim 1 : vector<8x256xf32>, i32 -> vector<8x256xf32>
    %c12 = arith.constant 12 : index
    %c0_431 = arith.constant 0 : index
    %c0_432 = arith.constant 0 : index
    %1473 = vector.load %arg10[%c12, %c0_431, %c0_432] : memref<16x1x256xf32, #tpu.memory_space<vmem>>, vector<1x1x256xf32>
    %1474 = vector.shape_cast %1473 : vector<1x1x256xf32> to vector<1x256xf32>
    %1475 = vector.broadcast %1474 : vector<1x256xf32> to vector<8x256xf32>
    %1476 = arith.mulf %1472, %1475 : vector<8x256xf32>
    %1477 = vector.extract_strided_slice %1436 {offsets = [0, 5], sizes = [8, 1], strides = [1, 1]} : vector<8x9xf32> to vector<8x1xf32>
    %1478 = vector.broadcast %1477 : vector<8x1xf32> to vector<8x256xf32>
    %1479 = arith.mulf %1476, %1478 : vector<8x256xf32>
    %c226_i32 = arith.constant 226 : i32
    %1480 = tpu.dynamic_rotate %1434 by %c226_i32 dim 1 : vector<8x256xf32>, i32 -> vector<8x256xf32>
    %c13 = arith.constant 13 : index
    %c0_433 = arith.constant 0 : index
    %c0_434 = arith.constant 0 : index
    %1481 = vector.load %arg10[%c13, %c0_433, %c0_434] : memref<16x1x256xf32, #tpu.memory_space<vmem>>, vector<1x1x256xf32>
    %1482 = vector.shape_cast %1481 : vector<1x1x256xf32> to vector<1x256xf32>
    %1483 = vector.broadcast %1482 : vector<1x256xf32> to vector<8x256xf32>
    %1484 = arith.mulf %1480, %1483 : vector<8x256xf32>
    %1485 = vector.extract_strided_slice %1436 {offsets = [0, 6], sizes = [8, 1], strides = [1, 1]} : vector<8x9xf32> to vector<8x1xf32>
    %1486 = vector.broadcast %1485 : vector<8x1xf32> to vector<8x256xf32>
    %1487 = arith.mulf %1484, %1486 : vector<8x256xf32>
    %c224_i32 = arith.constant 224 : i32
    %1488 = tpu.dynamic_rotate %1434 by %c224_i32 dim 1 : vector<8x256xf32>, i32 -> vector<8x256xf32>
    %c14 = arith.constant 14 : index
    %c0_435 = arith.constant 0 : index
    %c0_436 = arith.constant 0 : index
    %1489 = vector.load %arg10[%c14, %c0_435, %c0_436] : memref<16x1x256xf32, #tpu.memory_space<vmem>>, vector<1x1x256xf32>
    %1490 = vector.shape_cast %1489 : vector<1x1x256xf32> to vector<1x256xf32>
    %1491 = vector.broadcast %1490 : vector<1x256xf32> to vector<8x256xf32>
    %1492 = arith.mulf %1488, %1491 : vector<8x256xf32>
    %1493 = vector.extract_strided_slice %1436 {offsets = [0, 7], sizes = [8, 1], strides = [1, 1]} : vector<8x9xf32> to vector<8x1xf32>
    %1494 = vector.broadcast %1493 : vector<8x1xf32> to vector<8x256xf32>
    %1495 = arith.mulf %1492, %1494 : vector<8x256xf32>
    %c222_i32 = arith.constant 222 : i32
    %1496 = tpu.dynamic_rotate %1434 by %c222_i32 dim 1 : vector<8x256xf32>, i32 -> vector<8x256xf32>
    %c15 = arith.constant 15 : index
    %c0_437 = arith.constant 0 : index
    %c0_438 = arith.constant 0 : index
    %1497 = vector.load %arg10[%c15, %c0_437, %c0_438] : memref<16x1x256xf32, #tpu.memory_space<vmem>>, vector<1x1x256xf32>
    %1498 = vector.shape_cast %1497 : vector<1x1x256xf32> to vector<1x256xf32>
    %1499 = vector.broadcast %1498 : vector<1x256xf32> to vector<8x256xf32>
    %1500 = arith.mulf %1496, %1499 : vector<8x256xf32>
    %1501 = vector.extract_strided_slice %1436 {offsets = [0, 8], sizes = [8, 1], strides = [1, 1]} : vector<8x9xf32> to vector<8x1xf32>
    %1502 = vector.broadcast %1501 : vector<8x1xf32> to vector<8x256xf32>
    %1503 = arith.mulf %1500, %1502 : vector<8x256xf32>
    %1504 = arith.addf %1444, %1452 : vector<8x256xf32>
    %1505 = arith.addf %1460, %1468 : vector<8x256xf32>
    %1506 = arith.addf %1471, %1479 : vector<8x256xf32>
    %1507 = arith.addf %1487, %1495 : vector<8x256xf32>
    %1508 = arith.addf %1504, %1505 : vector<8x256xf32>
    %1509 = arith.addf %1506, %1507 : vector<8x256xf32>
    %1510 = arith.addf %1508, %1509 : vector<8x256xf32>
    %1511 = arith.addf %1510, %1503 : vector<8x256xf32>
    %c10_439 = arith.constant 10 : index
    %c0_440 = arith.constant 0 : index
    %c0_441 = arith.constant 0 : index
    %1512 = vector.load %arg8[%c10_439, %c0_440, %c0_441] : memref<11x8x8xf32, #tpu.memory_space<vmem>>, vector<1x8x8xf32>
    %1513 = vector.shape_cast %1512 : vector<1x8x8xf32> to vector<8x8xf32>
    %c10_442 = arith.constant 10 : index
    %c0_443 = arith.constant 0 : index
    %c0_444 = arith.constant 0 : index
    %1514 = vector.load %arg9[%c10_442, %c0_443, %c0_444] : memref<11x8x1xf32, #tpu.memory_space<vmem>>, vector<1x8x1xf32>
    %1515 = vector.shape_cast %1514 : vector<1x8x1xf32> to vector<8x1xf32>
    %1516 = vector.extract_strided_slice %1513 {offsets = [0, 0], sizes = [8, 1], strides = [1, 1]} : vector<8x8xf32> to vector<8x1xf32>
    %1517 = vector.extract_strided_slice %1511 {offsets = [0, 0], sizes = [1, 256], strides = [1, 1]} : vector<8x256xf32> to vector<1x256xf32>
    %1518 = vector.broadcast %1516 : vector<8x1xf32> to vector<8x256xf32>
    %1519 = vector.broadcast %1517 : vector<1x256xf32> to vector<8x256xf32>
    %1520 = arith.mulf %1518, %1519 : vector<8x256xf32>
    %1521 = vector.extract_strided_slice %1513 {offsets = [0, 1], sizes = [8, 1], strides = [1, 1]} : vector<8x8xf32> to vector<8x1xf32>
    %1522 = vector.extract_strided_slice %1511 {offsets = [1, 0], sizes = [1, 256], strides = [1, 1]} : vector<8x256xf32> to vector<1x256xf32>
    %1523 = vector.broadcast %1521 : vector<8x1xf32> to vector<8x256xf32>
    %1524 = vector.broadcast %1522 : vector<1x256xf32> to vector<8x256xf32>
    %1525 = arith.mulf %1523, %1524 : vector<8x256xf32>
    %1526 = vector.extract_strided_slice %1513 {offsets = [0, 2], sizes = [8, 1], strides = [1, 1]} : vector<8x8xf32> to vector<8x1xf32>
    %1527 = vector.extract_strided_slice %1511 {offsets = [2, 0], sizes = [1, 256], strides = [1, 1]} : vector<8x256xf32> to vector<1x256xf32>
    %1528 = vector.broadcast %1526 : vector<8x1xf32> to vector<8x256xf32>
    %1529 = vector.broadcast %1527 : vector<1x256xf32> to vector<8x256xf32>
    %1530 = arith.mulf %1528, %1529 : vector<8x256xf32>
    %1531 = vector.extract_strided_slice %1513 {offsets = [0, 3], sizes = [8, 1], strides = [1, 1]} : vector<8x8xf32> to vector<8x1xf32>
    %1532 = vector.extract_strided_slice %1511 {offsets = [3, 0], sizes = [1, 256], strides = [1, 1]} : vector<8x256xf32> to vector<1x256xf32>
    %1533 = vector.broadcast %1531 : vector<8x1xf32> to vector<8x256xf32>
    %1534 = vector.broadcast %1532 : vector<1x256xf32> to vector<8x256xf32>
    %1535 = arith.mulf %1533, %1534 : vector<8x256xf32>
    %1536 = vector.extract_strided_slice %1513 {offsets = [0, 4], sizes = [8, 1], strides = [1, 1]} : vector<8x8xf32> to vector<8x1xf32>
    %1537 = vector.extract_strided_slice %1511 {offsets = [4, 0], sizes = [1, 256], strides = [1, 1]} : vector<8x256xf32> to vector<1x256xf32>
    %1538 = vector.broadcast %1536 : vector<8x1xf32> to vector<8x256xf32>
    %1539 = vector.broadcast %1537 : vector<1x256xf32> to vector<8x256xf32>
    %1540 = arith.mulf %1538, %1539 : vector<8x256xf32>
    %1541 = vector.extract_strided_slice %1513 {offsets = [0, 5], sizes = [8, 1], strides = [1, 1]} : vector<8x8xf32> to vector<8x1xf32>
    %1542 = vector.extract_strided_slice %1511 {offsets = [5, 0], sizes = [1, 256], strides = [1, 1]} : vector<8x256xf32> to vector<1x256xf32>
    %1543 = vector.broadcast %1541 : vector<8x1xf32> to vector<8x256xf32>
    %1544 = vector.broadcast %1542 : vector<1x256xf32> to vector<8x256xf32>
    %1545 = arith.mulf %1543, %1544 : vector<8x256xf32>
    %1546 = vector.extract_strided_slice %1513 {offsets = [0, 6], sizes = [8, 1], strides = [1, 1]} : vector<8x8xf32> to vector<8x1xf32>
    %1547 = vector.extract_strided_slice %1511 {offsets = [6, 0], sizes = [1, 256], strides = [1, 1]} : vector<8x256xf32> to vector<1x256xf32>
    %1548 = vector.broadcast %1546 : vector<8x1xf32> to vector<8x256xf32>
    %1549 = vector.broadcast %1547 : vector<1x256xf32> to vector<8x256xf32>
    %1550 = arith.mulf %1548, %1549 : vector<8x256xf32>
    %1551 = vector.extract_strided_slice %1513 {offsets = [0, 7], sizes = [8, 1], strides = [1, 1]} : vector<8x8xf32> to vector<8x1xf32>
    %1552 = vector.extract_strided_slice %1511 {offsets = [7, 0], sizes = [1, 256], strides = [1, 1]} : vector<8x256xf32> to vector<1x256xf32>
    %1553 = vector.broadcast %1551 : vector<8x1xf32> to vector<8x256xf32>
    %1554 = vector.broadcast %1552 : vector<1x256xf32> to vector<8x256xf32>
    %1555 = arith.mulf %1553, %1554 : vector<8x256xf32>
    %1556 = arith.addf %1520, %1525 : vector<8x256xf32>
    %1557 = arith.addf %1530, %1535 : vector<8x256xf32>
    %1558 = arith.addf %1540, %1545 : vector<8x256xf32>
    %1559 = arith.addf %1550, %1555 : vector<8x256xf32>
    %1560 = arith.addf %1556, %1557 : vector<8x256xf32>
    %1561 = arith.addf %1558, %1559 : vector<8x256xf32>
    %1562 = arith.addf %1560, %1561 : vector<8x256xf32>
    %1563 = vector.broadcast %1515 : vector<8x1xf32> to vector<8x256xf32>
    %1564 = arith.addf %1562, %1563 : vector<8x256xf32>
    %1565 = arith.addf %54, %1564 : vector<8x256xf32>
    %1566 = tpu.concatenate %638, %1167, %1432, %1565 in 0 : vector<8x256xf32>, vector<8x256xf32>, vector<8x256xf32>, vector<8x256xf32> -> vector<32x256xf32>
    %c0_445 = arith.constant 0 : index
    %c0_446 = arith.constant 0 : index
    %c0_447 = arith.constant 0 : index
    %1567 = vector.load %arg11[%c0_445, %c0_446, %c0_447] : memref<1x32x256xf32, #tpu.memory_space<vmem>>, vector<1x32x256xf32>
    %1568 = vector.shape_cast %1567 : vector<1x32x256xf32> to vector<32x256xf32>
    %1569 = vector.shape_cast %1566 : vector<32x256xf32> to vector<1x32x256xf32>
    tpu.vector_store %arg11[%c0_445, %c0_446, %c0_447], %1569 {strides = array<i32>} : memref<1x32x256xf32, #tpu.memory_space<vmem>>, vector<1x32x256xf32>,
    return
  }
  func.func @transform_0(%arg0: i32) -> (i32, i32, i32) {
    %c0_i32 = arith.constant 0 : i32
    %c0_i32_0 = arith.constant 0 : i32
    %c0_i32_1 = arith.constant 0 : i32
    return %arg0, %c0_i32, %c0_i32_0 : i32, i32, i32
  }
  func.func @transform_1(%arg0: i32) -> (i32, i32, i32) {
    %c0_i32 = arith.constant 0 : i32
    %c0_i32_0 = arith.constant 0 : i32
    %c0_i32_1 = arith.constant 0 : i32
    return %arg0, %c0_i32, %c0_i32_0 : i32, i32, i32
  }
  func.func @transform_2(%arg0: i32) -> (i32, i32) {
    %c0_i32 = arith.constant 0 : i32
    %c0_i32_0 = arith.constant 0 : i32
    %c0_i32_1 = arith.constant 0 : i32
    return %c0_i32, %c0_i32_0 : i32, i32
  }
  func.func @transform_3(%arg0: i32) -> (i32, i32) {
    %c0_i32 = arith.constant 0 : i32
    %c0_i32_0 = arith.constant 0 : i32
    %c0_i32_1 = arith.constant 0 : i32
    return %c0_i32, %c0_i32_0 : i32, i32
  }
  func.func @transform_4(%arg0: i32) -> (i32, i32) {
    %c0_i32 = arith.constant 0 : i32
    %c0_i32_0 = arith.constant 0 : i32
    %c0_i32_1 = arith.constant 0 : i32
    return %c0_i32, %c0_i32_0 : i32, i32
  }
  func.func @transform_5(%arg0: i32) -> (i32, i32) {
    %c0_i32 = arith.constant 0 : i32
    %c0_i32_0 = arith.constant 0 : i32
    %c0_i32_1 = arith.constant 0 : i32
    return %c0_i32, %c0_i32_0 : i32, i32
  }
  func.func @transform_6(%arg0: i32) -> (i32, i32, i32) {
    %c0_i32 = arith.constant 0 : i32
    %c0_i32_0 = arith.constant 0 : i32
    %c0_i32_1 = arith.constant 0 : i32
    %c0_i32_2 = arith.constant 0 : i32
    return %c0_i32, %c0_i32_0, %c0_i32_1 : i32, i32, i32
  }
  func.func @transform_7(%arg0: i32) -> (i32, i32, i32) {
    %c0_i32 = arith.constant 0 : i32
    %c0_i32_0 = arith.constant 0 : i32
    %c0_i32_1 = arith.constant 0 : i32
    %c0_i32_2 = arith.constant 0 : i32
    return %c0_i32, %c0_i32_0, %c0_i32_1 : i32, i32, i32
  }
  func.func @transform_8(%arg0: i32) -> (i32, i32, i32) {
    %c0_i32 = arith.constant 0 : i32
    %c0_i32_0 = arith.constant 0 : i32
    %c0_i32_1 = arith.constant 0 : i32
    %c0_i32_2 = arith.constant 0 : i32
    return %c0_i32, %c0_i32_0, %c0_i32_1 : i32, i32, i32
  }
  func.func @transform_9(%arg0: i32) -> (i32, i32, i32) {
    %c0_i32 = arith.constant 0 : i32
    %c0_i32_0 = arith.constant 0 : i32
    %c0_i32_1 = arith.constant 0 : i32
    %c0_i32_2 = arith.constant 0 : i32
    return %c0_i32, %c0_i32_0, %c0_i32_1 : i32, i32, i32
  }
  func.func @transform_10(%arg0: i32) -> (i32, i32, i32) {
    %c0_i32 = arith.constant 0 : i32
    %c0_i32_0 = arith.constant 0 : i32
    %c0_i32_1 = arith.constant 0 : i32
    return %arg0, %c0_i32, %c0_i32_0 : i32, i32, i32
  }
}

</mosaic_0001>

<bundles_post_ra>
// kernel: _lambda_.1
= control target key start
LH: loop header
LB: loop body
LE: loop exit
PB: predicated region body
PF: predicated region fallthrough
CT: control target
= control target key end

     0   :  { %s3473_s13 = smov 0   ;;  %s5640_s0 = inlined_call_operand.vmem [shape: f32[2,8,256], index: 0, kind: input, shape index: {}]   ;;  %s5641_s1 = inlined_call_operand.vmem [shape: f32[2,8,256], index: 1, kind: input, shape index: {}]   ;;  %s5642_s2 = inlined_call_operand.vmem [shape: f32[8,8], index: 2, kind: input, shape index: {}]   ;;  %s5643_s3 = inlined_call_operand.vmem [shape: f32[8,1], index: 3, kind: input, shape index: {}]   ;;  %s5644_s4 = inlined_call_operand.vmem [shape: f32[8,8], index: 4, kind: input, shape index: {}]   ;;  %s5645_s5 = inlined_call_operand.vmem [shape: f32[8,1], index: 5, kind: input, shape index: {}]   ;;  %s5646_s6 = inlined_call_operand.vmem [shape: f32[11,8,9], index: 6, kind: input, shape index: {}]   ;;  %s5647_s7 = inlined_call_operand.vmem [shape: f32[11,8,8], index: 7, kind: input, shape index: {}]   ;;  %s5648_s8 = inlined_call_operand.vmem [shape: f32[11,8,1], index: 8, kind: input, shape index: {}]   ;;  %s5649_s9 = inlined_call_operand.vmem [shape: f32[16,1,256], index: 9, kind: input, shape index: {}]   ;;  %s5650_s10 = inlined_call_operand.vmem [shape: f32[2,32,256], index: 10, kind: output, shape index: {}]  }
   0x1 LB: > { %s3094_s14 = sadd.s32 4294967295, %s3391_s13   ;;  %p3098_p0 = scmp.ge.s32.totalorder %s3391_s13, 1  ;;  %s3391_s13 = sphi %s3473_s13, %s20_s13  }
   0x2   : > { %p322_p1 = scmp.lt.s32.totalorder %s3391_s13, 3 }
   0x4   : > { %p323_p2 = pnand %p3098_p0, %p322_p1 }
   0x6   : > { %326 = sbr.rel (%p323_p2) target bundleno = 1779 (0x6f3), region = 60 }
   0xb   : > { %v384_v0 = vld [vmem:[%s5642_s2] sm:$0xff]  ;;  %v5659_v1 = vmov 2   ;;  %v5653_v2 = vmov 0   ;;  %v5651_v3 = vmov 4   ;;  %v5665_v5 = vmov 3   ;;  %p365_p3 = scmp.lt.s32.totalorder %s3094_s14, 1 }
   0xc   : > { %3189 = vset.pattern.permute.xlu1 %v5659_v1  ;;  %3188 = vset.pattern.permute.xlu0 %v5653_v2  ;;  %v385_v4 = vld [vmem:[%s5643_s3] sm:$0xff]  ;;  %v5667_v6 = vmov 5   ;;  %v5663_v8 = vmov 6   ;;  %v5661_v9 = vmov 7   ;;  %v5657_v11 = vmov 1   ;;  %s3402_s11 = smov 127  }
   0xd   : > { %404 = vperm.xlu1 %3189, %v384_v0   ;;  %388 = vperm.xlu0 %3188, %v384_v0   ;;  %v476_v7 = vld [vmem:[%s5644_s4] sm:$0xff]  ;;  %v5655_v15 = vmov 8   ;;  %s6151_s14 = smov (!%p365_p3, %s3094_s14), 1  ;;  %s3403_s12 = smov 17  }
   0xe   : > { %3191 = vset.pattern.permute.xlu2 %v5651_v3  ;;  %v566_v10 = vld [vmem:[%s5646_s6] sm:$0xff]  ;;  %s3152_s27 = sshll.u32 %s6151_s14, 4  ;;  %s3404_s15 = smov 113  }
   0xf   : > { %420 = vperm.xlu2 %3191, %v384_v0   ;;  %v477_v12 = vld [vmem:[%s5645_s5] sm:$0xff]  ;;  %s369_s30 = scalar_lea.vmem %s5640_s0, %s3152_s27  ;;  %s3405_s16 = smov 16  }
  0x10   : > { %v3528_v16 = vld [vmem:[%s5647_s7] sm:$0xff]  ;;  %v381_v23 = vld [vmem:[%s369_s30 + $0x8] sm:$0xff]  ;;  %s3406_s17 = smov 15   ;;  %s3407_s18 = smov 112  }
  0x11   : > { %v380_v22 = vld [vmem:[%s369_s30] sm:$0xff]  ;;  %v383_v26 = vmax.f32 %v381_v23, 0.0  ;;  %s3408_s19 = smov 1   ;;  %s3409_s20 = smov 111  }
  0x12   : > { %v382_v25 = vmax.f32 %v380_v22, 0.0  ;;  %s3601_s23 = scalar_lea.vmem %s5641_s1, %s3152_s27  ;;  %s3154_s22 = sshll.u32 %s6151_s14, 6 }
  0x13   : > { %v424_v28 = vperm.slane %v383_v26, 4  ;;  %v432_v31 = vperm.slane %v383_v26, 5  ;;  %v448_v33 = vperm.slane %v383_v26, 7  ;;  %v440_v35 = vperm.slane %v383_v26, 6  ;;  %s5243_s24 = scalar_lea.vmem %s5650_s10, %s3154_s22  ;;  %s3416_s27 = smov 96  }
  0x14   : > { %v423_v27 = vperm.slane %v382_v25, 4  ;;  %v431_v30 = vperm.slane %v382_v25, 5  ;;  %v447_v32 = vperm.slane %v382_v25, 7  ;;  %v439_v34 = vperm.slane %v382_v25, 6  ;;  %s3417_s30 = smov 94  }
  0x15   : > { %3190 = vset.pattern.permute.xlu1 %v5665_v5  ;;  %467 = vperm.xlu0 %3188, %v385_v4   ;;  %v391_v37 = vperm.slane %v382_v25, 0  ;;  %v392_v38 = vperm.slane %v383_v26, 0  ;;  %v407_v39 = vperm.slane %v382_v25, 2  ;;  %v408_v40 = vperm.slane %v383_v26, 2 }
  0x16   : > { %412 = vperm.xlu1 %3190, %v384_v0   ;;  %v415_v43 = vperm.slane %v382_v25, 3  ;;  %v416_v44 = vperm.slane %v383_v26, 3  ;;  %v399_v52 = vperm.slane %v382_v25, 1  ;;  %v400_v53 = vperm.slane %v383_v26, 1 }
  0x17   : > { %3192 = vset.pattern.permute.xlu2 %v5667_v6 }
  0x18   : > { %428 = vperm.xlu2 %3192, %v384_v0  }
  0x1d   : > { %3199 = vset.pattern.permute.xlu0 %v5651_v3 }
  0x1e   : > { %3193 = vset.pattern.permute.xlu1 %v5663_v8  ;;  %512 = vperm.xlu0 %3199, %v476_v7  }
  0x1f   : > { %436 = vperm.xlu1 %3193, %v384_v0  }
  0x20   : > { %3194 = vset.pattern.permute.xlu2 %v5661_v9 }
  0x21   : > { %444 = vperm.xlu2 %3194, %v384_v0  }
  0x26   : > { %658 = vperm.xlu0 %3199, %v566_v10  }
  0x27   : > { %3195 = vset.pattern.permute.xlu1 %v5653_v2 }
  0x28   : > { %480 = vperm.xlu1 %3195, %v476_v7  }
  0x29   : > { %3196 = vset.pattern.permute.xlu2 %v5657_v11 }
  0x2a   : > { %488 = vperm.xlu2 %3196, %v476_v7  }
  0x2e   : > { %3207 = vset.pattern.permute.xlu0 %v5667_v6 }
  0x2f   : > { %680 = vperm.xlu0 %3207, %v566_v10  }
  0x30   : > { %3197 = vset.pattern.permute.xlu1 %v5659_v1 }
  0x31   : > { %496 = vperm.xlu1 %3197, %v476_v7  }
  0x32   : > { %3198 = vset.pattern.permute.xlu2 %v5665_v5 }
  0x33   : > { %504 = vperm.xlu2 %3198, %v476_v7  }
  0x37   : > { %3208 = vset.pattern.permute.xlu0 %v5657_v11 }
  0x38   : > { %396 = vperm.xlu0 %3208, %v384_v0  }
  0x39   : > { %3200 = vset.pattern.permute.xlu1 %v5667_v6 }
  0x3a   : > { %520 = vperm.xlu1 %3200, %v476_v7  }
  0x3b   : > { %3201 = vset.pattern.permute.xlu2 %v5663_v8 }
  0x3c   : > { %528 = vperm.xlu2 %3201, %v476_v7  }
  0x42   : > { %3202 = vset.pattern.permute.xlu1 %v5661_v9 }
  0x43   : > { %536 = vperm.xlu1 %3202, %v476_v7  }
  0x44   : > { %3203 = vset.pattern.permute.xlu2 %v5653_v2 }
  0x45   : > { %559 = vperm.xlu2 %3203, %v477_v12  }
  0x4b   : > { %3209 = vset.pattern.permute.xlu1 %v5663_v8 }
  0x4c   : > { %702 = vperm.xlu1 %3209, %v566_v10  }
  0x4d   : > { %586 = vperm.xlu2 %3203, %v566_v10  }
  0x54   : > { %3210 = vset.pattern.permute.xlu1 %v5661_v9 }
  0x55   : > { %3204 = vset.pattern.permute.xlu2 %v5657_v11  ;;  %724 = vperm.xlu1 %3210, %v566_v10  }
  0x56   : > { %608 = vperm.xlu2 %3204, %v566_v10  }
  0x5d   : > { %3211 = vset.pattern.permute.xlu1 %v5655_v15 }
  0x5e   : > { %3205 = vset.pattern.permute.xlu2 %v5659_v1  ;;  %746 = vperm.xlu1 %3211, %v566_v10  }
  0x5f   : > { %630 = vperm.xlu2 %3205, %v566_v10  }
  0x66   : > { %3213 = vset.pattern.permute.xlu1 %v5659_v1 }
  0x67   : > { %3206 = vset.pattern.permute.xlu2 %v5665_v5 }
  0x68   : > { %652 = vperm.xlu2 %3206, %v566_v10  }
  0x69   : > { %v421_v17 = vpop.permute.xlu2 %420 }
  0x6a   : > { %v425_v41 = vmul.f32 %v423_v27, %v421_v17  ;;  %v426_v42 = vmul.f32 %v424_v28, %v421_v17 }
  0x70   : > { %3212 = vset.pattern.permute.xlu2 %v5653_v2 }
  0x71   : > { %771 = vperm.xlu2 %3212, %v3528_v16  }
  0x72   : > { %v429_v21 = vpop.permute.xlu2 %428 }
  0x73   : > { %v433_v45 = vmul.f32 %v431_v30, %v429_v21  ;;  %v434_v46 = vmul.f32 %v432_v31, %v429_v21 }
  0x75   : > { %v455_v60 = vadd.f32 %v433_v45, %v425_v41  ;;  %v456_v61 = vadd.f32 %v434_v46, %v426_v42 }
  0x79   : > { %3214 = vset.pattern.permute.xlu2 %v5665_v5 }
  0x7b   : > { %v445_v36 = vpop.permute.xlu2 %444 }
  0x7c   : > { %v449_v48 = vmul.f32 %v447_v32, %v445_v36  ;;  %v450_v49 = vmul.f32 %v448_v33, %v445_v36 }
  0x7f   : > { %v389_v13 = vpop.permute.xlu0 %388  ;;  %v405_v19 = vpop.permute.xlu1 %404 }
  0x80   : > { %v409_v54 = vmul.f32 %v407_v39, %v405_v19  ;;  %v410_v55 = vmul.f32 %v408_v40, %v405_v19  ;;  %v393_v58 = vmul.f32 %v391_v37, %v389_v13  ;;  %v394_v59 = vmul.f32 %v392_v38, %v389_v13  ;;  %v768_v37 = vld [vmem:[%s5648_s8] sm:$0xff] }
  0x84   : > { %v3589_v32 = vpop.permute.xlu2 %488 }
  0x87   : > { %v3520_v14 = vpop.permute.xlu0 %467 }
  0x88   : > { %v413_v24 = vpop.permute.xlu1 %412 }
  0x89   : > { %v417_v56 = vmul.f32 %v415_v43, %v413_v24  ;;  %v418_v57 = vmul.f32 %v416_v44, %v413_v24 }
  0x8b   : > { %v453_v10 = vadd.f32 %v417_v56, %v409_v54  ;;  %v454_v12 = vadd.f32 %v418_v57, %v410_v55  ;;  %v3636_v56 = vld [vmem:[%s5646_s6 + $0x8] sm:$0xff] }
  0x90   : > { %v3531_v18 = vpop.permute.xlu0 %512 }
  0x91   : > { %v437_v47 = vpop.permute.xlu1 %436 }
  0x92   : > { %v441_v50 = vmul.f32 %v439_v34, %v437_v47  ;;  %v442_v51 = vmul.f32 %v440_v35, %v437_v47  ;;  %v3605_v34 = vpop.permute.xlu2 %504  ;;  %v473_v35 = vld [vmem:[%s3601_s23 + $0x8] sm:$0xff] }
  0x93   : > { %v475_v36 = vmax.f32 %v473_v35, 0.0 }
  0x94   : > { %v457_v63 = vadd.f32 %v449_v48, %v441_v50  ;;  %v458_v0 = vadd.f32 %v450_v49, %v442_v51 }
  0x95   : > { %v492_v38 = vperm.slane %v475_v36, 1  ;;  %v508_v39 = vperm.slane %v475_v36, 3  ;;  %v484_v40 = vperm.slane %v475_v36, 0  ;;  %v500_v41 = vperm.slane %v475_v36, 2 }
  0x96   : > { %v461_v22 = vadd.f32 %v457_v63, %v455_v60  ;;  %v462_v23 = vadd.f32 %v458_v0, %v456_v61  ;;  %v532_v42 = vperm.slane %v475_v36, 6  ;;  %v540_v43 = vperm.slane %v475_v36, 7  ;;  %v3646_v63 = vld [vmem:[%s5647_s7 + $0x8] sm:$0xff] }
  0x97   : > { %v524_v46 = vperm.slane %v475_v36, 5  ;;  %v516_v47 = vperm.slane %v475_v36, 4  ;;  %v494_v48 = vmul.f32 %v492_v38, %v3589_v32  ;;  %v510_v49 = vmul.f32 %v508_v39, %v3605_v34 }
  0x98   : > { %v3540_v20 = vpop.permute.xlu0 %658 }
  0x99   : > { %v518_v55 = vmul.f32 %v516_v47, %v3531_v18 }
  0x9a   : > { %v3620_v44 = vpop.permute.xlu2 %528 }
  0xa1   : > { %v3547_v29 = vpop.permute.xlu0 %680 }
  0xaa   : > { %v397_v62 = vpop.permute.xlu0 %396 }
  0xab   : > { %v401_v4 = vmul.f32 %v399_v52, %v397_v62  ;;  %v402_v7 = vmul.f32 %v400_v53, %v397_v62  ;;  %v534_v52 = vmul.f32 %v532_v42, %v3620_v44 }
  0xad   : > { %v451_v17 = vadd.f32 %v401_v4, %v393_v58  ;;  %v452_v21 = vadd.f32 %v402_v7, %v394_v59  ;;  %v3649_v4 = vpop.permute.xlu2 %559 }
  0xaf   : > { %v459_v25 = vadd.f32 %v453_v10, %v451_v17  ;;  %v460_v26 = vadd.f32 %v454_v12, %v452_v21 }
  0xb1   : > { %v463_v19 = vadd.f32 %v461_v22, %v459_v25  ;;  %v464_v27 = vadd.f32 %v462_v23, %v460_v26  ;;  %v472_v22 = vld [vmem:[%s3601_s23] sm:$0xff] }
  0xb2   : > { %v474_v25 = vmax.f32 %v472_v22, 0.0  ;;  %v576_v22 = vld [vmem:[%s5649_s9] sm:$0x3] }
  0xb3   : > { %v3550_v24 = vadd.f32 %v3520_v14, %v463_v19  ;;  %v3553_v13 = vadd.f32 %v3520_v14, %v464_v27  ;;  %v3579_v14 = vpop.permute.xlu1 %480 }
  0xb4   : > { %v486_v50 = vmul.f32 %v484_v40, %v3579_v14  ;;  %v491_v26 = vperm.slane %v474_v25, 1  ;;  %v507_v19 = vperm.slane %v474_v25, 3  ;;  %v483_v27 = vperm.slane %v474_v25, 0 }
  0xb5   : > { %5838 = vst [vmem:[#allocation2_spill] sm:$0xff] %v3550_v24  ;;  %v3556_v28 = vmax.f32 %v3550_v24, 0.0  ;;  %v3559_v30 = vmax.f32 %v3553_v13, 0.0  ;;  %v3663_v12 = vpop.permute.xlu2 %586  ;;  %v499_v35 = vperm.slane %v474_v25, 2  ;;  %v531_v36 = vperm.slane %v474_v25, 6 }
  0xb6   : > { %5839 = vst [vmem:[#allocation3_spill] sm:$0xff] %v3553_v13  ;;  %v544_v57 = vadd.f32 %v494_v48, %v486_v50  ;;  %v523_v38 = vperm.slane %v474_v25, 5  ;;  %v515_v40 = vperm.slane %v474_v25, 4  ;;  %v509_v42 = vmul.f32 %v507_v19, %v3605_v34  ;;  %v3105_v19 = vld [vmem:[%s5649_s9 + $0x2] sm:$0x3] }
  0xb7   : > { %5840 = vst [vmem:[#allocation4_spill] sm:$0xff] %v3556_v28  ;;  %665 = vrot.lane.b32.xlu2 %v3559_v30, %s3402_s11  ;;  %569 = vrot.lane.b32.xlu1 %v3559_v30, %s3403_s12  ;;  %v533_v47 = vmul.f32 %v531_v36, %v3620_v44  ;;  %v3106_v36 = vld [vmem:[%s5649_s9 + $0x4] sm:$0x3] }
  0xb8   : > { %5841 = vst [vmem:[#allocation5_spill] sm:$0xff] %v3559_v30  ;;  %567 = vrot.lane.b32.xlu0 %v3556_v28, %s3403_s12 }
  0xbb   : > { %v3587_v31 = vpop.permute.xlu1 %496 }
  0xbc   : > { %v502_v51 = vmul.f32 %v500_v41, %v3587_v31  ;;  %v493_v41 = vmul.f32 %v491_v26, %v3589_v32 }
  0xbd   : > { %v3674_v17 = vpop.permute.xlu2 %608 }
  0xbe   : > { %v546_v58 = vadd.f32 %v510_v49, %v502_v51  ;;  %v517_v51 = vmul.f32 %v515_v40, %v3531_v18 }
  0xbf   : > { %687 = vrot.lane.b32.xlu2 %v3559_v30, %s3404_s15  ;;  %593 = vrot.lane.b32.xlu1 %v3559_v30, %s3405_s16 }
  0xc0   : > { %591 = vrot.lane.b32.xlu0 %v3556_v28, %s3405_s16  ;;  %v552_v61 = vadd.f32 %v546_v58, %v544_v57 }
  0xc3   : > { %v3603_v33 = vpop.permute.xlu1 %520 }
  0xc4   : > { %v526_v54 = vmul.f32 %v524_v46, %v3603_v33  ;;  %v501_v46 = vmul.f32 %v499_v35, %v3587_v31  ;;  %v525_v50 = vmul.f32 %v523_v38, %v3603_v33  ;;  %v3742_v35 = vperm.slane %v576_v22, 1 }
  0xc5   : > { %v3684_v23 = vpop.permute.xlu2 %630  ;;  %v3752_v38 = vmul.f32 %v3540_v20, %v3559_v30 }
  0xc6   : > { %v548_v60 = vadd.f32 %v526_v54, %v518_v55  ;;  %5845 = vst [vmem:[#allocation9_spill] sm:$0xff] %v3742_v35 }
  0xc7   : > { %615 = vrot.lane.b32.xlu1 %v3559_v30, %s3406_s17  ;;  %707 = vrot.lane.b32.xlu2 %v3556_v28, %s3407_s18 }
  0xc8   : > { %613 = vrot.lane.b32.xlu0 %v3556_v28, %s3406_s17 }
  0xcb   : > { %v3622_v45 = vpop.permute.xlu1 %536 }
  0xcc   : > { %v542_v53 = vmul.f32 %v540_v43, %v3622_v45  ;;  %v485_v43 = vmul.f32 %v483_v27, %v3579_v14  ;;  %v547_v14 = vadd.f32 %v525_v50, %v517_v51  ;;  %v3740_v27 = vperm.slane %v576_v22, 0 }
  0xcd   : > { %v3698_v49 = vpop.permute.xlu2 %652  ;;  %v3774_v50 = vperm.slane %v3106_v36, 1 }
  0xce   : > { %v550_v59 = vadd.f32 %v542_v53, %v534_v52  ;;  %v543_v52 = vadd.f32 %v493_v41, %v485_v43  ;;  %v545_v53 = vadd.f32 %v509_v42, %v501_v46  ;;  %5844 = vst [vmem:[#allocation8_spill] sm:$0xff] %v3740_v27  ;;  %v3108_v42 = vld [vmem:[%s5649_s9 + $0x8] sm:$0x3]  ;;  %v3764_v43 = vmul.f32 %v3540_v20, %v3556_v28 }
  0xcf   : > { %637 = vrot.lane.b32.xlu1 %v3559_v30, %s3408_s19  ;;  %729 = vrot.lane.b32.xlu2 %v3556_v28, %s3409_s20  ;;  %v3766_v46 = vperm.slane %v3105_v19, 0  ;;  %5849 = vst [vmem:[#allocation13_spill] sm:$0xff] %v3774_v50 }
  0xd0   : > { %635 = vrot.lane.b32.xlu0 %v3556_v28, %s3408_s19  ;;  %v554_v62 = vadd.f32 %v550_v59, %v548_v60  ;;  %v551_v31 = vadd.f32 %v545_v53, %v543_v52 }
  0xd1   : > { %5846 = vst [vmem:[#allocation10_spill] sm:$0xff] %v3766_v46 }
  0xd2   : > { %v556_v0 = vadd.f32 %v554_v62, %v552_v61  ;;  %v571_v61 = vlaneseq }
  0xd4   : > { %v563_v7 = vadd.f32 %v3649_v4, %v556_v0  ;;  %v3724_v0 = vld [vmem:[%s5646_s6 + $0x10] sm:$0xff] }
  0xd6   : > { %v3657_v10 = vmax.f32 %v563_v7, 0.0 }
  0xd7   : > { %795 = vperm.xlu2 %3214, %v3528_v16   ;;  %663 = vrot.lane.b32.xlu1 %v3556_v28, %s3402_s11 }
  0xd8   : > { %709 = vrot.lane.b32.xlu0 %v3559_v30, %s3407_s18  ;;  %5842 = vst [vmem:[#allocation6_spill] sm:$0xff] %v3657_v10 }
  0xdf   : > { %3216 = vset.pattern.permute.xlu2 %v5667_v6  ;;  %685 = vrot.lane.b32.xlu1 %v3556_v28, %s3404_s15 }
  0xe0   : > { %731 = vrot.lane.b32.xlu0 %v3559_v30, %s3409_s20  ;;  %811 = vperm.xlu2 %3216, %v3528_v16  }
  0xe7   : > { %787 = vperm.xlu1 %3213, %v3528_v16  }
  0xe8   : > { %779 = vperm.xlu0 %3208, %v3528_v16   ;;  %3219 = vset.pattern.permute.xlu2 %v5653_v2 }
  0xe9   : > { %850 = vperm.xlu2 %3219, %v768_v37   ;;  %v539_v37 = vperm.slane %v474_v25, 7 }
  0xeb   : > { %v541_v48 = vmul.f32 %v539_v37, %v3622_v45  ;;  %v3706_v45 = vpop.permute.xlu2 %771  ;;  %v3107_v37 = vld [vmem:[%s5649_s9 + $0x6] sm:$0x3] }
  0xec   : > { %v3776_v51 = vperm.slane %v3107_v37, 0  ;;  %v3778_v52 = vperm.slane %v3107_v37, 1 }
  0xed   : > { %v549_v54 = vadd.f32 %v541_v48, %v533_v47  ;;  %v3768_v47 = vperm.slane %v3105_v19, 1  ;;  %v3772_v48 = vperm.slane %v3106_v36, 0  ;;  %v3808_v19 = vperm.slane %v3108_v42, 1 }
  0xee   : > { %5850 = vst [vmem:[#allocation14_spill] sm:$0xff] %v3776_v51 }
  0xef   : > { %3215 = vset.pattern.permute.xlu1 %v5651_v3  ;;  %v553_v32 = vadd.f32 %v549_v54, %v547_v14  ;;  %5847 = vst [vmem:[#allocation11_spill] sm:$0xff] %v3768_v47  ;;  %v3789_v54 = vperm.slane %v3108_v42, 0  ;;  %v3110_v14 = vld [vmem:[%s5649_s9 + $0xc] sm:$0x3] }
  0xf0   : > { %3217 = vset.pattern.permute.xlu0 %v5663_v8  ;;  %803 = vperm.xlu1 %3215, %v3528_v16   ;;  %5848 = vst [vmem:[#allocation12_spill] sm:$0xff] %v3772_v48  ;;  %v3817_v36 = vperm.slane %v3110_v14, 1 }
  0xf1   : > { %819 = vperm.xlu0 %3217, %v3528_v16   ;;  %3223 = vset.pattern.permute.xlu2 %v5651_v3  ;;  %v555_v33 = vadd.f32 %v553_v32, %v551_v31  ;;  %5851 = vst [vmem:[#allocation15_spill] sm:$0xff] %v3778_v52 }
  0xf2   : > { %917 = vperm.xlu2 %3223, %v3636_v56   ;;  %5855 = vst [vmem:[#allocation19_spill] sm:$0xff] %v3817_v36 }
  0xf3   : > { %v562_v18 = vadd.f32 %v3649_v4, %v555_v33  ;;  %v3726_v4 = vand.u32 127, %v571_v61 }
  0xf5   : > { %v3713_v58 = vmax.f32 %v562_v18, 0.0  ;;  %vm573_vm0 = vcmp.lt.s32.totalorder %v3726_v4, 17  ;;  %vm595_vm1 = vcmp.lt.s32.totalorder %v3726_v4, 16  ;;  %vm617_vm2 = vcmp.lt.s32.totalorder %v3726_v4, 15 }
  0xf6   : > { %vm639_vm3 = vcmp.lt.s32.totalorder %v3726_v4, 1  ;;  %vm667_vm4 = vcmp.lt.s32.totalorder %v3726_v4, 127  ;;  %vm711_vm5 = vcmp.lt.s32.totalorder %v3726_v4, 112  ;;  %vm689_vm6 = vcmp.lt.s32.totalorder %v3726_v4, 113 }
  0xf7   : > { %5843 = vst [vmem:[#allocation7_spill] sm:$0xff] %v3713_v58  ;;  %vm733_vm7 = vcmp.lt.s32.totalorder %v3726_v4, 111  ;;  %vm2755_vm8 = vcmp.lt.s32.totalorder %v3726_v4, 32  ;;  %vm2732_vm9 = vcmp.lt.s32.totalorder %v3726_v4, 34  ;;  %vm2777_vm10 = vcmp.lt.s32.totalorder %v3726_v4, 30 }
  0xf8   : > { %3218 = vset.pattern.permute.xlu1 %v5661_v9  ;;  %vm2799_vm11 = vcmp.lt.s32.totalorder %v3726_v4, 2  ;;  %vm2827_vm12 = vcmp.lt.s32.totalorder %v3726_v4, 126  ;;  %vm2849_vm13 = vcmp.lt.s32.totalorder %v3726_v4, 98  ;;  %vm2871_vm14 = vcmp.lt.s32.totalorder %v3726_v4, 96 }
  0xf9   : > { %3230 = vset.pattern.permute.xlu0 %v5665_v5  ;;  %827 = vperm.xlu1 %3218, %v3528_v16   ;;  %v3671_v16 = vpop.permute.xlu1 %702  ;;  %vm2893_vm15 = vcmp.lt.s32.totalorder %v3726_v4, 94 }
  0xfa   : > { %1024 = vperm.xlu0 %3230, %v3646_v63   ;;  %3224 = vset.pattern.permute.xlu2 %v5667_v6 }
  0xfb   : > { %931 = vperm.xlu2 %3224, %v3636_v56  }
 0x101   : > { %3220 = vset.pattern.permute.xlu1 %v5657_v11  ;;  %v3680_v21 = vpop.permute.xlu1 %724 }
 0x102   : > { %1105 = vrot.lane.b32.xlu0 %v3657_v10, %s3405_s16  ;;  %883 = vperm.xlu1 %3220, %v3636_v56  }
 0x103   : > { %3225 = vset.pattern.permute.xlu2 %v5663_v8 }
 0x104   : > { %945 = vperm.xlu2 %3225, %v3636_v56  }
 0x109   : > { %v3690_v39 = vpop.permute.xlu1 %746 }
 0x10a   : > { %1119 = vrot.lane.b32.xlu0 %v3657_v10, %s3406_s17  ;;  %3221 = vset.pattern.permute.xlu1 %v5659_v1 }
 0x10b   : > { %897 = vperm.xlu1 %3221, %v3636_v56  }
 0x10c   : > { %3226 = vset.pattern.permute.xlu2 %v5661_v9 }
 0x10d   : > { %959 = vperm.xlu2 %3226, %v3636_v56  }
 0x111   : > { %v666_v59 = vpop.permute.xlu2 %665 }
 0x113   : > { %3222 = vset.pattern.permute.xlu1 %v5665_v5 }
 0x114   : > { %911 = vperm.xlu1 %3222, %v3636_v56  }
 0x115   : > { %3227 = vset.pattern.permute.xlu2 %v5655_v15 }
 0x116   : > { %973 = vperm.xlu2 %3227, %v3636_v56  }
 0x119   : > { %v3728_v7 = vpop.permute.xlu2 %687 }
 0x11c   : > { %3228 = vset.pattern.permute.xlu1 %v5657_v11 }
 0x11d   : > { %1008 = vperm.xlu1 %3228, %v3646_v63  }
 0x11e   : > { %3229 = vset.pattern.permute.xlu2 %v5659_v1 }
 0x11f   : > { %1016 = vperm.xlu2 %3229, %v3646_v63  }
 0x121   : > { %v708_v31 = vpop.permute.xlu2 %707 }
 0x125   : > { %3231 = vset.pattern.permute.xlu1 %v5651_v3 }
 0x126   : > { %1032 = vperm.xlu1 %3231, %v3646_v63  }
 0x127   : > { %3232 = vset.pattern.permute.xlu2 %v5667_v6 }
 0x128   : > { %1040 = vperm.xlu2 %3232, %v3646_v63  }
 0x129   : > { %v570_v34 = vpop.permute.xlu1 %569 }
 0x12a   : > { %v568_v44 = vpop.permute.xlu0 %567 }
 0x12b   : > { %v574_v40 = vsel %vm573_vm0, %v568_v44, %v570_v34  ;;  %v575_v41 = vsel %vm573_vm0, %v570_v34, %v568_v44 }
 0x12c   : > { %v3782_v20 = vmul.f32 %v3740_v27, %v575_v41  ;;  %v3785_v53 = vmul.f32 %v3742_v35, %v574_v40 }
 0x12e   : > { %3233 = vset.pattern.permute.xlu1 %v5663_v8  ;;  %5852 = vst [vmem:[#allocation16_spill] sm:$0xff] %v3782_v20  ;;  %v589_v41 = vmul.f32 %v3663_v12, %v3782_v20  ;;  %v590_v42 = vmul.f32 %v3663_v12, %v3785_v53 }
 0x12f   : > { %1048 = vperm.xlu1 %3233, %v3646_v63   ;;  %5853 = vst [vmem:[#allocation17_spill] sm:$0xff] %v3785_v53 }
 0x130   : > { %3234 = vset.pattern.permute.xlu2 %v5661_v9  ;;  %v730_v9 = vpop.permute.xlu2 %729 }
 0x131   : > { %v594_v55 = vpop.permute.xlu1 %593  ;;  %1056 = vperm.xlu2 %3234, %v3646_v63  }
 0x132   : > { %v592_v57 = vpop.permute.xlu0 %591 }
 0x133   : > { %v596_v32 = vsel %vm595_vm1, %v592_v57, %v594_v55  ;;  %v597_v34 = vsel %vm595_vm1, %v594_v55, %v592_v57 }
 0x134   : > { %v3820_v37 = vmul.f32 %v3766_v46, %v597_v34 }
 0x136   : > { %5856 = vst [vmem:[#allocation20_spill] sm:$0xff] %v3820_v37 }
 0x137   : > { %1088 = vrot.lane.b32.xlu1 %v3713_v58, %s3403_s12 }
 0x138   : > { %3235 = vset.pattern.permute.xlu1 %v5653_v2 }
 0x139   : > { %v616_v60 = vpop.permute.xlu1 %615  ;;  %1090 = vrot.lane.b32.xlu2 %v3657_v10, %s3403_s12 }
 0x13a   : > { %v614_v62 = vpop.permute.xlu0 %613  ;;  %3239 = vset.pattern.permute.xlu2 %v5651_v3 }
 0x13b   : > { %v618_v61 = vsel %vm617_vm2, %v614_v62, %v616_v60  ;;  %v619_v22 = vsel %vm617_vm2, %v616_v60, %v614_v62  ;;  %v3823_v60 = vmul.f32 %v3768_v47, %v596_v32 }
 0x13c   : > { %v3842_v32 = vmul.f32 %v3774_v50, %v618_v61  ;;  %v611_v61 = vmul.f32 %v3674_v17, %v3820_v37 }
 0x13d   : > { %5857 = vst [vmem:[#allocation21_spill] sm:$0xff] %v3823_v60 }
 0x13e   : > { %5861 = vst [vmem:[#allocation25_spill] sm:$0xff] %v3842_v32  ;;  %v634_v3 = vmul.f32 %v3684_v23, %v3842_v32 }
 0x13f   : > { %1098 = vperm.xlu1 %3235, %v3724_v0  }
 0x141   : > { %v638_v25 = vpop.permute.xlu1 %637  ;;  %1103 = vrot.lane.b32.xlu2 %v3713_v58, %s3405_s16 }
 0x142   : > { %v636_v26 = vpop.permute.xlu0 %635 }
 0x143   : > { %v640_v44 = vsel %vm639_vm3, %v636_v26, %v638_v25  ;;  %v641_v33 = vsel %vm639_vm3, %v638_v25, %v636_v26  ;;  %v3815_v26 = vperm.slane %v3110_v14, 0  ;;  %v3839_v14 = vmul.f32 %v3772_v48, %v619_v22 }
 0x144   : > { %v3826_v62 = vmul.f32 %v3776_v51, %v641_v33  ;;  %v3829_v40 = vmul.f32 %v3778_v52, %v640_v44 }
 0x145   : > { %5854 = vst [vmem:[#allocation18_spill] sm:$0xff] %v3815_v26 }
 0x146   : > { %5858 = vst [vmem:[#allocation22_spill] sm:$0xff] %v3826_v62 }
 0x147   : > { %3236 = vset.pattern.permute.xlu1 %v5657_v11  ;;  %5859 = vst [vmem:[#allocation23_spill] sm:$0xff] %v3829_v40 }
 0x148   : > { %1112 = vperm.xlu1 %3236, %v3724_v0   ;;  %5860 = vst [vmem:[#allocation24_spill] sm:$0xff] %v3839_v14 }
 0x149   : > { %1117 = vrot.lane.b32.xlu2 %v3713_v58, %s3406_s17  ;;  %v664_v18 = vpop.permute.xlu1 %663 }
 0x14a   : > { %v710_v55 = vpop.permute.xlu0 %709  ;;  %v668_v57 = vsel %vm667_vm4, %v664_v18, %v666_v59  ;;  %v669_v25 = vsel %vm667_vm4, %v666_v59, %v664_v18  ;;  %v3109_v59 = vld [vmem:[%s5649_s9 + $0xa] sm:$0x3] }
 0x14b   : > { %v3845_v34 = vmul.f32 %v3789_v54, %v668_v57  ;;  %v3848_v44 = vmul.f32 %v3808_v19, %v669_v25  ;;  %v712_v33 = vsel %vm711_vm5, %v708_v31, %v710_v55  ;;  %v713_v18 = vsel %vm711_vm5, %v710_v55, %v708_v31  ;;  %v3111_v55 = vld [vmem:[%s5649_s9 + $0xe] sm:$0x3] }
 0x14c   : > { %v3855_v12 = vperm.slane %v3109_v59, 0  ;;  %v3857_v22 = vperm.slane %v3109_v59, 1  ;;  %v612_v57 = vmul.f32 %v3674_v17, %v3823_v60  ;;  %v655_v25 = vmul.f32 %v3698_v49, %v3826_v62 }
 0x14d   : > { %5862 = vst [vmem:[#allocation26_spill] sm:$0xff] %v3845_v34  ;;  %v656_v31 = vmul.f32 %v3698_v49, %v3829_v40  ;;  %v633_v59 = vmul.f32 %v3684_v23, %v3839_v14  ;;  %v3877_v17 = vmul.f32 %v3815_v26, %v712_v33  ;;  %v3880_v2 = vmul.f32 %v3817_v36, %v713_v18 }
 0x14e   : > { %5863 = vst [vmem:[#allocation27_spill] sm:$0xff] %v3848_v44  ;;  %v683_v49 = vmul.f32 %v3547_v29, %v3845_v34  ;;  %v684_v11 = vmul.f32 %v3547_v29, %v3848_v44  ;;  %v3898_v5 = vperm.slane %v3111_v55, 0  ;;  %v3900_v6 = vperm.slane %v3111_v55, 1 }
 0x14f   : > { %5864 = vst [vmem:[#allocation28_spill] sm:$0xff] %v3855_v12  ;;  %v753_v29 = vadd.f32 %v655_v25, %v633_v59  ;;  %v754_v13 = vadd.f32 %v656_v31, %v634_v3  ;;  %v751_v25 = vadd.f32 %v611_v61, %v589_v41  ;;  %v752_v3 = vadd.f32 %v612_v57, %v590_v42 }
 0x150   : > { %5865 = vst [vmem:[#allocation29_spill] sm:$0xff] %v3857_v22  ;;  %3237 = vset.pattern.permute.xlu1 %v5659_v1  ;;  %v755_v31 = vadd.f32 %v683_v49, %v3764_v43  ;;  %v756_v59 = vadd.f32 %v684_v11, %v3752_v38  ;;  %v796_v43 = vpop.permute.xlu2 %795 }
 0x151   : > { %5866 = vst [vmem:[#allocation30_spill] sm:$0xff] %v3877_v17  ;;  %v686_v15 = vpop.permute.xlu1 %685  ;;  %v760_v53 = vadd.f32 %v754_v13, %v752_v3 }
 0x152   : > { %5867 = vst [vmem:[#allocation31_spill] sm:$0xff] %v3880_v2  ;;  %v690_v1 = vsel %vm689_vm6, %v686_v15, %v3728_v7  ;;  %v691_v23 = vsel %vm689_vm6, %v3728_v7, %v686_v15  ;;  %v732_v33 = vpop.permute.xlu0 %731  ;;  %v727_v7 = vmul.f32 %v3680_v21, %v3877_v17 }
 0x153   : > { %v3893_v18 = vmul.f32 %v3855_v12, %v690_v1  ;;  %v3896_v8 = vmul.f32 %v3857_v22, %v691_v23  ;;  %5868 = vst [vmem:[#allocation32_spill] sm:$0xff] %v3898_v5  ;;  %v734_v24 = vsel %vm733_vm7, %v730_v9, %v732_v33  ;;  %v735_v15 = vsel %vm733_vm7, %v732_v33, %v730_v9 }
 0x154   : > { %5869 = vst [vmem:[#allocation33_spill] sm:$0xff] %v3900_v6  ;;  %v728_v1 = vmul.f32 %v3680_v21, %v3880_v2  ;;  %v3917_v33 = vmul.f32 %v3898_v5, %v734_v24  ;;  %v3920_v37 = vmul.f32 %v3900_v6, %v735_v15  ;;  %v759_v21 = vadd.f32 %v753_v29, %v751_v25 }
 0x155   : > { %v705_v23 = vmul.f32 %v3671_v16, %v3893_v18  ;;  %v706_v55 = vmul.f32 %v3671_v16, %v3896_v8 }
 0x156   : > { %5870 = vst [vmem:[#allocation34_spill] sm:$0xff] %v3917_v33  ;;  %v749_v41 = vmul.f32 %v3690_v39, %v3917_v33  ;;  %v750_v11 = vmul.f32 %v3690_v39, %v3920_v37 }
 0x157   : > { %v757_v60 = vadd.f32 %v727_v7, %v705_v23  ;;  %v758_v9 = vadd.f32 %v728_v1, %v706_v55  ;;  %5871 = vst [vmem:[#allocation35_spill] sm:$0xff] %v3920_v37 }
 0x159   : > { %v761_v20 = vadd.f32 %v757_v60, %v755_v31  ;;  %v762_v40 = vadd.f32 %v758_v9, %v756_v59  ;;  %v788_v62 = vpop.permute.xlu1 %787  ;;  %v812_v59 = vpop.permute.xlu2 %811 }
 0x15a   : > { %v780_v61 = vpop.permute.xlu0 %779 }
 0x15b   : > { %v764_v16 = vadd.f32 %v762_v40, %v760_v53  ;;  %v763_v38 = vadd.f32 %v761_v20, %v759_v21 }
 0x15d   : > { %v765_v42 = vadd.f32 %v763_v38, %v749_v41  ;;  %v766_v24 = vadd.f32 %v764_v16, %v750_v11 }
 0x15f   : > { %v790_v57 = vperm.slane %v765_v42, 2  ;;  %v791_v49 = vperm.slane %v766_v24, 2  ;;  %v798_v15 = vperm.slane %v765_v42, 3  ;;  %v799_v29 = vperm.slane %v766_v24, 3 }
 0x160   : > { %v775_v13 = vperm.slane %v766_v24, 0  ;;  %v783_v60 = vperm.slane %v766_v24, 1  ;;  %v774_v7 = vperm.slane %v765_v42, 0  ;;  %v782_v1 = vperm.slane %v765_v42, 1 }
 0x161   : > { %v792_v40 = vmul.f32 %v790_v57, %v788_v62  ;;  %v793_v23 = vmul.f32 %v791_v49, %v788_v62  ;;  %v800_v55 = vmul.f32 %v798_v15, %v796_v43  ;;  %v801_v25 = vmul.f32 %v799_v29, %v796_v43 }
 0x162   : > { %v804_v53 = vpop.permute.xlu1 %803  ;;  %v777_v39 = vmul.f32 %v775_v13, %v3706_v45  ;;  %v776_v20 = vmul.f32 %v774_v7, %v3706_v45  ;;  %v784_v3 = vmul.f32 %v782_v1, %v780_v61  ;;  %v785_v31 = vmul.f32 %v783_v60, %v780_v61 }
 0x163   : > { %v806_v9 = vperm.slane %v765_v42, 4  ;;  %v807_v21 = vperm.slane %v766_v24, 4  ;;  %v814_v16 = vperm.slane %v765_v42, 5  ;;  %v815_v41 = vperm.slane %v766_v24, 5  ;;  %v820_v30 = vpop.permute.xlu0 %819 }
 0x164   : > { %v836_v11 = vadd.f32 %v800_v55, %v792_v40  ;;  %v837_v38 = vadd.f32 %v801_v25, %v793_v23  ;;  %v823_v57 = vperm.slane %v766_v24, 6  ;;  %v822_v62 = vperm.slane %v765_v42, 6 }
 0x165   : > { %v808_v37 = vmul.f32 %v806_v9, %v804_v53  ;;  %v809_v33 = vmul.f32 %v807_v21, %v804_v53  ;;  %v830_v49 = vperm.slane %v765_v42, 7  ;;  %v831_v43 = vperm.slane %v766_v24, 7  ;;  %v851_v21 = vpop.permute.xlu2 %850 }
 0x166   : > { %v834_v15 = vadd.f32 %v784_v3, %v776_v20  ;;  %v835_v29 = vadd.f32 %v785_v31, %v777_v39  ;;  %v816_v13 = vmul.f32 %v814_v16, %v812_v59  ;;  %v817_v45 = vmul.f32 %v815_v41, %v812_v59 }
 0x167   : > { %v824_v61 = vmul.f32 %v822_v62, %v820_v30  ;;  %v825_v60 = vmul.f32 %v823_v57, %v820_v30  ;;  %v5882_v41 = vmov 5   ;;  %v5885_v57 = vmov 3  }
 0x168   : > { %v838_v2 = vadd.f32 %v816_v13, %v808_v37  ;;  %v839_v17 = vadd.f32 %v817_v45, %v809_v33  ;;  %v842_v55 = vadd.f32 %v836_v11, %v834_v15  ;;  %v843_v53 = vadd.f32 %v837_v38, %v835_v29 }
 0x169   : > { %v5886_v62 = vmov 6   ;;  %v5890_v29 = vmov 1   ;;  %v5892_v45 = vmov 8  }
 0x16b   : > { %v828_v7 = vpop.permute.xlu1 %827 }
 0x16c   : > { %v832_v1 = vmul.f32 %v830_v49, %v828_v7  ;;  %v833_v28 = vmul.f32 %v831_v43, %v828_v7  ;;  %v5888_v43 = vmov 7  }
 0x16e   : > { %v840_v40 = vadd.f32 %v832_v1, %v824_v61  ;;  %v841_v23 = vadd.f32 %v833_v28, %v825_v60  ;;  %v3116_v60 = vld [vmem:[%s5647_s7 + $0x10] sm:$0xff]  ;;  %v5894_v1 = vmov 2  }
 0x170   : > { %v844_v25 = vadd.f32 %v840_v40, %v838_v2  ;;  %v845_v9 = vadd.f32 %v841_v23, %v839_v17  ;;  %v3938_v2 = vpop.permute.xlu2 %917  ;;  %v4029_v40 = vpop.permute.xlu0 %1024 }
 0x171   : > { %5874 = vst [vmem:[#allocation38_spill] sm:$0xff] %v3938_v2 }
 0x172   : > { %v846_v42 = vadd.f32 %v844_v25, %v842_v55  ;;  %v847_v24 = vadd.f32 %v845_v9, %v843_v53  ;;  %5895 = vst [vmem:[#allocation52_spill] sm:$0xff] %v4029_v40  ;;  %v5896_v53 = vmov 0  }
 0x174   : > { %v853_v20 = vadd.f32 %v851_v21, %v846_v42  ;;  %v854_v39 = vadd.f32 %v851_v21, %v847_v24  ;;  %v3962_v37 = vpop.permute.xlu1 %883  ;;  %v5897_v42 = vmov 4  }
 0x175   : > { %5877 = vst [vmem:[#allocation41_spill] sm:$0xff] %v3962_v37 }
 0x176   : > { %v3928_v3 = vmax.f32 %v853_v20, 0.0  ;;  %v3930_v31 = vmax.f32 %v854_v39, 0.0  ;;  %v3114_v20 = vld [vmem:[%s5648_s8 + $0x8] sm:$0xff] }
 0x178   : > { %5872 = vst [vmem:[#allocation36_spill] sm:$0xff] %v3928_v3  ;;  %890 = vrot.lane.b32.xlu0 %v3930_v31, %s3406_s17  ;;  %861 = vrot.lane.b32.xlu2 %v3930_v31, %s3403_s12  ;;  %v3946_v28 = vpop.permute.xlu2 %931  ;;  %v1106_v55 = vpop.permute.xlu0 %1105 }
 0x179   : > { %5873 = vst [vmem:[#allocation37_spill] sm:$0xff] %v3930_v31  ;;  %859 = vrot.lane.b32.xlu1 %v3928_v3, %s3403_s12 }
 0x17a   : > { %5875 = vst [vmem:[#allocation39_spill] sm:$0xff] %v3946_v28 }
 0x17d   : > { %v3972_v33 = vpop.permute.xlu1 %897 }
 0x17e   : > { %5879 = vst [vmem:[#allocation43_spill] sm:$0xff] %v3972_v33 }
 0x180   : > { %904 = vrot.lane.b32.xlu0 %v3930_v31, %s3408_s19  ;;  %876 = vrot.lane.b32.xlu2 %v3930_v31, %s3405_s16  ;;  %v3954_v30 = vpop.permute.xlu2 %945  ;;  %v1120_v21 = vpop.permute.xlu0 %1119 }
 0x181   : > { %874 = vrot.lane.b32.xlu1 %v3928_v3, %s3405_s16  ;;  %5876 = vst [vmem:[#allocation40_spill] sm:$0xff] %v3954_v30 }
 0x186   : > { %v3981_v16 = vpop.permute.xlu1 %911 }
 0x187   : > { %5881 = vst [vmem:[#allocation45_spill] sm:$0xff] %v3981_v16 }
 0x188   : > { %922 = vrot.lane.b32.xlu0 %v3928_v3, %s3402_s11  ;;  %888 = vrot.lane.b32.xlu2 %v3928_v3, %s3406_s17  ;;  %v3968_v17 = vpop.permute.xlu2 %959 }
 0x189   : > { %924 = vrot.lane.b32.xlu1 %v3930_v31, %s3402_s11  ;;  %5878 = vst [vmem:[#allocation42_spill] sm:$0xff] %v3968_v17 }
 0x18f   : > { %v3992_v38 = vpop.permute.xlu1 %1008 }
 0x190   : > { %936 = vrot.lane.b32.xlu0 %v3928_v3, %s3404_s15  ;;  %902 = vrot.lane.b32.xlu2 %v3928_v3, %s3408_s19  ;;  %v3979_v59 = vpop.permute.xlu2 %973  ;;  %5884 = vst [vmem:[#allocation47_spill] sm:$0xff] %v3992_v38 }
 0x191   : > { %938 = vrot.lane.b32.xlu1 %v3930_v31, %s3404_s15  ;;  %5880 = vst [vmem:[#allocation44_spill] sm:$0xff] %v3979_v59 }
 0x198   : > { %950 = vrot.lane.b32.xlu0 %v3928_v3, %s3407_s18  ;;  %1131 = vrot.lane.b32.xlu2 %v3713_v58, %s3408_s19  ;;  %v3988_v11 = vpop.permute.xlu2 %1016  ;;  %v4005_v15 = vpop.permute.xlu1 %1032 }
 0x199   : > { %952 = vrot.lane.b32.xlu1 %v3930_v31, %s3407_s18  ;;  %5883 = vst [vmem:[#allocation46_spill] sm:$0xff] %v3988_v11 }
 0x19a   : > { %5889 = vst [vmem:[#allocation49_spill] sm:$0xff] %v4005_v15 }
 0x1a0   : > { %964 = vrot.lane.b32.xlu0 %v3928_v3, %s3409_s20  ;;  %1146 = vperm.xlu2 %3239, %v3724_v0   ;;  %v3998_v49 = vpop.permute.xlu2 %1040 }
 0x1a1   : > { %966 = vrot.lane.b32.xlu1 %v3930_v31, %s3409_s20  ;;  %5887 = vst [vmem:[#allocation48_spill] sm:$0xff] %v3998_v49  ;;  %v4017_v7 = vpop.permute.xlu1 %1048 }
 0x1a2   : > { %5893 = vst [vmem:[#allocation51_spill] sm:$0xff] %v4017_v7 }
 0x1a8   : > { %1133 = vrot.lane.b32.xlu0 %v3657_v10, %s3408_s19  ;;  %3240 = vset.pattern.permute.xlu2 %v5882_v41  ;;  %v4011_v13 = vpop.permute.xlu2 %1056 }
 0x1a9   : > { %1126 = vperm.xlu1 %3237, %v3724_v0   ;;  %1160 = vperm.xlu2 %3240, %v3724_v0   ;;  %5891 = vst [vmem:[#allocation50_spill] sm:$0xff] %v4011_v13 }
 0x1b0   : > { %1151 = vrot.lane.b32.xlu0 %v3713_v58, %s3402_s11  ;;  %v4023_v61 = vpop.permute.xlu2 %1090 }
 0x1b1   : > { %3238 = vset.pattern.permute.xlu1 %v5885_v57  ;;  %3241 = vset.pattern.permute.xlu2 %v5886_v62 }
 0x1b2   : > { %1140 = vperm.xlu1 %3238, %v3724_v0   ;;  %1174 = vperm.xlu2 %3241, %v3724_v0  }
 0x1b8   : > { %1165 = vrot.lane.b32.xlu0 %v3713_v58, %s3404_s15  ;;  %v4035_v23 = vpop.permute.xlu2 %1103 }
 0x1ba   : > { %1153 = vrot.lane.b32.xlu1 %v3657_v10, %s3402_s11  ;;  %3242 = vset.pattern.permute.xlu2 %v5888_v43 }
 0x1bb   : > { %1188 = vperm.xlu2 %3242, %v3724_v0   ;;  %3244 = vset.pattern.permute.xlu1 %v5890_v29 }
 0x1c0   : > { %1179 = vrot.lane.b32.xlu0 %v3713_v58, %s3407_s18  ;;  %v1118_v9 = vpop.permute.xlu2 %1117 }
 0x1c1   : > { %v1122_v44 = vsel %vm617_vm2, %v1120_v21, %v1118_v9 }
 0x1c2   : > { %1167 = vrot.lane.b32.xlu1 %v3657_v10, %s3404_s15 }
 0x1c3   : > { %3243 = vset.pattern.permute.xlu2 %v5892_v45 }
 0x1c4   : > { %1202 = vperm.xlu2 %3243, %v3724_v0   ;;  %v4031_v0 = vpop.permute.xlu1 %1088 }
 0x1c8   : > { %1193 = vrot.lane.b32.xlu0 %v3713_v58, %s3409_s20 }
 0x1ca   : > { %1181 = vrot.lane.b32.xlu1 %v3657_v10, %s3407_s18 }
 0x1cc   : > { %3245 = vset.pattern.permute.xlu2 %v5894_v1  ;;  %v4039_v25 = vpop.permute.xlu1 %1098 }
 0x1cd   : > { %1245 = vperm.xlu2 %3245, %v3116_v60  }
 0x1d0   : > { %1253 = vperm.xlu0 %3230, %v3116_v60  }
 0x1d2   : > { %1195 = vrot.lane.b32.xlu1 %v3657_v10, %s3409_s20  ;;  %v4050_v39 = vpop.permute.xlu2 %861 }
 0x1d3   : > { %5898 = vst [vmem:[#allocation53_spill] sm:$0xff] %v4050_v39 }
 0x1d4   : > { %v4045_v24 = vpop.permute.xlu1 %1112 }
 0x1d5   : > { %3248 = vset.pattern.permute.xlu2 %v5882_v41 }
 0x1d6   : > { %1269 = vperm.xlu2 %3248, %v3116_v60  }
 0x1d8   : > { %3246 = vset.pattern.permute.xlu0 %v5896_v53 }
 0x1d9   : > { %869 = vperm.xlu0 %3246, %v3636_v56  }
 0x1da   : > { %1237 = vperm.xlu1 %3244, %v3116_v60   ;;  %v4058_v13 = vpop.permute.xlu2 %876 }
 0x1db   : > { %5901 = vst [vmem:[#allocation56_spill] sm:$0xff] %v4058_v13 }
 0x1de   : > { %3250 = vset.pattern.permute.xlu2 %v5888_v43 }
 0x1df   : > { %1285 = vperm.xlu2 %3250, %v3116_v60  }
 0x1e1   : > { %1000 = vperm.xlu0 %3246, %v3646_v63  }
 0x1e2   : > { %3247 = vset.pattern.permute.xlu1 %v5897_v42  ;;  %v4070_v40 = vpop.permute.xlu2 %888 }
 0x1e3   : > { %1261 = vperm.xlu1 %3247, %v3116_v60   ;;  %5905 = vst [vmem:[#allocation60_spill] sm:$0xff] %v4070_v40  ;;  %v1121_v40 = vsel %vm617_vm2, %v1118_v9, %v1120_v21 }
 0x1e7   : > { %3255 = vset.pattern.permute.xlu2 %v5897_v42 }
 0x1e9   : > { %1079 = vperm.xlu0 %3246, %v3114_v20   ;;  %v3117_v20 = vld [vmem:[%s5648_s8 + $0x10] sm:$0xff] }
 0x1ea   : > { %v4053_v56 = vpop.permute.xlu0 %890  ;;  %v4079_v59 = vpop.permute.xlu2 %902 }
 0x1eb   : > { %5899 = vst [vmem:[#allocation54_spill] sm:$0xff] %v4053_v56  ;;  %3249 = vset.pattern.permute.xlu1 %v5886_v62  ;;  %v4056_v63 = vpop.permute.xlu1 %859  ;;  %v1108_v56 = vsel %vm595_vm1, %v1106_v55, %v4035_v23 }
 0x1ec   : > { %5900 = vst [vmem:[#allocation55_spill] sm:$0xff] %v4056_v63  ;;  %1277 = vperm.xlu1 %3249, %v3116_v60  }
 0x1ed   : > { %5909 = vst [vmem:[#allocation64_spill] sm:$0xff] %v4079_v59  ;;  %v1107_v59 = vsel %vm595_vm1, %v4035_v23, %v1106_v55 }
 0x1f1   : > { %1229 = vperm.xlu0 %3246, %v3116_v60  }
 0x1f2   : > { %v4060_v7 = vpop.permute.xlu0 %904  ;;  %v1132_v17 = vpop.permute.xlu2 %1131 }
 0x1f3   : > { %5902 = vst [vmem:[#allocation57_spill] sm:$0xff] %v4060_v7  ;;  %v4062_v49 = vpop.permute.xlu1 %874 }
 0x1f4   : > { %5903 = vst [vmem:[#allocation58_spill] sm:$0xff] %v4062_v49  ;;  %3251 = vset.pattern.permute.xlu1 %v5896_v53 }
 0x1f9   : > { %1308 = vperm.xlu0 %3246, %v3117_v20  }
 0x1fa   : > { %v4068_v15 = vpop.permute.xlu0 %922  ;;  %v4089_v37 = vpop.permute.xlu2 %1146 }
 0x1fb   : > { %5904 = vst [vmem:[#allocation59_spill] sm:$0xff] %v4068_v15  ;;  %v4072_v11 = vpop.permute.xlu1 %924 }
 0x1fc   : > { %5906 = vst [vmem:[#allocation61_spill] sm:$0xff] %v4072_v11 }
 0x201   : > { %3270 = vset.pattern.permute.xlu0 %v5897_v42 }
 0x202   : > { %v4075_v60 = vpop.permute.xlu0 %936 }
 0x203   : > { %5907 = vst [vmem:[#allocation62_spill] sm:$0xff] %v4075_v60  ;;  %v4077_v38 = vpop.permute.xlu1 %938  ;;  %v1161_v15 = vpop.permute.xlu2 %1160 }
 0x204   : > { %5908 = vst [vmem:[#allocation63_spill] sm:$0xff] %v4077_v38 }
 0x20a   : > { %v4081_v3 = vpop.permute.xlu0 %950 }
 0x20b   : > { %5910 = vst [vmem:[#allocation65_spill] sm:$0xff] %v4081_v3  ;;  %v4083_v30 = vpop.permute.xlu1 %952 }
 0x20c   : > { %5911 = vst [vmem:[#allocation66_spill] sm:$0xff] %v4083_v30  ;;  %v1175_v38 = vpop.permute.xlu2 %1174 }
 0x212   : > { %v4085_v20 = vpop.permute.xlu0 %964 }
 0x213   : > { %5912 = vst [vmem:[#allocation67_spill] sm:$0xff] %v4085_v20  ;;  %v4087_v28 = vpop.permute.xlu1 %966 }
 0x214   : > { %5913 = vst [vmem:[#allocation68_spill] sm:$0xff] %v4087_v28 }
 0x215   : > { %v1189_v3 = vpop.permute.xlu2 %1188 }
 0x21a   : > { %v1134_v16 = vpop.permute.xlu0 %1133 }
 0x21b   : > { %v1127_v33 = vpop.permute.xlu1 %1126  ;;  %v1135_v23 = vsel %vm639_vm3, %v1132_v17, %v1134_v16  ;;  %v1136_v55 = vsel %vm639_vm3, %v1134_v16, %v1132_v17 }
 0x21e   : > { %v4091_v39 = vpop.permute.xlu2 %1202 }
 0x222   : > { %v1152_v11 = vpop.permute.xlu0 %1151 }
 0x224   : > { %v1141_v60 = vpop.permute.xlu1 %1140 }
 0x22a   : > { %v1166_v2 = vpop.permute.xlu0 %1165 }
 0x22c   : > { %v1154_v31 = vpop.permute.xlu1 %1153 }
 0x22d   : > { %v1155_v32 = vsel %vm667_vm4, %v1152_v11, %v1154_v31 }
 0x22e   : > { %v4142_v17 = vmul.f32 %v1155_v32, %v3789_v54  ;;  %v4163_v32 = vmul.f32 %v1135_v23, %v3778_v52 }
 0x230   : > { %5918 = vst [vmem:[#allocation73_spill] sm:$0xff] %v4142_v17 }
 0x231   : > { %5925 = vst [vmem:[#allocation80_spill] sm:$0xff] %v4163_v32 }
 0x232   : > { %v1180_v13 = vpop.permute.xlu0 %1179 }
 0x234   : > { %v1168_v49 = vpop.permute.xlu1 %1167 }
 0x235   : > { %v1170_v14 = vsel %vm689_vm6, %v1168_v49, %v1166_v2 }
 0x23a   : > { %v1194_v63 = vpop.permute.xlu0 %1193 }
 0x23c   : > { %v1182_v30 = vpop.permute.xlu1 %1181 }
 0x23d   : > { %v1183_v28 = vsel %vm711_vm5, %v1180_v13, %v1182_v30  ;;  %v1184_v7 = vsel %vm711_vm5, %v1182_v30, %v1180_v13  ;;  %v1156_v30 = vsel %vm667_vm4, %v1154_v31, %v1152_v11  ;;  %v1169_v13 = vsel %vm689_vm6, %v1166_v2, %v1168_v49 }
 0x23e   : > { %v4122_v9 = vmul.f32 %v1183_v28, %v3815_v26  ;;  %v4125_v21 = vmul.f32 %v1184_v7, %v3817_v36  ;;  %v4128_v31 = vmul.f32 %v1108_v56, %v3766_v46  ;;  %v4131_v11 = vmul.f32 %v1107_v59, %v3768_v47 }
 0x23f   : > { %v1092_v2 = vsel %vm573_vm0, %v4031_v0, %v4023_v61  ;;  %v1093_v28 = vsel %vm573_vm0, %v4023_v61, %v4031_v0  ;;  %v4145_v16 = vmul.f32 %v1156_v30, %v3808_v19  ;;  %v4148_v49 = vmul.f32 %v1169_v13, %v3855_v12  ;;  %v4165_v0 = vpop.permute.xlu2 %1245 }
 0x240   : > { %5914 = vst [vmem:[#allocation69_spill] sm:$0xff] %v4122_v9  ;;  %v4151_v59 = vmul.f32 %v1170_v14, %v3857_v22  ;;  %v4154_v7 = vmul.f32 %v1122_v44, %v3772_v48  ;;  %v4157_v56 = vmul.f32 %v1121_v40, %v3774_v50  ;;  %v4160_v61 = vmul.f32 %v1136_v55, %v3776_v51 }
 0x241   : > { %5915 = vst [vmem:[#allocation70_spill] sm:$0xff] %v4125_v21  ;;  %v4168_v30 = vmul.f32 %v1093_v28, %v3740_v27  ;;  %v4171_v14 = vmul.f32 %v1092_v2, %v3742_v35  ;;  %v1191_v44 = vmul.f32 %v1189_v3, %v4122_v9  ;;  %v1192_v13 = vmul.f32 %v1189_v3, %v4125_v21 }
 0x242   : > { %v4093_v20 = vpop.permute.xlu0 %1253  ;;  %5916 = vst [vmem:[#allocation71_spill] sm:$0xff] %v4128_v31  ;;  %v1115_v40 = vmul.f32 %v4045_v24, %v4128_v31  ;;  %v1116_v55 = vmul.f32 %v4045_v24, %v4131_v11  ;;  %v1143_v23 = vmul.f32 %v1141_v60, %v4160_v61  ;;  %v1144_v36 = vmul.f32 %v1141_v60, %v4163_v32 }
 0x243   : > { %5917 = vst [vmem:[#allocation72_spill] sm:$0xff] %v4131_v11  ;;  %v1163_v28 = vmul.f32 %v1161_v15, %v4142_v17  ;;  %v1164_v2 = vmul.f32 %v1161_v15, %v4145_v16  ;;  %v1177_v9 = vmul.f32 %v1175_v38, %v4148_v49  ;;  %v1178_v3 = vmul.f32 %v1175_v38, %v4151_v59 }
 0x244   : > { %v1196_v34 = vpop.permute.xlu1 %1195  ;;  %5919 = vst [vmem:[#allocation74_spill] sm:$0xff] %v4145_v16  ;;  %v1129_v31 = vmul.f32 %v1127_v33, %v4154_v7  ;;  %v1130_v24 = vmul.f32 %v1127_v33, %v4157_v56  ;;  %v1150_v15 = vmul.f32 %v4089_v37, %v3657_v10  ;;  %v1102_v33 = vmul.f32 %v4039_v25, %v4171_v14 }
 0x245   : > { %5920 = vst [vmem:[#allocation75_spill] sm:$0xff] %v4148_v49  ;;  %v1197_v11 = vsel %vm733_vm7, %v1194_v63, %v1196_v34  ;;  %v1198_v60 = vsel %vm733_vm7, %v1196_v34, %v1194_v63  ;;  %v1213_v49 = vadd.f32 %v1191_v44, %v1177_v9  ;;  %v1214_v38 = vadd.f32 %v1192_v13, %v1178_v3 }
 0x246   : > { %5921 = vst [vmem:[#allocation76_spill] sm:$0xff] %v4151_v59  ;;  %v1101_v59 = vmul.f32 %v4039_v25, %v4168_v30  ;;  %v4204_v34 = vmul.f32 %v1197_v11, %v3898_v5  ;;  %v4207_v63 = vmul.f32 %v1198_v60, %v3900_v6 }
 0x247   : > { %5922 = vst [vmem:[#allocation77_spill] sm:$0xff] %v4154_v7  ;;  %v1210_v7 = vadd.f32 %v1144_v36, %v1130_v24  ;;  %v1270_v13 = vpop.permute.xlu2 %1269 }
 0x248   : > { %5923 = vst [vmem:[#allocation78_spill] sm:$0xff] %v4157_v56  ;;  %v1209_v56 = vadd.f32 %v1143_v23, %v1129_v31  ;;  %v1205_v36 = vmul.f32 %v4091_v39, %v4204_v34 }
 0x249   : > { %5924 = vst [vmem:[#allocation79_spill] sm:$0xff] %v4160_v61  ;;  %v1212_v61 = vadd.f32 %v1164_v2, %v1150_v15 }
 0x24a   : > { %5926 = vst [vmem:[#allocation81_spill] sm:$0xff] %v4168_v30 }
 0x24b   : > { %5927 = vst [vmem:[#allocation82_spill] sm:$0xff] %v4171_v14  ;;  %v4181_v26 = vpop.permute.xlu0 %869  ;;  %v1218_v44 = vadd.f32 %v1214_v38, %v1212_v61 }
 0x24c   : > { %5928 = vst [vmem:[#allocation83_spill] sm:$0xff] %v4181_v26  ;;  %v4187_v21 = vpop.permute.xlu1 %1237  ;;  %v1149_v26 = vmul.f32 %v4089_v37, %v3713_v58  ;;  %v1207_v58 = vadd.f32 %v1115_v40, %v1101_v59  ;;  %v1208_v37 = vadd.f32 %v1116_v55, %v1102_v33 }
 0x24d   : > { %5929 = vst [vmem:[#allocation84_spill] sm:$0xff] %v4204_v34 }
 0x24e   : > { %v1211_v32 = vadd.f32 %v1163_v28, %v1149_v26  ;;  %5930 = vst [vmem:[#allocation85_spill] sm:$0xff] %v4207_v63  ;;  %v1215_v30 = vadd.f32 %v1209_v56, %v1207_v58  ;;  %v1216_v10 = vadd.f32 %v1210_v7, %v1208_v37  ;;  %v1206_v26 = vmul.f32 %v4091_v39, %v4207_v63 }
 0x24f   : > { %v1286_v55 = vpop.permute.xlu2 %1285 }
 0x250   : > { %v1217_v9 = vadd.f32 %v1213_v49, %v1211_v32  ;;  %v1220_v11 = vadd.f32 %v1218_v44, %v1216_v10 }
 0x252   : > { %v1219_v31 = vadd.f32 %v1217_v9, %v1215_v30  ;;  %v1222_v28 = vadd.f32 %v1220_v11, %v1206_v26 }
 0x253   : > { %v4209_v3 = vpop.permute.xlu0 %1000 }
 0x254   : > { %5931 = vst [vmem:[#allocation86_spill] sm:$0xff] %v4209_v3  ;;  %v1221_v23 = vadd.f32 %v1219_v31, %v1205_v36  ;;  %v1289_v61 = vperm.slane %v1222_v28, 7  ;;  %v1273_v40 = vperm.slane %v1222_v28, 5  ;;  %v1281_v7 = vperm.slane %v1222_v28, 6 }
 0x255   : > { %v1262_v25 = vpop.permute.xlu1 %1261  ;;  %v1249_v24 = vperm.slane %v1222_v28, 2  ;;  %v1257_v15 = vperm.slane %v1222_v28, 3  ;;  %v1241_v38 = vperm.slane %v1222_v28, 1  ;;  %v1265_v10 = vperm.slane %v1222_v28, 4 }
 0x256   : > { %v1288_v49 = vperm.slane %v1221_v23, 7  ;;  %v1272_v32 = vperm.slane %v1221_v23, 5  ;;  %v1280_v58 = vperm.slane %v1221_v23, 6  ;;  %v1248_v2 = vperm.slane %v1221_v23, 2 }
 0x257   : > { %v1256_v60 = vperm.slane %v1221_v23, 3  ;;  %v1240_v39 = vperm.slane %v1221_v23, 1  ;;  %v1264_v30 = vperm.slane %v1221_v23, 4  ;;  %v1291_v37 = vmul.f32 %v1289_v61, %v1286_v55 }
 0x258   : > { %v1290_v33 = vmul.f32 %v1288_v49, %v1286_v55  ;;  %v1267_v26 = vmul.f32 %v1265_v10, %v1262_v25  ;;  %v1232_v31 = vperm.slane %v1221_v23, 0  ;;  %v1233_v11 = vperm.slane %v1222_v28, 0 }
 0x259   : > { %v1266_v36 = vmul.f32 %v1264_v30, %v1262_v25  ;;  %v1251_v3 = vmul.f32 %v1249_v24, %v4165_v0  ;;  %v1258_v63 = vmul.f32 %v1256_v60, %v4093_v20  ;;  %v1259_v34 = vmul.f32 %v1257_v15, %v4093_v20 }
 0x25a   : > { %v1274_v14 = vmul.f32 %v1272_v32, %v1270_v13  ;;  %v1275_v16 = vmul.f32 %v1273_v40, %v1270_v13  ;;  %v1242_v17 = vmul.f32 %v1240_v39, %v4187_v21  ;;  %v1243_v49 = vmul.f32 %v1241_v38, %v4187_v21 }
 0x25b   : > { %v4215_v59 = vpop.permute.xlu0 %1079  ;;  %v1295_v24 = vadd.f32 %v1259_v34, %v1251_v3 }
 0x25c   : > { %5932 = vst [vmem:[#allocation87_spill] sm:$0xff] %v4215_v59  ;;  %v1250_v59 = vmul.f32 %v1248_v2, %v4165_v0  ;;  %v1296_v28 = vadd.f32 %v1274_v14, %v1266_v36  ;;  %v3119_v14 = vld [vmem:[%s5647_s7 + $0x18] sm:$0xff] }
 0x25e   : > { %v1278_v56 = vpop.permute.xlu1 %1277  ;;  %v1294_v0 = vadd.f32 %v1258_v63, %v1250_v59  ;;  %v3120_v63 = vld [vmem:[%s5648_s8 + $0x18] sm:$0xff]  ;;  %v3122_v59 = vld [vmem:[%s5647_s7 + $0x20] sm:$0xff] }
 0x25f   : > { %v1282_v9 = vmul.f32 %v1280_v58, %v1278_v56  ;;  %v1283_v44 = vmul.f32 %v1281_v7, %v1278_v56  ;;  %v1297_v7 = vadd.f32 %v1275_v16, %v1267_v26  ;;  %v3121_v16 = vld [vmem:[%s5646_s6 + $0x20] sm:$0xff] }
 0x261   : > { %v1298_v55 = vadd.f32 %v1290_v33, %v1282_v9  ;;  %v1299_v58 = vadd.f32 %v1291_v37, %v1283_v44 }
 0x263   : > { %v1230_v61 = vpop.permute.xlu0 %1229  ;;  %v1302_v20 = vadd.f32 %v1298_v55, %v1296_v28  ;;  %v1303_v32 = vadd.f32 %v1299_v58, %v1297_v7 }
 0x264   : > { %v1234_v25 = vmul.f32 %v1232_v31, %v1230_v61  ;;  %v1235_v23 = vmul.f32 %v1233_v11, %v1230_v61 }
 0x266   : > { %v1292_v56 = vadd.f32 %v1242_v17, %v1234_v25  ;;  %v1293_v2 = vadd.f32 %v1243_v49, %v1235_v23  ;;  %v3118_v17 = vld [vmem:[%s5646_s6 + $0x18] sm:$0xff]  ;;  %v3123_v23 = vld [vmem:[%s5648_s8 + $0x20] sm:$0xff] }
 0x268   : > { %v1300_v60 = vadd.f32 %v1294_v0, %v1292_v56  ;;  %v1301_v30 = vadd.f32 %v1295_v24, %v1293_v2  ;;  %v4347_v2 = vld [vmem:[%s5646_s6 + $0x28] sm:$0xff] }
 0x26a   : > { %v1304_v13 = vadd.f32 %v1302_v20, %v1300_v60  ;;  %v1305_v40 = vadd.f32 %v1303_v32, %v1301_v30 }
 0x26b   : > { %v1309_v15 = vpop.permute.xlu0 %1308 }
 0x26c   : > { %v1311_v39 = vadd.f32 %v1309_v15, %v1304_v13  ;;  %v1312_v21 = vadd.f32 %v1309_v15, %v1305_v40 }
 0x26e   : > { %v4223_v38 = vmax.f32 %v1311_v39, 0.0  ;;  %v4225_v10 = vmax.f32 %v1312_v21, 0.0 }
 0x270   : > { %5933 = vst [vmem:[#allocation88_spill] sm:$0xff] %v4223_v38  ;;  %1334 = vrot.lane.b32.xlu0 %v4225_v10, %s3405_s16  ;;  %1319 = vrot.lane.b32.xlu2 %v4225_v10, %s3403_s12 }
 0x271   : > { %5934 = vst [vmem:[#allocation89_spill] sm:$0xff] %v4225_v10  ;;  %1317 = vrot.lane.b32.xlu1 %v4223_v38, %s3403_s12 }
 0x278   : > { %1348 = vrot.lane.b32.xlu0 %v4225_v10, %s3406_s17  ;;  %1332 = vrot.lane.b32.xlu2 %v4223_v38, %s3405_s16 }
 0x279   : > { %1327 = vperm.xlu1 %3251, %v3118_v17  }
 0x280   : > { %1362 = vrot.lane.b32.xlu0 %v4225_v10, %s3408_s19  ;;  %1346 = vrot.lane.b32.xlu2 %v4223_v38, %s3406_s17 }
 0x281   : > { %3252 = vset.pattern.permute.xlu1 %v5890_v29 }
 0x282   : > { %1341 = vperm.xlu1 %3252, %v3118_v17  }
 0x288   : > { %1380 = vrot.lane.b32.xlu0 %v4223_v38, %s3402_s11  ;;  %1360 = vrot.lane.b32.xlu2 %v4223_v38, %s3408_s19 }
 0x28a   : > { %3253 = vset.pattern.permute.xlu1 %v5894_v1 }
 0x28b   : > { %1355 = vperm.xlu1 %3253, %v3118_v17  }
 0x290   : > { %1394 = vrot.lane.b32.xlu0 %v4223_v38, %s3404_s15  ;;  %1375 = vperm.xlu2 %3255, %v3118_v17  }
 0x293   : > { %3254 = vset.pattern.permute.xlu1 %v5885_v57 }
 0x294   : > { %1369 = vperm.xlu1 %3254, %v3118_v17  }
 0x298   : > { %1408 = vrot.lane.b32.xlu0 %v4223_v38, %s3407_s18  ;;  %3256 = vset.pattern.permute.xlu2 %v5882_v41 }
 0x299   : > { %1389 = vperm.xlu2 %3256, %v3118_v17  }
 0x29c   : > { %1382 = vrot.lane.b32.xlu1 %v4225_v10, %s3402_s11 }
 0x29d   : > { %3260 = vset.pattern.permute.xlu1 %v5890_v29 }
 0x2a0   : > { %1422 = vrot.lane.b32.xlu0 %v4223_v38, %s3409_s20  ;;  %v5979_v38 = vld [vmem:[#allocation17_spill] sm:$0xff] }
 0x2a1   : > { %3257 = vset.pattern.permute.xlu2 %v5886_v62 }
 0x2a2   : > { %1403 = vperm.xlu2 %3257, %v3118_v17  }
 0x2a4   : > { %1396 = vrot.lane.b32.xlu1 %v4225_v10, %s3404_s15 }
 0x2a8   : > { %1572 = vperm.xlu0 %3270, %v3121_v16  }
 0x2aa   : > { %3258 = vset.pattern.permute.xlu2 %v5888_v43 }
 0x2ab   : > { %1417 = vperm.xlu2 %3258, %v3118_v17  }
 0x2ac   : > { %1410 = vrot.lane.b32.xlu1 %v4225_v10, %s3407_s18 }
 0x2b0   : > { %3271 = vset.pattern.permute.xlu0 %v5896_v53 }
 0x2b1   : > { %1458 = vperm.xlu0 %3271, %v3119_v14  }
 0x2b3   : > { %3259 = vset.pattern.permute.xlu2 %v5892_v45 }
 0x2b4   : > { %1424 = vrot.lane.b32.xlu1 %v4225_v10, %s3409_s20  ;;  %1431 = vperm.xlu2 %3259, %v3118_v17  }
 0x2b9   : > { %1537 = vperm.xlu0 %3271, %v3120_v63  }
 0x2bc   : > { %1466 = vperm.xlu1 %3260, %v3119_v14   ;;  %3261 = vset.pattern.permute.xlu2 %v5894_v1 }
 0x2bd   : > { %1474 = vperm.xlu2 %3261, %v3119_v14  }
 0x2c1   : > { %1623 = vperm.xlu0 %3271, %v3122_v59  }
 0x2c4   : > { %3262 = vset.pattern.permute.xlu1 %v5897_v42 }
 0x2c5   : > { %1490 = vperm.xlu1 %3262, %v3119_v14   ;;  %3263 = vset.pattern.permute.xlu2 %v5882_v41 }
 0x2c6   : > { %1498 = vperm.xlu2 %3263, %v3119_v14  }
 0x2c9   : > { %3280 = vset.pattern.permute.xlu0 %v5882_v41 }
 0x2ca   : > { %v4280_v34 = vpop.permute.xlu2 %1319  ;;  %1663 = vperm.xlu0 %3280, %v3122_v59  }
 0x2cb   : > { %5935 = vst [vmem:[#allocation90_spill] sm:$0xff] %v4280_v34 }
 0x2cd   : > { %3264 = vset.pattern.permute.xlu1 %v5886_v62 }
 0x2ce   : > { %1506 = vperm.xlu1 %3264, %v3119_v14   ;;  %3265 = vset.pattern.permute.xlu2 %v5888_v43 }
 0x2cf   : > { %1514 = vperm.xlu2 %3265, %v3119_v14  }
 0x2d2   : > { %v4287_v3 = vpop.permute.xlu2 %1332 }
 0x2d3   : > { %5936 = vst [vmem:[#allocation91_spill] sm:$0xff] %v4287_v3 }
 0x2d6   : > { %3266 = vset.pattern.permute.xlu1 %v5896_v53 }
 0x2d7   : > { %1548 = vperm.xlu1 %3266, %v3121_v16   ;;  %3267 = vset.pattern.permute.xlu2 %v5890_v29 }
 0x2d8   : > { %1554 = vperm.xlu2 %3267, %v3121_v16  }
 0x2da   : > { %v4295_v33 = vpop.permute.xlu2 %1346 }
 0x2db   : > { %5937 = vst [vmem:[#allocation92_spill] sm:$0xff] %v4295_v33 }
 0x2df   : > { %3268 = vset.pattern.permute.xlu1 %v5894_v1 }
 0x2e0   : > { %1560 = vperm.xlu1 %3268, %v3121_v16   ;;  %3269 = vset.pattern.permute.xlu2 %v5885_v57 }
 0x2e1   : > { %1566 = vperm.xlu2 %3269, %v3121_v16  }
 0x2e2   : > { %v4303_v9 = vpop.permute.xlu2 %1360  ;;  %v4329_v58 = vpop.permute.xlu0 %1334 }
 0x2e3   : > { %v4299_v37 = vpop.permute.xlu1 %1317  ;;  %5939 = vst [vmem:[#allocation94_spill] sm:$0xff] %v4303_v9 }
 0x2e4   : > { %5938 = vst [vmem:[#allocation93_spill] sm:$0xff] %v4299_v37 }
 0x2e5   : > { %5948 = vst [vmem:[#allocation103_spill] sm:$0xff] %v4329_v58 }
 0x2e8   : > { %3272 = vset.pattern.permute.xlu1 %v5882_v41 }
 0x2e9   : > { %1578 = vperm.xlu1 %3272, %v3121_v16   ;;  %3273 = vset.pattern.permute.xlu2 %v5886_v62 }
 0x2ea   : > { %1584 = vperm.xlu2 %3273, %v3121_v16   ;;  %v4309_v36 = vpop.permute.xlu2 %1375  ;;  %v4340_v7 = vpop.permute.xlu0 %1348 }
 0x2eb   : > { %v4305_v44 = vpop.permute.xlu1 %1327  ;;  %5941 = vst [vmem:[#allocation96_spill] sm:$0xff] %v4309_v36 }
 0x2ec   : > { %5940 = vst [vmem:[#allocation95_spill] sm:$0xff] %v4305_v44  ;;  %v5974_v44 = vld [vmem:[#allocation5_spill] sm:$0xff] }
 0x2ed   : > { %5951 = vst [vmem:[#allocation106_spill] sm:$0xff] %v4340_v7 }
 0x2f1   : > { %3274 = vset.pattern.permute.xlu1 %v5888_v43 }
 0x2f2   : > { %1590 = vperm.xlu1 %3274, %v3121_v16   ;;  %3275 = vset.pattern.permute.xlu2 %v5892_v45  ;;  %v4352_v24 = vpop.permute.xlu0 %1362 }
 0x2f3   : > { %1596 = vperm.xlu2 %3275, %v3121_v16   ;;  %v4315_v31 = vpop.permute.xlu2 %1389  ;;  %5954 = vst [vmem:[#allocation109_spill] sm:$0xff] %v4352_v24  ;;  %v5981_v24 = vld [vmem:[#allocation21_spill] sm:$0xff] }
 0x2f4   : > { %v4311_v26 = vpop.permute.xlu1 %1341  ;;  %5943 = vst [vmem:[#allocation98_spill] sm:$0xff] %v4315_v31  ;;  %v5968_v31 = vld [vmem:[#allocation25_spill] sm:$0xff] }
 0x2f5   : > { %5942 = vst [vmem:[#allocation97_spill] sm:$0xff] %v4311_v26  ;;  %v5973_v26 = vld [vmem:[#allocation4_spill] sm:$0xff] }
 0x2fa   : > { %3276 = vset.pattern.permute.xlu1 %v5890_v29  ;;  %v4360_v20 = vpop.permute.xlu0 %1380 }
 0x2fb   : > { %1631 = vperm.xlu1 %3276, %v3122_v59   ;;  %3277 = vset.pattern.permute.xlu2 %v5894_v1  ;;  %5957 = vst [vmem:[#allocation112_spill] sm:$0xff] %v4360_v20 }
 0x2fc   : > { %1639 = vperm.xlu2 %3277, %v3122_v59   ;;  %v4321_v49 = vpop.permute.xlu2 %1403 }
 0x2fd   : > { %v4317_v11 = vpop.permute.xlu1 %1355  ;;  %5945 = vst [vmem:[#allocation100_spill] sm:$0xff] %v4321_v49 }
 0x2fe   : > { %5944 = vst [vmem:[#allocation99_spill] sm:$0xff] %v4317_v11 }
 0x302   : > { %v4370_v15 = vpop.permute.xlu0 %1394 }
 0x303   : > { %3278 = vset.pattern.permute.xlu1 %v5885_v57  ;;  %5961 = vst [vmem:[#allocation116_spill] sm:$0xff] %v4370_v15 }
 0x304   : > { %1647 = vperm.xlu1 %3278, %v3122_v59   ;;  %3279 = vset.pattern.permute.xlu2 %v5897_v42 }
 0x305   : > { %1655 = vperm.xlu2 %3279, %v3122_v59   ;;  %v4331_v25 = vpop.permute.xlu2 %1417 }
 0x306   : > { %v4323_v61 = vpop.permute.xlu1 %1369  ;;  %5949 = vst [vmem:[#allocation104_spill] sm:$0xff] %v4331_v25 }
 0x307   : > { %5946 = vst [vmem:[#allocation101_spill] sm:$0xff] %v4323_v61  ;;  %v5972_v61 = vld [vmem:[#allocation31_spill] sm:$0xff] }
 0x30a   : > { %v4379_v17 = vpop.permute.xlu0 %1408 }
 0x30b   : > { %5964 = vst [vmem:[#allocation119_spill] sm:$0xff] %v4379_v17  ;;  %v5971_v17 = vld [vmem:[#allocation30_spill] sm:$0xff] }
 0x30c   : > { %3281 = vset.pattern.permute.xlu1 %v5886_v62 }
 0x30d   : > { %1671 = vperm.xlu1 %3281, %v3122_v59   ;;  %3282 = vset.pattern.permute.xlu2 %v5888_v43 }
 0x30e   : > { %v4327_v55 = vpop.permute.xlu1 %1382  ;;  %1679 = vperm.xlu2 %3282, %v3122_v59   ;;  %v4342_v56 = vpop.permute.xlu2 %1431 }
 0x30f   : > { %5947 = vst [vmem:[#allocation102_spill] sm:$0xff] %v4327_v55 }
 0x310   : > { %5952 = vst [vmem:[#allocation107_spill] sm:$0xff] %v4342_v56 }
 0x312   : > { %v4381_v63 = vpop.permute.xlu0 %1422 }
 0x313   : > { %5965 = vst [vmem:[#allocation120_spill] sm:$0xff] %v4381_v63  ;;  %v5970_v63 = vld [vmem:[#allocation27_spill] sm:$0xff] }
 0x315   : > { %3283 = vset.pattern.permute.xlu1 %v5896_v53 }
 0x316   : > { %1702 = vperm.xlu1 %3283, %v3123_v23   ;;  %v4337_v28 = vpop.permute.xlu1 %1396  ;;  %3287 = vset.pattern.permute.xlu2 %v5897_v42 }
 0x317   : > { %5950 = vst [vmem:[#allocation105_spill] sm:$0xff] %v4337_v28  ;;  %v4354_v60 = vpop.permute.xlu2 %1474  ;;  %v5969_v28 = vld [vmem:[#allocation26_spill] sm:$0xff] }
 0x318   : > { %5955 = vst [vmem:[#allocation110_spill] sm:$0xff] %v4354_v60 }
 0x31a   : > { %v1573_v60 = vpop.permute.xlu0 %1572 }
 0x31b   : > { %v1576_v10 = vmul.f32 %v1573_v60, %v5974_v44 }
 0x31e   : > { %1721 = vperm.xlu1 %3283, %v4347_v2   ;;  %v4350_v0 = vpop.permute.xlu1 %1410 }
 0x31f   : > { %5953 = vst [vmem:[#allocation108_spill] sm:$0xff] %v4350_v0 }
 0x320   : > { %v4362_v32 = vpop.permute.xlu2 %1498 }
 0x321   : > { %5958 = vst [vmem:[#allocation113_spill] sm:$0xff] %v4362_v32 }
 0x326   : > { %v4356_v30 = vpop.permute.xlu1 %1424  ;;  %3284 = vset.pattern.permute.xlu1 %v5890_v29 }
 0x327   : > { %5956 = vst [vmem:[#allocation111_spill] sm:$0xff] %v4356_v30  ;;  %1735 = vperm.xlu1 %3284, %v4347_v2   ;;  %v5967_v30 = vld [vmem:[#allocation24_spill] sm:$0xff] }
 0x329   : > { %v4372_v39 = vpop.permute.xlu2 %1514 }
 0x32a   : > { %5962 = vst [vmem:[#allocation117_spill] sm:$0xff] %v4372_v39 }
 0x32e   : > { %v4364_v13 = vpop.permute.xlu1 %1466 }
 0x32f   : > { %5959 = vst [vmem:[#allocation114_spill] sm:$0xff] %v4364_v13  ;;  %3285 = vset.pattern.permute.xlu1 %v5894_v1  ;;  %v4383_v13 = vpop.permute.xlu0 %1458 }
 0x330   : > { %1749 = vperm.xlu1 %3285, %v4347_v2   ;;  %5966 = vst [vmem:[#allocation121_spill] sm:$0xff] %v4383_v13  ;;  %v1575_v13 = vmul.f32 %v1573_v60, %v5973_v26 }
 0x332   : > { %v1555_v16 = vpop.permute.xlu2 %1554 }
 0x337   : > { %v4368_v40 = vpop.permute.xlu1 %1490 }
 0x338   : > { %5960 = vst [vmem:[#allocation115_spill] sm:$0xff] %v4368_v40  ;;  %3286 = vset.pattern.permute.xlu1 %v5885_v57 }
 0x339   : > { %1763 = vperm.xlu1 %3286, %v4347_v2  }
 0x33b   : > { %v1567_v59 = vpop.permute.xlu2 %1566 }
 0x340   : > { %v4376_v21 = vpop.permute.xlu1 %1506 }
 0x341   : > { %5963 = vst [vmem:[#allocation118_spill] sm:$0xff] %v4376_v21  ;;  %3292 = vset.pattern.permute.xlu1 %v5890_v29 }
 0x344   : > { %v1585_v32 = vpop.permute.xlu2 %1584 }
 0x345   : > { %v1587_v56 = vmul.f32 %v1585_v32, %v3893_v18  ;;  %v1588_v21 = vmul.f32 %v1585_v32, %v3896_v8  ;;  %v5975_v18 = vld [vmem:[#allocation22_spill] sm:$0xff]  ;;  %v5976_v8 = vld [vmem:[#allocation23_spill] sm:$0xff] }
 0x346   : > { %v1569_v36 = vmul.f32 %v1567_v59, %v5975_v18  ;;  %v1570_v32 = vmul.f32 %v1567_v59, %v5976_v8 }
 0x349   : > { %v1549_v14 = vpop.permute.xlu1 %1548 }
 0x34d   : > { %v1597_v39 = vpop.permute.xlu2 %1596 }
 0x352   : > { %v1561_v23 = vpop.permute.xlu1 %1560 }
 0x353   : > { %v1563_v49 = vmul.f32 %v1561_v23, %v5967_v30  ;;  %v1564_v25 = vmul.f32 %v1561_v23, %v5968_v31  ;;  %v4397_v30 = vpop.permute.xlu0 %1537  ;;  %v5978_v31 = vld [vmem:[#allocation16_spill] sm:$0xff] }
 0x354   : > { %5977 = vst [vmem:[#allocation24_spill] sm:$0xff] %v4397_v30  ;;  %v1551_v23 = vmul.f32 %v1549_v14, %v5978_v31 }
 0x355   : > { %v1603_v26 = vadd.f32 %v1569_v36, %v1563_v49  ;;  %v1604_v33 = vadd.f32 %v1570_v32, %v1564_v25 }
 0x35b   : > { %v1579_v40 = vpop.permute.xlu1 %1578 }
 0x35c   : > { %v1581_v20 = vmul.f32 %v1579_v40, %v5969_v28  ;;  %v1582_v55 = vmul.f32 %v1579_v40, %v5970_v63  ;;  %v1552_v28 = vmul.f32 %v1549_v14, %v5979_v38  ;;  %v5980_v63 = vld [vmem:[#allocation20_spill] sm:$0xff] }
 0x35e   : > { %v1605_v44 = vadd.f32 %v1581_v20, %v1575_v13  ;;  %v1606_v60 = vadd.f32 %v1582_v55, %v1576_v10 }
 0x364   : > { %v1591_v15 = vpop.permute.xlu1 %1590 }
 0x365   : > { %v1593_v0 = vmul.f32 %v1591_v15, %v5971_v17  ;;  %v1594_v11 = vmul.f32 %v1591_v15, %v5972_v61  ;;  %v1557_v17 = vmul.f32 %v1555_v16, %v5980_v63  ;;  %v1558_v61 = vmul.f32 %v1555_v16, %v5981_v24  ;;  %v1640_v15 = vpop.permute.xlu2 %1639 }
 0x367   : > { %v1607_v9 = vadd.f32 %v1593_v0, %v1587_v56  ;;  %v1608_v40 = vadd.f32 %v1594_v11, %v1588_v21  ;;  %v1601_v18 = vadd.f32 %v1557_v17, %v1551_v23  ;;  %v1602_v7 = vadd.f32 %v1558_v61, %v1552_v28  ;;  %v1624_v56 = vpop.permute.xlu0 %1623  ;;  %v5982_v11 = vld [vmem:[#allocation34_spill] sm:$0xff]  ;;  %v5983_v21 = vld [vmem:[#allocation35_spill] sm:$0xff] }
 0x368   : > { %v1599_v0 = vmul.f32 %v1597_v39, %v5982_v11  ;;  %v1600_v14 = vmul.f32 %v1597_v39, %v5983_v21 }
 0x369   : > { %v1611_v59 = vadd.f32 %v1607_v9, %v1605_v44  ;;  %v1612_v8 = vadd.f32 %v1608_v40, %v1606_v60  ;;  %v1609_v30 = vadd.f32 %v1603_v26, %v1601_v18  ;;  %v1610_v37 = vadd.f32 %v1604_v33, %v1602_v7 }
 0x36b   : > { %v1613_v34 = vadd.f32 %v1611_v59, %v1609_v30  ;;  %v1614_v38 = vadd.f32 %v1612_v8, %v1610_v37 }
 0x36d   : > { %v1632_v31 = vpop.permute.xlu1 %1631  ;;  %v1656_v24 = vpop.permute.xlu2 %1655  ;;  %v1615_v16 = vadd.f32 %v1613_v34, %v1599_v0  ;;  %v1616_v36 = vadd.f32 %v1614_v38, %v1600_v14 }
 0x36f   : > { %v1626_v25 = vperm.slane %v1615_v16, 0  ;;  %v1627_v10 = vperm.slane %v1616_v36, 0  ;;  %v1658_v55 = vperm.slane %v1615_v16, 4  ;;  %v1659_v20 = vperm.slane %v1616_v36, 4  ;;  %v1664_v7 = vpop.permute.xlu0 %1663 }
 0x370   : > { %v1634_v9 = vperm.slane %v1615_v16, 1  ;;  %v1635_v13 = vperm.slane %v1616_v36, 1  ;;  %v1666_v32 = vperm.slane %v1615_v16, 5  ;;  %v1667_v33 = vperm.slane %v1616_v36, 5 }
 0x371   : > { %v1642_v30 = vperm.slane %v1615_v16, 2  ;;  %v1643_v37 = vperm.slane %v1616_v36, 2  ;;  %v1650_v23 = vperm.slane %v1615_v16, 3  ;;  %v1651_v28 = vperm.slane %v1616_v36, 3 }
 0x372   : > { %v1628_v40 = vmul.f32 %v1626_v25, %v1624_v56  ;;  %v1629_v63 = vmul.f32 %v1627_v10, %v1624_v56  ;;  %v1682_v39 = vperm.slane %v1615_v16, 7  ;;  %v1683_v17 = vperm.slane %v1616_v36, 7 }
 0x373   : > { %v1660_v34 = vmul.f32 %v1658_v55, %v1656_v24  ;;  %v1661_v61 = vmul.f32 %v1659_v20, %v1656_v24  ;;  %v1636_v18 = vmul.f32 %v1634_v9, %v1632_v31  ;;  %v1637_v59 = vmul.f32 %v1635_v13, %v1632_v31 }
 0x374   : > { %v1668_v8 = vmul.f32 %v1666_v32, %v1664_v7  ;;  %v1669_v38 = vmul.f32 %v1667_v33, %v1664_v7  ;;  %v1644_v11 = vmul.f32 %v1642_v30, %v1640_v15  ;;  %v1645_v0 = vmul.f32 %v1643_v37, %v1640_v15 }
 0x375   : > { %v1680_v26 = vpop.permute.xlu2 %1679  ;;  %v1674_v21 = vperm.slane %v1615_v16, 6  ;;  %v1675_v14 = vperm.slane %v1616_v36, 6  ;;  %v1686_v55 = vadd.f32 %v1636_v18, %v1628_v40  ;;  %v1687_v24 = vadd.f32 %v1637_v59, %v1629_v63  ;;  %v4487_v40 = vld [vmem:[%s5647_s7 + $0x30] sm:$0xff] }
 0x376   : > { %v1648_v49 = vpop.permute.xlu1 %1647  ;;  %v1684_v3 = vmul.f32 %v1682_v39, %v1680_v26  ;;  %v1685_v58 = vmul.f32 %v1683_v17, %v1680_v26  ;;  %v1690_v20 = vadd.f32 %v1668_v8, %v1660_v34  ;;  %v3129_v59 = vld [vmem:[%s5648_s8 + $0x30] sm:$0xff] }
 0x377   : > { %v1652_v44 = vmul.f32 %v1650_v23, %v1648_v49  ;;  %v1653_v60 = vmul.f32 %v1651_v28, %v1648_v49  ;;  %v1691_v23 = vadd.f32 %v1669_v38, %v1661_v61 }
 0x379   : > { %v1688_v25 = vadd.f32 %v1652_v44, %v1644_v11  ;;  %v1689_v56 = vadd.f32 %v1653_v60, %v1645_v0 }
 0x37b   : > { %v1694_v31 = vadd.f32 %v1688_v25, %v1686_v55  ;;  %v1695_v13 = vadd.f32 %v1689_v56, %v1687_v24 }
 0x37f   : > { %v1672_v6 = vpop.permute.xlu1 %1671 }
 0x380   : > { %v1676_v10 = vmul.f32 %v1674_v21, %v1672_v6  ;;  %v1677_v5 = vmul.f32 %v1675_v14, %v1672_v6  ;;  %v3126_v6 = vld [vmem:[%s5648_s8 + $0x28] sm:$0xff] }
 0x382   : > { %v1692_v49 = vadd.f32 %v1684_v3, %v1676_v10  ;;  %v1693_v9 = vadd.f32 %v1685_v58, %v1677_v5  ;;  %v4436_v5 = vld [vmem:[%s5647_s7 + $0x28] sm:$0xff]  ;;  %v4466_v3 = vld [vmem:[%s5646_s6 + $0x30] sm:$0xff] }
 0x384   : > { %v1696_v32 = vadd.f32 %v1692_v49, %v1690_v20  ;;  %v1697_v33 = vadd.f32 %v1693_v9, %v1691_v23 }
 0x386   : > { %v1698_v15 = vadd.f32 %v1696_v32, %v1694_v31  ;;  %v1699_v16 = vadd.f32 %v1697_v33, %v1695_v13 }
 0x388   : > { %v1703_v36 = vpop.permute.xlu1 %1702 }
 0x389   : > { %v1705_v7 = vadd.f32 %v1703_v36, %v1698_v15  ;;  %v1706_v30 = vadd.f32 %v1703_v36, %v1699_v16 }
 0x38b   : > { %v4405_v37 = vmax.f32 %v1705_v7, 0.0  ;;  %v4407_v28 = vmax.f32 %v1706_v30, 0.0 }
 0x38d   : > { %1776 = vrot.lane.b32.xlu1 %v4407_v28, %s3402_s11  ;;  %1713 = vrot.lane.b32.xlu0 %v4407_v28, %s3403_s12 }
 0x38e   : > { %1711 = vrot.lane.b32.xlu2 %v4405_v37, %s3403_s12 }
 0x390   : > { %v1722_v58 = vpop.permute.xlu1 %1721 }
 0x395   : > { %1790 = vrot.lane.b32.xlu1 %v4407_v28, %s3404_s15  ;;  %1728 = vrot.lane.b32.xlu0 %v4407_v28, %s3405_s16 }
 0x396   : > { %1726 = vrot.lane.b32.xlu2 %v4405_v37, %s3405_s16 }
 0x39d   : > { %1804 = vrot.lane.b32.xlu1 %v4407_v28, %s3407_s18  ;;  %1742 = vrot.lane.b32.xlu0 %v4407_v28, %s3406_s17 }
 0x39e   : > { %1740 = vrot.lane.b32.xlu2 %v4405_v37, %s3406_s17 }
 0x3a5   : > { %1818 = vrot.lane.b32.xlu1 %v4407_v28, %s3409_s20  ;;  %1756 = vrot.lane.b32.xlu0 %v4407_v28, %s3408_s19 }
 0x3a6   : > { %1754 = vrot.lane.b32.xlu2 %v4405_v37, %s3408_s19 }
 0x3ad   : > { %1860 = vperm.xlu1 %3292, %v4436_v5   ;;  %1774 = vrot.lane.b32.xlu0 %v4405_v37, %s3402_s11 }
 0x3ae   : > { %1769 = vperm.xlu2 %3287, %v4347_v2  }
 0x3b5   : > { %3294 = vset.pattern.permute.xlu1 %v5885_v57  ;;  %1788 = vrot.lane.b32.xlu0 %v4405_v37, %s3404_s15 }
 0x3b6   : > { %3288 = vset.pattern.permute.xlu2 %v5882_v41  ;;  %1876 = vperm.xlu1 %3294, %v4436_v5  }
 0x3b7   : > { %1783 = vperm.xlu2 %3288, %v4347_v2  }
 0x3bd   : > { %1802 = vrot.lane.b32.xlu0 %v4405_v37, %s3407_s18 }
 0x3be   : > { %3296 = vset.pattern.permute.xlu1 %v5886_v62 }
 0x3bf   : > { %3289 = vset.pattern.permute.xlu2 %v5886_v62  ;;  %1900 = vperm.xlu1 %3296, %v4436_v5  }
 0x3c0   : > { %1797 = vperm.xlu2 %3289, %v4347_v2  }
 0x3c5   : > { %1816 = vrot.lane.b32.xlu0 %v4405_v37, %s3409_s20 }
 0x3c7   : > { %3298 = vset.pattern.permute.xlu1 %v5896_v53 }
 0x3c8   : > { %3290 = vset.pattern.permute.xlu2 %v5888_v43  ;;  %1931 = vperm.xlu1 %3298, %v3126_v6  }
 0x3c9   : > { %1811 = vperm.xlu2 %3290, %v4347_v2  }
 0x3cd   : > { %1892 = vperm.xlu0 %3280, %v4436_v5  }
 0x3d0   : > { %3301 = vset.pattern.permute.xlu1 %v5894_v1 }
 0x3d1   : > { %3291 = vset.pattern.permute.xlu2 %v5892_v45  ;;  %1952 = vperm.xlu1 %3301, %v4466_v3  }
 0x3d2   : > { %1825 = vperm.xlu2 %3291, %v4347_v2   ;;  %v1736_v2 = vpop.permute.xlu1 %1735 }
 0x3d5   : > { %3300 = vset.pattern.permute.xlu0 %v5890_v29 }
 0x3d6   : > { %1946 = vperm.xlu0 %3300, %v4466_v3  }
 0x3d9   : > { %3303 = vset.pattern.permute.xlu1 %v5897_v42 }
 0x3da   : > { %3293 = vset.pattern.permute.xlu2 %v5894_v1  ;;  %1964 = vperm.xlu1 %3303, %v4466_v3   ;;  %v1750_v17 = vpop.permute.xlu1 %1749 }
 0x3db   : > { %1868 = vperm.xlu2 %3293, %v4436_v5  }
 0x3de   : > { %3305 = vset.pattern.permute.xlu0 %v5886_v62 }
 0x3df   : > { %1976 = vperm.xlu0 %3305, %v4466_v3  }
 0x3e2   : > { %3306 = vset.pattern.permute.xlu1 %v5888_v43  ;;  %v1764_v61 = vpop.permute.xlu1 %1763 }
 0x3e3   : > { %3295 = vset.pattern.permute.xlu2 %v5897_v42  ;;  %1982 = vperm.xlu1 %3306, %v4466_v3  }
 0x3e4   : > { %1884 = vperm.xlu2 %3295, %v4436_v5  }
 0x3e7   : > { %3310 = vset.pattern.permute.xlu0 %v5894_v1 }
 0x3e8   : > { %v1712_v63 = vpop.permute.xlu2 %1711  ;;  %2031 = vperm.xlu0 %3310, %v4487_v40  }
 0x3eb   : > { %3308 = vset.pattern.permute.xlu1 %v5896_v53 }
 0x3ec   : > { %3297 = vset.pattern.permute.xlu2 %v5888_v43  ;;  %2015 = vperm.xlu1 %3308, %v4487_v40  }
 0x3ed   : > { %1908 = vperm.xlu2 %3297, %v4436_v5  }
 0x3f0   : > { %v1727_v39 = vpop.permute.xlu2 %1726  ;;  %3315 = vset.pattern.permute.xlu0 %v5888_v43 }
 0x3f1   : > { %2071 = vperm.xlu0 %3315, %v4487_v40  }
 0x3f4   : > { %3311 = vset.pattern.permute.xlu1 %v5885_v57 }
 0x3f5   : > { %3299 = vset.pattern.permute.xlu2 %v5896_v53  ;;  %2039 = vperm.xlu1 %3311, %v4487_v40  }
 0x3f6   : > { %1940 = vperm.xlu2 %3299, %v4466_v3  }
 0x3f8   : > { %v1741_v34 = vpop.permute.xlu2 %1740 }
 0x3f9   : > { %3321 = vset.pattern.permute.xlu0 %v5897_v42 }
 0x3fd   : > { %3313 = vset.pattern.permute.xlu1 %v5882_v41 }
 0x3fe   : > { %3302 = vset.pattern.permute.xlu2 %v5885_v57  ;;  %2055 = vperm.xlu1 %3313, %v4487_v40  }
 0x3ff   : > { %1958 = vperm.xlu2 %3302, %v4466_v3   ;;  %v1714_v26 = vpop.permute.xlu0 %1713  ;;  %v1777_v8 = vpop.permute.xlu1 %1776 }
 0x400   : > { %v1755_v44 = vpop.permute.xlu2 %1754  ;;  %v1715_v60 = vsel %vm573_vm0, %v1712_v63, %v1714_v26  ;;  %v1716_v18 = vsel %vm573_vm0, %v1714_v26, %v1712_v63 }
 0x401   : > { %v1717_v38 = vmul.f32 %v1716_v18, %v3740_v27  ;;  %v1718_v11 = vmul.f32 %v1715_v60, %v3742_v35 }
 0x403   : > { %v1724_v55 = vmul.f32 %v1722_v58, %v1717_v38  ;;  %v1725_v24 = vmul.f32 %v1722_v58, %v1718_v11 }
 0x406   : > { %3316 = vset.pattern.permute.xlu1 %v5896_v53 }
 0x407   : > { %3304 = vset.pattern.permute.xlu2 %v5882_v41  ;;  %v1729_v0 = vpop.permute.xlu0 %1728  ;;  %2094 = vperm.xlu1 %3316, %v3129_v59   ;;  %v1791_v31 = vpop.permute.xlu1 %1790 }
 0x408   : > { %v1730_v21 = vsel %vm595_vm1, %v1727_v39, %v1729_v0  ;;  %v1731_v14 = vsel %vm595_vm1, %v1729_v0, %v1727_v39  ;;  %1970 = vperm.xlu2 %3304, %v4466_v3   ;;  %v1770_v25 = vpop.permute.xlu2 %1769 }
 0x409   : > { %v1732_v56 = vmul.f32 %v1731_v14, %v3766_v46  ;;  %v1733_v10 = vmul.f32 %v1730_v21, %v3768_v47 }
 0x40b   : > { %v1738_v20 = vmul.f32 %v1736_v2, %v1732_v56  ;;  %v1739_v23 = vmul.f32 %v1736_v2, %v1733_v10 }
 0x40d   : > { %v1830_v49 = vadd.f32 %v1738_v20, %v1724_v55  ;;  %v1831_v9 = vadd.f32 %v1739_v23, %v1725_v24 }
 0x40f   : > { %v1743_v13 = vpop.permute.xlu0 %1742  ;;  %3322 = vset.pattern.permute.xlu1 %v5882_v41  ;;  %v1805_v58 = vpop.permute.xlu1 %1804 }
 0x410   : > { %3307 = vset.pattern.permute.xlu2 %v5892_v45  ;;  %v1744_v33 = vsel %vm617_vm2, %v1741_v34, %v1743_v13  ;;  %v1745_v15 = vsel %vm617_vm2, %v1743_v13, %v1741_v34 }
 0x411   : > { %1988 = vperm.xlu2 %3307, %v4466_v3   ;;  %v1784_v32 = vpop.permute.xlu2 %1783  ;;  %v1746_v16 = vmul.f32 %v1745_v15, %v3772_v48  ;;  %v1747_v36 = vmul.f32 %v1744_v33, %v3774_v50 }
 0x413   : > { %v1752_v39 = vmul.f32 %v1750_v17, %v1746_v16  ;;  %v1753_v34 = vmul.f32 %v1750_v17, %v1747_v36  ;;  %v5985_v16 = vld [vmem:[#allocation18_spill] sm:$0xff]  ;;  %v5986_v36 = vld [vmem:[#allocation19_spill] sm:$0xff] }
 0x417   : > { %v1757_v7 = vpop.permute.xlu0 %1756 }
 0x418   : > { %v1758_v30 = vsel %vm639_vm3, %v1755_v44, %v1757_v7  ;;  %v1759_v6 = vsel %vm639_vm3, %v1757_v7, %v1755_v44  ;;  %v1819_v44 = vpop.permute.xlu1 %1818 }
 0x419   : > { %v1760_v3 = vmul.f32 %v1759_v6, %v3776_v51  ;;  %v1761_v2 = vmul.f32 %v1758_v30, %v3778_v52  ;;  %3309 = vset.pattern.permute.xlu2 %v5890_v29  ;;  %v1772_v30 = vmul.f32 %v1770_v25, %v4405_v37  ;;  %v1773_v6 = vmul.f32 %v1770_v25, %v4407_v28  ;;  %v5989_v25 = vld [vmem:[#allocation32_spill] sm:$0xff] }
 0x41a   : > { %2023 = vperm.xlu2 %3309, %v4487_v40   ;;  %v1798_v63 = vpop.permute.xlu2 %1797 }
 0x41b   : > { %v1766_v26 = vmul.f32 %v1764_v61, %v1760_v3  ;;  %v1767_v60 = vmul.f32 %v1764_v61, %v1761_v2 }
 0x41d   : > { %v1832_v18 = vadd.f32 %v1766_v26, %v1752_v39  ;;  %v1833_v59 = vadd.f32 %v1767_v60, %v1753_v34 }
 0x41f   : > { %v1838_v38 = vadd.f32 %v1832_v18, %v1830_v49  ;;  %v1839_v11 = vadd.f32 %v1833_v59, %v1831_v9  ;;  %v1775_v0 = vpop.permute.xlu0 %1774 }
 0x420   : > { %v1778_v56 = vsel %vm667_vm4, %v1775_v0, %v1777_v8  ;;  %v1779_v17 = vsel %vm667_vm4, %v1777_v8, %v1775_v0  ;;  %v4547_v10 = vpop.permute.xlu1 %1860 }
 0x421   : > { %5984 = vst [vmem:[#allocation25_spill] sm:$0xff] %v4547_v10  ;;  %v1780_v20 = vmul.f32 %v1778_v56, %v3789_v54  ;;  %v1781_v23 = vmul.f32 %v1779_v17, %v3808_v19 }
 0x422   : > { %3312 = vset.pattern.permute.xlu2 %v5897_v42 }
 0x423   : > { %2047 = vperm.xlu2 %3312, %v4487_v40   ;;  %v1812_v21 = vpop.permute.xlu2 %1811  ;;  %v1786_v15 = vmul.f32 %v1784_v32, %v1780_v20 }
 0x425   : > { %v1834_v26 = vadd.f32 %v1786_v15, %v1772_v30 }
 0x427   : > { %v1789_v14 = vpop.permute.xlu0 %1788 }
 0x428   : > { %v1792_v61 = vsel %vm689_vm6, %v1789_v14, %v1791_v31  ;;  %v1793_v55 = vsel %vm689_vm6, %v1791_v31, %v1789_v14  ;;  %v1787_v31 = vmul.f32 %v1784_v32, %v1781_v23  ;;  %v4568_v18 = vpop.permute.xlu1 %1876 }
 0x429   : > { %v1794_v49 = vmul.f32 %v1792_v61, %v3855_v12  ;;  %v1795_v8 = vmul.f32 %v1793_v55, %v3857_v22  ;;  %5987 = vst [vmem:[#allocation26_spill] sm:$0xff] %v4568_v18 }
 0x42a   : > { %v1835_v60 = vadd.f32 %v1787_v31, %v1773_v6 }
 0x42b   : > { %3314 = vset.pattern.permute.xlu2 %v5886_v62  ;;  %v1800_v3 = vmul.f32 %v1798_v63, %v1794_v49  ;;  %v1801_v2 = vmul.f32 %v1798_v63, %v1795_v8 }
 0x42c   : > { %2063 = vperm.xlu2 %3314, %v4487_v40   ;;  %v1826_v24 = vpop.permute.xlu2 %1825 }
 0x42f   : > { %v1803_v9 = vpop.permute.xlu0 %1802 }
 0x430   : > { %v1806_v13 = vsel %vm711_vm5, %v1803_v9, %v1805_v58  ;;  %v1807_v33 = vsel %vm711_vm5, %v1805_v58, %v1803_v9 }
 0x431   : > { %v1808_v40 = vmul.f32 %v1806_v13, %v5985_v16  ;;  %v1809_v7 = vmul.f32 %v1807_v33, %v5986_v36  ;;  %v1901_v13 = vpop.permute.xlu1 %1900 }
 0x433   : > { %v1814_v39 = vmul.f32 %v1812_v21, %v1808_v40  ;;  %v1815_v34 = vmul.f32 %v1812_v21, %v1809_v7  ;;  %v5990_v21 = vld [vmem:[#allocation33_spill] sm:$0xff] }
 0x434   : > { %3317 = vset.pattern.permute.xlu2 %v5896_v53 }
 0x435   : > { %v1836_v58 = vadd.f32 %v1814_v39, %v1800_v3  ;;  %v1837_v32 = vadd.f32 %v1815_v34, %v1801_v2  ;;  %v4570_v59 = vpop.permute.xlu2 %1868 }
 0x436   : > { %5988 = vst [vmem:[#allocation27_spill] sm:$0xff] %v4570_v59 }
 0x437   : > { %v1840_v0 = vadd.f32 %v1836_v58, %v1834_v26  ;;  %v1841_v14 = vadd.f32 %v1837_v32, %v1835_v60  ;;  %v1817_v56 = vpop.permute.xlu0 %1816 }
 0x438   : > { %v1820_v37 = vsel %vm733_vm7, %v1817_v56, %v1819_v44  ;;  %v1821_v28 = vsel %vm733_vm7, %v1819_v44, %v1817_v56 }
 0x439   : > { %v1822_v63 = vmul.f32 %v1820_v37, %v5989_v25  ;;  %v1823_v17 = vmul.f32 %v1821_v28, %v5990_v21  ;;  %v1842_v61 = vadd.f32 %v1840_v0, %v1838_v38  ;;  %v1843_v55 = vadd.f32 %v1841_v14, %v1839_v11 }
 0x43a   : > { %v4590_v14 = vpop.permute.xlu1 %1931 }
 0x43b   : > { %v1828_v20 = vmul.f32 %v1826_v24, %v1822_v63  ;;  %v1829_v23 = vmul.f32 %v1826_v24, %v1823_v17  ;;  %5993 = vst [vmem:[#allocation4_spill] sm:$0xff] %v4590_v14 }
 0x43d   : > { %v4578_v49 = vadd.f32 %v1842_v61, %v1828_v20  ;;  %v4580_v8 = vadd.f32 %v1843_v55, %v1829_v23 }
 0x43e   : > { %v1885_v9 = vpop.permute.xlu2 %1884 }
 0x43f   : > { %5991 = vst [vmem:[#allocation30_spill] sm:$0xff] %v4578_v49  ;;  %v1887_v33 = vperm.slane %v4578_v49, 4  ;;  %v1888_v15 = vperm.slane %v4580_v8, 4  ;;  %v1893_v31 = vpop.permute.xlu0 %1892  ;;  %v1895_v44 = vperm.slane %v4578_v49, 5  ;;  %v1896_v40 = vperm.slane %v4580_v8, 5 }
 0x440   : > { %5992 = vst [vmem:[#allocation31_spill] sm:$0xff] %v4580_v8  ;;  %v1903_v3 = vperm.slane %v4578_v49, 6  ;;  %v1904_v2 = vperm.slane %v4580_v8, 6  ;;  %v1911_v39 = vperm.slane %v4578_v49, 7  ;;  %v1912_v34 = vperm.slane %v4580_v8, 7 }
 0x441   : > { %v1889_v7 = vmul.f32 %v1887_v33, %v1885_v9  ;;  %v1890_v38 = vmul.f32 %v1888_v15, %v1885_v9  ;;  %v1897_v11 = vmul.f32 %v1895_v44, %v1893_v31  ;;  %v1898_v30 = vmul.f32 %v1896_v40, %v1893_v31  ;;  %v5996_v31 = vld [vmem:[#allocation73_spill] sm:$0xff]  ;;  %v5997_v44 = vld [vmem:[#allocation74_spill] sm:$0xff] }
 0x442   : > { %v1905_v60 = vmul.f32 %v1903_v3, %v1901_v13  ;;  %v1906_v58 = vmul.f32 %v1904_v2, %v1901_v13  ;;  %v6000_v3 = vld [vmem:[#allocation69_spill] sm:$0xff]  ;;  %v6001_v2 = vld [vmem:[#allocation70_spill] sm:$0xff] }
 0x443   : > { %v1919_v24 = vadd.f32 %v1897_v11, %v1889_v7  ;;  %v1920_v6 = vadd.f32 %v1898_v30, %v1890_v38  ;;  %v1953_v61 = vpop.permute.xlu1 %1952  ;;  %v5998_v7 = vld [vmem:[#allocation7_spill] sm:$0xff]  ;;  %v5999_v11 = vld [vmem:[#allocation6_spill] sm:$0xff] }
 0x447   : > { %v1909_v26 = vpop.permute.xlu2 %1908 }
 0x448   : > { %v1913_v32 = vmul.f32 %v1911_v39, %v1909_v26  ;;  %v1914_v0 = vmul.f32 %v1912_v34, %v1909_v26  ;;  %v1947_v9 = vpop.permute.xlu0 %1946  ;;  %v6002_v34 = vld [vmem:[#allocation79_spill] sm:$0xff] }
 0x44a   : > { %v1921_v56 = vadd.f32 %v1913_v32, %v1905_v60  ;;  %v1922_v37 = vadd.f32 %v1914_v0, %v1906_v58  ;;  %v6003_v60 = vld [vmem:[#allocation80_spill] sm:$0xff]  ;;  %v6004_v32 = vld [vmem:[#allocation77_spill] sm:$0xff] }
 0x44b   : > { %v1955_v0 = vmul.f32 %v1953_v61, %v6004_v32 }
 0x44c   : > { %v4592_v28 = vadd.f32 %v1921_v56, %v1919_v24  ;;  %v4594_v63 = vadd.f32 %v1922_v37, %v1920_v6  ;;  %v1965_v20 = vpop.permute.xlu1 %1964  ;;  %v6005_v56 = vld [vmem:[#allocation78_spill] sm:$0xff] }
 0x44d   : > { %v1967_v38 = vmul.f32 %v1965_v20, %v5998_v7  ;;  %v1968_v30 = vmul.f32 %v1965_v20, %v5999_v11  ;;  %v1956_v37 = vmul.f32 %v1953_v61, %v6005_v56  ;;  %v6009_v11 = vld [vmem:[#allocation76_spill] sm:$0xff] }
 0x44e   : > { %5994 = vst [vmem:[#allocation5_spill] sm:$0xff] %v4592_v28 }
 0x44f   : > { %5995 = vst [vmem:[#allocation22_spill] sm:$0xff] %v4594_v63  ;;  %v6008_v63 = vld [vmem:[#allocation75_spill] sm:$0xff] }
 0x450   : > { %v1941_v17 = vpop.permute.xlu2 %1940 }
 0x451   : > { %v1977_v24 = vpop.permute.xlu0 %1976 }
 0x452   : > { %v1979_v20 = vmul.f32 %v1977_v24, %v6008_v63  ;;  %v1980_v28 = vmul.f32 %v1977_v24, %v6009_v11  ;;  %v6012_v63 = vld [vmem:[#allocation84_spill] sm:$0xff]  ;;  %v6013_v24 = vld [vmem:[#allocation85_spill] sm:$0xff] }
 0x455   : > { %v1983_v33 = vpop.permute.xlu1 %1982 }
 0x456   : > { %v1985_v6 = vmul.f32 %v1983_v33, %v6000_v3  ;;  %v1986_v39 = vmul.f32 %v1983_v33, %v6001_v2  ;;  %v6010_v33 = vld [vmem:[#allocation71_spill] sm:$0xff] }
 0x457   : > { %v1949_v2 = vmul.f32 %v1947_v9, %v6010_v33 }
 0x459   : > { %v1959_v55 = vpop.permute.xlu2 %1958 }
 0x45a   : > { %v1961_v26 = vmul.f32 %v1959_v55, %v6002_v34  ;;  %v1962_v58 = vmul.f32 %v1959_v55, %v6003_v60  ;;  %v6011_v34 = vld [vmem:[#allocation72_spill] sm:$0xff]  ;;  %v1999_v55 = vadd.f32 %v1985_v6, %v1979_v20  ;;  %v2000_v60 = vadd.f32 %v1986_v39, %v1980_v28 }
 0x45b   : > { %v1950_v18 = vmul.f32 %v1947_v9, %v6011_v34 }
 0x45c   : > { %v1995_v32 = vadd.f32 %v1961_v26, %v1955_v0  ;;  %v1996_v59 = vadd.f32 %v1962_v58, %v1956_v37 }
 0x45e   : > { %v2016_v7 = vpop.permute.xlu1 %2015 }
 0x462   : > { %v1971_v23 = vpop.permute.xlu2 %1970 }
 0x463   : > { %v1973_v13 = vmul.f32 %v1971_v23, %v5996_v31  ;;  %v1974_v40 = vmul.f32 %v1971_v23, %v5997_v44  ;;  %v6006_v31 = vld [vmem:[#allocation81_spill] sm:$0xff]  ;;  %v6007_v23 = vld [vmem:[#allocation82_spill] sm:$0xff] }
 0x464   : > { %v1943_v14 = vmul.f32 %v1941_v17, %v6006_v31  ;;  %v1944_v44 = vmul.f32 %v1941_v17, %v6007_v23 }
 0x465   : > { %v1997_v3 = vadd.f32 %v1973_v13, %v1967_v38  ;;  %v1998_v10 = vadd.f32 %v1974_v40, %v1968_v30  ;;  %v2032_v30 = vpop.permute.xlu0 %2031 }
 0x466   : > { %v1993_v61 = vadd.f32 %v1949_v2, %v1943_v14  ;;  %v1994_v56 = vadd.f32 %v1950_v18, %v1944_v44 }
 0x467   : > { %v2003_v31 = vadd.f32 %v1999_v55, %v1997_v3  ;;  %v2004_v8 = vadd.f32 %v2000_v60, %v1998_v10  ;;  %v2040_v33 = vpop.permute.xlu1 %2039 }
 0x468   : > { %v2001_v23 = vadd.f32 %v1995_v32, %v1993_v61  ;;  %v2002_v49 = vadd.f32 %v1996_v59, %v1994_v56 }
 0x46a   : > { %v2005_v40 = vadd.f32 %v2003_v31, %v2001_v23  ;;  %v2006_v38 = vadd.f32 %v2004_v8, %v2002_v49 }
 0x46b   : > { %v1989_v15 = vpop.permute.xlu2 %1988 }
 0x46c   : > { %v1991_v21 = vmul.f32 %v1989_v15, %v6012_v63  ;;  %v1992_v13 = vmul.f32 %v1989_v15, %v6013_v24 }
 0x46d   : > { %v2072_v49 = vpop.permute.xlu0 %2071 }
 0x46e   : > { %v2007_v9 = vadd.f32 %v2005_v40, %v1991_v21  ;;  %v2008_v6 = vadd.f32 %v2006_v38, %v1992_v13 }
 0x470   : > { %v2018_v39 = vperm.slane %v2007_v9, 0  ;;  %v2019_v26 = vperm.slane %v2008_v6, 0  ;;  %v2034_v14 = vperm.slane %v2007_v9, 2  ;;  %v2035_v18 = vperm.slane %v2008_v6, 2  ;;  %v2056_v8 = vpop.permute.xlu1 %2055 }
 0x471   : > { %v2042_v44 = vperm.slane %v2007_v9, 3  ;;  %v2043_v10 = vperm.slane %v2008_v6, 3  ;;  %v2074_v3 = vperm.slane %v2007_v9, 7  ;;  %v2075_v2 = vperm.slane %v2008_v6, 7 }
 0x472   : > { %v2026_v59 = vperm.slane %v2007_v9, 1  ;;  %v2027_v60 = vperm.slane %v2008_v6, 1  ;;  %v2058_v58 = vperm.slane %v2007_v9, 5  ;;  %v2059_v32 = vperm.slane %v2008_v6, 5 }
 0x473   : > { %v2020_v15 = vmul.f32 %v2018_v39, %v2016_v7  ;;  %v2021_v31 = vmul.f32 %v2019_v26, %v2016_v7  ;;  %v2050_v56 = vperm.slane %v2007_v9, 4  ;;  %v2051_v37 = vperm.slane %v2008_v6, 4 }
 0x474   : > { %v2024_v17 = vpop.permute.xlu2 %2023  ;;  %v2036_v23 = vmul.f32 %v2034_v14, %v2032_v30  ;;  %v2037_v20 = vmul.f32 %v2035_v18, %v2032_v30  ;;  %v2044_v55 = vmul.f32 %v2042_v44, %v2040_v33  ;;  %v2045_v61 = vmul.f32 %v2043_v10, %v2040_v33 }
 0x475   : > { %v2028_v0 = vmul.f32 %v2026_v59, %v2024_v17  ;;  %v2029_v21 = vmul.f32 %v2027_v60, %v2024_v17  ;;  %v2066_v38 = vperm.slane %v2007_v9, 6  ;;  %v2067_v24 = vperm.slane %v2008_v6, 6 }
 0x476   : > { %v2076_v63 = vmul.f32 %v2074_v3, %v2072_v49  ;;  %v2077_v34 = vmul.f32 %v2075_v2, %v2072_v49  ;;  %v2060_v11 = vmul.f32 %v2058_v58, %v2056_v8  ;;  %v2061_v25 = vmul.f32 %v2059_v32, %v2056_v8 }
 0x477   : > { %v2078_v7 = vadd.f32 %v2028_v0, %v2020_v15  ;;  %v2079_v26 = vadd.f32 %v2029_v21, %v2021_v31  ;;  %v2080_v17 = vadd.f32 %v2044_v55, %v2036_v23  ;;  %v2081_v60 = vadd.f32 %v2045_v61, %v2037_v20  ;;  %v3384_v31 = vld [vmem:[%s5647_s7 + $0x18] sm:$0xff]  ;;  %v4701_v0 = vld [vmem:[%s5647_s7 + $0x40] sm:$0xff] }
 0x479   : > { %v2086_v33 = vadd.f32 %v2080_v17, %v2078_v7  ;;  %v2087_v44 = vadd.f32 %v2081_v60, %v2079_v26  ;;  %v2095_v6 = vpop.permute.xlu1 %2094  ;;  %v6015_v7 = vld [vmem:[#allocation60_spill] sm:$0xff]  ;;  %v6016_v26 = vld [vmem:[#allocation54_spill] sm:$0xff] }
 0x47d   : > { %v2048_v28 = vpop.permute.xlu2 %2047 }
 0x47e   : > { %v2052_v13 = vmul.f32 %v2050_v56, %v2048_v28  ;;  %v2053_v40 = vmul.f32 %v2051_v37, %v2048_v28 }
 0x480   : > { %v2082_v12 = vadd.f32 %v2060_v11, %v2052_v13  ;;  %v2083_v14 = vadd.f32 %v2061_v25, %v2053_v40  ;;  %v4668_v25 = vld [vmem:[%s5646_s6 + $0x40] sm:$0xff] }
 0x481   : > { %v3135_v11 = vld [vmem:[%s5648_s8 + $0x40] sm:$0xff] }
 0x486   : > { %v2064_v39 = vpop.permute.xlu2 %2063 }
 0x487   : > { %v2068_v22 = vmul.f32 %v2066_v38, %v2064_v39  ;;  %v2069_v59 = vmul.f32 %v2067_v24, %v2064_v39  ;;  %v3132_v24 = vld [vmem:[%s5648_s8 + $0x38] sm:$0xff] }
 0x489   : > { %v2084_v30 = vadd.f32 %v2076_v63, %v2068_v22  ;;  %v2085_v18 = vadd.f32 %v2077_v34, %v2069_v59  ;;  %v3131_v22 = vld [vmem:[%s5647_s7 + $0x38] sm:$0xff]  ;;  %v893_v59 = vsel %vm617_vm2, %v6016_v26, %v6015_v7 }
 0x48b   : > { %v2088_v28 = vadd.f32 %v2084_v30, %v2082_v12  ;;  %v2089_v9 = vadd.f32 %v2085_v18, %v2083_v14  ;;  %v3130_v12 = vld [vmem:[%s5646_s6 + $0x38] sm:$0xff]  ;;  %v892_v14 = vsel %vm617_vm2, %v6015_v7, %v6016_v26  ;;  %v6027_v26 = vld [vmem:[#allocation66_spill] sm:$0xff] }
 0x48d   : > { %v2090_v10 = vadd.f32 %v2088_v28, %v2086_v33  ;;  %v2091_v3 = vadd.f32 %v2089_v9, %v2087_v44  ;;  %v894_v44 = vmul.f32 %v893_v59, %v3772_v48  ;;  %v6017_v28 = vld [vmem:[#allocation64_spill] sm:$0xff]  ;;  %v6018_v9 = vld [vmem:[#allocation57_spill] sm:$0xff] }
 0x48e   : > { %v6028_v59 = vld [vmem:[#allocation65_spill] sm:$0xff] }
 0x48f   : > { %v2097_v2 = vadd.f32 %v2095_v6, %v2090_v10  ;;  %v2098_v58 = vadd.f32 %v2095_v6, %v2091_v3  ;;  %v907_v6 = vsel %vm639_vm3, %v6018_v9, %v6017_v28  ;;  %v6019_v10 = vld [vmem:[#allocation53_spill] sm:$0xff]  ;;  %v6020_v3 = vld [vmem:[#allocation55_spill] sm:$0xff] }
 0x491   : > { %v4614_v32 = vmax.f32 %v2097_v2, 0.0  ;;  %v4616_v15 = vmax.f32 %v2098_v58, 0.0  ;;  %v863_v2 = vsel %vm573_vm0, %v6020_v3, %v6019_v10  ;;  %v864_v58 = vsel %vm573_vm0, %v6019_v10, %v6020_v3  ;;  %v6031_v3 = vld [vmem:[#allocation63_spill] sm:$0xff] }
 0x493   : > { %6014 = vst [vmem:[#allocation23_spill] sm:$0xff] %v4616_v15  ;;  %2105 = vrot.lane.b32.xlu1 %v4616_v15, %s3403_s12  ;;  %2118 = vrot.lane.b32.xlu0 %v4614_v32, %s3405_s16 }
 0x494   : > { %2103 = vrot.lane.b32.xlu2 %v4614_v32, %s3403_s12 }
 0x49b   : > { %2120 = vrot.lane.b32.xlu1 %v4616_v15, %s3405_s16  ;;  %2132 = vrot.lane.b32.xlu0 %v4614_v32, %s3406_s17 }
 0x49c   : > { %2113 = vperm.xlu2 %3317, %v3130_v12  }
 0x4a3   : > { %2134 = vrot.lane.b32.xlu1 %v4616_v15, %s3406_s17  ;;  %2146 = vrot.lane.b32.xlu0 %v4614_v32, %s3408_s19 }
 0x4a4   : > { %3318 = vset.pattern.permute.xlu2 %v5890_v29 }
 0x4a5   : > { %2127 = vperm.xlu2 %3318, %v3130_v12  }
 0x4ab   : > { %2148 = vrot.lane.b32.xlu1 %v4616_v15, %s3408_s19  ;;  %2161 = vperm.xlu0 %3321, %v3130_v12  }
 0x4ad   : > { %3319 = vset.pattern.permute.xlu2 %v5894_v1 }
 0x4ae   : > { %2141 = vperm.xlu2 %3319, %v3130_v12  }
 0x4b3   : > { %2166 = vrot.lane.b32.xlu1 %v4614_v32, %s3402_s11  ;;  %2182 = vrot.lane.b32.xlu0 %v4616_v15, %s3404_s15 }
 0x4b4   : > { %3327 = vset.pattern.permute.xlu0 %v5890_v29 }
 0x4b6   : > { %3320 = vset.pattern.permute.xlu2 %v5885_v57 }
 0x4b7   : > { %2155 = vperm.xlu2 %3320, %v3130_v12  }
 0x4bb   : > { %2175 = vperm.xlu1 %3322, %v3130_v12   ;;  %2196 = vrot.lane.b32.xlu0 %v4616_v15, %s3407_s18 }
 0x4bf   : > { %2168 = vrot.lane.b32.xlu2 %v4616_v15, %s3402_s11 }
 0x4c0   : > { %3326 = vset.pattern.permute.xlu2 %v5896_v53 }
 0x4c3   : > { %3323 = vset.pattern.permute.xlu1 %v5886_v62  ;;  %2210 = vrot.lane.b32.xlu0 %v4616_v15, %s3409_s20 }
 0x4c4   : > { %2189 = vperm.xlu1 %3323, %v3130_v12  }
 0x4c7   : > { %2180 = vrot.lane.b32.xlu2 %v4614_v32, %s3404_s15 }
 0x4cb   : > { %2252 = vperm.xlu0 %3327, %v3131_v22  }
 0x4cc   : > { %3324 = vset.pattern.permute.xlu1 %v5888_v43 }
 0x4cd   : > { %2203 = vperm.xlu1 %3324, %v3130_v12  }
 0x4cf   : > { %2194 = vrot.lane.b32.xlu2 %v4614_v32, %s3407_s18 }
 0x4d3   : > { %3332 = vset.pattern.permute.xlu0 %v5886_v62 }
 0x4d4   : > { %2292 = vperm.xlu0 %3332, %v3131_v22  }
 0x4d5   : > { %3325 = vset.pattern.permute.xlu1 %v5892_v45 }
 0x4d6   : > { %2217 = vperm.xlu1 %3325, %v3130_v12  }
 0x4d7   : > { %2208 = vrot.lane.b32.xlu2 %v4614_v32, %s3409_s20 }
 0x4dc   : > { %3337 = vset.pattern.permute.xlu0 %v5894_v1 }
 0x4dd   : > { %2346 = vperm.xlu0 %3337, %v4668_v25  }
 0x4de   : > { %3328 = vset.pattern.permute.xlu1 %v5894_v1 }
 0x4df   : > { %2244 = vperm.xlu2 %3326, %v3131_v22   ;;  %2260 = vperm.xlu1 %3328, %v3131_v22  }
 0x4e5   : > { %3342 = vset.pattern.permute.xlu0 %v5888_v43 }
 0x4e6   : > { %2376 = vperm.xlu0 %3342, %v4668_v25  }
 0x4e7   : > { %3329 = vset.pattern.permute.xlu2 %v5885_v57  ;;  %3330 = vset.pattern.permute.xlu1 %v5897_v42 }
 0x4e8   : > { %2268 = vperm.xlu2 %3329, %v3131_v22   ;;  %2276 = vperm.xlu1 %3330, %v3131_v22  }
 0x4ee   : > { %v2104_v63 = vpop.permute.xlu2 %2103  ;;  %3343 = vset.pattern.permute.xlu0 %v5896_v53 }
 0x4ef   : > { %1852 = vperm.xlu0 %3343, %v4436_v5  }
 0x4f0   : > { %3331 = vset.pattern.permute.xlu2 %v5882_v41  ;;  %3333 = vset.pattern.permute.xlu1 %v5888_v43 }
 0x4f1   : > { %2284 = vperm.xlu2 %3331, %v3131_v22   ;;  %2300 = vperm.xlu1 %3333, %v3131_v22  }
 0x4f6   : > { %v2114_v34 = vpop.permute.xlu2 %2113 }
 0x4f7   : > { %2488 = vperm.xlu0 %3343, %v3135_v11   ;;  %v906_v11 = vsel %vm639_vm3, %v6017_v28, %v6018_v9  ;;  %v955_v28 = vsel %vm711_vm5, %v6027_v26, %v6028_v59  ;;  %v6030_v9 = vld [vmem:[#allocation45_spill] sm:$0xff] }
 0x4f9   : > { %3334 = vset.pattern.permute.xlu2 %v5896_v53  ;;  %3335 = vset.pattern.permute.xlu1 %v5896_v53 }
 0x4fa   : > { %2323 = vperm.xlu2 %3334, %v3132_v24   ;;  %2334 = vperm.xlu1 %3335, %v4668_v25   ;;  %v6022_v24 = vld [vmem:[#allocation56_spill] sm:$0xff] }
 0x4ff   : > { %3352 = vset.pattern.permute.xlu0 %v5885_v57  ;;  %v2128_v5 = vpop.permute.xlu2 %2127 }
 0x500   : > { %1482 = vperm.xlu0 %3352, %v3384_v31   ;;  %v908_v31 = vmul.f32 %v907_v6, %v3776_v51 }
 0x502   : > { %3336 = vset.pattern.permute.xlu2 %v5890_v29  ;;  %3338 = vset.pattern.permute.xlu1 %v5885_v57  ;;  %v914_v6 = vmul.f32 %v6030_v9, %v908_v31 }
 0x503   : > { %2340 = vperm.xlu2 %3336, %v4668_v25   ;;  %2352 = vperm.xlu1 %3338, %v4668_v25  }
 0x505   : > { %v2106_v49 = vpop.permute.xlu1 %2105  ;;  %v2119_v8 = vpop.permute.xlu0 %2118 }
 0x506   : > { %v2107_v21 = vsel %vm573_vm0, %v2104_v63, %v2106_v49  ;;  %v2108_v56 = vsel %vm573_vm0, %v2106_v49, %v2104_v63  ;;  %v895_v63 = vmul.f32 %v892_v14, %v3774_v50 }
 0x507   : > { %v2109_v37 = vmul.f32 %v2108_v56, %v3740_v27  ;;  %v2110_v23 = vmul.f32 %v2107_v21, %v3742_v35  ;;  %v865_v21 = vmul.f32 %v864_v58, %v3740_v27  ;;  %v866_v56 = vmul.f32 %v863_v2, %v3742_v35  ;;  %v6032_v2 = vld [vmem:[#allocation62_spill] sm:$0xff] }
 0x508   : > { %v4709_v20 = vpop.permute.xlu2 %2141  ;;  %2433 = vperm.xlu0 %3352, %v4701_v0   ;;  %v941_v58 = vsel %vm689_vm6, %v6031_v3, %v6032_v2 }
 0x509   : > { %v2116_v55 = vmul.f32 %v2114_v34, %v2109_v37  ;;  %v2117_v61 = vmul.f32 %v2114_v34, %v2110_v23  ;;  %v6021_v34 = vld [vmem:[#allocation58_spill] sm:$0xff]  ;;  %v6023_v23 = vld [vmem:[#allocation37_spill] sm:$0xff] }
 0x50a   : > { %v878_v37 = vsel %vm595_vm1, %v6021_v34, %v6022_v24 }
 0x50b   : > { %3339 = vset.pattern.permute.xlu2 %v5897_v42  ;;  %3340 = vset.pattern.permute.xlu1 %v5882_v41  ;;  %v881_v10 = vmul.f32 %v878_v37, %v3768_v47  ;;  %v6033_v37 = vld [vmem:[#allocation41_spill] sm:$0xff] }
 0x50c   : > { %2358 = vperm.xlu2 %3339, %v4668_v25   ;;  %2364 = vperm.xlu1 %3340, %v4668_v25  }
 0x50d   : > { %v2121_v13 = vpop.permute.xlu1 %2120  ;;  %v2133_v40 = vpop.permute.xlu0 %2132 }
 0x50e   : > { %v2122_v38 = vsel %vm595_vm1, %v2119_v8, %v2121_v13  ;;  %v2123_v39 = vsel %vm595_vm1, %v2121_v13, %v2119_v8  ;;  %v909_v13 = vmul.f32 %v906_v11, %v3778_v52 }
 0x50f   : > { %v2124_v17 = vmul.f32 %v2123_v39, %v3766_v46  ;;  %v2125_v60 = vmul.f32 %v2122_v38, %v3768_v47  ;;  %v6025_v39 = vld [vmem:[#allocation61_spill] sm:$0xff] }
 0x510   : > { %v915_v31 = vmul.f32 %v6030_v9, %v909_v13  ;;  %v6038_v9 = vld [vmem:[#allocation42_spill] sm:$0xff] }
 0x511   : > { %v2130_v30 = vmul.f32 %v2128_v5, %v2124_v17  ;;  %v2131_v18 = vmul.f32 %v2128_v5, %v2125_v60  ;;  %v4730_v33 = vpop.permute.xlu2 %2155  ;;  %v879_v5 = vsel %vm595_vm1, %v6022_v24, %v6021_v34  ;;  %v954_v17 = vsel %vm711_vm5, %v6028_v59, %v6027_v26  ;;  %v6029_v60 = vld [vmem:[#allocation43_spill] sm:$0xff]  ;;  %v6034_v26 = vld [vmem:[#allocation28_spill] sm:$0xff] }
 0x512   : > { %v880_v38 = vmul.f32 %v879_v5, %v3766_v46  ;;  %v900_v14 = vmul.f32 %v6029_v60, %v894_v44  ;;  %v940_v44 = vsel %vm689_vm6, %v6032_v2, %v6031_v3  ;;  %v956_v34 = vmul.f32 %v954_v17, %v5985_v16  ;;  %v6036_v3 = vld [vmem:[#allocation83_spill] sm:$0xff] }
 0x513   : > { %v4745_v12 = vadd.f32 %v2130_v30, %v2116_v55  ;;  %v4747_v22 = vadd.f32 %v2131_v18, %v2117_v61  ;;  %v6024_v55 = vld [vmem:[#allocation38_spill] sm:$0xff]  ;;  %v901_v30 = vmul.f32 %v6029_v60, %v895_v63  ;;  %v942_v59 = vmul.f32 %v940_v44, %v6034_v26  ;;  %v6035_v60 = vld [vmem:[#allocation29_spill] sm:$0xff] }
 0x514   : > { %3341 = vset.pattern.permute.xlu2 %v5886_v62  ;;  %3344 = vset.pattern.permute.xlu1 %v5892_v45  ;;  %v4771_v61 = vmul.f32 %v6024_v55, %v6023_v23  ;;  %v886_v23 = vmul.f32 %v6033_v37, %v880_v38  ;;  %v872_v17 = vmul.f32 %v6036_v3, %v865_v21 }
 0x515   : > { %2370 = vperm.xlu2 %3341, %v4668_v25   ;;  %v2135_v49 = vpop.permute.xlu1 %2134  ;;  %2382 = vperm.xlu1 %3344, %v4668_v25   ;;  %v2147_v8 = vpop.permute.xlu0 %2146  ;;  %v6026_v25 = vld [vmem:[#allocation59_spill] sm:$0xff]  ;;  %v873_v2 = vmul.f32 %v6036_v3, %v866_v56  ;;  %v887_v45 = vmul.f32 %v6033_v37, %v881_v10  ;;  %v962_v44 = vmul.f32 %v6038_v9, %v956_v34 }
 0x516   : > { %v926_v7 = vsel %vm667_vm4, %v6026_v25, %v6025_v39  ;;  %v927_v18 = vsel %vm667_vm4, %v6025_v39, %v6026_v25  ;;  %v2136_v24 = vsel %vm617_vm2, %v2133_v40, %v2135_v49  ;;  %v2137_v5 = vsel %vm617_vm2, %v2135_v49, %v2133_v40 }
 0x517   : > { %v928_v11 = vmul.f32 %v926_v7, %v3789_v54  ;;  %v929_v39 = vmul.f32 %v927_v18, %v3808_v19  ;;  %v957_v25 = vmul.f32 %v955_v28, %v5986_v36  ;;  %v943_v7 = vmul.f32 %v941_v58, %v6035_v60  ;;  %v6037_v18 = vld [vmem:[#allocation39_spill] sm:$0xff] }
 0x518   : > { %v2138_v40 = vmul.f32 %v2137_v5, %v3772_v48  ;;  %v2139_v49 = vmul.f32 %v2136_v24, %v3774_v50  ;;  %v978_v3 = vadd.f32 %v886_v23, %v872_v17  ;;  %v979_v57 = vadd.f32 %v887_v45, %v873_v2  ;;  %v6042_v23 = vld [vmem:[#allocation67_spill] sm:$0xff] }
 0x519   : > { %v4803_v63 = vpop.permute.xlu2 %2168  ;;  %v934_v28 = vmul.f32 %v6037_v18, %v928_v11  ;;  %v935_v10 = vmul.f32 %v6037_v18, %v929_v39  ;;  %v963_v58 = vmul.f32 %v6038_v9, %v957_v25  ;;  %v6039_v11 = vld [vmem:[#allocation40_spill] sm:$0xff]  ;;  %v980_v18 = vadd.f32 %v914_v6, %v900_v14 }
 0x51a   : > { %v948_v34 = vmul.f32 %v6039_v11, %v942_v59  ;;  %v949_v37 = vmul.f32 %v6039_v11, %v943_v7  ;;  %v981_v9 = vadd.f32 %v915_v31, %v901_v30  ;;  %v6041_v7 = vld [vmem:[#allocation68_spill] sm:$0xff] }
 0x51b   : > { %v968_v45 = vsel %vm733_vm7, %v6042_v23, %v6041_v7  ;;  %v986_v14 = vadd.f32 %v980_v18, %v978_v3 }
 0x51c   : > { %v985_v59 = vadd.f32 %v963_v58, %v949_v37  ;;  %v987_v30 = vadd.f32 %v981_v9, %v979_v57 }
 0x51d   : > { %3345 = vset.pattern.permute.xlu2 %v5896_v53  ;;  %v2149_v13 = vpop.permute.xlu1 %2148  ;;  %3346 = vset.pattern.permute.xlu1 %v5890_v29  ;;  %v4824_v38 = vpop.permute.xlu0 %2161  ;;  %v984_v29 = vadd.f32 %v962_v44, %v948_v34  ;;  %v6043_v44 = vld [vmem:[#allocation32_spill] sm:$0xff] }
 0x51e   : > { %v2150_v21 = vsel %vm639_vm3, %v2147_v8, %v2149_v13  ;;  %v2151_v56 = vsel %vm639_vm3, %v2149_v13, %v2147_v8  ;;  %2409 = vperm.xlu2 %3345, %v4701_v0   ;;  %2417 = vperm.xlu1 %3346, %v4701_v0   ;;  %v2144_v8 = vmul.f32 %v4709_v20, %v2138_v40 }
 0x51f   : > { %v2152_v24 = vmul.f32 %v2151_v56, %v3776_v51  ;;  %v2153_v5 = vmul.f32 %v2150_v21, %v3778_v52  ;;  %v2145_v13 = vmul.f32 %v4709_v20, %v2139_v49  ;;  %v6040_v56 = vld [vmem:[#allocation36_spill] sm:$0xff]  ;;  %v970_v58 = vmul.f32 %v968_v45, %v6043_v44 }
 0x520   : > { %v920_v21 = vmul.f32 %v6024_v55, %v6040_v56  ;;  %v983_v55 = vadd.f32 %v935_v10, %v4771_v61  ;;  %v6045_v61 = vld [vmem:[#allocation44_spill] sm:$0xff]  ;;  %v6046_v56 = vld [vmem:[#allocation86_spill] sm:$0xff] }
 0x521   : > { %v2158_v39 = vmul.f32 %v4730_v33, %v2152_v24  ;;  %v2159_v25 = vmul.f32 %v4730_v33, %v2153_v5  ;;  %v4846_v15 = vpop.permute.xlu2 %2180  ;;  %v969_v33 = vsel %vm733_vm7, %v6041_v7, %v6042_v23  ;;  %v6044_v5 = vld [vmem:[#allocation33_spill] sm:$0xff]  ;;  %v976_v10 = vmul.f32 %v6045_v61, %v970_v58 }
 0x522   : > { %v982_v2 = vadd.f32 %v934_v28, %v920_v21  ;;  %v989_v24 = vadd.f32 %v985_v59, %v983_v55  ;;  %v971_v11 = vmul.f32 %v969_v33, %v6044_v5  ;;  %v6047_v59 = vld [vmem:[#allocation47_spill] sm:$0xff] }
 0x523   : > { %v2224_v17 = vadd.f32 %v2158_v39, %v2144_v8  ;;  %v2225_v20 = vadd.f32 %v2159_v25, %v2145_v13 }
 0x524   : > { %v988_v28 = vadd.f32 %v984_v29, %v982_v2 }
 0x525   : > { %v4857_v6 = vpop.permute.xlu1 %2166  ;;  %v4859_v31 = vpop.permute.xlu0 %2182  ;;  %v4862_v40 = vadd.f32 %v2224_v17, %v4745_v12  ;;  %v4865_v49 = vadd.f32 %v2225_v20, %v4747_v22  ;;  %v991_v12 = vadd.f32 %v989_v24, %v987_v30  ;;  %v977_v22 = vmul.f32 %v6045_v61, %v971_v11  ;;  %v6048_v24 = vld [vmem:[#allocation46_spill] sm:$0xff] }
 0x526   : > { %3347 = vset.pattern.permute.xlu2 %v5894_v1  ;;  %3348 = vset.pattern.permute.xlu1 %v5897_v42  ;;  %v990_v57 = vadd.f32 %v988_v28, %v986_v14  ;;  %v6065_v1 = vld [vmem:[#allocation88_spill] sm:$0xff] }
 0x527   : > { %2425 = vperm.xlu2 %3347, %v4701_v0   ;;  %2441 = vperm.xlu1 %3348, %v4701_v0   ;;  %v4879_v37 = vadd.f32 %v991_v12, %v977_v22 }
 0x528   : > { %v4875_v29 = vadd.f32 %v990_v57, %v976_v10 }
 0x529   : > { %v4877_v34 = vpop.permute.xlu2 %2194  ;;  %v1004_v25 = vperm.slane %v4879_v37, 0  ;;  %v1012_v18 = vperm.slane %v4879_v37, 1  ;;  %v1020_v23 = vperm.slane %v4879_v37, 2  ;;  %v1028_v2 = vperm.slane %v4879_v37, 3 }
 0x52a   : > { %v1003_v13 = vperm.slane %v4875_v29, 0  ;;  %v1011_v39 = vperm.slane %v4875_v29, 1  ;;  %v1019_v9 = vperm.slane %v4875_v29, 2  ;;  %v1027_v20 = vperm.slane %v4875_v29, 3 }
 0x52b   : > { %v1006_v45 = vmul.f32 %v1004_v25, %v6046_v56  ;;  %v1014_v17 = vmul.f32 %v1012_v18, %v6047_v59  ;;  %v1035_v14 = vperm.slane %v4875_v29, 4  ;;  %v1036_v55 = vperm.slane %v4879_v37, 4 }
 0x52c   : > { %v1005_v21 = vmul.f32 %v1003_v13, %v6046_v56  ;;  %v1013_v7 = vmul.f32 %v1011_v39, %v6047_v59  ;;  %v1043_v30 = vperm.slane %v4875_v29, 5  ;;  %v1044_v28 = vperm.slane %v4879_v37, 5  ;;  %v6051_v39 = vld [vmem:[#allocation52_spill] sm:$0xff] }
 0x52d   : > { %v4881_v3 = vpop.permute.xlu1 %2175  ;;  %v4883_v8 = vpop.permute.xlu0 %2196  ;;  %v4910_v11 = vmul.f32 %v1019_v9, %v6048_v24  ;;  %v4917_v61 = vmul.f32 %v1020_v23, %v6048_v24  ;;  %v1051_v10 = vperm.slane %v4875_v29, 6  ;;  %v1052_v22 = vperm.slane %v4879_v37, 6  ;;  %v6052_v9 = vld [vmem:[#allocation49_spill] sm:$0xff]  ;;  %v6053_v59 = vld [vmem:[#allocation48_spill] sm:$0xff] }
 0x52e   : > { %v4914_v12 = vadd.f32 %v1013_v7, %v1005_v21  ;;  %v4921_v13 = vadd.f32 %v1014_v17, %v1006_v45  ;;  %v4924_v25 = vmul.f32 %v1027_v20, %v6051_v39  ;;  %v4927_v18 = vmul.f32 %v1028_v2, %v6051_v39  ;;  %v6054_v45 = vld [vmem:[#allocation103_spill] sm:$0xff] }
 0x52f   : > { %3349 = vset.pattern.permute.xlu2 %v5882_v41  ;;  %3350 = vset.pattern.permute.xlu1 %v5886_v62  ;;  %v4932_v56 = vmul.f32 %v1035_v14, %v6052_v9  ;;  %v4935_v21 = vmul.f32 %v1036_v55, %v6052_v9  ;;  %v4938_v7 = vmul.f32 %v1043_v30, %v6053_v59  ;;  %v6055_v17 = vld [vmem:[#allocation91_spill] sm:$0xff]  ;;  %v6056_v14 = vld [vmem:[#allocation90_spill] sm:$0xff]  ;;  %v6057_v55 = vld [vmem:[#allocation93_spill] sm:$0xff] }
 0x530   : > { %2449 = vperm.xlu2 %3349, %v4701_v0   ;;  %2457 = vperm.xlu1 %3350, %v4701_v0   ;;  %6049 = vst [vmem:[#allocation16_spill] sm:$0xff] %v4914_v12  ;;  %v4941_v23 = vmul.f32 %v1044_v28, %v6053_v59  ;;  %v1336_v20 = vsel %vm595_vm1, %v6055_v17, %v6054_v45  ;;  %v6058_v28 = vld [vmem:[#allocation51_spill] sm:$0xff]  ;;  %v6060_v9 = vld [vmem:[#allocation106_spill] sm:$0xff]  ;;  %v6061_v59 = vld [vmem:[#allocation92_spill] sm:$0xff] }
 0x531   : > { %v4912_v57 = vpop.permute.xlu2 %2208  ;;  %6050 = vst [vmem:[#allocation17_spill] sm:$0xff] %v4921_v13  ;;  %v1337_v2 = vsel %vm595_vm1, %v6054_v45, %v6055_v17  ;;  %v1321_v30 = vsel %vm573_vm0, %v6057_v55, %v6056_v14  ;;  %v4961_v24 = vmul.f32 %v1051_v10, %v6058_v28  ;;  %v4964_v39 = vmul.f32 %v1052_v22, %v6058_v28  ;;  %v6063_v10 = vld [vmem:[#allocation94_spill] sm:$0xff]  ;;  %v6066_v13 = vld [vmem:[#allocation96_spill] sm:$0xff] }
 0x532   : > { %v1350_v45 = vsel %vm617_vm2, %v6061_v59, %v6060_v9  ;;  %v1351_v17 = vsel %vm617_vm2, %v6060_v9, %v6061_v59  ;;  %v1338_v62 = vmul.f32 %v1337_v2, %v3766_v46  ;;  %v1339_v9 = vmul.f32 %v1336_v20, %v3768_v47  ;;  %v6068_v20 = vld [vmem:[#allocation95_spill] sm:$0xff]  ;;  %v6071_v46 = vld [vmem:[#allocation101_spill] sm:$0xff] }
 0x533   : > { %6059 = vst [vmem:[#allocation20_spill] sm:$0xff] %v4964_v39  ;;  %v1353_v41 = vmul.f32 %v1350_v45, %v3774_v50  ;;  %v4994_v12 = vmul.f32 %v6066_v13, %v6065_v1  ;;  %v6067_v39 = vld [vmem:[#allocation89_spill] sm:$0xff] }
 0x535   : > { %v4901_v33 = vpop.permute.xlu0 %2210 }
 0x536   : > { %v4907_v58 = vpop.permute.xlu1 %2189 }
 0x538   : > { %3351 = vset.pattern.permute.xlu2 %v5888_v43  ;;  %3353 = vset.pattern.permute.xlu1 %v5896_v53  ;;  %v1352_v53 = vmul.f32 %v1351_v17, %v3772_v48  ;;  %v6069_v17 = vld [vmem:[#allocation97_spill] sm:$0xff]  ;;  %v6070_v48 = vld [vmem:[#allocation99_spill] sm:$0xff] }
 0x539   : > { %2465 = vperm.xlu2 %3351, %v4701_v0   ;;  %v1322_v0 = vsel %vm573_vm0, %v6056_v14, %v6057_v55  ;;  %v6062_v55 = vld [vmem:[#allocation109_spill] sm:$0xff]  ;;  %v1324_v14 = vmul.f32 %v1321_v30, %v3742_v35  ;;  %v1344_v1 = vmul.f32 %v6069_v17, %v1338_v62  ;;  %v1345_v50 = vmul.f32 %v6069_v17, %v1339_v9 }
 0x53a   : > { %v1364_v22 = vsel %vm639_vm3, %v6063_v10, %v6062_v55  ;;  %v1365_v28 = vsel %vm639_vm3, %v6062_v55, %v6063_v10  ;;  %v1323_v59 = vmul.f32 %v1322_v0, %v3740_v27  ;;  %v4998_v55 = vmul.f32 %v6066_v13, %v6067_v39  ;;  %v5000_v10 = vpop.permute.xlu2 %2244  ;;  %v6072_v27 = vld [vmem:[#allocation108_spill] sm:$0xff] }
 0x53b   : > { %v5006_v30 = vmul.f32 %v6068_v20, %v1324_v14  ;;  %v1366_v0 = vmul.f32 %v1365_v28, %v3776_v51  ;;  %v1367_v45 = vmul.f32 %v1364_v22, %v3778_v52  ;;  %v1358_v13 = vmul.f32 %v6070_v48, %v1352_v53  ;;  %v6074_v22 = vld [vmem:[#allocation102_spill] sm:$0xff]  ;;  %v6075_v53 = vld [vmem:[#allocation112_spill] sm:$0xff] }
 0x53c   : > { %v5003_v47 = vmul.f32 %v6068_v20, %v1323_v59  ;;  %v1359_v39 = vmul.f32 %v6070_v48, %v1353_v41  ;;  %v1384_v48 = vsel %vm667_vm4, %v6075_v53, %v6074_v22  ;;  %v2198_v41 = vsel %vm711_vm5, %v4877_v34, %v4883_v8  ;;  %v6077_v28 = vld [vmem:[#allocation116_spill] sm:$0xff] }
 0x53d   : > { %v4984_v43 = vpop.permute.xlu0 %2252  ;;  %v1372_v35 = vmul.f32 %v6071_v46, %v1366_v0  ;;  %v1373_v59 = vmul.f32 %v6071_v46, %v1367_v45  ;;  %v1385_v46 = vsel %vm667_vm4, %v6074_v22, %v6075_v53  ;;  %v2170_v0 = vsel %vm667_vm4, %v4857_v6, %v4803_v63 }
 0x53e   : > { %6064 = vst [vmem:[#allocation21_spill] sm:$0xff] %v4984_v43  ;;  %v6073_v43 = vld [vmem:[#allocation119_spill] sm:$0xff]  ;;  %v2184_v17 = vsel %vm689_vm6, %v4846_v15, %v4859_v31  ;;  %v2185_v22 = vsel %vm689_vm6, %v4859_v31, %v4846_v15  ;;  %v1386_v53 = vmul.f32 %v1384_v48, %v3789_v54  ;;  %v2172_v52 = vmul.f32 %v2170_v0, %v3789_v54 }
 0x53f   : > { %v2204_v2 = vpop.permute.xlu1 %2203  ;;  %v1412_v14 = vsel %vm711_vm5, %v6073_v43, %v6072_v27  ;;  %v1413_v62 = vsel %vm711_vm5, %v6072_v27, %v6073_v43  ;;  %v2199_v27 = vsel %vm711_vm5, %v4883_v8, %v4877_v34  ;;  %v6076_v43 = vld [vmem:[#allocation105_spill] sm:$0xff]  ;;  %v2171_v34 = vsel %vm667_vm4, %v4803_v63, %v4857_v6 }
 0x540   : > { %v1398_v9 = vsel %vm689_vm6, %v6077_v28, %v6076_v43  ;;  %v1399_v20 = vsel %vm689_vm6, %v6076_v43, %v6077_v28  ;;  %v1414_v8 = vmul.f32 %v1412_v14, %v5985_v16  ;;  %v1415_v45 = vmul.f32 %v1413_v62, %v5986_v36 }
 0x541   : > { %3357 = vset.pattern.permute.xlu2 %v5897_v42  ;;  %v1387_v43 = vmul.f32 %v1385_v46, %v3808_v19  ;;  %v2200_v63 = vmul.f32 %v2198_v41, %v5985_v16  ;;  %v2201_v6 = vmul.f32 %v2199_v27, %v5986_v36  ;;  %v1400_v62 = vmul.f32 %v1398_v9, %v6034_v26  ;;  %v6079_v27 = vld [vmem:[#allocation104_spill] sm:$0xff] }
 0x542   : > { %v1401_v28 = vmul.f32 %v1399_v20, %v6035_v60  ;;  %v2173_v51 = vmul.f32 %v2171_v34, %v3808_v19  ;;  %v2186_v15 = vmul.f32 %v2184_v17, %v6034_v26  ;;  %v2187_v31 = vmul.f32 %v2185_v22, %v6035_v60  ;;  %v5081_v9 = vpop.permute.xlu2 %2268  ;;  %v6080_v22 = vld [vmem:[#allocation98_spill] sm:$0xff] }
 0x543   : > { %v2206_v48 = vmul.f32 %v2204_v2, %v2200_v63  ;;  %v2207_v46 = vmul.f32 %v2204_v2, %v2201_v6  ;;  %v1438_v41 = vadd.f32 %v1372_v35, %v1358_v13  ;;  %v1439_v16 = vadd.f32 %v1373_v59, %v1359_v39  ;;  %v6081_v35 = vld [vmem:[#allocation100_spill] sm:$0xff] }
 0x544   : > { %v1420_v36 = vmul.f32 %v6079_v27, %v1414_v8  ;;  %v2178_v20 = vmul.f32 %v4881_v3, %v2172_v52  ;;  %v2179_v0 = vmul.f32 %v4881_v3, %v2173_v51  ;;  %v2192_v34 = vmul.f32 %v4907_v58, %v2186_v15  ;;  %v6082_v8 = vld [vmem:[#allocation23_spill] sm:$0xff] }
 0x545   : > { %v2193_v17 = vmul.f32 %v4907_v58, %v2187_v31  ;;  %v1392_v63 = vmul.f32 %v6080_v22, %v1386_v53  ;;  %v1393_v2 = vmul.f32 %v6080_v22, %v1387_v43  ;;  %v1406_v13 = vmul.f32 %v6081_v35, %v1400_v62  ;;  %v6083_v43 = vld [vmem:[#allocation111_spill] sm:$0xff]  ;;  %v6084_v62 = vld [vmem:[#allocation120_spill] sm:$0xff] }
 0x546   : > { %v5071_v14 = vpop.permute.xlu0 %2292  ;;  %v1407_v39 = vmul.f32 %v6081_v35, %v1401_v28  ;;  %v2164_v59 = vmul.f32 %v4824_v38, %v4614_v32  ;;  %v2165_v52 = vmul.f32 %v4824_v38, %v6082_v8  ;;  %v2212_v58 = vsel %vm733_vm7, %v4912_v57, %v4901_v33  ;;  %v6086_v35 = vld [vmem:[#allocation31_spill] sm:$0xff]  ;;  %v6087_v8 = vld [vmem:[#allocation50_spill] sm:$0xff] }
 0x547   : > { %6078 = vst [vmem:[#allocation34_spill] sm:$0xff] %v5071_v14  ;;  %v1421_v14 = vmul.f32 %v6079_v27, %v1415_v45  ;;  %v2228_v45 = vadd.f32 %v2206_v48, %v2192_v34  ;;  %v2229_v51 = vadd.f32 %v2207_v46, %v2193_v17  ;;  %v1442_v3 = vadd.f32 %v1420_v36, %v1406_v13 }
 0x548   : > { %v2218_v42 = vpop.permute.xlu1 %2217  ;;  %v2213_v53 = vsel %vm733_vm7, %v4901_v33, %v4912_v57  ;;  %v1426_v32 = vsel %vm733_vm7, %v6084_v62, %v6083_v43  ;;  %v1427_v36 = vsel %vm733_vm7, %v6083_v43, %v6084_v62  ;;  %v2226_v38 = vadd.f32 %v2178_v20, %v2164_v59 }
 0x549   : > { %v1443_v6 = vadd.f32 %v1421_v14, %v1407_v39  ;;  %v2227_v14 = vadd.f32 %v2179_v0, %v2165_v52  ;;  %v1436_v28 = vadd.f32 %v1344_v1, %v5003_v47  ;;  %v1437_v15 = vadd.f32 %v1345_v50, %v5006_v30 }
 0x54a   : > { %v1440_v31 = vadd.f32 %v1392_v63, %v4994_v12  ;;  %v1441_v33 = vadd.f32 %v1393_v2, %v4998_v55  ;;  %v2214_v48 = vmul.f32 %v2212_v58, %v6043_v44  ;;  %v2215_v46 = vmul.f32 %v2213_v53, %v6044_v5  ;;  %v6085_v63 = vld [vmem:[#allocation30_spill] sm:$0xff]  ;;  %v6090_v58 = vld [vmem:[#allocation107_spill] sm:$0xff] }
 0x54b   : > { %v2232_v27 = vadd.f32 %v2228_v45, %v2226_v38  ;;  %v2233_v34 = vadd.f32 %v2229_v51, %v2227_v14  ;;  %v1428_v20 = vmul.f32 %v1426_v32, %v6043_v44  ;;  %v1429_v47 = vmul.f32 %v1427_v36, %v6044_v5  ;;  %v2285_v55 = vpop.permute.xlu2 %2284  ;;  %v6092_v14 = vld [vmem:[#allocation26_spill] sm:$0xff] }
 0x54c   : > { %v1446_v17 = vadd.f32 %v1442_v3, %v1440_v31  ;;  %v1447_v22 = vadd.f32 %v1443_v6, %v1441_v33  ;;  %v1444_v50 = vadd.f32 %v1438_v41, %v1436_v28  ;;  %v1445_v30 = vadd.f32 %v1439_v16, %v1437_v15 }
 0x54d   : > { %v2220_v12 = vmul.f32 %v2218_v42, %v2214_v48  ;;  %v2221_v0 = vmul.f32 %v2218_v42, %v2215_v46  ;;  %v1871_v2 = vperm.slane %v6085_v63, 2  ;;  %v1872_v13 = vperm.slane %v6086_v35, 2 }
 0x54e   : > { %v1879_v39 = vperm.slane %v6085_v63, 3  ;;  %v1880_v59 = vperm.slane %v6086_v35, 3  ;;  %v6088_v52 = vperm.slane %v4875_v29, 7  ;;  %v6089_v51 = vperm.slane %v4879_v37, 7  ;;  %v6091_v37 = vld [vmem:[#allocation27_spill] sm:$0xff] }
 0x54f   : > { %v5115_v57 = vpop.permute.xlu0 %2346  ;;  %v2234_v16 = vadd.f32 %v2232_v27, %v4862_v40  ;;  %v2235_v42 = vadd.f32 %v2233_v34, %v4865_v49  ;;  %v1448_v3 = vadd.f32 %v1446_v17, %v1444_v50  ;;  %v1449_v6 = vadd.f32 %v1447_v22, %v1445_v30  ;;  %v6093_v34 = vld [vmem:[#allocation20_spill] sm:$0xff]  ;;  %v6094_v17 = vld [vmem:[#allocation25_spill] sm:$0xff] }
 0x550   : > { %v1061_v45 = vmul.f32 %v6088_v52, %v6087_v8  ;;  %v1062_v41 = vmul.f32 %v6089_v51, %v6087_v8  ;;  %v1434_v53 = vmul.f32 %v6090_v58, %v1428_v20  ;;  %v1435_v43 = vmul.f32 %v6090_v58, %v1429_v47  ;;  %v6095_v58 = vld [vmem:[#allocation21_spill] sm:$0xff] }
 0x551   : > { %v2261_v1 = vpop.permute.xlu1 %2260  ;;  %v5135_v62 = vadd.f32 %v2234_v16, %v2220_v12  ;;  %v5137_v32 = vadd.f32 %v2235_v42, %v2221_v0  ;;  %v1863_v29 = vperm.slane %v6085_v63, 1  ;;  %v1864_v36 = vperm.slane %v6086_v35, 1 }
 0x552   : > { %v1873_v38 = vmul.f32 %v1871_v2, %v6091_v37  ;;  %v1874_v40 = vmul.f32 %v1872_v13, %v6091_v37  ;;  %v1881_v49 = vmul.f32 %v1879_v39, %v6092_v14  ;;  %v1882_v28 = vmul.f32 %v1880_v59, %v6092_v14 }
 0x553   : > { %v5147_v15 = vadd.f32 %v4924_v25, %v4910_v11  ;;  %v5151_v31 = vadd.f32 %v4927_v18, %v4917_v61  ;;  %v5155_v33 = vadd.f32 %v4938_v7, %v4932_v56  ;;  %v5159_v48 = vadd.f32 %v4941_v23, %v4935_v21 }
 0x554   : > { %v5164_v27 = vadd.f32 %v1061_v45, %v4961_v24  ;;  %v5167_v11 = vadd.f32 %v1062_v41, %v6093_v34  ;;  %v5169_v25 = vadd.f32 %v1448_v3, %v1434_v53  ;;  %v5171_v61 = vadd.f32 %v1449_v6, %v1435_v43  ;;  %v5187_v39 = vpop.permute.xlu2 %2323 }
 0x555   : > { %v2287_v18 = vperm.slane %v5135_v62, 5  ;;  %v2288_v56 = vperm.slane %v5137_v32, 5  ;;  %v1855_v21 = vperm.slane %v6085_v63, 0  ;;  %v1856_v23 = vperm.slane %v6086_v35, 0 }
 0x556   : > { %v1865_v22 = vmul.f32 %v1863_v29, %v6094_v17  ;;  %v1866_v24 = vmul.f32 %v1864_v36, %v6094_v17  ;;  %v1917_v20 = vadd.f32 %v1881_v49, %v1873_v38  ;;  %v1918_v47 = vadd.f32 %v1882_v28, %v1874_v40 }
 0x557   : > { %v2247_v50 = vperm.slane %v5135_v62, 0  ;;  %v2248_v30 = vperm.slane %v5137_v32, 0  ;;  %v2255_v12 = vperm.slane %v5135_v62, 1  ;;  %v2256_v0 = vperm.slane %v5137_v32, 1 }
 0x558   : > { %v5161_v46 = vpop.permute.xlu0 %2376  ;;  %v2263_v2 = vperm.slane %v5135_v62, 2  ;;  %v2264_v63 = vperm.slane %v5137_v32, 2  ;;  %v2271_v35 = vperm.slane %v5135_v62, 3  ;;  %v2272_v13 = vperm.slane %v5137_v32, 3 }
 0x559   : > { %v2289_v59 = vmul.f32 %v2287_v18, %v2285_v55  ;;  %v2290_v8 = vmul.f32 %v2288_v56, %v2285_v55  ;;  %v2279_v52 = vperm.slane %v5135_v62, 4  ;;  %v2280_v45 = vperm.slane %v5137_v32, 4  ;;  %v6096_v18 = vld [vmem:[#allocation34_spill] sm:$0xff] }
 0x55a   : > { %v2277_v7 = vpop.permute.xlu1 %2276  ;;  %v2265_v51 = vmul.f32 %v2263_v2, %v2261_v1  ;;  %v2266_v41 = vmul.f32 %v2264_v63, %v2261_v1  ;;  %v2295_v16 = vperm.slane %v5135_v62, 6  ;;  %v2296_v42 = vperm.slane %v5137_v32, 6 }
 0x55b   : > { %v2249_v3 = vmul.f32 %v2247_v50, %v5000_v10  ;;  %v2250_v6 = vmul.f32 %v2248_v30, %v5000_v10  ;;  %v2257_v53 = vmul.f32 %v2255_v12, %v6095_v58  ;;  %v2258_v43 = vmul.f32 %v2256_v0, %v6095_v58 }
 0x55c   : > { %v2273_v55 = vmul.f32 %v2271_v35, %v5081_v9  ;;  %v2274_v29 = vmul.f32 %v2272_v13, %v5081_v9  ;;  %v2281_v36 = vmul.f32 %v2279_v52, %v2277_v7  ;;  %v2282_v37 = vmul.f32 %v2280_v45, %v2277_v7  ;;  %v6098_v52 = vld [vmem:[#allocation17_spill] sm:$0xff] }
 0x55d   : > { %v2303_v14 = vperm.slane %v5135_v62, 7  ;;  %v2304_v49 = vperm.slane %v5137_v32, 7  ;;  %v2297_v56 = vmul.f32 %v2295_v16, %v6096_v18  ;;  %v2298_v17 = vmul.f32 %v2296_v42, %v6096_v18  ;;  %v6097_v32 = vld [vmem:[#allocation16_spill] sm:$0xff] }
 0x55e   : > { %v2309_v28 = vadd.f32 %v2273_v55, %v2265_v51  ;;  %v2310_v34 = vadd.f32 %v2274_v29, %v2266_v41  ;;  %v2307_v0 = vadd.f32 %v2257_v53, %v2249_v3  ;;  %v2308_v7 = vadd.f32 %v2258_v43, %v2250_v6  ;;  %v5211_v51 = vpop.permute.xlu2 %2340  ;;  %v6099_v41 = vld [vmem:[#allocation5_spill] sm:$0xff] }
 0x55f   : > { %v2311_v2 = vadd.f32 %v2289_v59, %v2281_v36  ;;  %v5205_v13 = vadd.f32 %v5147_v15, %v6097_v32  ;;  %v5209_v45 = vadd.f32 %v5151_v31, %v6098_v52  ;;  %v1073_v42 = vadd.f32 %v5164_v27, %v5155_v33 }
 0x560   : > { %v1074_v15 = vadd.f32 %v5167_v11, %v5159_v48  ;;  %v1517_v3 = vperm.slane %v5169_v25, 7  ;;  %v1518_v31 = vperm.slane %v5171_v61, 7  ;;  %v1469_v58 = vperm.slane %v5169_v25, 1  ;;  %v6101_v11 = vld [vmem:[#allocation4_spill] sm:$0xff] }
 0x561   : > { %v1853_v38 = vpop.permute.xlu0 %1852  ;;  %v1470_v53 = vperm.slane %v5171_v61, 1  ;;  %v1461_v29 = vperm.slane %v5169_v25, 0  ;;  %v1462_v33 = vperm.slane %v5171_v61, 0  ;;  %v1493_v27 = vperm.slane %v5169_v25, 4 }
 0x562   : > { %v1857_v1 = vmul.f32 %v1855_v21, %v1853_v38  ;;  %v1858_v40 = vmul.f32 %v1856_v23, %v1853_v38  ;;  %v2312_v21 = vadd.f32 %v2290_v8, %v2282_v37  ;;  %v6100_v8 = vld [vmem:[#allocation22_spill] sm:$0xff]  ;;  %v1494_v48 = vperm.slane %v5171_v61, 4 }
 0x563   : > { %v2301_v10 = vpop.permute.xlu1 %2300 }
 0x564   : > { %v1915_v50 = vadd.f32 %v1865_v22, %v1857_v1  ;;  %v1916_v30 = vadd.f32 %v1866_v24, %v1858_v40  ;;  %v2305_v12 = vmul.f32 %v2303_v14, %v2301_v10  ;;  %v2306_v9 = vmul.f32 %v2304_v49, %v2301_v10 }
 0x565   : > { %v2315_v22 = vadd.f32 %v2309_v28, %v2307_v0  ;;  %v2316_v24 = vadd.f32 %v2310_v34, %v2308_v7  ;;  %v1501_v14 = vperm.slane %v5169_v25, 5  ;;  %v1502_v49 = vperm.slane %v5171_v61, 5  ;;  %v6104_v7 = vld [vmem:[#allocation114_spill] sm:$0xff] }
 0x566   : > { %v1923_v23 = vadd.f32 %v1917_v20, %v1915_v50  ;;  %v1924_v63 = vadd.f32 %v1918_v47, %v1916_v30  ;;  %v2313_v62 = vadd.f32 %v2305_v12, %v2297_v56  ;;  %v2314_v35 = vadd.f32 %v2306_v9, %v2298_v17  ;;  %v6102_v17 = vld [vmem:[#allocation117_spill] sm:$0xff]  ;;  %v6103_v12 = vld [vmem:[#allocation118_spill] sm:$0xff] }
 0x567   : > { %v1509_v28 = vperm.slane %v5169_v25, 6  ;;  %v1510_v34 = vperm.slane %v5171_v61, 6  ;;  %v1478_v56 = vperm.slane %v5171_v61, 2  ;;  %v1519_v50 = vmul.f32 %v1517_v3, %v6102_v17 }
 0x568   : > { %v1927_v59 = vadd.f32 %v6099_v41, %v1923_v23  ;;  %v1928_v20 = vadd.f32 %v6100_v8, %v1924_v63  ;;  %v2317_v47 = vadd.f32 %v2313_v62, %v2311_v2  ;;  %v2318_v16 = vadd.f32 %v2314_v35, %v2312_v21  ;;  %v6105_v23 = vld [vmem:[#allocation121_spill] sm:$0xff]  ;;  %v6106_v35 = vld [vmem:[#allocation115_spill] sm:$0xff] }
 0x569   : > { %v5221_v6 = vpop.permute.xlu0 %2488  ;;  %v1520_v30 = vmul.f32 %v1518_v31, %v6102_v17  ;;  %v1511_v9 = vmul.f32 %v1509_v28, %v6103_v12  ;;  %v1512_v0 = vmul.f32 %v1510_v34, %v6103_v12  ;;  %v1471_v2 = vmul.f32 %v1469_v58, %v6104_v7  ;;  %v6110_v17 = vld [vmem:[#allocation24_spill] sm:$0xff] }
 0x56a   : > { %v2319_v43 = vadd.f32 %v2317_v47, %v2315_v22  ;;  %v2320_v55 = vadd.f32 %v2318_v16, %v2316_v24  ;;  %v1934_v36 = vadd.f32 %v6101_v11, %v1927_v59  ;;  %v1935_v37 = vadd.f32 %v6101_v11, %v1928_v20  ;;  %v2359_v22 = vpop.permute.xlu2 %2358  ;;  %v6107_v59 = vld [vmem:[#allocation113_spill] sm:$0xff]  ;;  %v6108_v47 = vld [vmem:[#allocation110_spill] sm:$0xff] }
 0x56b   : > { %v1472_v21 = vmul.f32 %v1470_v53, %v6104_v7  ;;  %v1463_v63 = vmul.f32 %v1461_v29, %v6105_v23  ;;  %v1464_v62 = vmul.f32 %v1462_v33, %v6105_v23  ;;  %v1495_v32 = vmul.f32 %v1493_v27, %v6106_v35  ;;  %v6112_v7 = vld [vmem:[#allocation74_spill] sm:$0xff] }
 0x56c   : > { %v2326_v38 = vadd.f32 %v5187_v39, %v2319_v43  ;;  %v2327_v1 = vadd.f32 %v5187_v39, %v2320_v55  ;;  %v5234_v40 = vpop.permute.xlu1 %2334  ;;  %v1477_v39 = vperm.slane %v5169_v25, 2  ;;  %v1496_v52 = vmul.f32 %v1494_v48, %v6106_v35  ;;  %v6115_v35 = vld [vmem:[#allocation75_spill] sm:$0xff] }
 0x56d   : > { %v1485_v24 = vperm.slane %v5169_v25, 3  ;;  %v1486_v41 = vperm.slane %v5171_v61, 3  ;;  %v1503_v8 = vmul.f32 %v1501_v14, %v6107_v59  ;;  %v1504_v20 = vmul.f32 %v1502_v49, %v6107_v59 }
 0x56e   : > { %v2328_v10 = vadd.f32 %v2326_v38, %v1934_v36  ;;  %v2329_v18 = vadd.f32 %v2327_v1, %v1935_v37  ;;  %v1479_v16 = vmul.f32 %v1477_v39, %v6108_v47  ;;  %v1480_v3 = vmul.f32 %v1478_v56, %v6108_v47  ;;  %v6119_v47 = vld [vmem:[#allocation77_spill] sm:$0xff] }
 0x56f   : > { %v1527_v58 = vadd.f32 %v1519_v50, %v1511_v9  ;;  %v1528_v53 = vadd.f32 %v1520_v30, %v1512_v0  ;;  %v1521_v29 = vadd.f32 %v1471_v2, %v1463_v63  ;;  %v1522_v33 = vadd.f32 %v1472_v21, %v1464_v62  ;;  %v6111_v9 = vld [vmem:[#allocation73_spill] sm:$0xff]  ;;  %v6113_v21 = vld [vmem:[#allocation7_spill] sm:$0xff]  ;;  %v6114_v63 = vld [vmem:[#allocation6_spill] sm:$0xff] }
 0x570   : > { %3021 = vst [vmem:[%s5243_s24 + $0x10] sm:$0xff] %v2328_v10  ;;  %v1525_v27 = vadd.f32 %v1503_v8, %v1495_v32  ;;  %v1526_v48 = vadd.f32 %v1504_v20, %v1496_v52  ;;  %v1075_v36 = vadd.f32 %v1073_v42, %v5205_v13  ;;  %v1076_v37 = vadd.f32 %v1074_v15, %v5209_v45  ;;  %v6109_v10 = vld [vmem:[#allocation87_spill] sm:$0xff]  ;;  %v6116_v52 = vld [vmem:[#allocation76_spill] sm:$0xff] }
 0x571   : > { %3022 = vst [vmem:[%s5243_s24 + $0x18] sm:$0xff] %v2329_v18  ;;  %v2361_v23 = vmul.f32 %v2359_v22, %v6113_v21  ;;  %v2362_v62 = vmul.f32 %v2359_v22, %v6114_v63  ;;  %v6118_v8 = vld [vmem:[#allocation80_spill] sm:$0xff] }
 0x572   : > { %v1483_v31 = vpop.permute.xlu0 %1482  ;;  %v1531_v38 = vadd.f32 %v1527_v58, %v1525_v27  ;;  %v1532_v1 = vadd.f32 %v1528_v53, %v1526_v48  ;;  %v1082_v18 = vadd.f32 %v6109_v10, %v1075_v36  ;;  %v1083_v39 = vadd.f32 %v6109_v10, %v1076_v37  ;;  %v2371_v56 = vpop.permute.xlu2 %2370  ;;  %v6121_v58 = vld [vmem:[#allocation69_spill] sm:$0xff]  ;;  %v6126_v37 = vld [vmem:[#allocation72_spill] sm:$0xff] }
 0x573   : > { %v1487_v43 = vmul.f32 %v1485_v24, %v1483_v31  ;;  %v1488_v55 = vmul.f32 %v1486_v41, %v1483_v31  ;;  %v2373_v32 = vmul.f32 %v2371_v56, %v6115_v35  ;;  %v2374_v24 = vmul.f32 %v2371_v56, %v6116_v52  ;;  %v6117_v41 = vld [vmem:[#allocation79_spill] sm:$0xff]  ;;  %v6127_v56 = vld [vmem:[#allocation84_spill] sm:$0xff] }
 0x574   : > { %v2379_v53 = vmul.f32 %v5161_v46, %v6121_v58 }
 0x575   : > { %v1523_v25 = vadd.f32 %v1487_v43, %v1479_v16  ;;  %v1524_v11 = vadd.f32 %v1488_v55, %v1480_v3  ;;  %v2353_v61 = vpop.permute.xlu1 %2352  ;;  %v2349_v16 = vmul.f32 %v5115_v57, %v6119_v47  ;;  %v6120_v3 = vld [vmem:[#allocation78_spill] sm:$0xff]  ;;  %v6123_v55 = vld [vmem:[#allocation81_spill] sm:$0xff] }
 0x576   : > { %v2355_v59 = vmul.f32 %v2353_v61, %v6117_v41  ;;  %v2356_v20 = vmul.f32 %v2353_v61, %v6118_v8  ;;  %v2350_v31 = vmul.f32 %v5115_v57, %v6120_v3  ;;  %v6122_v43 = vld [vmem:[#allocation70_spill] sm:$0xff]  ;;  %v6125_v61 = vld [vmem:[#allocation71_spill] sm:$0xff]  ;;  %v2344_v57 = vmul.f32 %v5211_v51, %v6126_v37 }
 0x577   : > { %v1529_v14 = vadd.f32 %v1523_v25, %v1521_v29  ;;  %v1530_v49 = vadd.f32 %v1524_v11, %v1522_v33  ;;  %v2380_v22 = vmul.f32 %v5161_v46, %v6122_v43  ;;  %v2337_v29 = vmul.f32 %v5234_v40, %v6123_v55  ;;  %v6124_v33 = vld [vmem:[#allocation82_spill] sm:$0xff] }
 0x578   : > { %v2338_v27 = vmul.f32 %v5234_v40, %v6124_v33  ;;  %v2343_v36 = vmul.f32 %v5211_v51, %v6125_v61 }
 0x579   : > { %v1533_v28 = vadd.f32 %v1531_v38, %v1529_v14  ;;  %v1534_v34 = vadd.f32 %v1532_v1, %v1530_v49  ;;  %v2393_v38 = vadd.f32 %v2379_v53, %v2373_v32  ;;  %v2394_v1 = vadd.f32 %v2380_v22, %v2374_v24 }
 0x57a   : > { %v2410_v15 = vpop.permute.xlu2 %2409  ;;  %v2389_v14 = vadd.f32 %v2355_v59, %v2349_v16  ;;  %v2390_v49 = vadd.f32 %v2356_v20, %v2350_v31  ;;  %v2387_v46 = vadd.f32 %v2343_v36, %v2337_v29  ;;  %v2434_v35 = vpop.permute.xlu0 %2433 }
 0x57b   : > { %v1540_v50 = vadd.f32 %v6110_v17, %v1533_v28  ;;  %v1541_v30 = vadd.f32 %v6110_v17, %v1534_v34  ;;  %v2388_v28 = vadd.f32 %v2344_v57, %v2338_v27 }
 0x57d   : > { %v5271_v13 = vadd.f32 %v1540_v50, %v1082_v18  ;;  %v5273_v42 = vadd.f32 %v1541_v30, %v1083_v39  ;;  %v2395_v39 = vadd.f32 %v2389_v14, %v2387_v46  ;;  %v2396_v40 = vadd.f32 %v2390_v49, %v2388_v28  ;;  %v6128_v50 = vld [vmem:[#allocation85_spill] sm:$0xff] }
 0x57e   : > { %v2365_v45 = vpop.permute.xlu1 %2364 }
 0x57f   : > { %3019 = vst [vmem:[%s5243_s24] sm:$0xff] %v5271_v13  ;;  %v2367_v0 = vmul.f32 %v2365_v45, %v6111_v9  ;;  %v2368_v2 = vmul.f32 %v2365_v45, %v6112_v7 }
 0x580   : > { %3020 = vst [vmem:[%s5243_s24 + $0x8] sm:$0xff] %v5273_v42 }
 0x581   : > { %v2391_v48 = vadd.f32 %v2367_v0, %v2361_v23  ;;  %v2392_v25 = vadd.f32 %v2368_v2, %v2362_v62 }
 0x582   : > { %v2426_v11 = vpop.permute.xlu2 %2425 }
 0x583   : > { %v2397_v34 = vadd.f32 %v2393_v38, %v2391_v48  ;;  %v2398_v10 = vadd.f32 %v2394_v1, %v2392_v25 }
 0x585   : > { %v2399_v45 = vadd.f32 %v2397_v34, %v2395_v39  ;;  %v2400_v9 = vadd.f32 %v2398_v10, %v2396_v40 }
 0x587   : > { %v2383_v12 = vpop.permute.xlu1 %2382 }
 0x588   : > { %v2385_v17 = vmul.f32 %v2383_v12, %v6127_v56  ;;  %v2386_v30 = vmul.f32 %v2383_v12, %v6128_v50 }
 0x58a   : > { %v2401_v0 = vadd.f32 %v2399_v45, %v2385_v17  ;;  %v2402_v7 = vadd.f32 %v2400_v9, %v2386_v30  ;;  %v2450_v51 = vpop.permute.xlu2 %2449 }
 0x58c   : > { %v2428_v21 = vperm.slane %v2401_v0, 2  ;;  %v2429_v23 = vperm.slane %v2402_v7, 2  ;;  %v2436_v63 = vperm.slane %v2401_v0, 3  ;;  %v2437_v62 = vperm.slane %v2402_v7, 3 }
 0x58d   : > { %v2412_v32 = vperm.slane %v2401_v0, 0  ;;  %v2413_v52 = vperm.slane %v2402_v7, 0  ;;  %v2420_v24 = vperm.slane %v2401_v0, 1  ;;  %v2421_v41 = vperm.slane %v2402_v7, 1 }
 0x58e   : > { %v2452_v59 = vperm.slane %v2401_v0, 5  ;;  %v2453_v8 = vperm.slane %v2402_v7, 5  ;;  %v2430_v20 = vmul.f32 %v2428_v21, %v2426_v11  ;;  %v2431_v47 = vmul.f32 %v2429_v23, %v2426_v11 }
 0x58f   : > { %v2438_v3 = vmul.f32 %v2436_v63, %v2434_v35  ;;  %v2439_v31 = vmul.f32 %v2437_v62, %v2434_v35  ;;  %v2444_v58 = vperm.slane %v2401_v0, 4  ;;  %v2445_v53 = vperm.slane %v2402_v7, 4  ;;  %v5351_v35 = vld [vmem:[%s5647_s7 + $0x48] sm:$0xff] }
 0x590   : > { %v2418_v18 = vpop.permute.xlu1 %2417  ;;  %v2414_v43 = vmul.f32 %v2412_v32, %v2410_v15  ;;  %v2415_v22 = vmul.f32 %v2413_v52, %v2410_v15  ;;  %v2468_v55 = vperm.slane %v2401_v0, 7  ;;  %v2469_v29 = vperm.slane %v2402_v7, 7 }
 0x591   : > { %v2422_v12 = vmul.f32 %v2420_v24, %v2418_v18  ;;  %v2423_v16 = vmul.f32 %v2421_v41, %v2418_v18  ;;  %v2460_v25 = vperm.slane %v2401_v0, 6  ;;  %v2461_v61 = vperm.slane %v2402_v7, 6 }
 0x592   : > { %v2454_v36 = vmul.f32 %v2452_v59, %v2450_v51  ;;  %v2455_v37 = vmul.f32 %v2453_v8, %v2450_v51  ;;  %v2474_v28 = vadd.f32 %v2438_v3, %v2430_v20  ;;  %v2475_v34 = vadd.f32 %v2439_v31, %v2431_v47  ;;  %v5396_v47 = vld [vmem:[%s5646_s6 + $0x50] sm:$0xff] }
 0x593   : > { %v2466_v33 = vpop.permute.xlu2 %2465  ;;  %v2472_v57 = vadd.f32 %v2422_v12, %v2414_v43  ;;  %v2473_v38 = vadd.f32 %v2423_v16, %v2415_v22  ;;  %v6130_v21 = vmov 2   ;;  %v6131_v23 = vmov 3   ;;  %v5414_v22 = vld [vmem:[%s5647_s7 + $0x50] sm:$0xff] }
 0x594   : > { %v2470_v1 = vmul.f32 %v2468_v55, %v2466_v33  ;;  %v2471_v14 = vmul.f32 %v2469_v29, %v2466_v33  ;;  %v6132_v63 = vmov 5   ;;  %v6133_v62 = vmov 6   ;;  %v6138_v55 = vld [vmem:[#allocation8_spill] sm:$0xff]  ;;  %v6139_v33 = vld [vmem:[#allocation9_spill] sm:$0xff] }
 0x595   : > { %v2480_v40 = vadd.f32 %v2474_v28, %v2472_v57  ;;  %v2481_v56 = vadd.f32 %v2475_v34, %v2473_v38  ;;  %v6134_v32 = vmov 7   ;;  %v5358_v52 = vmax.f32 %v5273_v42, 0.0 }
 0x596   : > { %v6135_v24 = vmov 8   ;;  %v6136_v42 = vmov 4   ;;  %v5376_v41 = vmax.f32 %v5271_v13, 0.0  ;;  %v6137_v8 = vmov 0  }
 0x599   : > { %v2442_v2 = vpop.permute.xlu1 %2441 }
 0x59a   : > { %v2446_v27 = vmul.f32 %v2444_v58, %v2442_v2  ;;  %v2447_v48 = vmul.f32 %v2445_v53, %v2442_v2  ;;  %v3136_v2 = vld [vmem:[%s5646_s6 + $0x48] sm:$0xff] }
 0x59c   : > { %v2476_v10 = vadd.f32 %v2454_v36, %v2446_v27  ;;  %v2477_v15 = vadd.f32 %v2455_v37, %v2447_v48 }
 0x5a2   : > { %v2458_v11 = vpop.permute.xlu1 %2457 }
 0x5a3   : > { %v2462_v49 = vmul.f32 %v2460_v25, %v2458_v11  ;;  %v2463_v46 = vmul.f32 %v2461_v61, %v2458_v11 }
 0x5a5   : > { %v2478_v18 = vadd.f32 %v2470_v1, %v2462_v49  ;;  %v2479_v39 = vadd.f32 %v2471_v14, %v2463_v46  ;;  %v6140_v1 = vld [vmem:[#allocation10_spill] sm:$0xff]  ;;  %v6141_v49 = vld [vmem:[#allocation11_spill] sm:$0xff] }
 0x5a7   : > { %v2482_v17 = vadd.f32 %v2478_v18, %v2476_v10  ;;  %v2483_v50 = vadd.f32 %v2479_v39, %v2477_v15 }
 0x5a9   : > { %v2484_v30 = vadd.f32 %v2482_v17, %v2480_v40  ;;  %v2485_v45 = vadd.f32 %v2483_v50, %v2481_v56  ;;  %v3138_v40 = vld [vmem:[%s5648_s8 + $0x48] sm:$0xff] }
 0x5ab   : > { %v2491_v9 = vadd.f32 %v5221_v6, %v2484_v30  ;;  %v2492_v0 = vadd.f32 %v5221_v6, %v2485_v45  ;;  %v6129_v6 = vmov 1   ;;  %v6142_v30 = vld [vmem:[#allocation12_spill] sm:$0xff] }
 0x5ad   : > { %v5307_v7 = vmax.f32 %v2491_v9, 0.0  ;;  %v5309_v51 = vmax.f32 %v2492_v0, 0.0  ;;  %v6143_v9 = vld [vmem:[#allocation13_spill] sm:$0xff] }
 0x5af   : > { %2514 = vrot.lane.b32.xlu0 %v5309_v51, %s3405_s16  ;;  %2499 = vrot.lane.b32.xlu2 %v5309_v51, %s3403_s12 }
 0x5b0   : > { %2497 = vrot.lane.b32.xlu1 %v5307_v7, %s3403_s12 }
 0x5b7   : > { %2528 = vrot.lane.b32.xlu0 %v5309_v51, %s3406_s17  ;;  %2512 = vrot.lane.b32.xlu2 %v5307_v7, %s3405_s16 }
 0x5b8   : > { %2507 = vperm.xlu1 %3353, %v3136_v2  }
 0x5bf   : > { %2542 = vrot.lane.b32.xlu0 %v5309_v51, %s3408_s19  ;;  %2526 = vrot.lane.b32.xlu2 %v5307_v7, %s3406_s17  ;;  %s3412_s17 = smov 2  }
 0x5c0   : > { %3354 = vset.pattern.permute.xlu1 %v6129_v6 }
 0x5c1   : > { %2521 = vperm.xlu1 %3354, %v3136_v2  }
 0x5c7   : > { %2560 = vrot.lane.b32.xlu0 %v5307_v7, %s3402_s11  ;;  %2540 = vrot.lane.b32.xlu2 %v5307_v7, %s3408_s19  ;;  %s3414_s19 = smov 98  }
 0x5c9   : > { %3355 = vset.pattern.permute.xlu1 %v6130_v21 }
 0x5ca   : > { %2535 = vperm.xlu1 %3355, %v3136_v2  }
 0x5cf   : > { %2574 = vrot.lane.b32.xlu0 %v5307_v7, %s3404_s15  ;;  %2555 = vperm.xlu2 %3357, %v3136_v2  }
 0x5d2   : > { %3356 = vset.pattern.permute.xlu1 %v6131_v23 }
 0x5d3   : > { %2549 = vperm.xlu1 %3356, %v3136_v2  }
 0x5d7   : > { %2588 = vrot.lane.b32.xlu0 %v5307_v7, %s3407_s18  ;;  %3358 = vset.pattern.permute.xlu2 %v6132_v63 }
 0x5d8   : > { %2569 = vperm.xlu2 %3358, %v3136_v2  }
 0x5db   : > { %2562 = vrot.lane.b32.xlu1 %v5309_v51, %s3402_s11  ;;  %s3410_s11 = smov 32  }
 0x5dc   : > { %3362 = vset.pattern.permute.xlu1 %v6129_v6 }
 0x5df   : > { %2602 = vrot.lane.b32.xlu0 %v5307_v7, %s3409_s20 }
 0x5e0   : > { %3359 = vset.pattern.permute.xlu2 %v6133_v62 }
 0x5e1   : > { %2583 = vperm.xlu2 %3359, %v3136_v2  }
 0x5e3   : > { %2576 = vrot.lane.b32.xlu1 %v5309_v51, %s3404_s15  ;;  %s3411_s15 = smov 30  }
 0x5e7   : > { %2662 = vperm.xlu0 %3352, %v5351_v35  }
 0x5e9   : > { %3360 = vset.pattern.permute.xlu2 %v6134_v32 }
 0x5ea   : > { %2597 = vperm.xlu2 %3360, %v3136_v2  }
 0x5eb   : > { %2590 = vrot.lane.b32.xlu1 %v5309_v51, %s3407_s18  ;;  %s3413_s18 = smov 126  }
 0x5ef   : > { %2753 = vrot.lane.b32.xlu0 %v5358_v52, %s3410_s11 }
 0x5f2   : > { %3361 = vset.pattern.permute.xlu2 %v6135_v24 }
 0x5f3   : > { %2604 = vrot.lane.b32.xlu1 %v5309_v51, %s3409_s20  ;;  %2611 = vperm.xlu2 %3361, %v3136_v2   ;;  %s3415_s20 = smov 34  }
 0x5f7   : > { %2775 = vrot.lane.b32.xlu0 %v5358_v52, %s3411_s15 }
 0x5fb   : > { %2646 = vperm.xlu1 %3362, %v5351_v35   ;;  %3363 = vset.pattern.permute.xlu2 %v6130_v21 }
 0x5fc   : > { %2654 = vperm.xlu2 %3363, %v5351_v35  }
 0x5ff   : > { %2797 = vrot.lane.b32.xlu0 %v5358_v52, %s3412_s17 }
 0x603   : > { %3364 = vset.pattern.permute.xlu1 %v6136_v42 }
 0x604   : > { %2670 = vperm.xlu1 %3364, %v5351_v35   ;;  %3365 = vset.pattern.permute.xlu2 %v6132_v63 }
 0x605   : > { %2678 = vperm.xlu2 %3365, %v5351_v35  }
 0x607   : > { %2823 = vrot.lane.b32.xlu0 %v5376_v41, %s3413_s18 }
 0x609   : > { %v2500_v59 = vpop.permute.xlu2 %2499 }
 0x60c   : > { %3366 = vset.pattern.permute.xlu1 %v6133_v62 }
 0x60d   : > { %2686 = vperm.xlu1 %3366, %v5351_v35   ;;  %3367 = vset.pattern.permute.xlu2 %v6134_v32 }
 0x60e   : > { %2694 = vperm.xlu2 %3367, %v5351_v35  }
 0x60f   : > { %2845 = vrot.lane.b32.xlu0 %v5376_v41, %s3414_s19 }
 0x611   : > { %v2513_v13 = vpop.permute.xlu2 %2512 }
 0x615   : > { %2728 = vrot.lane.b32.xlu1 %v5376_v41, %s3415_s20 }
 0x616   : > { %2730 = vrot.lane.b32.xlu2 %v5358_v52, %s3415_s20  ;;  %3368 = vset.pattern.permute.xlu1 %v6137_v8 }
 0x617   : > { %2867 = vrot.lane.b32.xlu0 %v5376_v41, %s3416_s27  ;;  %3372 = vset.pattern.permute.xlu2 %v6136_v42 }
 0x619   : > { %v2527_v20 = vpop.permute.xlu2 %2526 }
 0x61d   : > { %2746 = vperm.xlu1 %3368, %v5396_v47  }
 0x61e   : > { %2751 = vrot.lane.b32.xlu2 %v5376_v41, %s3410_s11 }
 0x61f   : > { %2889 = vrot.lane.b32.xlu0 %v5376_v41, %s3417_s30 }
 0x621   : > { %v2515_v12 = vpop.permute.xlu0 %2514  ;;  %v2541_v16 = vpop.permute.xlu2 %2540 }
 0x622   : > { %v2516_v3 = vsel %vm595_vm1, %v2513_v13, %v2515_v12  ;;  %v2517_v31 = vsel %vm595_vm1, %v2515_v12, %v2513_v13  ;;  %v2498_v58 = vpop.permute.xlu1 %2497  ;;  %v6145_v12 = vld [vmem:[#allocation15_spill] sm:$0xff] }
 0x623   : > { %v2501_v53 = vsel %vm573_vm0, %v2498_v58, %v2500_v59  ;;  %v2502_v43 = vsel %vm573_vm0, %v2500_v59, %v2498_v58  ;;  %v2518_v14 = vmul.f32 %v2517_v31, %v6140_v1  ;;  %v2519_v46 = vmul.f32 %v2516_v3, %v6141_v49 }
 0x624   : > { %v2503_v29 = vmul.f32 %v2502_v43, %v6138_v55  ;;  %v2504_v27 = vmul.f32 %v2501_v53, %v6139_v33  ;;  %v3149_v43 = vld [vmem:[%s5648_s8 + $0x50] sm:$0xff] }
 0x625   : > { %3369 = vset.pattern.permute.xlu1 %v6129_v6 }
 0x626   : > { %2768 = vperm.xlu1 %3369, %v5396_v47   ;;  %2773 = vrot.lane.b32.xlu2 %v5376_v41, %s3411_s15 }
 0x627   : > { %2957 = vperm.xlu0 %3352, %v5414_v22  }
 0x629   : > { %v2529_v48 = vpop.permute.xlu0 %2528  ;;  %v5427_v36 = vpop.permute.xlu2 %2555 }
 0x62a   : > { %v2530_v25 = vsel %vm617_vm2, %v2527_v20, %v2529_v48  ;;  %v2531_v61 = vsel %vm617_vm2, %v2529_v48, %v2527_v20  ;;  %v2508_v37 = vpop.permute.xlu1 %2507  ;;  %v2559_v1 = vmul.f32 %v5427_v36, %v5309_v51 }
 0x62b   : > { %v2510_v57 = vmul.f32 %v2508_v37, %v2503_v29  ;;  %v2511_v38 = vmul.f32 %v2508_v37, %v2504_v27  ;;  %v2532_v45 = vmul.f32 %v2531_v61, %v6142_v30  ;;  %v2533_v0 = vmul.f32 %v2530_v25, %v6143_v9 }
 0x62e   : > { %3370 = vset.pattern.permute.xlu1 %v6130_v21  ;;  %2795 = vrot.lane.b32.xlu2 %v5376_v41, %s3412_s17 }
 0x62f   : > { %2790 = vperm.xlu1 %3370, %v5396_v47   ;;  %3379 = vset.pattern.permute.xlu0 %v6137_v8  ;;  %v6144_v8 = vld [vmem:[#allocation14_spill] sm:$0xff] }
 0x630   : > { %2638 = vperm.xlu0 %3379, %v5351_v35  }
 0x631   : > { %v2543_v11 = vpop.permute.xlu0 %2542 }
 0x632   : > { %v2544_v28 = vsel %vm639_vm3, %v2541_v16, %v2543_v11  ;;  %v2545_v34 = vsel %vm639_vm3, %v2543_v11, %v2541_v16  ;;  %v2570_v10 = vpop.permute.xlu2 %2569  ;;  %v2558_v11 = vmul.f32 %v5427_v36, %v5307_v7 }
 0x633   : > { %v2522_v15 = vpop.permute.xlu1 %2521  ;;  %v2546_v20 = vmul.f32 %v2545_v34, %v6144_v8  ;;  %v2547_v16 = vmul.f32 %v2544_v28, %v6145_v12 }
 0x634   : > { %v2524_v18 = vmul.f32 %v2522_v15, %v2518_v14  ;;  %v2525_v39 = vmul.f32 %v2522_v15, %v2519_v46 }
 0x636   : > { %v2616_v56 = vadd.f32 %v2524_v18, %v2510_v57  ;;  %v2617_v17 = vadd.f32 %v2525_v39, %v2511_v38  ;;  %2818 = vperm.xlu2 %3372, %v5396_v47  }
 0x637   : > { %3371 = vset.pattern.permute.xlu1 %v6131_v23 }
 0x638   : > { %2812 = vperm.xlu1 %3371, %v5396_v47   ;;  %2717 = vperm.xlu0 %3379, %v3138_v40  }
 0x639   : > { %v2561_v50 = vpop.permute.xlu0 %2560 }
 0x63b   : > { %v2584_v2 = vpop.permute.xlu2 %2583 }
 0x63c   : > { %v2536_v35 = vpop.permute.xlu1 %2535 }
 0x63d   : > { %v2538_v59 = vmul.f32 %v2536_v35, %v2532_v45  ;;  %v2539_v13 = vmul.f32 %v2536_v35, %v2533_v0 }
 0x63e   : > { %3373 = vset.pattern.permute.xlu2 %v6132_v63 }
 0x63f   : > { %2840 = vperm.xlu2 %3373, %v5396_v47  }
 0x640   : > { %2825 = vrot.lane.b32.xlu1 %v5358_v52, %s3413_s18  ;;  %2933 = vperm.xlu0 %3379, %v5414_v22  }
 0x641   : > { %v2575_v23 = vpop.permute.xlu0 %2574  ;;  %3377 = vset.pattern.permute.xlu1 %v6129_v6 }
 0x644   : > { %v2598_v3 = vpop.permute.xlu2 %2597 }
 0x645   : > { %v2550_v31 = vpop.permute.xlu1 %2549 }
 0x646   : > { %v2552_v58 = vmul.f32 %v2550_v31, %v2546_v20  ;;  %v2553_v53 = vmul.f32 %v2550_v31, %v2547_v16 }
 0x647   : > { %3374 = vset.pattern.permute.xlu2 %v6133_v62 }
 0x648   : > { %v2618_v55 = vadd.f32 %v2552_v58, %v2538_v59  ;;  %v2619_v29 = vadd.f32 %v2553_v53, %v2539_v13  ;;  %2847 = vrot.lane.b32.xlu1 %v5358_v52, %s3414_s19  ;;  %2862 = vperm.xlu2 %3374, %v5396_v47  }
 0x649   : > { %v2589_v6 = vpop.permute.xlu0 %2588  ;;  %3012 = vperm.xlu0 %3379, %v3149_v43  }
 0x64a   : > { %v2624_v33 = vadd.f32 %v2618_v55, %v2616_v56  ;;  %v2625_v27 = vadd.f32 %v2619_v29, %v2617_v17  ;;  %v6147_v17 = vld [vmem:[#allocation19_spill] sm:$0xff] }
 0x64d   : > { %v2563_v48 = vpop.permute.xlu1 %2562  ;;  %v2612_v25 = vpop.permute.xlu2 %2611 }
 0x64e   : > { %v2564_v61 = vsel %vm667_vm4, %v2561_v50, %v2563_v48  ;;  %v2565_v37 = vsel %vm667_vm4, %v2563_v48, %v2561_v50 }
 0x64f   : > { %v2566_v57 = vmul.f32 %v2564_v61, %v3789_v54  ;;  %v2567_v38 = vmul.f32 %v2565_v37, %v3808_v19 }
 0x650   : > { %2869 = vrot.lane.b32.xlu1 %v5358_v52, %s3416_s27  ;;  %3375 = vset.pattern.permute.xlu2 %v6134_v32 }
 0x651   : > { %v2572_v14 = vmul.f32 %v2570_v10, %v2566_v57  ;;  %v2573_v49 = vmul.f32 %v2570_v10, %v2567_v38  ;;  %v2603_v46 = vpop.permute.xlu0 %2602  ;;  %2884 = vperm.xlu2 %3375, %v5396_v47  }
 0x653   : > { %v2620_v28 = vadd.f32 %v2572_v14, %v2558_v11  ;;  %v2621_v54 = vadd.f32 %v2573_v49, %v2559_v1 }
 0x655   : > { %v2577_v34 = vpop.permute.xlu1 %2576 }
 0x656   : > { %v2655_v19 = vpop.permute.xlu2 %2654  ;;  %v2578_v7 = vsel %vm689_vm6, %v2575_v23, %v2577_v34  ;;  %v2579_v51 = vsel %vm689_vm6, %v2577_v34, %v2575_v23 }
 0x657   : > { %v2580_v36 = vmul.f32 %v2578_v7, %v6034_v26  ;;  %v2581_v10 = vmul.f32 %v2579_v51, %v6035_v60 }
 0x658   : > { %2891 = vrot.lane.b32.xlu1 %v5358_v52, %s3417_s30 }
 0x659   : > { %v2663_v15 = vpop.permute.xlu0 %2662  ;;  %3376 = vset.pattern.permute.xlu2 %v6135_v24  ;;  %v6146_v24 = vld [vmem:[#allocation18_spill] sm:$0xff]  ;;  %v2587_v45 = vmul.f32 %v2584_v2, %v2581_v10 }
 0x65a   : > { %2906 = vperm.xlu2 %3376, %v5396_v47   ;;  %v2586_v47 = vmul.f32 %v2584_v2, %v2580_v36 }
 0x65d   : > { %v2591_v18 = vpop.permute.xlu1 %2590 }
 0x65e   : > { %v2592_v39 = vsel %vm711_vm5, %v2589_v6, %v2591_v18  ;;  %v2593_v40 = vsel %vm711_vm5, %v2591_v18, %v2589_v6  ;;  %v3141_v18 = vld [vmem:[%s5649_s9 + $0x12] sm:$0x3] }
 0x65f   : > { %v2594_v56 = vmul.f32 %v2592_v39, %v6146_v24  ;;  %v2595_v50 = vmul.f32 %v2593_v40, %v6147_v17  ;;  %v5494_v30 = vpop.permute.xlu2 %2678  ;;  %v2762_v17 = vperm.slane %v3141_v18, 1 }
 0x660   : > { %2941 = vperm.xlu1 %3377, %v5414_v22  }
 0x661   : > { %v2600_v26 = vmul.f32 %v2598_v3, %v2594_v56  ;;  %v2601_v9 = vmul.f32 %v2598_v3, %v2595_v50  ;;  %v2754_v60 = vpop.permute.xlu0 %2753  ;;  %v2761_v56 = vperm.slane %v3141_v18, 0 }
 0x662   : > { %3378 = vset.pattern.permute.xlu2 %v6130_v21 }
 0x663   : > { %v2622_v0 = vadd.f32 %v2600_v26, %v2586_v47  ;;  %v2623_v35 = vadd.f32 %v2601_v9, %v2587_v45  ;;  %2949 = vperm.xlu2 %3378, %v5414_v22  }
 0x665   : > { %v2626_v59 = vadd.f32 %v2622_v0, %v2620_v28  ;;  %v2627_v13 = vadd.f32 %v2623_v35, %v2621_v54  ;;  %v2605_v23 = vpop.permute.xlu1 %2604 }
 0x666   : > { %v2606_v8 = vsel %vm733_vm7, %v2603_v46, %v2605_v23  ;;  %v2607_v20 = vsel %vm733_vm7, %v2605_v23, %v2603_v46 }
 0x667   : > { %v2628_v12 = vadd.f32 %v2626_v59, %v2624_v33  ;;  %v2629_v2 = vadd.f32 %v2627_v13, %v2625_v27  ;;  %v2608_v16 = vmul.f32 %v2606_v8, %v6043_v44  ;;  %v2609_v3 = vmul.f32 %v2607_v20, %v6044_v5  ;;  %v3142_v8 = vld [vmem:[%s5649_s9 + $0x14] sm:$0x3] }
 0x668   : > { %3380 = vset.pattern.permute.xlu1 %v6136_v42  ;;  %v5506_v21 = vpop.permute.xlu2 %2694 }
 0x669   : > { %v2614_v31 = vmul.f32 %v2612_v25, %v2608_v16  ;;  %v2615_v58 = vmul.f32 %v2612_v25, %v2609_v3  ;;  %2965 = vperm.xlu1 %3380, %v5414_v22   ;;  %v5509_v53 = vpop.permute.xlu0 %2775 }
 0x66b   : > { %v5511_v43 = vadd.f32 %v2628_v12, %v2614_v31  ;;  %v5513_v55 = vadd.f32 %v2629_v2, %v2615_v58  ;;  %3381 = vset.pattern.permute.xlu2 %v6132_v63 }
 0x66c   : > { %2973 = vperm.xlu2 %3381, %v5414_v22  }
 0x66d   : > { %v5517_v44 = vpop.permute.xlu1 %2646  ;;  %v2657_v29 = vperm.slane %v5511_v43, 2  ;;  %v2658_v6 = vperm.slane %v5513_v55, 2  ;;  %v2665_v33 = vperm.slane %v5511_v43, 3  ;;  %v2666_v27 = vperm.slane %v5513_v55, 3 }
 0x66e   : > { %v2697_v13 = vperm.slane %v5511_v43, 7  ;;  %v2698_v23 = vperm.slane %v5513_v55, 7  ;;  %v2649_v20 = vperm.slane %v5511_v43, 1  ;;  %v2650_v12 = vperm.slane %v5513_v55, 1 }
 0x66f   : > { %v2659_v63 = vmul.f32 %v2657_v29, %v2655_v19  ;;  %v2660_v48 = vmul.f32 %v2658_v6, %v2655_v19  ;;  %v2667_v25 = vmul.f32 %v2665_v33, %v2663_v15  ;;  %v2668_v61 = vmul.f32 %v2666_v27, %v2663_v15 }
 0x670   : > { %v2731_v5 = vpop.permute.xlu2 %2730  ;;  %v2689_v2 = vperm.slane %v5511_v43, 6  ;;  %v2690_v16 = vperm.slane %v5513_v55, 6  ;;  %v2673_v3 = vperm.slane %v5511_v43, 4  ;;  %v2674_v31 = vperm.slane %v5513_v55, 4 }
 0x671   : > { %3382 = vset.pattern.permute.xlu1 %v6133_v62  ;;  %v5520_v42 = vpop.permute.xlu0 %2797  ;;  %v5530_v37 = vadd.f32 %v2667_v25, %v2659_v63  ;;  %v5532_v57 = vadd.f32 %v2668_v61, %v2660_v48  ;;  %v2681_v58 = vperm.slane %v5511_v43, 5  ;;  %v2783_v27 = vperm.slane %v3142_v8, 0 }
 0x672   : > { %2981 = vperm.xlu1 %3382, %v5414_v22   ;;  %v2784_v25 = vperm.slane %v3142_v8, 1  ;;  %v2699_v61 = vmul.f32 %v2697_v13, %v5506_v21 }
 0x674   : > { %3383 = vset.pattern.permute.xlu2 %v6134_v32  ;;  %v3140_v32 = vld [vmem:[%s5649_s9 + $0x10] sm:$0x3] }
 0x675   : > { %2989 = vperm.xlu2 %3383, %v5414_v22   ;;  %v2738_v15 = vperm.slane %v3140_v32, 0  ;;  %v2739_v7 = vperm.slane %v3140_v32, 1  ;;  %v2641_v32 = vperm.slane %v5511_v43, 0 }
 0x676   : > { %v2671_v62 = vpop.permute.xlu1 %2670 }
 0x677   : > { %v2675_v63 = vmul.f32 %v2673_v3, %v2671_v62  ;;  %v2676_v48 = vmul.f32 %v2674_v31, %v2671_v62  ;;  %v2652_v62 = vmul.f32 %v2650_v12, %v5517_v44 }
 0x678   : > { %v2752_v38 = vpop.permute.xlu2 %2751 }
 0x679   : > { %v2756_v11 = vsel %vm2755_vm8, %v2752_v38, %v2754_v60  ;;  %v2757_v1 = vsel %vm2755_vm8, %v2754_v60, %v2752_v38  ;;  %v5534_v14 = vpop.permute.xlu0 %2823  ;;  %v2700_v38 = vmul.f32 %v2698_v23, %v5506_v21 }
 0x67a   : > { %v2765_v47 = vmul.f32 %v2761_v56, %v2757_v1  ;;  %v2766_v45 = vmul.f32 %v2762_v17, %v2756_v11  ;;  %v3143_v11 = vld [vmem:[%s5649_s9 + $0x16] sm:$0x3] }
 0x67f   : > { %v2687_v49 = vpop.permute.xlu1 %2686 }
 0x680   : > { %v2774_v19 = vpop.permute.xlu2 %2773  ;;  %v2691_v6 = vmul.f32 %v2689_v2, %v2687_v49  ;;  %v2692_v33 = vmul.f32 %v2690_v16, %v2687_v49  ;;  %v2642_v49 = vperm.slane %v5513_v55, 0 }
 0x681   : > { %v5536_v46 = vpop.permute.xlu0 %2845  ;;  %v2778_v43 = vsel %vm2777_vm10, %v2774_v19, %v5509_v53 }
 0x682   : > { %v2708_v21 = vadd.f32 %v2700_v38, %v2692_v33  ;;  %v2788_v23 = vmul.f32 %v2784_v25, %v2778_v43  ;;  %v6149_v33 = vld [vmem:[#allocation3_spill] sm:$0xff]  ;;  %v3144_v38 = vld [vmem:[%s5649_s9 + $0x18] sm:$0x3] }
 0x687   : > { %v2729_v22 = vpop.permute.xlu1 %2728 }
 0x688   : > { %v2733_v28 = vsel %vm2732_vm9, %v2729_v22, %v2731_v5  ;;  %v2734_v54 = vsel %vm2732_vm9, %v2731_v5, %v2729_v22  ;;  %v2796_v50 = vpop.permute.xlu2 %2795  ;;  %v2682_v5 = vperm.slane %v5513_v55, 5  ;;  %v2651_v22 = vmul.f32 %v2649_v20, %v5517_v44 }
 0x689   : > { %v5542_v34 = vpop.permute.xlu0 %2867  ;;  %v2742_v51 = vmul.f32 %v2738_v15, %v2734_v54  ;;  %v2743_v36 = vmul.f32 %v2739_v7, %v2733_v28  ;;  %v2683_v28 = vmul.f32 %v2681_v58, %v5494_v30  ;;  %v2707_v7 = vadd.f32 %v2699_v61, %v2691_v6 }
 0x68a   : > { %v2684_v54 = vmul.f32 %v2682_v5, %v5494_v30  ;;  %v2779_v55 = vsel %vm2777_vm10, %v5509_v53, %v2774_v19  ;;  %v2800_v30 = vsel %vm2799_vm11, %v2796_v50, %v5520_v42  ;;  %v2801_v17 = vsel %vm2799_vm11, %v5520_v42, %v2796_v50  ;;  %v6148_v5 = vld [vmem:[#allocation2_spill] sm:$0xff] }
 0x68b   : > { %v2787_v13 = vmul.f32 %v2783_v27, %v2779_v55 }
 0x68c   : > { %v2706_v18 = vadd.f32 %v2684_v54, %v2676_v48 }
 0x68f   : > { %v2747_v10 = vpop.permute.xlu1 %2746 }
 0x690   : > { %v2749_v39 = vmul.f32 %v2747_v10, %v2742_v51  ;;  %v2750_v40 = vmul.f32 %v2747_v10, %v2743_v36  ;;  %v5568_v29 = vpop.permute.xlu2 %2818  ;;  %v2705_v10 = vadd.f32 %v2683_v28, %v2675_v63 }
 0x691   : > { %v5547_v24 = vpop.permute.xlu0 %2889 }
 0x698   : > { %v2769_v26 = vpop.permute.xlu1 %2768 }
 0x699   : > { %v2771_v9 = vmul.f32 %v2769_v26, %v2765_v47  ;;  %v2772_v60 = vmul.f32 %v2769_v26, %v2766_v45  ;;  %v5549_v0 = vpop.permute.xlu0 %2957  ;;  %v2841_v47 = vpop.permute.xlu2 %2840 }
 0x69b   : > { %v5551_v35 = vadd.f32 %v2771_v9, %v2749_v39  ;;  %v5553_v59 = vadd.f32 %v2772_v60, %v2750_v40  ;;  %v2805_v39 = vperm.slane %v3143_v11, 0  ;;  %v2806_v40 = vperm.slane %v3143_v11, 1 }
 0x69c   : > { %v2711_v9 = vadd.f32 %v2707_v7, %v2705_v10  ;;  %v2712_v60 = vadd.f32 %v2708_v21, %v2706_v18 }
 0x69d   : > { %v2809_v53 = vmul.f32 %v2805_v39, %v2801_v17  ;;  %v2810_v19 = vmul.f32 %v2806_v40, %v2800_v30 }
 0x6a1   : > { %v2791_v1 = vpop.permute.xlu1 %2790 }
 0x6a2   : > { %v2639_v15 = vpop.permute.xlu0 %2638  ;;  %v2793_v12 = vmul.f32 %v2791_v1, %v2787_v13  ;;  %v2794_v2 = vmul.f32 %v2791_v1, %v2788_v23  ;;  %v2863_v25 = vpop.permute.xlu2 %2862 }
 0x6a3   : > { %v2643_v51 = vmul.f32 %v2641_v32, %v2639_v15  ;;  %v2644_v36 = vmul.f32 %v2642_v49, %v2639_v15  ;;  %v3145_v32 = vld [vmem:[%s5649_s9 + $0x1a] sm:$0x3]  ;;  %v2833_v49 = vperm.slane %v3144_v38, 0 }
 0x6a4   : > { %v2855_v28 = vperm.slane %v3145_v32, 0  ;;  %v2856_v54 = vperm.slane %v3145_v32, 1 }
 0x6a5   : > { %v2701_v44 = vadd.f32 %v2651_v22, %v2643_v51  ;;  %v2702_v56 = vadd.f32 %v2652_v62, %v2644_v36  ;;  %v3146_v62 = vld [vmem:[%s5649_s9 + $0x1c] sm:$0x3] }
 0x6a6   : > { %v2877_v36 = vperm.slane %v3146_v62, 0  ;;  %v2878_v10 = vperm.slane %v3146_v62, 1 }
 0x6a7   : > { %v2709_v45 = vadd.f32 %v5530_v37, %v2701_v44  ;;  %v2710_v26 = vadd.f32 %v5532_v57, %v2702_v56 }
 0x6a9   : > { %v2713_v8 = vadd.f32 %v2711_v9, %v2709_v45  ;;  %v2714_v20 = vadd.f32 %v2712_v60, %v2710_v26  ;;  %v2821_v45 = vmul.f32 %v5568_v29, %v5376_v41  ;;  %v2822_v26 = vmul.f32 %v5568_v29, %v5358_v52 }
 0x6aa   : > { %v2813_v16 = vpop.permute.xlu1 %2812  ;;  %v2718_v3 = vpop.permute.xlu0 %2717 }
 0x6ab   : > { %v2815_v42 = vmul.f32 %v2813_v16, %v2809_v53  ;;  %v2816_v50 = vmul.f32 %v2813_v16, %v2810_v19  ;;  %v2720_v31 = vadd.f32 %v2718_v3, %v2713_v8  ;;  %v2721_v37 = vadd.f32 %v2718_v3, %v2714_v20  ;;  %v2885_v11 = vpop.permute.xlu2 %2884 }
 0x6ad   : > { %v2913_v58 = vadd.f32 %v2815_v42, %v2793_v12  ;;  %v2914_v57 = vadd.f32 %v2816_v50, %v2794_v2  ;;  %v2722_v6 = vadd.f32 %v2720_v31, %v6148_v5  ;;  %v2723_v27 = vadd.f32 %v2721_v37, %v6149_v33 }
 0x6af   : > { %v2919_v63 = vadd.f32 %v2913_v58, %v5551_v35  ;;  %v2920_v48 = vadd.f32 %v2914_v57, %v5553_v59  ;;  %3023 = vst [vmem:[%s5243_s24 + $0x20] sm:$0xff] %v2722_v6  ;;  %v2834_v35 = vperm.slane %v3144_v38, 1 }
 0x6b0   : > { %3024 = vst [vmem:[%s5243_s24 + $0x28] sm:$0xff] %v2723_v27 }
 0x6b2   : > { %v2826_v61 = vpop.permute.xlu1 %2825 }
 0x6b3   : > { %v2828_v59 = vsel %vm2827_vm12, %v5534_v14, %v2826_v61  ;;  %v2829_v22 = vsel %vm2827_vm12, %v2826_v61, %v5534_v14  ;;  %v2934_v61 = vpop.permute.xlu0 %2933 }
 0x6b4   : > { %v2837_v21 = vmul.f32 %v2833_v49, %v2828_v59  ;;  %v2838_v51 = vmul.f32 %v2834_v35, %v2829_v22  ;;  %v2907_v56 = vpop.permute.xlu2 %2906 }
 0x6b6   : > { %v2843_v55 = vmul.f32 %v2841_v47, %v2837_v21  ;;  %v2844_v44 = vmul.f32 %v2841_v47, %v2838_v51 }
 0x6b8   : > { %v2915_v53 = vadd.f32 %v2843_v55, %v2821_v45  ;;  %v2916_v19 = vadd.f32 %v2844_v44, %v2822_v26 }
 0x6ba   : > { %v2848_v1 = vpop.permute.xlu1 %2847 }
 0x6bb   : > { %v2850_v15 = vsel %vm2849_vm13, %v5536_v46, %v2848_v1  ;;  %v2851_v7 = vsel %vm2849_vm13, %v2848_v1, %v5536_v46  ;;  %v3147_v46 = vld [vmem:[%s5649_s9 + $0x1e] sm:$0x3] }
 0x6bc   : > { %v2859_v18 = vmul.f32 %v2855_v28, %v2850_v15  ;;  %v2860_v39 = vmul.f32 %v2856_v54, %v2851_v7  ;;  %v2900_v47 = vperm.slane %v3147_v46, 1 }
 0x6bd   : > { %v2950_v31 = vpop.permute.xlu2 %2949 }
 0x6be   : > { %v2865_v9 = vmul.f32 %v2863_v25, %v2859_v18  ;;  %v2866_v60 = vmul.f32 %v2863_v25, %v2860_v39 }
 0x6c2   : > { %v2870_v40 = vpop.permute.xlu1 %2869 }
 0x6c3   : > { %v2872_v14 = vsel %vm2871_vm14, %v5542_v34, %v2870_v40  ;;  %v2873_v43 = vsel %vm2871_vm14, %v2870_v40, %v5542_v34  ;;  %v2899_v34 = vperm.slane %v3147_v46, 0 }
 0x6c4   : > { %v2881_v30 = vmul.f32 %v2877_v36, %v2872_v14  ;;  %v2882_v17 = vmul.f32 %v2878_v10, %v2873_v43 }
 0x6c6   : > { %v2887_v13 = vmul.f32 %v2885_v11, %v2881_v30  ;;  %v2888_v23 = vmul.f32 %v2885_v11, %v2882_v17  ;;  %v2974_v15 = vpop.permute.xlu2 %2973 }
 0x6c8   : > { %v2917_v8 = vadd.f32 %v2887_v13, %v2865_v9  ;;  %v2918_v20 = vadd.f32 %v2888_v23, %v2866_v60 }
 0x6ca   : > { %v2921_v12 = vadd.f32 %v2917_v8, %v2915_v53  ;;  %v2922_v2 = vadd.f32 %v2918_v20, %v2916_v19  ;;  %v2892_v16 = vpop.permute.xlu1 %2891 }
 0x6cb   : > { %v2894_v41 = vsel %vm2893_vm15, %v5547_v24, %v2892_v16  ;;  %v2895_v3 = vsel %vm2893_vm15, %v2892_v16, %v5547_v24 }
 0x6cc   : > { %v2923_v52 = vadd.f32 %v2921_v12, %v2919_v63  ;;  %v2924_v29 = vadd.f32 %v2922_v2, %v2920_v48  ;;  %v2903_v42 = vmul.f32 %v2899_v34, %v2894_v41  ;;  %v2904_v50 = vmul.f32 %v2900_v47, %v2895_v3  ;;  %v3013_v3 = vpop.permute.xlu0 %3012 }
 0x6ce   : > { %v2909_v37 = vmul.f32 %v2907_v56, %v2903_v42  ;;  %v2910_v4 = vmul.f32 %v2907_v56, %v2904_v50 }
 0x6cf   : > { %v2990_v30 = vpop.permute.xlu2 %2989 }
 0x6d0   : > { %v2925_v58 = vadd.f32 %v2923_v52, %v2909_v37  ;;  %v2926_v57 = vadd.f32 %v2924_v29, %v2910_v4 }
 0x6d2   : > { %v2936_v6 = vperm.slane %v2925_v58, 0  ;;  %v2937_v27 = vperm.slane %v2926_v57, 0  ;;  %v2942_v25 = vpop.permute.xlu1 %2941  ;;  %v2944_v38 = vperm.slane %v2925_v58, 1  ;;  %v2945_v11 = vperm.slane %v2926_v57, 1 }
 0x6d3   : > { %v2952_v1 = vperm.slane %v2925_v58, 2  ;;  %v2953_v32 = vperm.slane %v2926_v57, 2  ;;  %v2960_v48 = vperm.slane %v2925_v58, 3  ;;  %v2961_v59 = vperm.slane %v2926_v57, 3 }
 0x6d4   : > { %v2938_v49 = vmul.f32 %v2936_v6, %v2934_v61  ;;  %v2939_v35 = vmul.f32 %v2937_v27, %v2934_v61  ;;  %v2946_v22 = vmul.f32 %v2944_v38, %v2942_v25  ;;  %v2947_v62 = vmul.f32 %v2945_v11, %v2942_v25 }
 0x6d5   : > { %v2954_v24 = vmul.f32 %v2952_v1, %v2950_v31  ;;  %v2955_v63 = vmul.f32 %v2953_v32, %v2950_v31  ;;  %v2962_v28 = vmul.f32 %v2960_v48, %v5549_v0  ;;  %v2963_v54 = vmul.f32 %v2961_v59, %v5549_v0 }
 0x6d6   : > { %v2996_v7 = vadd.f32 %v2946_v22, %v2938_v49  ;;  %v2997_v21 = vadd.f32 %v2947_v62, %v2939_v35  ;;  %v2976_v40 = vperm.slane %v2925_v58, 5  ;;  %v2977_v14 = vperm.slane %v2926_v57, 5 }
 0x6d7   : > { %v2998_v51 = vadd.f32 %v2962_v28, %v2954_v24  ;;  %v2999_v36 = vadd.f32 %v2963_v54, %v2955_v63  ;;  %v2992_v43 = vperm.slane %v2925_v58, 7  ;;  %v2993_v55 = vperm.slane %v2926_v57, 7 }
 0x6d8   : > { %v2968_v44 = vperm.slane %v2925_v58, 4  ;;  %v2969_v56 = vperm.slane %v2926_v57, 4  ;;  %v2984_v45 = vperm.slane %v2925_v58, 6  ;;  %v2985_v26 = vperm.slane %v2926_v57, 6 }
 0x6d9   : > { %v3004_v10 = vadd.f32 %v2998_v51, %v2996_v7  ;;  %v3005_v18 = vadd.f32 %v2999_v36, %v2997_v21  ;;  %v2978_v0 = vmul.f32 %v2976_v40, %v2974_v15  ;;  %v2979_v9 = vmul.f32 %v2977_v14, %v2974_v15 }
 0x6da   : > { %v2994_v13 = vmul.f32 %v2992_v43, %v2990_v30  ;;  %v2995_v23 = vmul.f32 %v2993_v55, %v2990_v30 }
 0x6db   : > { %v2966_v39 = vpop.permute.xlu1 %2965 }
 0x6dc   : > { %v2970_v17 = vmul.f32 %v2968_v44, %v2966_v39  ;;  %v2971_v46 = vmul.f32 %v2969_v56, %v2966_v39 }
 0x6de   : > { %v3000_v53 = vadd.f32 %v2978_v0, %v2970_v17  ;;  %v3001_v19 = vadd.f32 %v2979_v9, %v2971_v46 }
 0x6e4   : > { %v2982_v60 = vpop.permute.xlu1 %2981 }
 0x6e5   : > { %v2986_v34 = vmul.f32 %v2984_v45, %v2982_v60  ;;  %v2987_v47 = vmul.f32 %v2985_v26, %v2982_v60 }
 0x6e7   : > { %v3002_v8 = vadd.f32 %v2994_v13, %v2986_v34  ;;  %v3003_v20 = vadd.f32 %v2995_v23, %v2987_v47 }
 0x6e9   : > { %v3006_v12 = vadd.f32 %v3002_v8, %v3000_v53  ;;  %v3007_v2 = vadd.f32 %v3003_v20, %v3001_v19 }
 0x6eb   : > { %v3008_v16 = vadd.f32 %v3006_v12, %v3004_v10  ;;  %v3009_v41 = vadd.f32 %v3007_v2, %v3005_v18 }
 0x6ed   : > { %v3015_v52 = vadd.f32 %v3013_v3, %v3008_v16  ;;  %v3016_v29 = vadd.f32 %v3013_v3, %v3009_v41 }
 0x6ef   : > { %v3017_v42 = vadd.f32 %v3015_v52, %v6148_v5  ;;  %v3018_v50 = vadd.f32 %v3016_v29, %v6149_v33 }
 0x6f1   : > { %3025 = vst [vmem:[%s5243_s24 + $0x30] sm:$0xff] %v3017_v42 }
 0x6f2   : > { %3026 = vst [vmem:[%s5243_s24 + $0x38] sm:$0xff] %v3018_v50 }
 0x6f3 PF: > { %s20_s13 = sadd.s32 1, %s3391_s13  }
 0x6f4   : > { %p17_p4 = scmp.ge.s32.totalorder %s20_s13, 4  }
 0x6f6   :  { %19 = sbr.rel (!%p17_p4) target bundleno = 1 (0x1), region = 138 }

</bundles_post_ra>
